<compile_context>
chip_gen: v7x
topology: tpu7x:2x2x1
jax: 0.10.0
libtpu: 0.0.40
codegen_flags: <defaults>
</compile_context>

<pallas_src>
import functools

import jax
import jax.numpy as jnp
from jax.experimental import pallas as pl
from jax.experimental.pallas import tpu as pltpu


def _round_up(x, m):
    return ((x + m - 1) // m) * m


# ----------------------------------------------------------------------------
# VMEM budgeting (per review: derive tile_t / vmem limit, don't hard-code)
# ----------------------------------------------------------------------------
def _layer_vmem_bytes(tile_t, b_p, h_p, src_dims):
    """Rough per-call VMEM footprint: double-buffered blocks + scratch."""
    g = 4 * h_p
    x_blk = 2 * sum(tile_t * b_p * d * 2 for d in src_dims)      # fwd+bwd, bf16
    w_ih = 2 * sum(d * g * 2 for d in src_dims)                  # fwd+bwd, bf16
    w_hh = 2 * h_p * g * 2                                       # bf16
    bias = 2 * g * 4                                             # f32
    outs = 2 * tile_t * b_p * h_p * 2                            # bf16
    h_out = 2 * b_p * h_p * 4                                    # f32
    lens = b_p * 128 * 4                                         # padded lanes
    pipelined = 2 * (x_blk + w_ih + w_hh + bias + outs + h_out + lens)
    scratch = 2 * tile_t * b_p * g * 4 + 4 * b_p * h_p * 4
    return pipelined + scratch


def _auto_tile_t(seq_len, b_p, h_p, src_dims_layers, budget=24 << 20):
    """Largest time tile whose per-layer footprint fits the VMEM budget."""
    cap = max(8, _round_up(seq_len, 8))
    for cand in (32, 16, 8):
        if cand > cap:
            continue
        worst = max(_layer_vmem_bytes(cand, b_p, h_p, d)
                    for d in src_dims_layers)
        if worst <= budget:
            return cand
    return 8


def _vmem_limit(estimate_bytes):
    # headroom over the estimate, clamped to sane scoped-VMEM bounds
    return int(min(100 << 20, max(32 << 20, 2 * estimate_bytes)))


# ----------------------------------------------------------------------------
# Fused per-layer kernel: block input projection (both directions) + fwd/bwd
# recurrent scan with length masking, h/c carried in VMEM scratch across the
# time-block grid.
# ----------------------------------------------------------------------------
def _bilstm_layer_kernel(*refs, tile_t, b_p, h, n_src):
    # ---- unpack refs (inputs, outputs, scratch in pallas_call order) -------
    k = 0
    len_ref = refs[k]; k += 1
    xf_refs = refs[k:k + n_src]; k += n_src          # x blocks, fwd time walk
    xb_refs = refs[k:k + n_src]; k += n_src          # x blocks, bwd time walk
    wf_refs = refs[k:k + n_src]; k += n_src          # W_ih for fwd gates
    wb_refs = refs[k:k + n_src]; k += n_src          # W_ih for bwd gates
    bf_ref, bb_ref, whhf_ref, whhb_ref = refs[k:k + 4]; k += 4
    of_ref, ob_ref, hfo_ref, hbo_ref = refs[k:k + 4]; k += 4
    gf_sc, gb_sc, hf_sc, cf_sc, hb_sc, cb_sc = refs[k:k + 6]

    i = pl.program_id(0)
    nb = pl.num_programs(0)

    @pl.when(i == 0)
    def _():
        hf_sc[...] = jnp.zeros_like(hf_sc)
        cf_sc[...] = jnp.zeros_like(cf_sc)
        hb_sc[...] = jnp.zeros_like(hb_sc)
        cb_sc[...] = jnp.zeros_like(cb_sc)

    # ---- fused input projection for the whole time block (off the serial
    #      path): gates_pre = bias + sum_s x_s @ W_s for all tile_t steps.
    #      Everything is a single MXU-friendly (tile_t*B_P, D)x(D, 4H_P) dot.
    def project(x_refs, w_refs, b_ref, g_sc):
        acc = b_ref[...]                                   # (1, 4H_P) f32
        for x_ref, w_ref in zip(x_refs, w_refs):
            acc = acc + jnp.dot(x_ref[...], w_ref[...],
                                preferred_element_type=jnp.float32)
        g_sc[...] = acc                                    # (tile_t*B_P, 4H_P)

    project(xf_refs, wf_refs, bf_ref, gf_sc)
    project(xb_refs, wb_refs, bb_ref, gb_sc)

    lens = len_ref[...]                  # (B_P, 1) int32
    t0_f = i * tile_t                    # global time of fwd-block row 0
    t0_b = (nb - 1 - i) * tile_t         # global time of bwd-block row 0

    def cell(g_pre, h_prev, c_prev, whh_ref, t):
        # only the hidden recurrence is on the serial MXU critical path
        gates = g_pre + jnp.dot(h_prev.astype(jnp.bfloat16), whh_ref[...],
                                preferred_element_type=jnp.float32)
        # PyTorch gate order: input, forget, cell, output (128-lane aligned)
        i_g = jax.nn.sigmoid(gates[:, 0 * h:1 * h])
        f_g = jax.nn.sigmoid(gates[:, 1 * h:2 * h])
        g_g = jnp.tanh(gates[:, 2 * h:3 * h])
        o_g = jax.nn.sigmoid(gates[:, 3 * h:4 * h])
        c_new = f_g * c_prev + i_g * g_g
        h_new = o_g * jnp.tanh(c_new)
        valid = t < lens                                   # (B_P, 1) bool
        return (jnp.where(valid, h_new, h_prev),           # carried h
                jnp.where(valid, c_new, c_prev),           # carried c
                jnp.where(valid, h_new, 0.0))              # packed-seq output

    # h / c carried as values; scratch written once per block (not per step).
    # tile_t is small so a statically unrolled loop with static indices is
    # used; for much larger tile_t switch to lax.fori_loop(..., unroll=True).
    hf, cf = hf_sc[...], cf_sc[...]
    hb, cb = hb_sc[...], cb_sc[...]
    for j in range(tile_t):
        rb = tile_t - 1 - j
        rf0, rb0 = j * b_p, rb * b_p
        hf, cf, out_f = cell(gf_sc[rf0:rf0 + b_p, :], hf, cf, whhf_ref,
                             t0_f + j)
        of_ref[rf0:rf0 + b_p, :] = out_f.astype(of_ref.dtype)
        hb, cb, out_b = cell(gb_sc[rb0:rb0 + b_p, :], hb, cb, whhb_ref,
                             t0_b + rb)
        ob_ref[rb0:rb0 + b_p, :] = out_b.astype(ob_ref.dtype)
    hf_sc[...], cf_sc[...] = hf, cf
    hb_sc[...], cb_sc[...] = hb, cb

    @pl.when(i == nb - 1)
    def _():
        hfo_ref[...] = hf
        hbo_ref[...] = hb


def bilstm_layer(xs, layer, lens2d, *, b_p, tile_t, vmem_limit):
    """One bidirectional LSTM layer. xs: list of (T_P*B_P, D_s) bf16 slabs."""
    rows = xs[0].shape[0]                  # T_P * B_P (time-major flattening)
    blk = tile_t * b_p
    nb = rows // blk
    h_p = layer['whh_f'].shape[0]
    g = 4 * h_p
    n_src = len(xs)

    x_fwd_specs = [pl.BlockSpec((blk, x.shape[1]), lambda i: (i, 0))
                   for x in xs]
    x_bwd_specs = [pl.BlockSpec((blk, x.shape[1]), lambda i: (nb - 1 - i, 0))
                   for x in xs]
    w_specs = [pl.BlockSpec(w.shape, lambda i: (0, 0))
               for w in (*layer['w_f'], *layer['w_b'])]
    const_specs = [pl.BlockSpec(layer['b_f'].shape, lambda i: (0, 0)),
                   pl.BlockSpec(layer['b_b'].shape, lambda i: (0, 0)),
                   pl.BlockSpec(layer['whh_f'].shape, lambda i: (0, 0)),
                   pl.BlockSpec(layer['whh_b'].shape, lambda i: (0, 0))]
    in_specs = ([pl.BlockSpec((b_p, 1), lambda i: (0, 0))]      # lengths
                + x_fwd_specs + x_bwd_specs + w_specs + const_specs)

    out_shape = (jax.ShapeDtypeStruct((rows, h_p), jnp.bfloat16),   # out fwd
                 jax.ShapeDtypeStruct((rows, h_p), jnp.bfloat16),   # out bwd
                 jax.ShapeDtypeStruct((b_p, h_p), jnp.float32),     # final h fwd
                 jax.ShapeDtypeStruct((b_p, h_p), jnp.float32))     # final h bwd
    out_specs = [pl.BlockSpec((blk, h_p), lambda i: (i, 0)),
                 pl.BlockSpec((blk, h_p), lambda i: (nb - 1 - i, 0)),
                 pl.BlockSpec((b_p, h_p), lambda i: (0, 0)),
                 pl.BlockSpec((b_p, h_p), lambda i: (0, 0))]
    scratch_shapes = [pltpu.VMEM((blk, g), jnp.float32),    # fwd gate pre-acts
                      pltpu.VMEM((blk, g), jnp.float32),    # bwd gate pre-acts
                      pltpu.VMEM((b_p, h_p), jnp.float32),  # h fwd
                      pltpu.VMEM((b_p, h_p), jnp.float32),  # c fwd
                      pltpu.VMEM((b_p, h_p), jnp.float32),  # h bwd
                      pltpu.VMEM((b_p, h_p), jnp.float32)]  # c bwd

    return pl.pallas_call(
        functools.partial(_bilstm_layer_kernel, tile_t=tile_t, b_p=b_p,
                          h=h_p, n_src=n_src),
        out_shape=out_shape,
        grid_spec=pltpu.PrefetchScalarGridSpec(
            num_scalar_prefetch=0,
            grid=(nb,),
            in_specs=in_specs,
            out_specs=out_specs,
            scratch_shapes=scratch_shapes),
        compiler_params=pltpu.CompilerParams(
            dimension_semantics=("arbitrary",),   # time grid is sequential
            vmem_limit_bytes=vmem_limit),
    )(lens2d, *xs, *xs, *layer['w_f'], *layer['w_b'],
      layer['b_f'], layer['b_b'], layer['whh_f'], layer['whh_b'])


# ----------------------------------------------------------------------------
# Parameters (deterministic, padded/split layout; padded rows/cols are zero so
# semantics match the unpadded PyTorch shapes exactly)
# ----------------------------------------------------------------------------
def init_params(key, vocab, emb_dim, hid_dim, out_dim, n_layers, pad_idx, *,
                h_pad):
    H, H_P = hid_dim, h_pad
    params = {}

    key, k_emb = jax.random.split(key)
    emb = jax.random.normal(k_emb, (vocab, emb_dim), jnp.float32) * 0.1
    emb = emb.at[pad_idx].set(0.0)               # nn.Embedding padding_idx
    params['embedding'] = emb

    stdv = 1.0 / float(H) ** 0.5

    def unif(k, shape):
        return jax.random.uniform(k, shape, jnp.float32, -stdv, stdv)

    def pad_gate_cols(w):
        # (Din, 4H) -> (Din, 4H_P); gate g's real cols live at [g*H_P, g*H_P+H)
        din = w.shape[0]
        out = jnp.zeros((din, 4 * H_P), w.dtype)
        for gi in range(4):
            out = out.at[:, gi * H_P:gi * H_P + H].set(w[:, gi * H:(gi + 1) * H])
        return out

    def pad_rows(w, rows):
        return jnp.pad(w, ((0, rows - w.shape[0]), (0, 0)))

    layers = []
    in_dim = emb_dim
    for layer_idx in range(n_layers):
        key, *ks = jax.random.split(key, 9)
        dirs = []
        for k1, k2, k3, k4 in (ks[0:4], ks[4:8]):
            w_ih = unif(k1, (in_dim, 4 * H))                 # W_ih^T
            w_hh = unif(k2, (H, 4 * H))                      # W_hh^T
            b = (unif(k3, (4 * H,)) + unif(k4, (4 * H,))).reshape(1, 4 * H)
            dirs.append((w_ih, w_hh, b))

        if layer_idx == 0:
            w_f = [pad_gate_cols(dirs[0][0]).astype(jnp.bfloat16)]
            w_b = [pad_gate_cols(dirs[1][0]).astype(jnp.bfloat16)]
        else:
            # layer input = [prev fwd out | prev bwd out], kept as two separate
            # bf16 streams so the inter-layer concat is never materialized
            w_f = [pad_rows(pad_gate_cols(dirs[0][0][:H]), H_P).astype(jnp.bfloat16),
                   pad_rows(pad_gate_cols(dirs[0][0][H:]), H_P).astype(jnp.bfloat16)]
            w_b = [pad_rows(pad_gate_cols(dirs[1][0][:H]), H_P).astype(jnp.bfloat16),
                   pad_rows(pad_gate_cols(dirs[1][0][H:]), H_P).astype(jnp.bfloat16)]

        layers.append({
            'w_f': w_f, 'w_b': w_b,
            'b_f': pad_gate_cols(dirs[0][2]),                       # f32 (1,4H_P)
            'b_b': pad_gate_cols(dirs[1][2]),
            'whh_f': pad_rows(pad_gate_cols(dirs[0][1]), H_P).astype(jnp.bfloat16),
            'whh_b': pad_rows(pad_gate_cols(dirs[1][1]), H_P).astype(jnp.bfloat16),
        })
        in_dim = 2 * H
    params['lstm'] = layers

    key, k_w, k_b = jax.random.split(key, 3)
    params['fc_w'] = unif(k_w, (2 * H, out_dim))
    params['fc_b'] = unif(k_b, (1, out_dim))
    return params


# ----------------------------------------------------------------------------
# Forward pass (mirrors BiLSTM.forward with noise_layer=False, eval dropout)
# ----------------------------------------------------------------------------
def bilstm_forward(params, text, lengths, *, hid_dim, tile_t=None):
    H = hid_dim
    H_P = params['lstm'][0]['whh_f'].shape[0]
    E = params['embedding'].shape[1]
    T, B = text.shape
    B_P = _round_up(B, 8)
    n_layers = len(params['lstm'])

    src_dims = [[E]] + [[H_P, H_P]] * (n_layers - 1)
    if tile_t is None:
        tile_t = _auto_tile_t(T, B_P, H_P, src_dims)
    T_P = _round_up(T, tile_t)

    # embedding lookup (plain JAX gather) + eval-mode dropout = identity
    x = params['embedding'][text]                              # (T, B, E) f32
    x = jnp.pad(x, ((0, T_P - T), (0, B_P - B), (0, 0)))       # zero time/batch pad
    x = x.reshape(T_P * B_P, E).astype(jnp.bfloat16)           # time-major rows
    lens2d = jnp.pad(lengths.astype(jnp.int32), (0, B_P - B)).reshape(B_P, 1)

    xs = [x]
    hf = hb = None
    for layer, dims in zip(params['lstm'], src_dims):
        vmem_limit = _vmem_limit(_layer_vmem_bytes(tile_t, B_P, H_P, dims))
        out_f, out_b, hf, hb = bilstm_layer(xs, layer, lens2d, b_p=B_P,
                                            tile_t=tile_t,
                                            vmem_limit=vmem_limit)
        xs = [out_f, out_b]        # inter-layer dropout: identity in eval mode

    # hidden[-2] = last-layer fwd final h, hidden[-1] = last-layer bwd final h
    original_hidden = jnp.concatenate([hf[:B, :H], hb[:B, :H]], axis=1)
    # noise_layer=False path; dropout(eval)=identity.
    # Tiny (B,2H)x(2H,O) projection left to XLA (cheaper than a kernel launch).
    prediction = original_hidden @ params['fc_w'] + params['fc_b']
    return prediction, original_hidden


if __name__ == "__main__":
    V, E, H, O, NL, PAD = 50, 32, 32, 4, 2, 0
    T, B = 8, 4
    H_P = _round_up(H, 128)

    key = jax.random.PRNGKey(0)
    kp, kt = jax.random.split(key)
    params = init_params(kp, V, E, H, O, NL, PAD, h_pad=H_P)

    lengths = jnp.array([8, 5, 3, 6], dtype=jnp.int32)
    tokens = jax.random.randint(kt, (T, B), 1, V, dtype=jnp.int32)
    pad_mask = jnp.arange(T)[:, None] < lengths[None, :]
    text = jnp.where(pad_mask, tokens, PAD)                    # (T, B) time-major

    fwd = jax.jit(functools.partial(bilstm_forward, hid_dim=H))
    pred, hidden = fwd(params, text, lengths)
    jax.block_until_ready(pred)

    assert pred.shape == (B, O) and hidden.shape == (B, 2 * H)
    assert bool(jnp.all(jnp.isfinite(pred)))
    assert bool(jnp.all(jnp.isfinite(hidden)))
    print("KERNEL_OK")
</pallas_src>

<mosaic_0001>
module attributes {stable_mosaic.version = 11 : i64} {
  func.func @_bilstm_layer_kernel(%arg0: i32, %arg1: memref<8x1xi32, #tpu.memory_space<vmem>>, %arg2: memref<64x32xbf16, #tpu.memory_space<vmem>>, %arg3: memref<64x32xbf16, #tpu.memory_space<vmem>>, %arg4: memref<32x512xbf16, #tpu.memory_space<vmem>>, %arg5: memref<32x512xbf16, #tpu.memory_space<vmem>>, %arg6: memref<1x512xf32, #tpu.memory_space<vmem>>, %arg7: memref<1x512xf32, #tpu.memory_space<vmem>>, %arg8: memref<128x512xbf16, #tpu.memory_space<vmem>>, %arg9: memref<128x512xbf16, #tpu.memory_space<vmem>>, %arg10: memref<64x128xbf16, #tpu.memory_space<vmem>>, %arg11: memref<64x128xbf16, #tpu.memory_space<vmem>>, %arg12: memref<8x128xf32, #tpu.memory_space<vmem>>, %arg13: memref<8x128xf32, #tpu.memory_space<vmem>>, %arg14: memref<64x512xf32, #tpu.memory_space<vmem>>, %arg15: memref<64x512xf32, #tpu.memory_space<vmem>>, %arg16: memref<8x128xf32, #tpu.memory_space<vmem>>, %arg17: memref<8x128xf32, #tpu.memory_space<vmem>>, %arg18: memref<8x128xf32, #tpu.memory_space<vmem>>, %arg19: memref<8x128xf32, #tpu.memory_space<vmem>>) attributes {dimension_semantics = [#tpu.dimension_semantics<arbitrary>], iteration_bounds = array<i64: 1>, scalar_prefetch = 0 : i64, scratch_operands = 6 : i64, tpu.core_type = #tpu.core_type<tc>, window_params = [{pipeline_mode = #tpu.pipeline_mode<synchronous>, transform_indices = @transform_0, window_bounds = array<i64: 8, 1>}, {transform_indices = @transform_1, window_bounds = array<i64: 64, 32>}, {transform_indices = @transform_2, window_bounds = array<i64: 64, 32>}, {pipeline_mode = #tpu.pipeline_mode<synchronous>, transform_indices = @transform_3, window_bounds = array<i64: 32, 512>}, {pipeline_mode = #tpu.pipeline_mode<synchronous>, transform_indices = @transform_4, window_bounds = array<i64: 32, 512>}, {pipeline_mode = #tpu.pipeline_mode<synchronous>, transform_indices = @transform_5, window_bounds = array<i64: 1, 512>}, {pipeline_mode = #tpu.pipeline_mode<synchronous>, transform_indices = @transform_6, window_bounds = array<i64: 1, 512>}, {pipeline_mode = #tpu.pipeline_mode<synchronous>, transform_indices = @transform_7, window_bounds = array<i64: 128, 512>}, {pipeline_mode = #tpu.pipeline_mode<synchronous>, transform_indices = @transform_8, window_bounds = array<i64: 128, 512>}, {transform_indices = @transform_9, window_bounds = array<i64: 64, 128>}, {transform_indices = @transform_10, window_bounds = array<i64: 64, 128>}, {pipeline_mode = #tpu.pipeline_mode<synchronous>, transform_indices = @transform_11, window_bounds = array<i64: 8, 128>}, {pipeline_mode = #tpu.pipeline_mode<synchronous>, transform_indices = @transform_12, window_bounds = array<i64: 8, 128>}]} {
    %c0_i32 = arith.constant 0 : i32
    %0 = arith.cmpi eq, %arg0, %c0_i32 : i32
    %1 = arith.extui %0 : i1 to i32
    %c0_i32_0 = arith.constant 0 : i32
    %2 = arith.cmpi ne, %1, %c0_i32_0 : i32
    scf.if %2 {
      %cst_217 = arith.constant 0.000000e+00 : f32
      %752 = vector.broadcast %cst_217 : f32 to vector<8x128xf32>
      %c0_218 = arith.constant 0 : index
      %c0_219 = arith.constant 0 : index
      %753 = vector.load %arg16[%c0_218, %c0_219] : memref<8x128xf32, #tpu.memory_space<vmem>>, vector<8x128xf32>
      tpu.vector_store %arg16[%c0_218, %c0_219], %752 {strides = array<i32>} : memref<8x128xf32, #tpu.memory_space<vmem>>, vector<8x128xf32>,
      %cst_220 = arith.constant 0.000000e+00 : f32
      %754 = vector.broadcast %cst_220 : f32 to vector<8x128xf32>
      %c0_221 = arith.constant 0 : index
      %c0_222 = arith.constant 0 : index
      %755 = vector.load %arg17[%c0_221, %c0_222] : memref<8x128xf32, #tpu.memory_space<vmem>>, vector<8x128xf32>
      tpu.vector_store %arg17[%c0_221, %c0_222], %754 {strides = array<i32>} : memref<8x128xf32, #tpu.memory_space<vmem>>, vector<8x128xf32>,
      %cst_223 = arith.constant 0.000000e+00 : f32
      %756 = vector.broadcast %cst_223 : f32 to vector<8x128xf32>
      %c0_224 = arith.constant 0 : index
      %c0_225 = arith.constant 0 : index
      %757 = vector.load %arg18[%c0_224, %c0_225] : memref<8x128xf32, #tpu.memory_space<vmem>>, vector<8x128xf32>
      tpu.vector_store %arg18[%c0_224, %c0_225], %756 {strides = array<i32>} : memref<8x128xf32, #tpu.memory_space<vmem>>, vector<8x128xf32>,
      %cst_226 = arith.constant 0.000000e+00 : f32
      %758 = vector.broadcast %cst_226 : f32 to vector<8x128xf32>
      %c0_227 = arith.constant 0 : index
      %c0_228 = arith.constant 0 : index
      %759 = vector.load %arg19[%c0_227, %c0_228] : memref<8x128xf32, #tpu.memory_space<vmem>>, vector<8x128xf32>
      tpu.vector_store %arg19[%c0_227, %c0_228], %758 {strides = array<i32>} : memref<8x128xf32, #tpu.memory_space<vmem>>, vector<8x128xf32>,
    } else {
    }
    %c0 = arith.constant 0 : index
    %c0_1 = arith.constant 0 : index
    %3 = vector.load %arg6[%c0, %c0_1] : memref<1x512xf32, #tpu.memory_space<vmem>>, vector<1x512xf32>
    %c0_2 = arith.constant 0 : index
    %c0_3 = arith.constant 0 : index
    %4 = vector.load %arg2[%c0_2, %c0_3] : memref<64x32xbf16, #tpu.memory_space<vmem>>, vector<64x32xbf16>
    %c0_4 = arith.constant 0 : index
    %c0_5 = arith.constant 0 : index
    %5 = vector.load %arg4[%c0_4, %c0_5] : memref<32x512xbf16, #tpu.memory_space<vmem>>, vector<32x512xbf16>
    %cst = arith.constant dense<0.000000e+00> : vector<64x512xf32>
    %6 = tpu.matmul %4, %5, %cst {dimension_numbers = #tpu.dot_dimension_numbers<[1], [0], [0], [1], [0, 0, 1, 1], [], []>} : vector<64x32xbf16>, vector<32x512xbf16>, vector<64x512xf32> -> vector<64x512xf32>
    %7 = vector.broadcast %3 : vector<1x512xf32> to vector<64x512xf32>
    %8 = arith.addf %7, %6 : vector<64x512xf32>
    %c0_6 = arith.constant 0 : index
    %c0_7 = arith.constant 0 : index
    %9 = vector.load %arg14[%c0_6, %c0_7] : memref<64x512xf32, #tpu.memory_space<vmem>>, vector<64x512xf32>
    tpu.vector_store %arg14[%c0_6, %c0_7], %8 {strides = array<i32>} : memref<64x512xf32, #tpu.memory_space<vmem>>, vector<64x512xf32>,
    %c0_8 = arith.constant 0 : index
    %c0_9 = arith.constant 0 : index
    %10 = vector.load %arg7[%c0_8, %c0_9] : memref<1x512xf32, #tpu.memory_space<vmem>>, vector<1x512xf32>
    %c0_10 = arith.constant 0 : index
    %c0_11 = arith.constant 0 : index
    %11 = vector.load %arg3[%c0_10, %c0_11] : memref<64x32xbf16, #tpu.memory_space<vmem>>, vector<64x32xbf16>
    %c0_12 = arith.constant 0 : index
    %c0_13 = arith.constant 0 : index
    %12 = vector.load %arg5[%c0_12, %c0_13] : memref<32x512xbf16, #tpu.memory_space<vmem>>, vector<32x512xbf16>
    %cst_14 = arith.constant dense<0.000000e+00> : vector<64x512xf32>
    %13 = tpu.matmul %11, %12, %cst_14 {dimension_numbers = #tpu.dot_dimension_numbers<[1], [0], [0], [1], [0, 0, 1, 1], [], []>} : vector<64x32xbf16>, vector<32x512xbf16>, vector<64x512xf32> -> vector<64x512xf32>
    %14 = vector.broadcast %10 : vector<1x512xf32> to vector<64x512xf32>
    %15 = arith.addf %14, %13 : vector<64x512xf32>
    %c0_15 = arith.constant 0 : index
    %c0_16 = arith.constant 0 : index
    %16 = vector.load %arg15[%c0_15, %c0_16] : memref<64x512xf32, #tpu.memory_space<vmem>>, vector<64x512xf32>
    tpu.vector_store %arg15[%c0_15, %c0_16], %15 {strides = array<i32>} : memref<64x512xf32, #tpu.memory_space<vmem>>, vector<64x512xf32>,
    %c0_17 = arith.constant 0 : index
    %c0_18 = arith.constant 0 : index
    %17 = vector.load %arg1[%c0_17, %c0_18] : memref<8x1xi32, #tpu.memory_space<vmem>>, vector<8x1xi32>
    %c8_i32 = arith.constant 8 : i32
    %18 = arith.muli %arg0, %c8_i32 : i32
    %c0_i32_19 = arith.constant 0 : i32
    %19 = arith.subi %c0_i32_19, %arg0 : i32
    %c8_i32_20 = arith.constant 8 : i32
    %20 = arith.muli %19, %c8_i32_20 : i32
    %c0_21 = arith.constant 0 : index
    %c0_22 = arith.constant 0 : index
    %21 = vector.load %arg16[%c0_21, %c0_22] : memref<8x128xf32, #tpu.memory_space<vmem>>, vector<8x128xf32>
    %c0_23 = arith.constant 0 : index
    %c0_24 = arith.constant 0 : index
    %22 = vector.load %arg17[%c0_23, %c0_24] : memref<8x128xf32, #tpu.memory_space<vmem>>, vector<8x128xf32>
    %c0_25 = arith.constant 0 : index
    %c0_26 = arith.constant 0 : index
    %23 = vector.load %arg18[%c0_25, %c0_26] : memref<8x128xf32, #tpu.memory_space<vmem>>, vector<8x128xf32>
    %c0_27 = arith.constant 0 : index
    %c0_28 = arith.constant 0 : index
    %24 = vector.load %arg19[%c0_27, %c0_28] : memref<8x128xf32, #tpu.memory_space<vmem>>, vector<8x128xf32>
    %c0_29 = arith.constant 0 : index
    %c0_30 = arith.constant 0 : index
    %25 = vector.load %arg14[%c0_29, %c0_30] : memref<64x512xf32, #tpu.memory_space<vmem>>, vector<8x512xf32>
    %c0_i32_31 = arith.constant 0 : i32
    %26 = arith.addi %18, %c0_i32_31 : i32
    %27 = arith.truncf %21 : vector<8x128xf32> to vector<8x128xbf16>
    %c0_32 = arith.constant 0 : index
    %c0_33 = arith.constant 0 : index
    %28 = vector.load %arg8[%c0_32, %c0_33] : memref<128x512xbf16, #tpu.memory_space<vmem>>, vector<128x512xbf16>
    %cst_34 = arith.constant dense<0.000000e+00> : vector<8x512xf32>
    %29 = tpu.matmul %27, %28, %cst_34 {dimension_numbers = #tpu.dot_dimension_numbers<[1], [0], [0], [1], [0, 0, 1, 1], [], []>} : vector<8x128xbf16>, vector<128x512xbf16>, vector<8x512xf32> -> vector<8x512xf32>
    %30 = arith.addf %25, %29 : vector<8x512xf32>
    %31 = vector.extract_strided_slice %30 {offsets = [0, 0], sizes = [8, 128], strides = [1, 1]} : vector<8x512xf32> to vector<8x128xf32>
    %32 = arith.negf %31 : vector<8x128xf32>
    %33 = math.exp %32 : vector<8x128xf32>
    %cst_35 = arith.constant 1.000000e+00 : f32
    %34 = vector.broadcast %cst_35 : f32 to vector<8x128xf32>
    %35 = arith.addf %34, %33 : vector<8x128xf32>
    %36 = arith.divf %34, %35 : vector<8x128xf32>
    %37 = vector.extract_strided_slice %30 {offsets = [0, 128], sizes = [8, 128], strides = [1, 1]} : vector<8x512xf32> to vector<8x128xf32>
    %38 = arith.negf %37 : vector<8x128xf32>
    %39 = math.exp %38 : vector<8x128xf32>
    %cst_36 = arith.constant 1.000000e+00 : f32
    %40 = vector.broadcast %cst_36 : f32 to vector<8x128xf32>
    %41 = arith.addf %40, %39 : vector<8x128xf32>
    %42 = arith.divf %40, %41 : vector<8x128xf32>
    %43 = vector.extract_strided_slice %30 {offsets = [0, 256], sizes = [8, 128], strides = [1, 1]} : vector<8x512xf32> to vector<8x128xf32>
    %44 = math.tanh %43 : vector<8x128xf32>
    %45 = vector.extract_strided_slice %30 {offsets = [0, 384], sizes = [8, 128], strides = [1, 1]} : vector<8x512xf32> to vector<8x128xf32>
    %46 = arith.negf %45 : vector<8x128xf32>
    %47 = math.exp %46 : vector<8x128xf32>
    %cst_37 = arith.constant 1.000000e+00 : f32
    %48 = vector.broadcast %cst_37 : f32 to vector<8x128xf32>
    %49 = arith.addf %48, %47 : vector<8x128xf32>
    %50 = arith.divf %48, %49 : vector<8x128xf32>
    %51 = arith.mulf %42, %22 : vector<8x128xf32>
    %52 = arith.mulf %36, %44 : vector<8x128xf32>
    %53 = arith.addf %51, %52 : vector<8x128xf32>
    %54 = math.tanh %53 : vector<8x128xf32>
    %55 = arith.mulf %50, %54 : vector<8x128xf32>
    %56 = vector.broadcast %26 : i32 to vector<8x1xi32>
    %57 = arith.cmpi slt, %56, %17 : vector<8x1xi32>
    %58 = vector.shape_cast %57 : vector<8x1xi1> to vector<8x1xi1>
    %59 = vector.broadcast %58 : vector<8x1xi1> to vector<8x128xi1>
    %60 = arith.select %59, %55, %21 : vector<8x128xi1>, vector<8x128xf32>
    %61 = vector.shape_cast %57 : vector<8x1xi1> to vector<8x1xi1>
    %62 = vector.broadcast %61 : vector<8x1xi1> to vector<8x128xi1>
    %63 = arith.select %62, %53, %22 : vector<8x128xi1>, vector<8x128xf32>
    %cst_38 = arith.constant 0.000000e+00 : f32
    %64 = vector.shape_cast %57 : vector<8x1xi1> to vector<8x1xi1>
    %65 = vector.broadcast %64 : vector<8x1xi1> to vector<8x128xi1>
    %66 = vector.broadcast %cst_38 : f32 to vector<8x128xf32>
    %67 = arith.select %65, %55, %66 : vector<8x128xi1>, vector<8x128xf32>
    %68 = arith.truncf %67 : vector<8x128xf32> to vector<8x128xbf16>
    %c0_39 = arith.constant 0 : index
    %c0_40 = arith.constant 0 : index
    %69 = vector.load %arg10[%c0_39, %c0_40] : memref<64x128xbf16, #tpu.memory_space<vmem>>, vector<8x128xbf16>
    tpu.vector_store %arg10[%c0_39, %c0_40], %68 {strides = array<i32>} : memref<64x128xbf16, #tpu.memory_space<vmem>>, vector<8x128xbf16>,
    %c56 = arith.constant 56 : index
    %c0_41 = arith.constant 0 : index
    %70 = vector.load %arg15[%c56, %c0_41] : memref<64x512xf32, #tpu.memory_space<vmem>>, vector<8x512xf32>
    %c7_i32 = arith.constant 7 : i32
    %71 = arith.addi %20, %c7_i32 : i32
    %72 = arith.truncf %23 : vector<8x128xf32> to vector<8x128xbf16>
    %c0_42 = arith.constant 0 : index
    %c0_43 = arith.constant 0 : index
    %73 = vector.load %arg9[%c0_42, %c0_43] : memref<128x512xbf16, #tpu.memory_space<vmem>>, vector<128x512xbf16>
    %cst_44 = arith.constant dense<0.000000e+00> : vector<8x512xf32>
    %74 = tpu.matmul %72, %73, %cst_44 {dimension_numbers = #tpu.dot_dimension_numbers<[1], [0], [0], [1], [0, 0, 1, 1], [], []>} : vector<8x128xbf16>, vector<128x512xbf16>, vector<8x512xf32> -> vector<8x512xf32>
    %75 = arith.addf %70, %74 : vector<8x512xf32>
    %76 = vector.extract_strided_slice %75 {offsets = [0, 0], sizes = [8, 128], strides = [1, 1]} : vector<8x512xf32> to vector<8x128xf32>
    %77 = arith.negf %76 : vector<8x128xf32>
    %78 = math.exp %77 : vector<8x128xf32>
    %cst_45 = arith.constant 1.000000e+00 : f32
    %79 = vector.broadcast %cst_45 : f32 to vector<8x128xf32>
    %80 = arith.addf %79, %78 : vector<8x128xf32>
    %81 = arith.divf %79, %80 : vector<8x128xf32>
    %82 = vector.extract_strided_slice %75 {offsets = [0, 128], sizes = [8, 128], strides = [1, 1]} : vector<8x512xf32> to vector<8x128xf32>
    %83 = arith.negf %82 : vector<8x128xf32>
    %84 = math.exp %83 : vector<8x128xf32>
    %cst_46 = arith.constant 1.000000e+00 : f32
    %85 = vector.broadcast %cst_46 : f32 to vector<8x128xf32>
    %86 = arith.addf %85, %84 : vector<8x128xf32>
    %87 = arith.divf %85, %86 : vector<8x128xf32>
    %88 = vector.extract_strided_slice %75 {offsets = [0, 256], sizes = [8, 128], strides = [1, 1]} : vector<8x512xf32> to vector<8x128xf32>
    %89 = math.tanh %88 : vector<8x128xf32>
    %90 = vector.extract_strided_slice %75 {offsets = [0, 384], sizes = [8, 128], strides = [1, 1]} : vector<8x512xf32> to vector<8x128xf32>
    %91 = arith.negf %90 : vector<8x128xf32>
    %92 = math.exp %91 : vector<8x128xf32>
    %cst_47 = arith.constant 1.000000e+00 : f32
    %93 = vector.broadcast %cst_47 : f32 to vector<8x128xf32>
    %94 = arith.addf %93, %92 : vector<8x128xf32>
    %95 = arith.divf %93, %94 : vector<8x128xf32>
    %96 = arith.mulf %87, %24 : vector<8x128xf32>
    %97 = arith.mulf %81, %89 : vector<8x128xf32>
    %98 = arith.addf %96, %97 : vector<8x128xf32>
    %99 = math.tanh %98 : vector<8x128xf32>
    %100 = arith.mulf %95, %99 : vector<8x128xf32>
    %101 = vector.broadcast %71 : i32 to vector<8x1xi32>
    %102 = arith.cmpi slt, %101, %17 : vector<8x1xi32>
    %103 = vector.shape_cast %102 : vector<8x1xi1> to vector<8x1xi1>
    %104 = vector.broadcast %103 : vector<8x1xi1> to vector<8x128xi1>
    %105 = arith.select %104, %100, %23 : vector<8x128xi1>, vector<8x128xf32>
    %106 = vector.shape_cast %102 : vector<8x1xi1> to vector<8x1xi1>
    %107 = vector.broadcast %106 : vector<8x1xi1> to vector<8x128xi1>
    %108 = arith.select %107, %98, %24 : vector<8x128xi1>, vector<8x128xf32>
    %cst_48 = arith.constant 0.000000e+00 : f32
    %109 = vector.shape_cast %102 : vector<8x1xi1> to vector<8x1xi1>
    %110 = vector.broadcast %109 : vector<8x1xi1> to vector<8x128xi1>
    %111 = vector.broadcast %cst_48 : f32 to vector<8x128xf32>
    %112 = arith.select %110, %100, %111 : vector<8x128xi1>, vector<8x128xf32>
    %113 = arith.truncf %112 : vector<8x128xf32> to vector<8x128xbf16>
    %c56_49 = arith.constant 56 : index
    %c0_50 = arith.constant 0 : index
    %114 = vector.load %arg11[%c56_49, %c0_50] : memref<64x128xbf16, #tpu.memory_space<vmem>>, vector<8x128xbf16>
    tpu.vector_store %arg11[%c56_49, %c0_50], %113 {strides = array<i32>} : memref<64x128xbf16, #tpu.memory_space<vmem>>, vector<8x128xbf16>,
    %c8 = arith.constant 8 : index
    %c0_51 = arith.constant 0 : index
    %115 = vector.load %arg14[%c8, %c0_51] : memref<64x512xf32, #tpu.memory_space<vmem>>, vector<8x512xf32>
    %c1_i32 = arith.constant 1 : i32
    %116 = arith.addi %18, %c1_i32 : i32
    %117 = arith.truncf %60 : vector<8x128xf32> to vector<8x128xbf16>
    %c0_52 = arith.constant 0 : index
    %c0_53 = arith.constant 0 : index
    %118 = vector.load %arg8[%c0_52, %c0_53] : memref<128x512xbf16, #tpu.memory_space<vmem>>, vector<128x512xbf16>
    %cst_54 = arith.constant dense<0.000000e+00> : vector<8x512xf32>
    %119 = tpu.matmul %117, %118, %cst_54 {dimension_numbers = #tpu.dot_dimension_numbers<[1], [0], [0], [1], [0, 0, 1, 1], [], []>} : vector<8x128xbf16>, vector<128x512xbf16>, vector<8x512xf32> -> vector<8x512xf32>
    %120 = arith.addf %115, %119 : vector<8x512xf32>
    %121 = vector.extract_strided_slice %120 {offsets = [0, 0], sizes = [8, 128], strides = [1, 1]} : vector<8x512xf32> to vector<8x128xf32>
    %122 = arith.negf %121 : vector<8x128xf32>
    %123 = math.exp %122 : vector<8x128xf32>
    %cst_55 = arith.constant 1.000000e+00 : f32
    %124 = vector.broadcast %cst_55 : f32 to vector<8x128xf32>
    %125 = arith.addf %124, %123 : vector<8x128xf32>
    %126 = arith.divf %124, %125 : vector<8x128xf32>
    %127 = vector.extract_strided_slice %120 {offsets = [0, 128], sizes = [8, 128], strides = [1, 1]} : vector<8x512xf32> to vector<8x128xf32>
    %128 = arith.negf %127 : vector<8x128xf32>
    %129 = math.exp %128 : vector<8x128xf32>
    %cst_56 = arith.constant 1.000000e+00 : f32
    %130 = vector.broadcast %cst_56 : f32 to vector<8x128xf32>
    %131 = arith.addf %130, %129 : vector<8x128xf32>
    %132 = arith.divf %130, %131 : vector<8x128xf32>
    %133 = vector.extract_strided_slice %120 {offsets = [0, 256], sizes = [8, 128], strides = [1, 1]} : vector<8x512xf32> to vector<8x128xf32>
    %134 = math.tanh %133 : vector<8x128xf32>
    %135 = vector.extract_strided_slice %120 {offsets = [0, 384], sizes = [8, 128], strides = [1, 1]} : vector<8x512xf32> to vector<8x128xf32>
    %136 = arith.negf %135 : vector<8x128xf32>
    %137 = math.exp %136 : vector<8x128xf32>
    %cst_57 = arith.constant 1.000000e+00 : f32
    %138 = vector.broadcast %cst_57 : f32 to vector<8x128xf32>
    %139 = arith.addf %138, %137 : vector<8x128xf32>
    %140 = arith.divf %138, %139 : vector<8x128xf32>
    %141 = arith.mulf %132, %63 : vector<8x128xf32>
    %142 = arith.mulf %126, %134 : vector<8x128xf32>
    %143 = arith.addf %141, %142 : vector<8x128xf32>
    %144 = math.tanh %143 : vector<8x128xf32>
    %145 = arith.mulf %140, %144 : vector<8x128xf32>
    %146 = vector.broadcast %116 : i32 to vector<8x1xi32>
    %147 = arith.cmpi slt, %146, %17 : vector<8x1xi32>
    %148 = vector.shape_cast %147 : vector<8x1xi1> to vector<8x1xi1>
    %149 = vector.broadcast %148 : vector<8x1xi1> to vector<8x128xi1>
    %150 = arith.select %149, %145, %60 : vector<8x128xi1>, vector<8x128xf32>
    %151 = vector.shape_cast %147 : vector<8x1xi1> to vector<8x1xi1>
    %152 = vector.broadcast %151 : vector<8x1xi1> to vector<8x128xi1>
    %153 = arith.select %152, %143, %63 : vector<8x128xi1>, vector<8x128xf32>
    %cst_58 = arith.constant 0.000000e+00 : f32
    %154 = vector.shape_cast %147 : vector<8x1xi1> to vector<8x1xi1>
    %155 = vector.broadcast %154 : vector<8x1xi1> to vector<8x128xi1>
    %156 = vector.broadcast %cst_58 : f32 to vector<8x128xf32>
    %157 = arith.select %155, %145, %156 : vector<8x128xi1>, vector<8x128xf32>
    %158 = arith.truncf %157 : vector<8x128xf32> to vector<8x128xbf16>
    %c8_59 = arith.constant 8 : index
    %c0_60 = arith.constant 0 : index
    %159 = vector.load %arg10[%c8_59, %c0_60] : memref<64x128xbf16, #tpu.memory_space<vmem>>, vector<8x128xbf16>
    tpu.vector_store %arg10[%c8_59, %c0_60], %158 {strides = array<i32>} : memref<64x128xbf16, #tpu.memory_space<vmem>>, vector<8x128xbf16>,
    %c48 = arith.constant 48 : index
    %c0_61 = arith.constant 0 : index
    %160 = vector.load %arg15[%c48, %c0_61] : memref<64x512xf32, #tpu.memory_space<vmem>>, vector<8x512xf32>
    %c6_i32 = arith.constant 6 : i32
    %161 = arith.addi %20, %c6_i32 : i32
    %162 = arith.truncf %105 : vector<8x128xf32> to vector<8x128xbf16>
    %c0_62 = arith.constant 0 : index
    %c0_63 = arith.constant 0 : index
    %163 = vector.load %arg9[%c0_62, %c0_63] : memref<128x512xbf16, #tpu.memory_space<vmem>>, vector<128x512xbf16>
    %cst_64 = arith.constant dense<0.000000e+00> : vector<8x512xf32>
    %164 = tpu.matmul %162, %163, %cst_64 {dimension_numbers = #tpu.dot_dimension_numbers<[1], [0], [0], [1], [0, 0, 1, 1], [], []>} : vector<8x128xbf16>, vector<128x512xbf16>, vector<8x512xf32> -> vector<8x512xf32>
    %165 = arith.addf %160, %164 : vector<8x512xf32>
    %166 = vector.extract_strided_slice %165 {offsets = [0, 0], sizes = [8, 128], strides = [1, 1]} : vector<8x512xf32> to vector<8x128xf32>
    %167 = arith.negf %166 : vector<8x128xf32>
    %168 = math.exp %167 : vector<8x128xf32>
    %cst_65 = arith.constant 1.000000e+00 : f32
    %169 = vector.broadcast %cst_65 : f32 to vector<8x128xf32>
    %170 = arith.addf %169, %168 : vector<8x128xf32>
    %171 = arith.divf %169, %170 : vector<8x128xf32>
    %172 = vector.extract_strided_slice %165 {offsets = [0, 128], sizes = [8, 128], strides = [1, 1]} : vector<8x512xf32> to vector<8x128xf32>
    %173 = arith.negf %172 : vector<8x128xf32>
    %174 = math.exp %173 : vector<8x128xf32>
    %cst_66 = arith.constant 1.000000e+00 : f32
    %175 = vector.broadcast %cst_66 : f32 to vector<8x128xf32>
    %176 = arith.addf %175, %174 : vector<8x128xf32>
    %177 = arith.divf %175, %176 : vector<8x128xf32>
    %178 = vector.extract_strided_slice %165 {offsets = [0, 256], sizes = [8, 128], strides = [1, 1]} : vector<8x512xf32> to vector<8x128xf32>
    %179 = math.tanh %178 : vector<8x128xf32>
    %180 = vector.extract_strided_slice %165 {offsets = [0, 384], sizes = [8, 128], strides = [1, 1]} : vector<8x512xf32> to vector<8x128xf32>
    %181 = arith.negf %180 : vector<8x128xf32>
    %182 = math.exp %181 : vector<8x128xf32>
    %cst_67 = arith.constant 1.000000e+00 : f32
    %183 = vector.broadcast %cst_67 : f32 to vector<8x128xf32>
    %184 = arith.addf %183, %182 : vector<8x128xf32>
    %185 = arith.divf %183, %184 : vector<8x128xf32>
    %186 = arith.mulf %177, %108 : vector<8x128xf32>
    %187 = arith.mulf %171, %179 : vector<8x128xf32>
    %188 = arith.addf %186, %187 : vector<8x128xf32>
    %189 = math.tanh %188 : vector<8x128xf32>
    %190 = arith.mulf %185, %189 : vector<8x128xf32>
    %191 = vector.broadcast %161 : i32 to vector<8x1xi32>
    %192 = arith.cmpi slt, %191, %17 : vector<8x1xi32>
    %193 = vector.shape_cast %192 : vector<8x1xi1> to vector<8x1xi1>
    %194 = vector.broadcast %193 : vector<8x1xi1> to vector<8x128xi1>
    %195 = arith.select %194, %190, %105 : vector<8x128xi1>, vector<8x128xf32>
    %196 = vector.shape_cast %192 : vector<8x1xi1> to vector<8x1xi1>
    %197 = vector.broadcast %196 : vector<8x1xi1> to vector<8x128xi1>
    %198 = arith.select %197, %188, %108 : vector<8x128xi1>, vector<8x128xf32>
    %cst_68 = arith.constant 0.000000e+00 : f32
    %199 = vector.shape_cast %192 : vector<8x1xi1> to vector<8x1xi1>
    %200 = vector.broadcast %199 : vector<8x1xi1> to vector<8x128xi1>
    %201 = vector.broadcast %cst_68 : f32 to vector<8x128xf32>
    %202 = arith.select %200, %190, %201 : vector<8x128xi1>, vector<8x128xf32>
    %203 = arith.truncf %202 : vector<8x128xf32> to vector<8x128xbf16>
    %c48_69 = arith.constant 48 : index
    %c0_70 = arith.constant 0 : index
    %204 = vector.load %arg11[%c48_69, %c0_70] : memref<64x128xbf16, #tpu.memory_space<vmem>>, vector<8x128xbf16>
    tpu.vector_store %arg11[%c48_69, %c0_70], %203 {strides = array<i32>} : memref<64x128xbf16, #tpu.memory_space<vmem>>, vector<8x128xbf16>,
    %c16 = arith.constant 16 : index
    %c0_71 = arith.constant 0 : index
    %205 = vector.load %arg14[%c16, %c0_71] : memref<64x512xf32, #tpu.memory_space<vmem>>, vector<8x512xf32>
    %c2_i32 = arith.constant 2 : i32
    %206 = arith.addi %18, %c2_i32 : i32
    %207 = arith.truncf %150 : vector<8x128xf32> to vector<8x128xbf16>
    %c0_72 = arith.constant 0 : index
    %c0_73 = arith.constant 0 : index
    %208 = vector.load %arg8[%c0_72, %c0_73] : memref<128x512xbf16, #tpu.memory_space<vmem>>, vector<128x512xbf16>
    %cst_74 = arith.constant dense<0.000000e+00> : vector<8x512xf32>
    %209 = tpu.matmul %207, %208, %cst_74 {dimension_numbers = #tpu.dot_dimension_numbers<[1], [0], [0], [1], [0, 0, 1, 1], [], []>} : vector<8x128xbf16>, vector<128x512xbf16>, vector<8x512xf32> -> vector<8x512xf32>
    %210 = arith.addf %205, %209 : vector<8x512xf32>
    %211 = vector.extract_strided_slice %210 {offsets = [0, 0], sizes = [8, 128], strides = [1, 1]} : vector<8x512xf32> to vector<8x128xf32>
    %212 = arith.negf %211 : vector<8x128xf32>
    %213 = math.exp %212 : vector<8x128xf32>
    %cst_75 = arith.constant 1.000000e+00 : f32
    %214 = vector.broadcast %cst_75 : f32 to vector<8x128xf32>
    %215 = arith.addf %214, %213 : vector<8x128xf32>
    %216 = arith.divf %214, %215 : vector<8x128xf32>
    %217 = vector.extract_strided_slice %210 {offsets = [0, 128], sizes = [8, 128], strides = [1, 1]} : vector<8x512xf32> to vector<8x128xf32>
    %218 = arith.negf %217 : vector<8x128xf32>
    %219 = math.exp %218 : vector<8x128xf32>
    %cst_76 = arith.constant 1.000000e+00 : f32
    %220 = vector.broadcast %cst_76 : f32 to vector<8x128xf32>
    %221 = arith.addf %220, %219 : vector<8x128xf32>
    %222 = arith.divf %220, %221 : vector<8x128xf32>
    %223 = vector.extract_strided_slice %210 {offsets = [0, 256], sizes = [8, 128], strides = [1, 1]} : vector<8x512xf32> to vector<8x128xf32>
    %224 = math.tanh %223 : vector<8x128xf32>
    %225 = vector.extract_strided_slice %210 {offsets = [0, 384], sizes = [8, 128], strides = [1, 1]} : vector<8x512xf32> to vector<8x128xf32>
    %226 = arith.negf %225 : vector<8x128xf32>
    %227 = math.exp %226 : vector<8x128xf32>
    %cst_77 = arith.constant 1.000000e+00 : f32
    %228 = vector.broadcast %cst_77 : f32 to vector<8x128xf32>
    %229 = arith.addf %228, %227 : vector<8x128xf32>
    %230 = arith.divf %228, %229 : vector<8x128xf32>
    %231 = arith.mulf %222, %153 : vector<8x128xf32>
    %232 = arith.mulf %216, %224 : vector<8x128xf32>
    %233 = arith.addf %231, %232 : vector<8x128xf32>
    %234 = math.tanh %233 : vector<8x128xf32>
    %235 = arith.mulf %230, %234 : vector<8x128xf32>
    %236 = vector.broadcast %206 : i32 to vector<8x1xi32>
    %237 = arith.cmpi slt, %236, %17 : vector<8x1xi32>
    %238 = vector.shape_cast %237 : vector<8x1xi1> to vector<8x1xi1>
    %239 = vector.broadcast %238 : vector<8x1xi1> to vector<8x128xi1>
    %240 = arith.select %239, %235, %150 : vector<8x128xi1>, vector<8x128xf32>
    %241 = vector.shape_cast %237 : vector<8x1xi1> to vector<8x1xi1>
    %242 = vector.broadcast %241 : vector<8x1xi1> to vector<8x128xi1>
    %243 = arith.select %242, %233, %153 : vector<8x128xi1>, vector<8x128xf32>
    %cst_78 = arith.constant 0.000000e+00 : f32
    %244 = vector.shape_cast %237 : vector<8x1xi1> to vector<8x1xi1>
    %245 = vector.broadcast %244 : vector<8x1xi1> to vector<8x128xi1>
    %246 = vector.broadcast %cst_78 : f32 to vector<8x128xf32>
    %247 = arith.select %245, %235, %246 : vector<8x128xi1>, vector<8x128xf32>
    %248 = arith.truncf %247 : vector<8x128xf32> to vector<8x128xbf16>
    %c16_79 = arith.constant 16 : index
    %c0_80 = arith.constant 0 : index
    %249 = vector.load %arg10[%c16_79, %c0_80] : memref<64x128xbf16, #tpu.memory_space<vmem>>, vector<8x128xbf16>
    tpu.vector_store %arg10[%c16_79, %c0_80], %248 {strides = array<i32>} : memref<64x128xbf16, #tpu.memory_space<vmem>>, vector<8x128xbf16>,
    %c40 = arith.constant 40 : index
    %c0_81 = arith.constant 0 : index
    %250 = vector.load %arg15[%c40, %c0_81] : memref<64x512xf32, #tpu.memory_space<vmem>>, vector<8x512xf32>
    %c5_i32 = arith.constant 5 : i32
    %251 = arith.addi %20, %c5_i32 : i32
    %252 = arith.truncf %195 : vector<8x128xf32> to vector<8x128xbf16>
    %c0_82 = arith.constant 0 : index
    %c0_83 = arith.constant 0 : index
    %253 = vector.load %arg9[%c0_82, %c0_83] : memref<128x512xbf16, #tpu.memory_space<vmem>>, vector<128x512xbf16>
    %cst_84 = arith.constant dense<0.000000e+00> : vector<8x512xf32>
    %254 = tpu.matmul %252, %253, %cst_84 {dimension_numbers = #tpu.dot_dimension_numbers<[1], [0], [0], [1], [0, 0, 1, 1], [], []>} : vector<8x128xbf16>, vector<128x512xbf16>, vector<8x512xf32> -> vector<8x512xf32>
    %255 = arith.addf %250, %254 : vector<8x512xf32>
    %256 = vector.extract_strided_slice %255 {offsets = [0, 0], sizes = [8, 128], strides = [1, 1]} : vector<8x512xf32> to vector<8x128xf32>
    %257 = arith.negf %256 : vector<8x128xf32>
    %258 = math.exp %257 : vector<8x128xf32>
    %cst_85 = arith.constant 1.000000e+00 : f32
    %259 = vector.broadcast %cst_85 : f32 to vector<8x128xf32>
    %260 = arith.addf %259, %258 : vector<8x128xf32>
    %261 = arith.divf %259, %260 : vector<8x128xf32>
    %262 = vector.extract_strided_slice %255 {offsets = [0, 128], sizes = [8, 128], strides = [1, 1]} : vector<8x512xf32> to vector<8x128xf32>
    %263 = arith.negf %262 : vector<8x128xf32>
    %264 = math.exp %263 : vector<8x128xf32>
    %cst_86 = arith.constant 1.000000e+00 : f32
    %265 = vector.broadcast %cst_86 : f32 to vector<8x128xf32>
    %266 = arith.addf %265, %264 : vector<8x128xf32>
    %267 = arith.divf %265, %266 : vector<8x128xf32>
    %268 = vector.extract_strided_slice %255 {offsets = [0, 256], sizes = [8, 128], strides = [1, 1]} : vector<8x512xf32> to vector<8x128xf32>
    %269 = math.tanh %268 : vector<8x128xf32>
    %270 = vector.extract_strided_slice %255 {offsets = [0, 384], sizes = [8, 128], strides = [1, 1]} : vector<8x512xf32> to vector<8x128xf32>
    %271 = arith.negf %270 : vector<8x128xf32>
    %272 = math.exp %271 : vector<8x128xf32>
    %cst_87 = arith.constant 1.000000e+00 : f32
    %273 = vector.broadcast %cst_87 : f32 to vector<8x128xf32>
    %274 = arith.addf %273, %272 : vector<8x128xf32>
    %275 = arith.divf %273, %274 : vector<8x128xf32>
    %276 = arith.mulf %267, %198 : vector<8x128xf32>
    %277 = arith.mulf %261, %269 : vector<8x128xf32>
    %278 = arith.addf %276, %277 : vector<8x128xf32>
    %279 = math.tanh %278 : vector<8x128xf32>
    %280 = arith.mulf %275, %279 : vector<8x128xf32>
    %281 = vector.broadcast %251 : i32 to vector<8x1xi32>
    %282 = arith.cmpi slt, %281, %17 : vector<8x1xi32>
    %283 = vector.shape_cast %282 : vector<8x1xi1> to vector<8x1xi1>
    %284 = vector.broadcast %283 : vector<8x1xi1> to vector<8x128xi1>
    %285 = arith.select %284, %280, %195 : vector<8x128xi1>, vector<8x128xf32>
    %286 = vector.shape_cast %282 : vector<8x1xi1> to vector<8x1xi1>
    %287 = vector.broadcast %286 : vector<8x1xi1> to vector<8x128xi1>
    %288 = arith.select %287, %278, %198 : vector<8x128xi1>, vector<8x128xf32>
    %cst_88 = arith.constant 0.000000e+00 : f32
    %289 = vector.shape_cast %282 : vector<8x1xi1> to vector<8x1xi1>
    %290 = vector.broadcast %289 : vector<8x1xi1> to vector<8x128xi1>
    %291 = vector.broadcast %cst_88 : f32 to vector<8x128xf32>
    %292 = arith.select %290, %280, %291 : vector<8x128xi1>, vector<8x128xf32>
    %293 = arith.truncf %292 : vector<8x128xf32> to vector<8x128xbf16>
    %c40_89 = arith.constant 40 : index
    %c0_90 = arith.constant 0 : index
    %294 = vector.load %arg11[%c40_89, %c0_90] : memref<64x128xbf16, #tpu.memory_space<vmem>>, vector<8x128xbf16>
    tpu.vector_store %arg11[%c40_89, %c0_90], %293 {strides = array<i32>} : memref<64x128xbf16, #tpu.memory_space<vmem>>, vector<8x128xbf16>,
    %c24 = arith.constant 24 : index
    %c0_91 = arith.constant 0 : index
    %295 = vector.load %arg14[%c24, %c0_91] : memref<64x512xf32, #tpu.memory_space<vmem>>, vector<8x512xf32>
    %c3_i32 = arith.constant 3 : i32
    %296 = arith.addi %18, %c3_i32 : i32
    %297 = arith.truncf %240 : vector<8x128xf32> to vector<8x128xbf16>
    %c0_92 = arith.constant 0 : index
    %c0_93 = arith.constant 0 : index
    %298 = vector.load %arg8[%c0_92, %c0_93] : memref<128x512xbf16, #tpu.memory_space<vmem>>, vector<128x512xbf16>
    %cst_94 = arith.constant dense<0.000000e+00> : vector<8x512xf32>
    %299 = tpu.matmul %297, %298, %cst_94 {dimension_numbers = #tpu.dot_dimension_numbers<[1], [0], [0], [1], [0, 0, 1, 1], [], []>} : vector<8x128xbf16>, vector<128x512xbf16>, vector<8x512xf32> -> vector<8x512xf32>
    %300 = arith.addf %295, %299 : vector<8x512xf32>
    %301 = vector.extract_strided_slice %300 {offsets = [0, 0], sizes = [8, 128], strides = [1, 1]} : vector<8x512xf32> to vector<8x128xf32>
    %302 = arith.negf %301 : vector<8x128xf32>
    %303 = math.exp %302 : vector<8x128xf32>
    %cst_95 = arith.constant 1.000000e+00 : f32
    %304 = vector.broadcast %cst_95 : f32 to vector<8x128xf32>
    %305 = arith.addf %304, %303 : vector<8x128xf32>
    %306 = arith.divf %304, %305 : vector<8x128xf32>
    %307 = vector.extract_strided_slice %300 {offsets = [0, 128], sizes = [8, 128], strides = [1, 1]} : vector<8x512xf32> to vector<8x128xf32>
    %308 = arith.negf %307 : vector<8x128xf32>
    %309 = math.exp %308 : vector<8x128xf32>
    %cst_96 = arith.constant 1.000000e+00 : f32
    %310 = vector.broadcast %cst_96 : f32 to vector<8x128xf32>
    %311 = arith.addf %310, %309 : vector<8x128xf32>
    %312 = arith.divf %310, %311 : vector<8x128xf32>
    %313 = vector.extract_strided_slice %300 {offsets = [0, 256], sizes = [8, 128], strides = [1, 1]} : vector<8x512xf32> to vector<8x128xf32>
    %314 = math.tanh %313 : vector<8x128xf32>
    %315 = vector.extract_strided_slice %300 {offsets = [0, 384], sizes = [8, 128], strides = [1, 1]} : vector<8x512xf32> to vector<8x128xf32>
    %316 = arith.negf %315 : vector<8x128xf32>
    %317 = math.exp %316 : vector<8x128xf32>
    %cst_97 = arith.constant 1.000000e+00 : f32
    %318 = vector.broadcast %cst_97 : f32 to vector<8x128xf32>
    %319 = arith.addf %318, %317 : vector<8x128xf32>
    %320 = arith.divf %318, %319 : vector<8x128xf32>
    %321 = arith.mulf %312, %243 : vector<8x128xf32>
    %322 = arith.mulf %306, %314 : vector<8x128xf32>
    %323 = arith.addf %321, %322 : vector<8x128xf32>
    %324 = math.tanh %323 : vector<8x128xf32>
    %325 = arith.mulf %320, %324 : vector<8x128xf32>
    %326 = vector.broadcast %296 : i32 to vector<8x1xi32>
    %327 = arith.cmpi slt, %326, %17 : vector<8x1xi32>
    %328 = vector.shape_cast %327 : vector<8x1xi1> to vector<8x1xi1>
    %329 = vector.broadcast %328 : vector<8x1xi1> to vector<8x128xi1>
    %330 = arith.select %329, %325, %240 : vector<8x128xi1>, vector<8x128xf32>
    %331 = vector.shape_cast %327 : vector<8x1xi1> to vector<8x1xi1>
    %332 = vector.broadcast %331 : vector<8x1xi1> to vector<8x128xi1>
    %333 = arith.select %332, %323, %243 : vector<8x128xi1>, vector<8x128xf32>
    %cst_98 = arith.constant 0.000000e+00 : f32
    %334 = vector.shape_cast %327 : vector<8x1xi1> to vector<8x1xi1>
    %335 = vector.broadcast %334 : vector<8x1xi1> to vector<8x128xi1>
    %336 = vector.broadcast %cst_98 : f32 to vector<8x128xf32>
    %337 = arith.select %335, %325, %336 : vector<8x128xi1>, vector<8x128xf32>
    %338 = arith.truncf %337 : vector<8x128xf32> to vector<8x128xbf16>
    %c24_99 = arith.constant 24 : index
    %c0_100 = arith.constant 0 : index
    %339 = vector.load %arg10[%c24_99, %c0_100] : memref<64x128xbf16, #tpu.memory_space<vmem>>, vector<8x128xbf16>
    tpu.vector_store %arg10[%c24_99, %c0_100], %338 {strides = array<i32>} : memref<64x128xbf16, #tpu.memory_space<vmem>>, vector<8x128xbf16>,
    %c32 = arith.constant 32 : index
    %c0_101 = arith.constant 0 : index
    %340 = vector.load %arg15[%c32, %c0_101] : memref<64x512xf32, #tpu.memory_space<vmem>>, vector<8x512xf32>
    %c4_i32 = arith.constant 4 : i32
    %341 = arith.addi %20, %c4_i32 : i32
    %342 = arith.truncf %285 : vector<8x128xf32> to vector<8x128xbf16>
    %c0_102 = arith.constant 0 : index
    %c0_103 = arith.constant 0 : index
    %343 = vector.load %arg9[%c0_102, %c0_103] : memref<128x512xbf16, #tpu.memory_space<vmem>>, vector<128x512xbf16>
    %cst_104 = arith.constant dense<0.000000e+00> : vector<8x512xf32>
    %344 = tpu.matmul %342, %343, %cst_104 {dimension_numbers = #tpu.dot_dimension_numbers<[1], [0], [0], [1], [0, 0, 1, 1], [], []>} : vector<8x128xbf16>, vector<128x512xbf16>, vector<8x512xf32> -> vector<8x512xf32>
    %345 = arith.addf %340, %344 : vector<8x512xf32>
    %346 = vector.extract_strided_slice %345 {offsets = [0, 0], sizes = [8, 128], strides = [1, 1]} : vector<8x512xf32> to vector<8x128xf32>
    %347 = arith.negf %346 : vector<8x128xf32>
    %348 = math.exp %347 : vector<8x128xf32>
    %cst_105 = arith.constant 1.000000e+00 : f32
    %349 = vector.broadcast %cst_105 : f32 to vector<8x128xf32>
    %350 = arith.addf %349, %348 : vector<8x128xf32>
    %351 = arith.divf %349, %350 : vector<8x128xf32>
    %352 = vector.extract_strided_slice %345 {offsets = [0, 128], sizes = [8, 128], strides = [1, 1]} : vector<8x512xf32> to vector<8x128xf32>
    %353 = arith.negf %352 : vector<8x128xf32>
    %354 = math.exp %353 : vector<8x128xf32>
    %cst_106 = arith.constant 1.000000e+00 : f32
    %355 = vector.broadcast %cst_106 : f32 to vector<8x128xf32>
    %356 = arith.addf %355, %354 : vector<8x128xf32>
    %357 = arith.divf %355, %356 : vector<8x128xf32>
    %358 = vector.extract_strided_slice %345 {offsets = [0, 256], sizes = [8, 128], strides = [1, 1]} : vector<8x512xf32> to vector<8x128xf32>
    %359 = math.tanh %358 : vector<8x128xf32>
    %360 = vector.extract_strided_slice %345 {offsets = [0, 384], sizes = [8, 128], strides = [1, 1]} : vector<8x512xf32> to vector<8x128xf32>
    %361 = arith.negf %360 : vector<8x128xf32>
    %362 = math.exp %361 : vector<8x128xf32>
    %cst_107 = arith.constant 1.000000e+00 : f32
    %363 = vector.broadcast %cst_107 : f32 to vector<8x128xf32>
    %364 = arith.addf %363, %362 : vector<8x128xf32>
    %365 = arith.divf %363, %364 : vector<8x128xf32>
    %366 = arith.mulf %357, %288 : vector<8x128xf32>
    %367 = arith.mulf %351, %359 : vector<8x128xf32>
    %368 = arith.addf %366, %367 : vector<8x128xf32>
    %369 = math.tanh %368 : vector<8x128xf32>
    %370 = arith.mulf %365, %369 : vector<8x128xf32>
    %371 = vector.broadcast %341 : i32 to vector<8x1xi32>
    %372 = arith.cmpi slt, %371, %17 : vector<8x1xi32>
    %373 = vector.shape_cast %372 : vector<8x1xi1> to vector<8x1xi1>
    %374 = vector.broadcast %373 : vector<8x1xi1> to vector<8x128xi1>
    %375 = arith.select %374, %370, %285 : vector<8x128xi1>, vector<8x128xf32>
    %376 = vector.shape_cast %372 : vector<8x1xi1> to vector<8x1xi1>
    %377 = vector.broadcast %376 : vector<8x1xi1> to vector<8x128xi1>
    %378 = arith.select %377, %368, %288 : vector<8x128xi1>, vector<8x128xf32>
    %cst_108 = arith.constant 0.000000e+00 : f32
    %379 = vector.shape_cast %372 : vector<8x1xi1> to vector<8x1xi1>
    %380 = vector.broadcast %379 : vector<8x1xi1> to vector<8x128xi1>
    %381 = vector.broadcast %cst_108 : f32 to vector<8x128xf32>
    %382 = arith.select %380, %370, %381 : vector<8x128xi1>, vector<8x128xf32>
    %383 = arith.truncf %382 : vector<8x128xf32> to vector<8x128xbf16>
    %c32_109 = arith.constant 32 : index
    %c0_110 = arith.constant 0 : index
    %384 = vector.load %arg11[%c32_109, %c0_110] : memref<64x128xbf16, #tpu.memory_space<vmem>>, vector<8x128xbf16>
    tpu.vector_store %arg11[%c32_109, %c0_110], %383 {strides = array<i32>} : memref<64x128xbf16, #tpu.memory_space<vmem>>, vector<8x128xbf16>,
    %c32_111 = arith.constant 32 : index
    %c0_112 = arith.constant 0 : index
    %385 = vector.load %arg14[%c32_111, %c0_112] : memref<64x512xf32, #tpu.memory_space<vmem>>, vector<8x512xf32>
    %c4_i32_113 = arith.constant 4 : i32
    %386 = arith.addi %18, %c4_i32_113 : i32
    %387 = arith.truncf %330 : vector<8x128xf32> to vector<8x128xbf16>
    %c0_114 = arith.constant 0 : index
    %c0_115 = arith.constant 0 : index
    %388 = vector.load %arg8[%c0_114, %c0_115] : memref<128x512xbf16, #tpu.memory_space<vmem>>, vector<128x512xbf16>
    %cst_116 = arith.constant dense<0.000000e+00> : vector<8x512xf32>
    %389 = tpu.matmul %387, %388, %cst_116 {dimension_numbers = #tpu.dot_dimension_numbers<[1], [0], [0], [1], [0, 0, 1, 1], [], []>} : vector<8x128xbf16>, vector<128x512xbf16>, vector<8x512xf32> -> vector<8x512xf32>
    %390 = arith.addf %385, %389 : vector<8x512xf32>
    %391 = vector.extract_strided_slice %390 {offsets = [0, 0], sizes = [8, 128], strides = [1, 1]} : vector<8x512xf32> to vector<8x128xf32>
    %392 = arith.negf %391 : vector<8x128xf32>
    %393 = math.exp %392 : vector<8x128xf32>
    %cst_117 = arith.constant 1.000000e+00 : f32
    %394 = vector.broadcast %cst_117 : f32 to vector<8x128xf32>
    %395 = arith.addf %394, %393 : vector<8x128xf32>
    %396 = arith.divf %394, %395 : vector<8x128xf32>
    %397 = vector.extract_strided_slice %390 {offsets = [0, 128], sizes = [8, 128], strides = [1, 1]} : vector<8x512xf32> to vector<8x128xf32>
    %398 = arith.negf %397 : vector<8x128xf32>
    %399 = math.exp %398 : vector<8x128xf32>
    %cst_118 = arith.constant 1.000000e+00 : f32
    %400 = vector.broadcast %cst_118 : f32 to vector<8x128xf32>
    %401 = arith.addf %400, %399 : vector<8x128xf32>
    %402 = arith.divf %400, %401 : vector<8x128xf32>
    %403 = vector.extract_strided_slice %390 {offsets = [0, 256], sizes = [8, 128], strides = [1, 1]} : vector<8x512xf32> to vector<8x128xf32>
    %404 = math.tanh %403 : vector<8x128xf32>
    %405 = vector.extract_strided_slice %390 {offsets = [0, 384], sizes = [8, 128], strides = [1, 1]} : vector<8x512xf32> to vector<8x128xf32>
    %406 = arith.negf %405 : vector<8x128xf32>
    %407 = math.exp %406 : vector<8x128xf32>
    %cst_119 = arith.constant 1.000000e+00 : f32
    %408 = vector.broadcast %cst_119 : f32 to vector<8x128xf32>
    %409 = arith.addf %408, %407 : vector<8x128xf32>
    %410 = arith.divf %408, %409 : vector<8x128xf32>
    %411 = arith.mulf %402, %333 : vector<8x128xf32>
    %412 = arith.mulf %396, %404 : vector<8x128xf32>
    %413 = arith.addf %411, %412 : vector<8x128xf32>
    %414 = math.tanh %413 : vector<8x128xf32>
    %415 = arith.mulf %410, %414 : vector<8x128xf32>
    %416 = vector.broadcast %386 : i32 to vector<8x1xi32>
    %417 = arith.cmpi slt, %416, %17 : vector<8x1xi32>
    %418 = vector.shape_cast %417 : vector<8x1xi1> to vector<8x1xi1>
    %419 = vector.broadcast %418 : vector<8x1xi1> to vector<8x128xi1>
    %420 = arith.select %419, %415, %330 : vector<8x128xi1>, vector<8x128xf32>
    %421 = vector.shape_cast %417 : vector<8x1xi1> to vector<8x1xi1>
    %422 = vector.broadcast %421 : vector<8x1xi1> to vector<8x128xi1>
    %423 = arith.select %422, %413, %333 : vector<8x128xi1>, vector<8x128xf32>
    %cst_120 = arith.constant 0.000000e+00 : f32
    %424 = vector.shape_cast %417 : vector<8x1xi1> to vector<8x1xi1>
    %425 = vector.broadcast %424 : vector<8x1xi1> to vector<8x128xi1>
    %426 = vector.broadcast %cst_120 : f32 to vector<8x128xf32>
    %427 = arith.select %425, %415, %426 : vector<8x128xi1>, vector<8x128xf32>
    %428 = arith.truncf %427 : vector<8x128xf32> to vector<8x128xbf16>
    %c32_121 = arith.constant 32 : index
    %c0_122 = arith.constant 0 : index
    %429 = vector.load %arg10[%c32_121, %c0_122] : memref<64x128xbf16, #tpu.memory_space<vmem>>, vector<8x128xbf16>
    tpu.vector_store %arg10[%c32_121, %c0_122], %428 {strides = array<i32>} : memref<64x128xbf16, #tpu.memory_space<vmem>>, vector<8x128xbf16>,
    %c24_123 = arith.constant 24 : index
    %c0_124 = arith.constant 0 : index
    %430 = vector.load %arg15[%c24_123, %c0_124] : memref<64x512xf32, #tpu.memory_space<vmem>>, vector<8x512xf32>
    %c3_i32_125 = arith.constant 3 : i32
    %431 = arith.addi %20, %c3_i32_125 : i32
    %432 = arith.truncf %375 : vector<8x128xf32> to vector<8x128xbf16>
    %c0_126 = arith.constant 0 : index
    %c0_127 = arith.constant 0 : index
    %433 = vector.load %arg9[%c0_126, %c0_127] : memref<128x512xbf16, #tpu.memory_space<vmem>>, vector<128x512xbf16>
    %cst_128 = arith.constant dense<0.000000e+00> : vector<8x512xf32>
    %434 = tpu.matmul %432, %433, %cst_128 {dimension_numbers = #tpu.dot_dimension_numbers<[1], [0], [0], [1], [0, 0, 1, 1], [], []>} : vector<8x128xbf16>, vector<128x512xbf16>, vector<8x512xf32> -> vector<8x512xf32>
    %435 = arith.addf %430, %434 : vector<8x512xf32>
    %436 = vector.extract_strided_slice %435 {offsets = [0, 0], sizes = [8, 128], strides = [1, 1]} : vector<8x512xf32> to vector<8x128xf32>
    %437 = arith.negf %436 : vector<8x128xf32>
    %438 = math.exp %437 : vector<8x128xf32>
    %cst_129 = arith.constant 1.000000e+00 : f32
    %439 = vector.broadcast %cst_129 : f32 to vector<8x128xf32>
    %440 = arith.addf %439, %438 : vector<8x128xf32>
    %441 = arith.divf %439, %440 : vector<8x128xf32>
    %442 = vector.extract_strided_slice %435 {offsets = [0, 128], sizes = [8, 128], strides = [1, 1]} : vector<8x512xf32> to vector<8x128xf32>
    %443 = arith.negf %442 : vector<8x128xf32>
    %444 = math.exp %443 : vector<8x128xf32>
    %cst_130 = arith.constant 1.000000e+00 : f32
    %445 = vector.broadcast %cst_130 : f32 to vector<8x128xf32>
    %446 = arith.addf %445, %444 : vector<8x128xf32>
    %447 = arith.divf %445, %446 : vector<8x128xf32>
    %448 = vector.extract_strided_slice %435 {offsets = [0, 256], sizes = [8, 128], strides = [1, 1]} : vector<8x512xf32> to vector<8x128xf32>
    %449 = math.tanh %448 : vector<8x128xf32>
    %450 = vector.extract_strided_slice %435 {offsets = [0, 384], sizes = [8, 128], strides = [1, 1]} : vector<8x512xf32> to vector<8x128xf32>
    %451 = arith.negf %450 : vector<8x128xf32>
    %452 = math.exp %451 : vector<8x128xf32>
    %cst_131 = arith.constant 1.000000e+00 : f32
    %453 = vector.broadcast %cst_131 : f32 to vector<8x128xf32>
    %454 = arith.addf %453, %452 : vector<8x128xf32>
    %455 = arith.divf %453, %454 : vector<8x128xf32>
    %456 = arith.mulf %447, %378 : vector<8x128xf32>
    %457 = arith.mulf %441, %449 : vector<8x128xf32>
    %458 = arith.addf %456, %457 : vector<8x128xf32>
    %459 = math.tanh %458 : vector<8x128xf32>
    %460 = arith.mulf %455, %459 : vector<8x128xf32>
    %461 = vector.broadcast %431 : i32 to vector<8x1xi32>
    %462 = arith.cmpi slt, %461, %17 : vector<8x1xi32>
    %463 = vector.shape_cast %462 : vector<8x1xi1> to vector<8x1xi1>
    %464 = vector.broadcast %463 : vector<8x1xi1> to vector<8x128xi1>
    %465 = arith.select %464, %460, %375 : vector<8x128xi1>, vector<8x128xf32>
    %466 = vector.shape_cast %462 : vector<8x1xi1> to vector<8x1xi1>
    %467 = vector.broadcast %466 : vector<8x1xi1> to vector<8x128xi1>
    %468 = arith.select %467, %458, %378 : vector<8x128xi1>, vector<8x128xf32>
    %cst_132 = arith.constant 0.000000e+00 : f32
    %469 = vector.shape_cast %462 : vector<8x1xi1> to vector<8x1xi1>
    %470 = vector.broadcast %469 : vector<8x1xi1> to vector<8x128xi1>
    %471 = vector.broadcast %cst_132 : f32 to vector<8x128xf32>
    %472 = arith.select %470, %460, %471 : vector<8x128xi1>, vector<8x128xf32>
    %473 = arith.truncf %472 : vector<8x128xf32> to vector<8x128xbf16>
    %c24_133 = arith.constant 24 : index
    %c0_134 = arith.constant 0 : index
    %474 = vector.load %arg11[%c24_133, %c0_134] : memref<64x128xbf16, #tpu.memory_space<vmem>>, vector<8x128xbf16>
    tpu.vector_store %arg11[%c24_133, %c0_134], %473 {strides = array<i32>} : memref<64x128xbf16, #tpu.memory_space<vmem>>, vector<8x128xbf16>,
    %c40_135 = arith.constant 40 : index
    %c0_136 = arith.constant 0 : index
    %475 = vector.load %arg14[%c40_135, %c0_136] : memref<64x512xf32, #tpu.memory_space<vmem>>, vector<8x512xf32>
    %c5_i32_137 = arith.constant 5 : i32
    %476 = arith.addi %18, %c5_i32_137 : i32
    %477 = arith.truncf %420 : vector<8x128xf32> to vector<8x128xbf16>
    %c0_138 = arith.constant 0 : index
    %c0_139 = arith.constant 0 : index
    %478 = vector.load %arg8[%c0_138, %c0_139] : memref<128x512xbf16, #tpu.memory_space<vmem>>, vector<128x512xbf16>
    %cst_140 = arith.constant dense<0.000000e+00> : vector<8x512xf32>
    %479 = tpu.matmul %477, %478, %cst_140 {dimension_numbers = #tpu.dot_dimension_numbers<[1], [0], [0], [1], [0, 0, 1, 1], [], []>} : vector<8x128xbf16>, vector<128x512xbf16>, vector<8x512xf32> -> vector<8x512xf32>
    %480 = arith.addf %475, %479 : vector<8x512xf32>
    %481 = vector.extract_strided_slice %480 {offsets = [0, 0], sizes = [8, 128], strides = [1, 1]} : vector<8x512xf32> to vector<8x128xf32>
    %482 = arith.negf %481 : vector<8x128xf32>
    %483 = math.exp %482 : vector<8x128xf32>
    %cst_141 = arith.constant 1.000000e+00 : f32
    %484 = vector.broadcast %cst_141 : f32 to vector<8x128xf32>
    %485 = arith.addf %484, %483 : vector<8x128xf32>
    %486 = arith.divf %484, %485 : vector<8x128xf32>
    %487 = vector.extract_strided_slice %480 {offsets = [0, 128], sizes = [8, 128], strides = [1, 1]} : vector<8x512xf32> to vector<8x128xf32>
    %488 = arith.negf %487 : vector<8x128xf32>
    %489 = math.exp %488 : vector<8x128xf32>
    %cst_142 = arith.constant 1.000000e+00 : f32
    %490 = vector.broadcast %cst_142 : f32 to vector<8x128xf32>
    %491 = arith.addf %490, %489 : vector<8x128xf32>
    %492 = arith.divf %490, %491 : vector<8x128xf32>
    %493 = vector.extract_strided_slice %480 {offsets = [0, 256], sizes = [8, 128], strides = [1, 1]} : vector<8x512xf32> to vector<8x128xf32>
    %494 = math.tanh %493 : vector<8x128xf32>
    %495 = vector.extract_strided_slice %480 {offsets = [0, 384], sizes = [8, 128], strides = [1, 1]} : vector<8x512xf32> to vector<8x128xf32>
    %496 = arith.negf %495 : vector<8x128xf32>
    %497 = math.exp %496 : vector<8x128xf32>
    %cst_143 = arith.constant 1.000000e+00 : f32
    %498 = vector.broadcast %cst_143 : f32 to vector<8x128xf32>
    %499 = arith.addf %498, %497 : vector<8x128xf32>
    %500 = arith.divf %498, %499 : vector<8x128xf32>
    %501 = arith.mulf %492, %423 : vector<8x128xf32>
    %502 = arith.mulf %486, %494 : vector<8x128xf32>
    %503 = arith.addf %501, %502 : vector<8x128xf32>
    %504 = math.tanh %503 : vector<8x128xf32>
    %505 = arith.mulf %500, %504 : vector<8x128xf32>
    %506 = vector.broadcast %476 : i32 to vector<8x1xi32>
    %507 = arith.cmpi slt, %506, %17 : vector<8x1xi32>
    %508 = vector.shape_cast %507 : vector<8x1xi1> to vector<8x1xi1>
    %509 = vector.broadcast %508 : vector<8x1xi1> to vector<8x128xi1>
    %510 = arith.select %509, %505, %420 : vector<8x128xi1>, vector<8x128xf32>
    %511 = vector.shape_cast %507 : vector<8x1xi1> to vector<8x1xi1>
    %512 = vector.broadcast %511 : vector<8x1xi1> to vector<8x128xi1>
    %513 = arith.select %512, %503, %423 : vector<8x128xi1>, vector<8x128xf32>
    %cst_144 = arith.constant 0.000000e+00 : f32
    %514 = vector.shape_cast %507 : vector<8x1xi1> to vector<8x1xi1>
    %515 = vector.broadcast %514 : vector<8x1xi1> to vector<8x128xi1>
    %516 = vector.broadcast %cst_144 : f32 to vector<8x128xf32>
    %517 = arith.select %515, %505, %516 : vector<8x128xi1>, vector<8x128xf32>
    %518 = arith.truncf %517 : vector<8x128xf32> to vector<8x128xbf16>
    %c40_145 = arith.constant 40 : index
    %c0_146 = arith.constant 0 : index
    %519 = vector.load %arg10[%c40_145, %c0_146] : memref<64x128xbf16, #tpu.memory_space<vmem>>, vector<8x128xbf16>
    tpu.vector_store %arg10[%c40_145, %c0_146], %518 {strides = array<i32>} : memref<64x128xbf16, #tpu.memory_space<vmem>>, vector<8x128xbf16>,
    %c16_147 = arith.constant 16 : index
    %c0_148 = arith.constant 0 : index
    %520 = vector.load %arg15[%c16_147, %c0_148] : memref<64x512xf32, #tpu.memory_space<vmem>>, vector<8x512xf32>
    %c2_i32_149 = arith.constant 2 : i32
    %521 = arith.addi %20, %c2_i32_149 : i32
    %522 = arith.truncf %465 : vector<8x128xf32> to vector<8x128xbf16>
    %c0_150 = arith.constant 0 : index
    %c0_151 = arith.constant 0 : index
    %523 = vector.load %arg9[%c0_150, %c0_151] : memref<128x512xbf16, #tpu.memory_space<vmem>>, vector<128x512xbf16>
    %cst_152 = arith.constant dense<0.000000e+00> : vector<8x512xf32>
    %524 = tpu.matmul %522, %523, %cst_152 {dimension_numbers = #tpu.dot_dimension_numbers<[1], [0], [0], [1], [0, 0, 1, 1], [], []>} : vector<8x128xbf16>, vector<128x512xbf16>, vector<8x512xf32> -> vector<8x512xf32>
    %525 = arith.addf %520, %524 : vector<8x512xf32>
    %526 = vector.extract_strided_slice %525 {offsets = [0, 0], sizes = [8, 128], strides = [1, 1]} : vector<8x512xf32> to vector<8x128xf32>
    %527 = arith.negf %526 : vector<8x128xf32>
    %528 = math.exp %527 : vector<8x128xf32>
    %cst_153 = arith.constant 1.000000e+00 : f32
    %529 = vector.broadcast %cst_153 : f32 to vector<8x128xf32>
    %530 = arith.addf %529, %528 : vector<8x128xf32>
    %531 = arith.divf %529, %530 : vector<8x128xf32>
    %532 = vector.extract_strided_slice %525 {offsets = [0, 128], sizes = [8, 128], strides = [1, 1]} : vector<8x512xf32> to vector<8x128xf32>
    %533 = arith.negf %532 : vector<8x128xf32>
    %534 = math.exp %533 : vector<8x128xf32>
    %cst_154 = arith.constant 1.000000e+00 : f32
    %535 = vector.broadcast %cst_154 : f32 to vector<8x128xf32>
    %536 = arith.addf %535, %534 : vector<8x128xf32>
    %537 = arith.divf %535, %536 : vector<8x128xf32>
    %538 = vector.extract_strided_slice %525 {offsets = [0, 256], sizes = [8, 128], strides = [1, 1]} : vector<8x512xf32> to vector<8x128xf32>
    %539 = math.tanh %538 : vector<8x128xf32>
    %540 = vector.extract_strided_slice %525 {offsets = [0, 384], sizes = [8, 128], strides = [1, 1]} : vector<8x512xf32> to vector<8x128xf32>
    %541 = arith.negf %540 : vector<8x128xf32>
    %542 = math.exp %541 : vector<8x128xf32>
    %cst_155 = arith.constant 1.000000e+00 : f32
    %543 = vector.broadcast %cst_155 : f32 to vector<8x128xf32>
    %544 = arith.addf %543, %542 : vector<8x128xf32>
    %545 = arith.divf %543, %544 : vector<8x128xf32>
    %546 = arith.mulf %537, %468 : vector<8x128xf32>
    %547 = arith.mulf %531, %539 : vector<8x128xf32>
    %548 = arith.addf %546, %547 : vector<8x128xf32>
    %549 = math.tanh %548 : vector<8x128xf32>
    %550 = arith.mulf %545, %549 : vector<8x128xf32>
    %551 = vector.broadcast %521 : i32 to vector<8x1xi32>
    %552 = arith.cmpi slt, %551, %17 : vector<8x1xi32>
    %553 = vector.shape_cast %552 : vector<8x1xi1> to vector<8x1xi1>
    %554 = vector.broadcast %553 : vector<8x1xi1> to vector<8x128xi1>
    %555 = arith.select %554, %550, %465 : vector<8x128xi1>, vector<8x128xf32>
    %556 = vector.shape_cast %552 : vector<8x1xi1> to vector<8x1xi1>
    %557 = vector.broadcast %556 : vector<8x1xi1> to vector<8x128xi1>
    %558 = arith.select %557, %548, %468 : vector<8x128xi1>, vector<8x128xf32>
    %cst_156 = arith.constant 0.000000e+00 : f32
    %559 = vector.shape_cast %552 : vector<8x1xi1> to vector<8x1xi1>
    %560 = vector.broadcast %559 : vector<8x1xi1> to vector<8x128xi1>
    %561 = vector.broadcast %cst_156 : f32 to vector<8x128xf32>
    %562 = arith.select %560, %550, %561 : vector<8x128xi1>, vector<8x128xf32>
    %563 = arith.truncf %562 : vector<8x128xf32> to vector<8x128xbf16>
    %c16_157 = arith.constant 16 : index
    %c0_158 = arith.constant 0 : index
    %564 = vector.load %arg11[%c16_157, %c0_158] : memref<64x128xbf16, #tpu.memory_space<vmem>>, vector<8x128xbf16>
    tpu.vector_store %arg11[%c16_157, %c0_158], %563 {strides = array<i32>} : memref<64x128xbf16, #tpu.memory_space<vmem>>, vector<8x128xbf16>,
    %c48_159 = arith.constant 48 : index
    %c0_160 = arith.constant 0 : index
    %565 = vector.load %arg14[%c48_159, %c0_160] : memref<64x512xf32, #tpu.memory_space<vmem>>, vector<8x512xf32>
    %c6_i32_161 = arith.constant 6 : i32
    %566 = arith.addi %18, %c6_i32_161 : i32
    %567 = arith.truncf %510 : vector<8x128xf32> to vector<8x128xbf16>
    %c0_162 = arith.constant 0 : index
    %c0_163 = arith.constant 0 : index
    %568 = vector.load %arg8[%c0_162, %c0_163] : memref<128x512xbf16, #tpu.memory_space<vmem>>, vector<128x512xbf16>
    %cst_164 = arith.constant dense<0.000000e+00> : vector<8x512xf32>
    %569 = tpu.matmul %567, %568, %cst_164 {dimension_numbers = #tpu.dot_dimension_numbers<[1], [0], [0], [1], [0, 0, 1, 1], [], []>} : vector<8x128xbf16>, vector<128x512xbf16>, vector<8x512xf32> -> vector<8x512xf32>
    %570 = arith.addf %565, %569 : vector<8x512xf32>
    %571 = vector.extract_strided_slice %570 {offsets = [0, 0], sizes = [8, 128], strides = [1, 1]} : vector<8x512xf32> to vector<8x128xf32>
    %572 = arith.negf %571 : vector<8x128xf32>
    %573 = math.exp %572 : vector<8x128xf32>
    %cst_165 = arith.constant 1.000000e+00 : f32
    %574 = vector.broadcast %cst_165 : f32 to vector<8x128xf32>
    %575 = arith.addf %574, %573 : vector<8x128xf32>
    %576 = arith.divf %574, %575 : vector<8x128xf32>
    %577 = vector.extract_strided_slice %570 {offsets = [0, 128], sizes = [8, 128], strides = [1, 1]} : vector<8x512xf32> to vector<8x128xf32>
    %578 = arith.negf %577 : vector<8x128xf32>
    %579 = math.exp %578 : vector<8x128xf32>
    %cst_166 = arith.constant 1.000000e+00 : f32
    %580 = vector.broadcast %cst_166 : f32 to vector<8x128xf32>
    %581 = arith.addf %580, %579 : vector<8x128xf32>
    %582 = arith.divf %580, %581 : vector<8x128xf32>
    %583 = vector.extract_strided_slice %570 {offsets = [0, 256], sizes = [8, 128], strides = [1, 1]} : vector<8x512xf32> to vector<8x128xf32>
    %584 = math.tanh %583 : vector<8x128xf32>
    %585 = vector.extract_strided_slice %570 {offsets = [0, 384], sizes = [8, 128], strides = [1, 1]} : vector<8x512xf32> to vector<8x128xf32>
    %586 = arith.negf %585 : vector<8x128xf32>
    %587 = math.exp %586 : vector<8x128xf32>
    %cst_167 = arith.constant 1.000000e+00 : f32
    %588 = vector.broadcast %cst_167 : f32 to vector<8x128xf32>
    %589 = arith.addf %588, %587 : vector<8x128xf32>
    %590 = arith.divf %588, %589 : vector<8x128xf32>
    %591 = arith.mulf %582, %513 : vector<8x128xf32>
    %592 = arith.mulf %576, %584 : vector<8x128xf32>
    %593 = arith.addf %591, %592 : vector<8x128xf32>
    %594 = math.tanh %593 : vector<8x128xf32>
    %595 = arith.mulf %590, %594 : vector<8x128xf32>
    %596 = vector.broadcast %566 : i32 to vector<8x1xi32>
    %597 = arith.cmpi slt, %596, %17 : vector<8x1xi32>
    %598 = vector.shape_cast %597 : vector<8x1xi1> to vector<8x1xi1>
    %599 = vector.broadcast %598 : vector<8x1xi1> to vector<8x128xi1>
    %600 = arith.select %599, %595, %510 : vector<8x128xi1>, vector<8x128xf32>
    %601 = vector.shape_cast %597 : vector<8x1xi1> to vector<8x1xi1>
    %602 = vector.broadcast %601 : vector<8x1xi1> to vector<8x128xi1>
    %603 = arith.select %602, %593, %513 : vector<8x128xi1>, vector<8x128xf32>
    %cst_168 = arith.constant 0.000000e+00 : f32
    %604 = vector.shape_cast %597 : vector<8x1xi1> to vector<8x1xi1>
    %605 = vector.broadcast %604 : vector<8x1xi1> to vector<8x128xi1>
    %606 = vector.broadcast %cst_168 : f32 to vector<8x128xf32>
    %607 = arith.select %605, %595, %606 : vector<8x128xi1>, vector<8x128xf32>
    %608 = arith.truncf %607 : vector<8x128xf32> to vector<8x128xbf16>
    %c48_169 = arith.constant 48 : index
    %c0_170 = arith.constant 0 : index
    %609 = vector.load %arg10[%c48_169, %c0_170] : memref<64x128xbf16, #tpu.memory_space<vmem>>, vector<8x128xbf16>
    tpu.vector_store %arg10[%c48_169, %c0_170], %608 {strides = array<i32>} : memref<64x128xbf16, #tpu.memory_space<vmem>>, vector<8x128xbf16>,
    %c8_171 = arith.constant 8 : index
    %c0_172 = arith.constant 0 : index
    %610 = vector.load %arg15[%c8_171, %c0_172] : memref<64x512xf32, #tpu.memory_space<vmem>>, vector<8x512xf32>
    %c1_i32_173 = arith.constant 1 : i32
    %611 = arith.addi %20, %c1_i32_173 : i32
    %612 = arith.truncf %555 : vector<8x128xf32> to vector<8x128xbf16>
    %c0_174 = arith.constant 0 : index
    %c0_175 = arith.constant 0 : index
    %613 = vector.load %arg9[%c0_174, %c0_175] : memref<128x512xbf16, #tpu.memory_space<vmem>>, vector<128x512xbf16>
    %cst_176 = arith.constant dense<0.000000e+00> : vector<8x512xf32>
    %614 = tpu.matmul %612, %613, %cst_176 {dimension_numbers = #tpu.dot_dimension_numbers<[1], [0], [0], [1], [0, 0, 1, 1], [], []>} : vector<8x128xbf16>, vector<128x512xbf16>, vector<8x512xf32> -> vector<8x512xf32>
    %615 = arith.addf %610, %614 : vector<8x512xf32>
    %616 = vector.extract_strided_slice %615 {offsets = [0, 0], sizes = [8, 128], strides = [1, 1]} : vector<8x512xf32> to vector<8x128xf32>
    %617 = arith.negf %616 : vector<8x128xf32>
    %618 = math.exp %617 : vector<8x128xf32>
    %cst_177 = arith.constant 1.000000e+00 : f32
    %619 = vector.broadcast %cst_177 : f32 to vector<8x128xf32>
    %620 = arith.addf %619, %618 : vector<8x128xf32>
    %621 = arith.divf %619, %620 : vector<8x128xf32>
    %622 = vector.extract_strided_slice %615 {offsets = [0, 128], sizes = [8, 128], strides = [1, 1]} : vector<8x512xf32> to vector<8x128xf32>
    %623 = arith.negf %622 : vector<8x128xf32>
    %624 = math.exp %623 : vector<8x128xf32>
    %cst_178 = arith.constant 1.000000e+00 : f32
    %625 = vector.broadcast %cst_178 : f32 to vector<8x128xf32>
    %626 = arith.addf %625, %624 : vector<8x128xf32>
    %627 = arith.divf %625, %626 : vector<8x128xf32>
    %628 = vector.extract_strided_slice %615 {offsets = [0, 256], sizes = [8, 128], strides = [1, 1]} : vector<8x512xf32> to vector<8x128xf32>
    %629 = math.tanh %628 : vector<8x128xf32>
    %630 = vector.extract_strided_slice %615 {offsets = [0, 384], sizes = [8, 128], strides = [1, 1]} : vector<8x512xf32> to vector<8x128xf32>
    %631 = arith.negf %630 : vector<8x128xf32>
    %632 = math.exp %631 : vector<8x128xf32>
    %cst_179 = arith.constant 1.000000e+00 : f32
    %633 = vector.broadcast %cst_179 : f32 to vector<8x128xf32>
    %634 = arith.addf %633, %632 : vector<8x128xf32>
    %635 = arith.divf %633, %634 : vector<8x128xf32>
    %636 = arith.mulf %627, %558 : vector<8x128xf32>
    %637 = arith.mulf %621, %629 : vector<8x128xf32>
    %638 = arith.addf %636, %637 : vector<8x128xf32>
    %639 = math.tanh %638 : vector<8x128xf32>
    %640 = arith.mulf %635, %639 : vector<8x128xf32>
    %641 = vector.broadcast %611 : i32 to vector<8x1xi32>
    %642 = arith.cmpi slt, %641, %17 : vector<8x1xi32>
    %643 = vector.shape_cast %642 : vector<8x1xi1> to vector<8x1xi1>
    %644 = vector.broadcast %643 : vector<8x1xi1> to vector<8x128xi1>
    %645 = arith.select %644, %640, %555 : vector<8x128xi1>, vector<8x128xf32>
    %646 = vector.shape_cast %642 : vector<8x1xi1> to vector<8x1xi1>
    %647 = vector.broadcast %646 : vector<8x1xi1> to vector<8x128xi1>
    %648 = arith.select %647, %638, %558 : vector<8x128xi1>, vector<8x128xf32>
    %cst_180 = arith.constant 0.000000e+00 : f32
    %649 = vector.shape_cast %642 : vector<8x1xi1> to vector<8x1xi1>
    %650 = vector.broadcast %649 : vector<8x1xi1> to vector<8x128xi1>
    %651 = vector.broadcast %cst_180 : f32 to vector<8x128xf32>
    %652 = arith.select %650, %640, %651 : vector<8x128xi1>, vector<8x128xf32>
    %653 = arith.truncf %652 : vector<8x128xf32> to vector<8x128xbf16>
    %c8_181 = arith.constant 8 : index
    %c0_182 = arith.constant 0 : index
    %654 = vector.load %arg11[%c8_181, %c0_182] : memref<64x128xbf16, #tpu.memory_space<vmem>>, vector<8x128xbf16>
    tpu.vector_store %arg11[%c8_181, %c0_182], %653 {strides = array<i32>} : memref<64x128xbf16, #tpu.memory_space<vmem>>, vector<8x128xbf16>,
    %c56_183 = arith.constant 56 : index
    %c0_184 = arith.constant 0 : index
    %655 = vector.load %arg14[%c56_183, %c0_184] : memref<64x512xf32, #tpu.memory_space<vmem>>, vector<8x512xf32>
    %c7_i32_185 = arith.constant 7 : i32
    %656 = arith.addi %18, %c7_i32_185 : i32
    %657 = arith.truncf %600 : vector<8x128xf32> to vector<8x128xbf16>
    %c0_186 = arith.constant 0 : index
    %c0_187 = arith.constant 0 : index
    %658 = vector.load %arg8[%c0_186, %c0_187] : memref<128x512xbf16, #tpu.memory_space<vmem>>, vector<128x512xbf16>
    %cst_188 = arith.constant dense<0.000000e+00> : vector<8x512xf32>
    %659 = tpu.matmul %657, %658, %cst_188 {dimension_numbers = #tpu.dot_dimension_numbers<[1], [0], [0], [1], [0, 0, 1, 1], [], []>} : vector<8x128xbf16>, vector<128x512xbf16>, vector<8x512xf32> -> vector<8x512xf32>
    %660 = arith.addf %655, %659 : vector<8x512xf32>
    %661 = vector.extract_strided_slice %660 {offsets = [0, 0], sizes = [8, 128], strides = [1, 1]} : vector<8x512xf32> to vector<8x128xf32>
    %662 = arith.negf %661 : vector<8x128xf32>
    %663 = math.exp %662 : vector<8x128xf32>
    %cst_189 = arith.constant 1.000000e+00 : f32
    %664 = vector.broadcast %cst_189 : f32 to vector<8x128xf32>
    %665 = arith.addf %664, %663 : vector<8x128xf32>
    %666 = arith.divf %664, %665 : vector<8x128xf32>
    %667 = vector.extract_strided_slice %660 {offsets = [0, 128], sizes = [8, 128], strides = [1, 1]} : vector<8x512xf32> to vector<8x128xf32>
    %668 = arith.negf %667 : vector<8x128xf32>
    %669 = math.exp %668 : vector<8x128xf32>
    %cst_190 = arith.constant 1.000000e+00 : f32
    %670 = vector.broadcast %cst_190 : f32 to vector<8x128xf32>
    %671 = arith.addf %670, %669 : vector<8x128xf32>
    %672 = arith.divf %670, %671 : vector<8x128xf32>
    %673 = vector.extract_strided_slice %660 {offsets = [0, 256], sizes = [8, 128], strides = [1, 1]} : vector<8x512xf32> to vector<8x128xf32>
    %674 = math.tanh %673 : vector<8x128xf32>
    %675 = vector.extract_strided_slice %660 {offsets = [0, 384], sizes = [8, 128], strides = [1, 1]} : vector<8x512xf32> to vector<8x128xf32>
    %676 = arith.negf %675 : vector<8x128xf32>
    %677 = math.exp %676 : vector<8x128xf32>
    %cst_191 = arith.constant 1.000000e+00 : f32
    %678 = vector.broadcast %cst_191 : f32 to vector<8x128xf32>
    %679 = arith.addf %678, %677 : vector<8x128xf32>
    %680 = arith.divf %678, %679 : vector<8x128xf32>
    %681 = arith.mulf %672, %603 : vector<8x128xf32>
    %682 = arith.mulf %666, %674 : vector<8x128xf32>
    %683 = arith.addf %681, %682 : vector<8x128xf32>
    %684 = math.tanh %683 : vector<8x128xf32>
    %685 = arith.mulf %680, %684 : vector<8x128xf32>
    %686 = vector.broadcast %656 : i32 to vector<8x1xi32>
    %687 = arith.cmpi slt, %686, %17 : vector<8x1xi32>
    %688 = vector.shape_cast %687 : vector<8x1xi1> to vector<8x1xi1>
    %689 = vector.broadcast %688 : vector<8x1xi1> to vector<8x128xi1>
    %690 = arith.select %689, %685, %600 : vector<8x128xi1>, vector<8x128xf32>
    %691 = vector.shape_cast %687 : vector<8x1xi1> to vector<8x1xi1>
    %692 = vector.broadcast %691 : vector<8x1xi1> to vector<8x128xi1>
    %693 = arith.select %692, %683, %603 : vector<8x128xi1>, vector<8x128xf32>
    %cst_192 = arith.constant 0.000000e+00 : f32
    %694 = vector.shape_cast %687 : vector<8x1xi1> to vector<8x1xi1>
    %695 = vector.broadcast %694 : vector<8x1xi1> to vector<8x128xi1>
    %696 = vector.broadcast %cst_192 : f32 to vector<8x128xf32>
    %697 = arith.select %695, %685, %696 : vector<8x128xi1>, vector<8x128xf32>
    %698 = arith.truncf %697 : vector<8x128xf32> to vector<8x128xbf16>
    %c56_193 = arith.constant 56 : index
    %c0_194 = arith.constant 0 : index
    %699 = vector.load %arg10[%c56_193, %c0_194] : memref<64x128xbf16, #tpu.memory_space<vmem>>, vector<8x128xbf16>
    tpu.vector_store %arg10[%c56_193, %c0_194], %698 {strides = array<i32>} : memref<64x128xbf16, #tpu.memory_space<vmem>>, vector<8x128xbf16>,
    %c0_195 = arith.constant 0 : index
    %c0_196 = arith.constant 0 : index
    %700 = vector.load %arg15[%c0_195, %c0_196] : memref<64x512xf32, #tpu.memory_space<vmem>>, vector<8x512xf32>
    %c0_i32_197 = arith.constant 0 : i32
    %701 = arith.addi %20, %c0_i32_197 : i32
    %702 = arith.truncf %645 : vector<8x128xf32> to vector<8x128xbf16>
    %c0_198 = arith.constant 0 : index
    %c0_199 = arith.constant 0 : index
    %703 = vector.load %arg9[%c0_198, %c0_199] : memref<128x512xbf16, #tpu.memory_space<vmem>>, vector<128x512xbf16>
    %cst_200 = arith.constant dense<0.000000e+00> : vector<8x512xf32>
    %704 = tpu.matmul %702, %703, %cst_200 {dimension_numbers = #tpu.dot_dimension_numbers<[1], [0], [0], [1], [0, 0, 1, 1], [], []>} : vector<8x128xbf16>, vector<128x512xbf16>, vector<8x512xf32> -> vector<8x512xf32>
    %705 = arith.addf %700, %704 : vector<8x512xf32>
    %706 = vector.extract_strided_slice %705 {offsets = [0, 0], sizes = [8, 128], strides = [1, 1]} : vector<8x512xf32> to vector<8x128xf32>
    %707 = arith.negf %706 : vector<8x128xf32>
    %708 = math.exp %707 : vector<8x128xf32>
    %cst_201 = arith.constant 1.000000e+00 : f32
    %709 = vector.broadcast %cst_201 : f32 to vector<8x128xf32>
    %710 = arith.addf %709, %708 : vector<8x128xf32>
    %711 = arith.divf %709, %710 : vector<8x128xf32>
    %712 = vector.extract_strided_slice %705 {offsets = [0, 128], sizes = [8, 128], strides = [1, 1]} : vector<8x512xf32> to vector<8x128xf32>
    %713 = arith.negf %712 : vector<8x128xf32>
    %714 = math.exp %713 : vector<8x128xf32>
    %cst_202 = arith.constant 1.000000e+00 : f32
    %715 = vector.broadcast %cst_202 : f32 to vector<8x128xf32>
    %716 = arith.addf %715, %714 : vector<8x128xf32>
    %717 = arith.divf %715, %716 : vector<8x128xf32>
    %718 = vector.extract_strided_slice %705 {offsets = [0, 256], sizes = [8, 128], strides = [1, 1]} : vector<8x512xf32> to vector<8x128xf32>
    %719 = math.tanh %718 : vector<8x128xf32>
    %720 = vector.extract_strided_slice %705 {offsets = [0, 384], sizes = [8, 128], strides = [1, 1]} : vector<8x512xf32> to vector<8x128xf32>
    %721 = arith.negf %720 : vector<8x128xf32>
    %722 = math.exp %721 : vector<8x128xf32>
    %cst_203 = arith.constant 1.000000e+00 : f32
    %723 = vector.broadcast %cst_203 : f32 to vector<8x128xf32>
    %724 = arith.addf %723, %722 : vector<8x128xf32>
    %725 = arith.divf %723, %724 : vector<8x128xf32>
    %726 = arith.mulf %717, %648 : vector<8x128xf32>
    %727 = arith.mulf %711, %719 : vector<8x128xf32>
    %728 = arith.addf %726, %727 : vector<8x128xf32>
    %729 = math.tanh %728 : vector<8x128xf32>
    %730 = arith.mulf %725, %729 : vector<8x128xf32>
    %731 = vector.broadcast %701 : i32 to vector<8x1xi32>
    %732 = arith.cmpi slt, %731, %17 : vector<8x1xi32>
    %733 = vector.shape_cast %732 : vector<8x1xi1> to vector<8x1xi1>
    %734 = vector.broadcast %733 : vector<8x1xi1> to vector<8x128xi1>
    %735 = arith.select %734, %730, %645 : vector<8x128xi1>, vector<8x128xf32>
    %736 = vector.shape_cast %732 : vector<8x1xi1> to vector<8x1xi1>
    %737 = vector.broadcast %736 : vector<8x1xi1> to vector<8x128xi1>
    %738 = arith.select %737, %728, %648 : vector<8x128xi1>, vector<8x128xf32>
    %cst_204 = arith.constant 0.000000e+00 : f32
    %739 = vector.shape_cast %732 : vector<8x1xi1> to vector<8x1xi1>
    %740 = vector.broadcast %739 : vector<8x1xi1> to vector<8x128xi1>
    %741 = vector.broadcast %cst_204 : f32 to vector<8x128xf32>
    %742 = arith.select %740, %730, %741 : vector<8x128xi1>, vector<8x128xf32>
    %743 = arith.truncf %742 : vector<8x128xf32> to vector<8x128xbf16>
    %c0_205 = arith.constant 0 : index
    %c0_206 = arith.constant 0 : index
    %744 = vector.load %arg11[%c0_205, %c0_206] : memref<64x128xbf16, #tpu.memory_space<vmem>>, vector<8x128xbf16>
    tpu.vector_store %arg11[%c0_205, %c0_206], %743 {strides = array<i32>} : memref<64x128xbf16, #tpu.memory_space<vmem>>, vector<8x128xbf16>,
    %c0_207 = arith.constant 0 : index
    %c0_208 = arith.constant 0 : index
    %745 = vector.load %arg16[%c0_207, %c0_208] : memref<8x128xf32, #tpu.memory_space<vmem>>, vector<8x128xf32>
    tpu.vector_store %arg16[%c0_207, %c0_208], %690 {strides = array<i32>} : memref<8x128xf32, #tpu.memory_space<vmem>>, vector<8x128xf32>,
    %c0_209 = arith.constant 0 : index
    %c0_210 = arith.constant 0 : index
    %746 = vector.load %arg17[%c0_209, %c0_210] : memref<8x128xf32, #tpu.memory_space<vmem>>, vector<8x128xf32>
    tpu.vector_store %arg17[%c0_209, %c0_210], %693 {strides = array<i32>} : memref<8x128xf32, #tpu.memory_space<vmem>>, vector<8x128xf32>,
    %c0_211 = arith.constant 0 : index
    %c0_212 = arith.constant 0 : index
    %747 = vector.load %arg18[%c0_211, %c0_212] : memref<8x128xf32, #tpu.memory_space<vmem>>, vector<8x128xf32>
    tpu.vector_store %arg18[%c0_211, %c0_212], %735 {strides = array<i32>} : memref<8x128xf32, #tpu.memory_space<vmem>>, vector<8x128xf32>,
    %c0_213 = arith.constant 0 : index
    %c0_214 = arith.constant 0 : index
    %748 = vector.load %arg19[%c0_213, %c0_214] : memref<8x128xf32, #tpu.memory_space<vmem>>, vector<8x128xf32>
    tpu.vector_store %arg19[%c0_213, %c0_214], %738 {strides = array<i32>} : memref<8x128xf32, #tpu.memory_space<vmem>>, vector<8x128xf32>,
    %c0_i32_215 = arith.constant 0 : i32
    %749 = arith.cmpi eq, %arg0, %c0_i32_215 : i32
    %750 = arith.extui %749 : i1 to i32
    %c0_i32_216 = arith.constant 0 : i32
    %751 = arith.cmpi ne, %750, %c0_i32_216 : i32
    scf.if %751 {
      %c0_217 = arith.constant 0 : index
      %c0_218 = arith.constant 0 : index
      %752 = vector.load %arg12[%c0_217, %c0_218] : memref<8x128xf32, #tpu.memory_space<vmem>>, vector<8x128xf32>
      tpu.vector_store %arg12[%c0_217, %c0_218], %690 {strides = array<i32>} : memref<8x128xf32, #tpu.memory_space<vmem>>, vector<8x128xf32>,
      %c0_219 = arith.constant 0 : index
      %c0_220 = arith.constant 0 : index
      %753 = vector.load %arg13[%c0_219, %c0_220] : memref<8x128xf32, #tpu.memory_space<vmem>>, vector<8x128xf32>
      tpu.vector_store %arg13[%c0_219, %c0_220], %735 {strides = array<i32>} : memref<8x128xf32, #tpu.memory_space<vmem>>, vector<8x128xf32>,
    } else {
    }
    return
  }
  func.func @transform_0(%arg0: i32) -> (i32, i32) {
    %c0_i32 = arith.constant 0 : i32
    %c0_i32_0 = arith.constant 0 : i32
    %c0_i32_1 = arith.constant 0 : i32
    return %c0_i32, %c0_i32_0 : i32, i32
  }
  func.func @transform_1(%arg0: i32) -> (i32, i32) {
    %c0_i32 = arith.constant 0 : i32
    %c0_i32_0 = arith.constant 0 : i32
    return %arg0, %c0_i32 : i32, i32
  }
  func.func @transform_2(%arg0: i32) -> (i32, i32) {
    %c0_i32 = arith.constant 0 : i32
    %0 = arith.subi %c0_i32, %arg0 : i32
    %c0_i32_0 = arith.constant 0 : i32
    %c0_i32_1 = arith.constant 0 : i32
    return %0, %c0_i32_0 : i32, i32
  }
  func.func @transform_3(%arg0: i32) -> (i32, i32) {
    %c0_i32 = arith.constant 0 : i32
    %c0_i32_0 = arith.constant 0 : i32
    %c0_i32_1 = arith.constant 0 : i32
    return %c0_i32, %c0_i32_0 : i32, i32
  }
  func.func @transform_4(%arg0: i32) -> (i32, i32) {
    %c0_i32 = arith.constant 0 : i32
    %c0_i32_0 = arith.constant 0 : i32
    %c0_i32_1 = arith.constant 0 : i32
    return %c0_i32, %c0_i32_0 : i32, i32
  }
  func.func @transform_5(%arg0: i32) -> (i32, i32) {
    %c0_i32 = arith.constant 0 : i32
    %c0_i32_0 = arith.constant 0 : i32
    %c0_i32_1 = arith.constant 0 : i32
    return %c0_i32, %c0_i32_0 : i32, i32
  }
  func.func @transform_6(%arg0: i32) -> (i32, i32) {
    %c0_i32 = arith.constant 0 : i32
    %c0_i32_0 = arith.constant 0 : i32
    %c0_i32_1 = arith.constant 0 : i32
    return %c0_i32, %c0_i32_0 : i32, i32
  }
  func.func @transform_7(%arg0: i32) -> (i32, i32) {
    %c0_i32 = arith.constant 0 : i32
    %c0_i32_0 = arith.constant 0 : i32
    %c0_i32_1 = arith.constant 0 : i32
    return %c0_i32, %c0_i32_0 : i32, i32
  }
  func.func @transform_8(%arg0: i32) -> (i32, i32) {
    %c0_i32 = arith.constant 0 : i32
    %c0_i32_0 = arith.constant 0 : i32
    %c0_i32_1 = arith.constant 0 : i32
    return %c0_i32, %c0_i32_0 : i32, i32
  }
  func.func @transform_9(%arg0: i32) -> (i32, i32) {
    %c0_i32 = arith.constant 0 : i32
    %c0_i32_0 = arith.constant 0 : i32
    return %arg0, %c0_i32 : i32, i32
  }
  func.func @transform_10(%arg0: i32) -> (i32, i32) {
    %c0_i32 = arith.constant 0 : i32
    %0 = arith.subi %c0_i32, %arg0 : i32
    %c0_i32_0 = arith.constant 0 : i32
    %c0_i32_1 = arith.constant 0 : i32
    return %0, %c0_i32_0 : i32, i32
  }
  func.func @transform_11(%arg0: i32) -> (i32, i32) {
    %c0_i32 = arith.constant 0 : i32
    %c0_i32_0 = arith.constant 0 : i32
    %c0_i32_1 = arith.constant 0 : i32
    return %c0_i32, %c0_i32_0 : i32, i32
  }
  func.func @transform_12(%arg0: i32) -> (i32, i32) {
    %c0_i32 = arith.constant 0 : i32
    %c0_i32_0 = arith.constant 0 : i32
    %c0_i32_1 = arith.constant 0 : i32
    return %c0_i32, %c0_i32_0 : i32, i32
  }
}

module attributes {stable_mosaic.version = 11 : i64} {
  func.func @_bilstm_layer_kernel(%arg0: i32, %arg1: memref<8x1xi32, #tpu.memory_space<vmem>>, %arg2: memref<64x128xbf16, #tpu.memory_space<vmem>>, %arg3: memref<64x128xbf16, #tpu.memory_space<vmem>>, %arg4: memref<64x128xbf16, #tpu.memory_space<vmem>>, %arg5: memref<64x128xbf16, #tpu.memory_space<vmem>>, %arg6: memref<128x512xbf16, #tpu.memory_space<vmem>>, %arg7: memref<128x512xbf16, #tpu.memory_space<vmem>>, %arg8: memref<128x512xbf16, #tpu.memory_space<vmem>>, %arg9: memref<128x512xbf16, #tpu.memory_space<vmem>>, %arg10: memref<1x512xf32, #tpu.memory_space<vmem>>, %arg11: memref<1x512xf32, #tpu.memory_space<vmem>>, %arg12: memref<128x512xbf16, #tpu.memory_space<vmem>>, %arg13: memref<128x512xbf16, #tpu.memory_space<vmem>>, %arg14: memref<64x128xbf16, #tpu.memory_space<vmem>>, %arg15: memref<64x128xbf16, #tpu.memory_space<vmem>>, %arg16: memref<8x128xf32, #tpu.memory_space<vmem>>, %arg17: memref<8x128xf32, #tpu.memory_space<vmem>>, %arg18: memref<64x512xf32, #tpu.memory_space<vmem>>, %arg19: memref<64x512xf32, #tpu.memory_space<vmem>>, %arg20: memref<8x128xf32, #tpu.memory_space<vmem>>, %arg21: memref<8x128xf32, #tpu.memory_space<vmem>>, %arg22: memref<8x128xf32, #tpu.memory_space<vmem>>, %arg23: memref<8x128xf32, #tpu.memory_space<vmem>>) attributes {dimension_semantics = [#tpu.dimension_semantics<arbitrary>], iteration_bounds = array<i64: 1>, scalar_prefetch = 0 : i64, scratch_operands = 6 : i64, tpu.core_type = #tpu.core_type<tc>, window_params = [{pipeline_mode = #tpu.pipeline_mode<synchronous>, transform_indices = @transform_0, window_bounds = array<i64: 8, 1>}, {transform_indices = @transform_1, window_bounds = array<i64: 64, 128>}, {transform_indices = @transform_2, window_bounds = array<i64: 64, 128>}, {transform_indices = @transform_3, window_bounds = array<i64: 64, 128>}, {transform_indices = @transform_4, window_bounds = array<i64: 64, 128>}, {pipeline_mode = #tpu.pipeline_mode<synchronous>, transform_indices = @transform_5, window_bounds = array<i64: 128, 512>}, {pipeline_mode = #tpu.pipeline_mode<synchronous>, transform_indices = @transform_6, window_bounds = array<i64: 128, 512>}, {pipeline_mode = #tpu.pipeline_mode<synchronous>, transform_indices = @transform_7, window_bounds = array<i64: 128, 512>}, {pipeline_mode = #tpu.pipeline_mode<synchronous>, transform_indices = @transform_8, window_bounds = array<i64: 128, 512>}, {pipeline_mode = #tpu.pipeline_mode<synchronous>, transform_indices = @transform_9, window_bounds = array<i64: 1, 512>}, {pipeline_mode = #tpu.pipeline_mode<synchronous>, transform_indices = @transform_10, window_bounds = array<i64: 1, 512>}, {pipeline_mode = #tpu.pipeline_mode<synchronous>, transform_indices = @transform_11, window_bounds = array<i64: 128, 512>}, {pipeline_mode = #tpu.pipeline_mode<synchronous>, transform_indices = @transform_12, window_bounds = array<i64: 128, 512>}, {transform_indices = @transform_13, window_bounds = array<i64: 64, 128>}, {transform_indices = @transform_14, window_bounds = array<i64: 64, 128>}, {pipeline_mode = #tpu.pipeline_mode<synchronous>, transform_indices = @transform_15, window_bounds = array<i64: 8, 128>}, {pipeline_mode = #tpu.pipeline_mode<synchronous>, transform_indices = @transform_16, window_bounds = array<i64: 8, 128>}]} {
    %c0_i32 = arith.constant 0 : i32
    %0 = arith.cmpi eq, %arg0, %c0_i32 : i32
    %1 = arith.extui %0 : i1 to i32
    %c0_i32_0 = arith.constant 0 : i32
    %2 = arith.cmpi ne, %1, %c0_i32_0 : i32
    scf.if %2 {
      %cst_227 = arith.constant 0.000000e+00 : f32
      %760 = vector.broadcast %cst_227 : f32 to vector<8x128xf32>
      %c0_228 = arith.constant 0 : index
      %c0_229 = arith.constant 0 : index
      %761 = vector.load %arg20[%c0_228, %c0_229] : memref<8x128xf32, #tpu.memory_space<vmem>>, vector<8x128xf32>
      tpu.vector_store %arg20[%c0_228, %c0_229], %760 {strides = array<i32>} : memref<8x128xf32, #tpu.memory_space<vmem>>, vector<8x128xf32>,
      %cst_230 = arith.constant 0.000000e+00 : f32
      %762 = vector.broadcast %cst_230 : f32 to vector<8x128xf32>
      %c0_231 = arith.constant 0 : index
      %c0_232 = arith.constant 0 : index
      %763 = vector.load %arg21[%c0_231, %c0_232] : memref<8x128xf32, #tpu.memory_space<vmem>>, vector<8x128xf32>
      tpu.vector_store %arg21[%c0_231, %c0_232], %762 {strides = array<i32>} : memref<8x128xf32, #tpu.memory_space<vmem>>, vector<8x128xf32>,
      %cst_233 = arith.constant 0.000000e+00 : f32
      %764 = vector.broadcast %cst_233 : f32 to vector<8x128xf32>
      %c0_234 = arith.constant 0 : index
      %c0_235 = arith.constant 0 : index
      %765 = vector.load %arg22[%c0_234, %c0_235] : memref<8x128xf32, #tpu.memory_space<vmem>>, vector<8x128xf32>
      tpu.vector_store %arg22[%c0_234, %c0_235], %764 {strides = array<i32>} : memref<8x128xf32, #tpu.memory_space<vmem>>, vector<8x128xf32>,
      %cst_236 = arith.constant 0.000000e+00 : f32
      %766 = vector.broadcast %cst_236 : f32 to vector<8x128xf32>
      %c0_237 = arith.constant 0 : index
      %c0_238 = arith.constant 0 : index
      %767 = vector.load %arg23[%c0_237, %c0_238] : memref<8x128xf32, #tpu.memory_space<vmem>>, vector<8x128xf32>
      tpu.vector_store %arg23[%c0_237, %c0_238], %766 {strides = array<i32>} : memref<8x128xf32, #tpu.memory_space<vmem>>, vector<8x128xf32>,
    } else {
    }
    %c0 = arith.constant 0 : index
    %c0_1 = arith.constant 0 : index
    %3 = vector.load %arg10[%c0, %c0_1] : memref<1x512xf32, #tpu.memory_space<vmem>>, vector<1x512xf32>
    %c0_2 = arith.constant 0 : index
    %c0_3 = arith.constant 0 : index
    %4 = vector.load %arg2[%c0_2, %c0_3] : memref<64x128xbf16, #tpu.memory_space<vmem>>, vector<64x128xbf16>
    %c0_4 = arith.constant 0 : index
    %c0_5 = arith.constant 0 : index
    %5 = vector.load %arg6[%c0_4, %c0_5] : memref<128x512xbf16, #tpu.memory_space<vmem>>, vector<128x512xbf16>
    %cst = arith.constant dense<0.000000e+00> : vector<64x512xf32>
    %6 = tpu.matmul %4, %5, %cst {dimension_numbers = #tpu.dot_dimension_numbers<[1], [0], [0], [1], [0, 0, 1, 1], [], []>} : vector<64x128xbf16>, vector<128x512xbf16>, vector<64x512xf32> -> vector<64x512xf32>
    %7 = vector.broadcast %3 : vector<1x512xf32> to vector<64x512xf32>
    %8 = arith.addf %7, %6 : vector<64x512xf32>
    %c0_6 = arith.constant 0 : index
    %c0_7 = arith.constant 0 : index
    %9 = vector.load %arg3[%c0_6, %c0_7] : memref<64x128xbf16, #tpu.memory_space<vmem>>, vector<64x128xbf16>
    %c0_8 = arith.constant 0 : index
    %c0_9 = arith.constant 0 : index
    %10 = vector.load %arg7[%c0_8, %c0_9] : memref<128x512xbf16, #tpu.memory_space<vmem>>, vector<128x512xbf16>
    %cst_10 = arith.constant dense<0.000000e+00> : vector<64x512xf32>
    %11 = tpu.matmul %9, %10, %cst_10 {dimension_numbers = #tpu.dot_dimension_numbers<[1], [0], [0], [1], [0, 0, 1, 1], [], []>} : vector<64x128xbf16>, vector<128x512xbf16>, vector<64x512xf32> -> vector<64x512xf32>
    %12 = arith.addf %8, %11 : vector<64x512xf32>
    %c0_11 = arith.constant 0 : index
    %c0_12 = arith.constant 0 : index
    %13 = vector.load %arg18[%c0_11, %c0_12] : memref<64x512xf32, #tpu.memory_space<vmem>>, vector<64x512xf32>
    tpu.vector_store %arg18[%c0_11, %c0_12], %12 {strides = array<i32>} : memref<64x512xf32, #tpu.memory_space<vmem>>, vector<64x512xf32>,
    %c0_13 = arith.constant 0 : index
    %c0_14 = arith.constant 0 : index
    %14 = vector.load %arg11[%c0_13, %c0_14] : memref<1x512xf32, #tpu.memory_space<vmem>>, vector<1x512xf32>
    %c0_15 = arith.constant 0 : index
    %c0_16 = arith.constant 0 : index
    %15 = vector.load %arg4[%c0_15, %c0_16] : memref<64x128xbf16, #tpu.memory_space<vmem>>, vector<64x128xbf16>
    %c0_17 = arith.constant 0 : index
    %c0_18 = arith.constant 0 : index
    %16 = vector.load %arg8[%c0_17, %c0_18] : memref<128x512xbf16, #tpu.memory_space<vmem>>, vector<128x512xbf16>
    %cst_19 = arith.constant dense<0.000000e+00> : vector<64x512xf32>
    %17 = tpu.matmul %15, %16, %cst_19 {dimension_numbers = #tpu.dot_dimension_numbers<[1], [0], [0], [1], [0, 0, 1, 1], [], []>} : vector<64x128xbf16>, vector<128x512xbf16>, vector<64x512xf32> -> vector<64x512xf32>
    %18 = vector.broadcast %14 : vector<1x512xf32> to vector<64x512xf32>
    %19 = arith.addf %18, %17 : vector<64x512xf32>
    %c0_20 = arith.constant 0 : index
    %c0_21 = arith.constant 0 : index
    %20 = vector.load %arg5[%c0_20, %c0_21] : memref<64x128xbf16, #tpu.memory_space<vmem>>, vector<64x128xbf16>
    %c0_22 = arith.constant 0 : index
    %c0_23 = arith.constant 0 : index
    %21 = vector.load %arg9[%c0_22, %c0_23] : memref<128x512xbf16, #tpu.memory_space<vmem>>, vector<128x512xbf16>
    %cst_24 = arith.constant dense<0.000000e+00> : vector<64x512xf32>
    %22 = tpu.matmul %20, %21, %cst_24 {dimension_numbers = #tpu.dot_dimension_numbers<[1], [0], [0], [1], [0, 0, 1, 1], [], []>} : vector<64x128xbf16>, vector<128x512xbf16>, vector<64x512xf32> -> vector<64x512xf32>
    %23 = arith.addf %19, %22 : vector<64x512xf32>
    %c0_25 = arith.constant 0 : index
    %c0_26 = arith.constant 0 : index
    %24 = vector.load %arg19[%c0_25, %c0_26] : memref<64x512xf32, #tpu.memory_space<vmem>>, vector<64x512xf32>
    tpu.vector_store %arg19[%c0_25, %c0_26], %23 {strides = array<i32>} : memref<64x512xf32, #tpu.memory_space<vmem>>, vector<64x512xf32>,
    %c0_27 = arith.constant 0 : index
    %c0_28 = arith.constant 0 : index
    %25 = vector.load %arg1[%c0_27, %c0_28] : memref<8x1xi32, #tpu.memory_space<vmem>>, vector<8x1xi32>
    %c8_i32 = arith.constant 8 : i32
    %26 = arith.muli %arg0, %c8_i32 : i32
    %c0_i32_29 = arith.constant 0 : i32
    %27 = arith.subi %c0_i32_29, %arg0 : i32
    %c8_i32_30 = arith.constant 8 : i32
    %28 = arith.muli %27, %c8_i32_30 : i32
    %c0_31 = arith.constant 0 : index
    %c0_32 = arith.constant 0 : index
    %29 = vector.load %arg20[%c0_31, %c0_32] : memref<8x128xf32, #tpu.memory_space<vmem>>, vector<8x128xf32>
    %c0_33 = arith.constant 0 : index
    %c0_34 = arith.constant 0 : index
    %30 = vector.load %arg21[%c0_33, %c0_34] : memref<8x128xf32, #tpu.memory_space<vmem>>, vector<8x128xf32>
    %c0_35 = arith.constant 0 : index
    %c0_36 = arith.constant 0 : index
    %31 = vector.load %arg22[%c0_35, %c0_36] : memref<8x128xf32, #tpu.memory_space<vmem>>, vector<8x128xf32>
    %c0_37 = arith.constant 0 : index
    %c0_38 = arith.constant 0 : index
    %32 = vector.load %arg23[%c0_37, %c0_38] : memref<8x128xf32, #tpu.memory_space<vmem>>, vector<8x128xf32>
    %c0_39 = arith.constant 0 : index
    %c0_40 = arith.constant 0 : index
    %33 = vector.load %arg18[%c0_39, %c0_40] : memref<64x512xf32, #tpu.memory_space<vmem>>, vector<8x512xf32>
    %c0_i32_41 = arith.constant 0 : i32
    %34 = arith.addi %26, %c0_i32_41 : i32
    %35 = arith.truncf %29 : vector<8x128xf32> to vector<8x128xbf16>
    %c0_42 = arith.constant 0 : index
    %c0_43 = arith.constant 0 : index
    %36 = vector.load %arg12[%c0_42, %c0_43] : memref<128x512xbf16, #tpu.memory_space<vmem>>, vector<128x512xbf16>
    %cst_44 = arith.constant dense<0.000000e+00> : vector<8x512xf32>
    %37 = tpu.matmul %35, %36, %cst_44 {dimension_numbers = #tpu.dot_dimension_numbers<[1], [0], [0], [1], [0, 0, 1, 1], [], []>} : vector<8x128xbf16>, vector<128x512xbf16>, vector<8x512xf32> -> vector<8x512xf32>
    %38 = arith.addf %33, %37 : vector<8x512xf32>
    %39 = vector.extract_strided_slice %38 {offsets = [0, 0], sizes = [8, 128], strides = [1, 1]} : vector<8x512xf32> to vector<8x128xf32>
    %40 = arith.negf %39 : vector<8x128xf32>
    %41 = math.exp %40 : vector<8x128xf32>
    %cst_45 = arith.constant 1.000000e+00 : f32
    %42 = vector.broadcast %cst_45 : f32 to vector<8x128xf32>
    %43 = arith.addf %42, %41 : vector<8x128xf32>
    %44 = arith.divf %42, %43 : vector<8x128xf32>
    %45 = vector.extract_strided_slice %38 {offsets = [0, 128], sizes = [8, 128], strides = [1, 1]} : vector<8x512xf32> to vector<8x128xf32>
    %46 = arith.negf %45 : vector<8x128xf32>
    %47 = math.exp %46 : vector<8x128xf32>
    %cst_46 = arith.constant 1.000000e+00 : f32
    %48 = vector.broadcast %cst_46 : f32 to vector<8x128xf32>
    %49 = arith.addf %48, %47 : vector<8x128xf32>
    %50 = arith.divf %48, %49 : vector<8x128xf32>
    %51 = vector.extract_strided_slice %38 {offsets = [0, 256], sizes = [8, 128], strides = [1, 1]} : vector<8x512xf32> to vector<8x128xf32>
    %52 = math.tanh %51 : vector<8x128xf32>
    %53 = vector.extract_strided_slice %38 {offsets = [0, 384], sizes = [8, 128], strides = [1, 1]} : vector<8x512xf32> to vector<8x128xf32>
    %54 = arith.negf %53 : vector<8x128xf32>
    %55 = math.exp %54 : vector<8x128xf32>
    %cst_47 = arith.constant 1.000000e+00 : f32
    %56 = vector.broadcast %cst_47 : f32 to vector<8x128xf32>
    %57 = arith.addf %56, %55 : vector<8x128xf32>
    %58 = arith.divf %56, %57 : vector<8x128xf32>
    %59 = arith.mulf %50, %30 : vector<8x128xf32>
    %60 = arith.mulf %44, %52 : vector<8x128xf32>
    %61 = arith.addf %59, %60 : vector<8x128xf32>
    %62 = math.tanh %61 : vector<8x128xf32>
    %63 = arith.mulf %58, %62 : vector<8x128xf32>
    %64 = vector.broadcast %34 : i32 to vector<8x1xi32>
    %65 = arith.cmpi slt, %64, %25 : vector<8x1xi32>
    %66 = vector.shape_cast %65 : vector<8x1xi1> to vector<8x1xi1>
    %67 = vector.broadcast %66 : vector<8x1xi1> to vector<8x128xi1>
    %68 = arith.select %67, %63, %29 : vector<8x128xi1>, vector<8x128xf32>
    %69 = vector.shape_cast %65 : vector<8x1xi1> to vector<8x1xi1>
    %70 = vector.broadcast %69 : vector<8x1xi1> to vector<8x128xi1>
    %71 = arith.select %70, %61, %30 : vector<8x128xi1>, vector<8x128xf32>
    %cst_48 = arith.constant 0.000000e+00 : f32
    %72 = vector.shape_cast %65 : vector<8x1xi1> to vector<8x1xi1>
    %73 = vector.broadcast %72 : vector<8x1xi1> to vector<8x128xi1>
    %74 = vector.broadcast %cst_48 : f32 to vector<8x128xf32>
    %75 = arith.select %73, %63, %74 : vector<8x128xi1>, vector<8x128xf32>
    %76 = arith.truncf %75 : vector<8x128xf32> to vector<8x128xbf16>
    %c0_49 = arith.constant 0 : index
    %c0_50 = arith.constant 0 : index
    %77 = vector.load %arg14[%c0_49, %c0_50] : memref<64x128xbf16, #tpu.memory_space<vmem>>, vector<8x128xbf16>
    tpu.vector_store %arg14[%c0_49, %c0_50], %76 {strides = array<i32>} : memref<64x128xbf16, #tpu.memory_space<vmem>>, vector<8x128xbf16>,
    %c56 = arith.constant 56 : index
    %c0_51 = arith.constant 0 : index
    %78 = vector.load %arg19[%c56, %c0_51] : memref<64x512xf32, #tpu.memory_space<vmem>>, vector<8x512xf32>
    %c7_i32 = arith.constant 7 : i32
    %79 = arith.addi %28, %c7_i32 : i32
    %80 = arith.truncf %31 : vector<8x128xf32> to vector<8x128xbf16>
    %c0_52 = arith.constant 0 : index
    %c0_53 = arith.constant 0 : index
    %81 = vector.load %arg13[%c0_52, %c0_53] : memref<128x512xbf16, #tpu.memory_space<vmem>>, vector<128x512xbf16>
    %cst_54 = arith.constant dense<0.000000e+00> : vector<8x512xf32>
    %82 = tpu.matmul %80, %81, %cst_54 {dimension_numbers = #tpu.dot_dimension_numbers<[1], [0], [0], [1], [0, 0, 1, 1], [], []>} : vector<8x128xbf16>, vector<128x512xbf16>, vector<8x512xf32> -> vector<8x512xf32>
    %83 = arith.addf %78, %82 : vector<8x512xf32>
    %84 = vector.extract_strided_slice %83 {offsets = [0, 0], sizes = [8, 128], strides = [1, 1]} : vector<8x512xf32> to vector<8x128xf32>
    %85 = arith.negf %84 : vector<8x128xf32>
    %86 = math.exp %85 : vector<8x128xf32>
    %cst_55 = arith.constant 1.000000e+00 : f32
    %87 = vector.broadcast %cst_55 : f32 to vector<8x128xf32>
    %88 = arith.addf %87, %86 : vector<8x128xf32>
    %89 = arith.divf %87, %88 : vector<8x128xf32>
    %90 = vector.extract_strided_slice %83 {offsets = [0, 128], sizes = [8, 128], strides = [1, 1]} : vector<8x512xf32> to vector<8x128xf32>
    %91 = arith.negf %90 : vector<8x128xf32>
    %92 = math.exp %91 : vector<8x128xf32>
    %cst_56 = arith.constant 1.000000e+00 : f32
    %93 = vector.broadcast %cst_56 : f32 to vector<8x128xf32>
    %94 = arith.addf %93, %92 : vector<8x128xf32>
    %95 = arith.divf %93, %94 : vector<8x128xf32>
    %96 = vector.extract_strided_slice %83 {offsets = [0, 256], sizes = [8, 128], strides = [1, 1]} : vector<8x512xf32> to vector<8x128xf32>
    %97 = math.tanh %96 : vector<8x128xf32>
    %98 = vector.extract_strided_slice %83 {offsets = [0, 384], sizes = [8, 128], strides = [1, 1]} : vector<8x512xf32> to vector<8x128xf32>
    %99 = arith.negf %98 : vector<8x128xf32>
    %100 = math.exp %99 : vector<8x128xf32>
    %cst_57 = arith.constant 1.000000e+00 : f32
    %101 = vector.broadcast %cst_57 : f32 to vector<8x128xf32>
    %102 = arith.addf %101, %100 : vector<8x128xf32>
    %103 = arith.divf %101, %102 : vector<8x128xf32>
    %104 = arith.mulf %95, %32 : vector<8x128xf32>
    %105 = arith.mulf %89, %97 : vector<8x128xf32>
    %106 = arith.addf %104, %105 : vector<8x128xf32>
    %107 = math.tanh %106 : vector<8x128xf32>
    %108 = arith.mulf %103, %107 : vector<8x128xf32>
    %109 = vector.broadcast %79 : i32 to vector<8x1xi32>
    %110 = arith.cmpi slt, %109, %25 : vector<8x1xi32>
    %111 = vector.shape_cast %110 : vector<8x1xi1> to vector<8x1xi1>
    %112 = vector.broadcast %111 : vector<8x1xi1> to vector<8x128xi1>
    %113 = arith.select %112, %108, %31 : vector<8x128xi1>, vector<8x128xf32>
    %114 = vector.shape_cast %110 : vector<8x1xi1> to vector<8x1xi1>
    %115 = vector.broadcast %114 : vector<8x1xi1> to vector<8x128xi1>
    %116 = arith.select %115, %106, %32 : vector<8x128xi1>, vector<8x128xf32>
    %cst_58 = arith.constant 0.000000e+00 : f32
    %117 = vector.shape_cast %110 : vector<8x1xi1> to vector<8x1xi1>
    %118 = vector.broadcast %117 : vector<8x1xi1> to vector<8x128xi1>
    %119 = vector.broadcast %cst_58 : f32 to vector<8x128xf32>
    %120 = arith.select %118, %108, %119 : vector<8x128xi1>, vector<8x128xf32>
    %121 = arith.truncf %120 : vector<8x128xf32> to vector<8x128xbf16>
    %c56_59 = arith.constant 56 : index
    %c0_60 = arith.constant 0 : index
    %122 = vector.load %arg15[%c56_59, %c0_60] : memref<64x128xbf16, #tpu.memory_space<vmem>>, vector<8x128xbf16>
    tpu.vector_store %arg15[%c56_59, %c0_60], %121 {strides = array<i32>} : memref<64x128xbf16, #tpu.memory_space<vmem>>, vector<8x128xbf16>,
    %c8 = arith.constant 8 : index
    %c0_61 = arith.constant 0 : index
    %123 = vector.load %arg18[%c8, %c0_61] : memref<64x512xf32, #tpu.memory_space<vmem>>, vector<8x512xf32>
    %c1_i32 = arith.constant 1 : i32
    %124 = arith.addi %26, %c1_i32 : i32
    %125 = arith.truncf %68 : vector<8x128xf32> to vector<8x128xbf16>
    %c0_62 = arith.constant 0 : index
    %c0_63 = arith.constant 0 : index
    %126 = vector.load %arg12[%c0_62, %c0_63] : memref<128x512xbf16, #tpu.memory_space<vmem>>, vector<128x512xbf16>
    %cst_64 = arith.constant dense<0.000000e+00> : vector<8x512xf32>
    %127 = tpu.matmul %125, %126, %cst_64 {dimension_numbers = #tpu.dot_dimension_numbers<[1], [0], [0], [1], [0, 0, 1, 1], [], []>} : vector<8x128xbf16>, vector<128x512xbf16>, vector<8x512xf32> -> vector<8x512xf32>
    %128 = arith.addf %123, %127 : vector<8x512xf32>
    %129 = vector.extract_strided_slice %128 {offsets = [0, 0], sizes = [8, 128], strides = [1, 1]} : vector<8x512xf32> to vector<8x128xf32>
    %130 = arith.negf %129 : vector<8x128xf32>
    %131 = math.exp %130 : vector<8x128xf32>
    %cst_65 = arith.constant 1.000000e+00 : f32
    %132 = vector.broadcast %cst_65 : f32 to vector<8x128xf32>
    %133 = arith.addf %132, %131 : vector<8x128xf32>
    %134 = arith.divf %132, %133 : vector<8x128xf32>
    %135 = vector.extract_strided_slice %128 {offsets = [0, 128], sizes = [8, 128], strides = [1, 1]} : vector<8x512xf32> to vector<8x128xf32>
    %136 = arith.negf %135 : vector<8x128xf32>
    %137 = math.exp %136 : vector<8x128xf32>
    %cst_66 = arith.constant 1.000000e+00 : f32
    %138 = vector.broadcast %cst_66 : f32 to vector<8x128xf32>
    %139 = arith.addf %138, %137 : vector<8x128xf32>
    %140 = arith.divf %138, %139 : vector<8x128xf32>
    %141 = vector.extract_strided_slice %128 {offsets = [0, 256], sizes = [8, 128], strides = [1, 1]} : vector<8x512xf32> to vector<8x128xf32>
    %142 = math.tanh %141 : vector<8x128xf32>
    %143 = vector.extract_strided_slice %128 {offsets = [0, 384], sizes = [8, 128], strides = [1, 1]} : vector<8x512xf32> to vector<8x128xf32>
    %144 = arith.negf %143 : vector<8x128xf32>
    %145 = math.exp %144 : vector<8x128xf32>
    %cst_67 = arith.constant 1.000000e+00 : f32
    %146 = vector.broadcast %cst_67 : f32 to vector<8x128xf32>
    %147 = arith.addf %146, %145 : vector<8x128xf32>
    %148 = arith.divf %146, %147 : vector<8x128xf32>
    %149 = arith.mulf %140, %71 : vector<8x128xf32>
    %150 = arith.mulf %134, %142 : vector<8x128xf32>
    %151 = arith.addf %149, %150 : vector<8x128xf32>
    %152 = math.tanh %151 : vector<8x128xf32>
    %153 = arith.mulf %148, %152 : vector<8x128xf32>
    %154 = vector.broadcast %124 : i32 to vector<8x1xi32>
    %155 = arith.cmpi slt, %154, %25 : vector<8x1xi32>
    %156 = vector.shape_cast %155 : vector<8x1xi1> to vector<8x1xi1>
    %157 = vector.broadcast %156 : vector<8x1xi1> to vector<8x128xi1>
    %158 = arith.select %157, %153, %68 : vector<8x128xi1>, vector<8x128xf32>
    %159 = vector.shape_cast %155 : vector<8x1xi1> to vector<8x1xi1>
    %160 = vector.broadcast %159 : vector<8x1xi1> to vector<8x128xi1>
    %161 = arith.select %160, %151, %71 : vector<8x128xi1>, vector<8x128xf32>
    %cst_68 = arith.constant 0.000000e+00 : f32
    %162 = vector.shape_cast %155 : vector<8x1xi1> to vector<8x1xi1>
    %163 = vector.broadcast %162 : vector<8x1xi1> to vector<8x128xi1>
    %164 = vector.broadcast %cst_68 : f32 to vector<8x128xf32>
    %165 = arith.select %163, %153, %164 : vector<8x128xi1>, vector<8x128xf32>
    %166 = arith.truncf %165 : vector<8x128xf32> to vector<8x128xbf16>
    %c8_69 = arith.constant 8 : index
    %c0_70 = arith.constant 0 : index
    %167 = vector.load %arg14[%c8_69, %c0_70] : memref<64x128xbf16, #tpu.memory_space<vmem>>, vector<8x128xbf16>
    tpu.vector_store %arg14[%c8_69, %c0_70], %166 {strides = array<i32>} : memref<64x128xbf16, #tpu.memory_space<vmem>>, vector<8x128xbf16>,
    %c48 = arith.constant 48 : index
    %c0_71 = arith.constant 0 : index
    %168 = vector.load %arg19[%c48, %c0_71] : memref<64x512xf32, #tpu.memory_space<vmem>>, vector<8x512xf32>
    %c6_i32 = arith.constant 6 : i32
    %169 = arith.addi %28, %c6_i32 : i32
    %170 = arith.truncf %113 : vector<8x128xf32> to vector<8x128xbf16>
    %c0_72 = arith.constant 0 : index
    %c0_73 = arith.constant 0 : index
    %171 = vector.load %arg13[%c0_72, %c0_73] : memref<128x512xbf16, #tpu.memory_space<vmem>>, vector<128x512xbf16>
    %cst_74 = arith.constant dense<0.000000e+00> : vector<8x512xf32>
    %172 = tpu.matmul %170, %171, %cst_74 {dimension_numbers = #tpu.dot_dimension_numbers<[1], [0], [0], [1], [0, 0, 1, 1], [], []>} : vector<8x128xbf16>, vector<128x512xbf16>, vector<8x512xf32> -> vector<8x512xf32>
    %173 = arith.addf %168, %172 : vector<8x512xf32>
    %174 = vector.extract_strided_slice %173 {offsets = [0, 0], sizes = [8, 128], strides = [1, 1]} : vector<8x512xf32> to vector<8x128xf32>
    %175 = arith.negf %174 : vector<8x128xf32>
    %176 = math.exp %175 : vector<8x128xf32>
    %cst_75 = arith.constant 1.000000e+00 : f32
    %177 = vector.broadcast %cst_75 : f32 to vector<8x128xf32>
    %178 = arith.addf %177, %176 : vector<8x128xf32>
    %179 = arith.divf %177, %178 : vector<8x128xf32>
    %180 = vector.extract_strided_slice %173 {offsets = [0, 128], sizes = [8, 128], strides = [1, 1]} : vector<8x512xf32> to vector<8x128xf32>
    %181 = arith.negf %180 : vector<8x128xf32>
    %182 = math.exp %181 : vector<8x128xf32>
    %cst_76 = arith.constant 1.000000e+00 : f32
    %183 = vector.broadcast %cst_76 : f32 to vector<8x128xf32>
    %184 = arith.addf %183, %182 : vector<8x128xf32>
    %185 = arith.divf %183, %184 : vector<8x128xf32>
    %186 = vector.extract_strided_slice %173 {offsets = [0, 256], sizes = [8, 128], strides = [1, 1]} : vector<8x512xf32> to vector<8x128xf32>
    %187 = math.tanh %186 : vector<8x128xf32>
    %188 = vector.extract_strided_slice %173 {offsets = [0, 384], sizes = [8, 128], strides = [1, 1]} : vector<8x512xf32> to vector<8x128xf32>
    %189 = arith.negf %188 : vector<8x128xf32>
    %190 = math.exp %189 : vector<8x128xf32>
    %cst_77 = arith.constant 1.000000e+00 : f32
    %191 = vector.broadcast %cst_77 : f32 to vector<8x128xf32>
    %192 = arith.addf %191, %190 : vector<8x128xf32>
    %193 = arith.divf %191, %192 : vector<8x128xf32>
    %194 = arith.mulf %185, %116 : vector<8x128xf32>
    %195 = arith.mulf %179, %187 : vector<8x128xf32>
    %196 = arith.addf %194, %195 : vector<8x128xf32>
    %197 = math.tanh %196 : vector<8x128xf32>
    %198 = arith.mulf %193, %197 : vector<8x128xf32>
    %199 = vector.broadcast %169 : i32 to vector<8x1xi32>
    %200 = arith.cmpi slt, %199, %25 : vector<8x1xi32>
    %201 = vector.shape_cast %200 : vector<8x1xi1> to vector<8x1xi1>
    %202 = vector.broadcast %201 : vector<8x1xi1> to vector<8x128xi1>
    %203 = arith.select %202, %198, %113 : vector<8x128xi1>, vector<8x128xf32>
    %204 = vector.shape_cast %200 : vector<8x1xi1> to vector<8x1xi1>
    %205 = vector.broadcast %204 : vector<8x1xi1> to vector<8x128xi1>
    %206 = arith.select %205, %196, %116 : vector<8x128xi1>, vector<8x128xf32>
    %cst_78 = arith.constant 0.000000e+00 : f32
    %207 = vector.shape_cast %200 : vector<8x1xi1> to vector<8x1xi1>
    %208 = vector.broadcast %207 : vector<8x1xi1> to vector<8x128xi1>
    %209 = vector.broadcast %cst_78 : f32 to vector<8x128xf32>
    %210 = arith.select %208, %198, %209 : vector<8x128xi1>, vector<8x128xf32>
    %211 = arith.truncf %210 : vector<8x128xf32> to vector<8x128xbf16>
    %c48_79 = arith.constant 48 : index
    %c0_80 = arith.constant 0 : index
    %212 = vector.load %arg15[%c48_79, %c0_80] : memref<64x128xbf16, #tpu.memory_space<vmem>>, vector<8x128xbf16>
    tpu.vector_store %arg15[%c48_79, %c0_80], %211 {strides = array<i32>} : memref<64x128xbf16, #tpu.memory_space<vmem>>, vector<8x128xbf16>,
    %c16 = arith.constant 16 : index
    %c0_81 = arith.constant 0 : index
    %213 = vector.load %arg18[%c16, %c0_81] : memref<64x512xf32, #tpu.memory_space<vmem>>, vector<8x512xf32>
    %c2_i32 = arith.constant 2 : i32
    %214 = arith.addi %26, %c2_i32 : i32
    %215 = arith.truncf %158 : vector<8x128xf32> to vector<8x128xbf16>
    %c0_82 = arith.constant 0 : index
    %c0_83 = arith.constant 0 : index
    %216 = vector.load %arg12[%c0_82, %c0_83] : memref<128x512xbf16, #tpu.memory_space<vmem>>, vector<128x512xbf16>
    %cst_84 = arith.constant dense<0.000000e+00> : vector<8x512xf32>
    %217 = tpu.matmul %215, %216, %cst_84 {dimension_numbers = #tpu.dot_dimension_numbers<[1], [0], [0], [1], [0, 0, 1, 1], [], []>} : vector<8x128xbf16>, vector<128x512xbf16>, vector<8x512xf32> -> vector<8x512xf32>
    %218 = arith.addf %213, %217 : vector<8x512xf32>
    %219 = vector.extract_strided_slice %218 {offsets = [0, 0], sizes = [8, 128], strides = [1, 1]} : vector<8x512xf32> to vector<8x128xf32>
    %220 = arith.negf %219 : vector<8x128xf32>
    %221 = math.exp %220 : vector<8x128xf32>
    %cst_85 = arith.constant 1.000000e+00 : f32
    %222 = vector.broadcast %cst_85 : f32 to vector<8x128xf32>
    %223 = arith.addf %222, %221 : vector<8x128xf32>
    %224 = arith.divf %222, %223 : vector<8x128xf32>
    %225 = vector.extract_strided_slice %218 {offsets = [0, 128], sizes = [8, 128], strides = [1, 1]} : vector<8x512xf32> to vector<8x128xf32>
    %226 = arith.negf %225 : vector<8x128xf32>
    %227 = math.exp %226 : vector<8x128xf32>
    %cst_86 = arith.constant 1.000000e+00 : f32
    %228 = vector.broadcast %cst_86 : f32 to vector<8x128xf32>
    %229 = arith.addf %228, %227 : vector<8x128xf32>
    %230 = arith.divf %228, %229 : vector<8x128xf32>
    %231 = vector.extract_strided_slice %218 {offsets = [0, 256], sizes = [8, 128], strides = [1, 1]} : vector<8x512xf32> to vector<8x128xf32>
    %232 = math.tanh %231 : vector<8x128xf32>
    %233 = vector.extract_strided_slice %218 {offsets = [0, 384], sizes = [8, 128], strides = [1, 1]} : vector<8x512xf32> to vector<8x128xf32>
    %234 = arith.negf %233 : vector<8x128xf32>
    %235 = math.exp %234 : vector<8x128xf32>
    %cst_87 = arith.constant 1.000000e+00 : f32
    %236 = vector.broadcast %cst_87 : f32 to vector<8x128xf32>
    %237 = arith.addf %236, %235 : vector<8x128xf32>
    %238 = arith.divf %236, %237 : vector<8x128xf32>
    %239 = arith.mulf %230, %161 : vector<8x128xf32>
    %240 = arith.mulf %224, %232 : vector<8x128xf32>
    %241 = arith.addf %239, %240 : vector<8x128xf32>
    %242 = math.tanh %241 : vector<8x128xf32>
    %243 = arith.mulf %238, %242 : vector<8x128xf32>
    %244 = vector.broadcast %214 : i32 to vector<8x1xi32>
    %245 = arith.cmpi slt, %244, %25 : vector<8x1xi32>
    %246 = vector.shape_cast %245 : vector<8x1xi1> to vector<8x1xi1>
    %247 = vector.broadcast %246 : vector<8x1xi1> to vector<8x128xi1>
    %248 = arith.select %247, %243, %158 : vector<8x128xi1>, vector<8x128xf32>
    %249 = vector.shape_cast %245 : vector<8x1xi1> to vector<8x1xi1>
    %250 = vector.broadcast %249 : vector<8x1xi1> to vector<8x128xi1>
    %251 = arith.select %250, %241, %161 : vector<8x128xi1>, vector<8x128xf32>
    %cst_88 = arith.constant 0.000000e+00 : f32
    %252 = vector.shape_cast %245 : vector<8x1xi1> to vector<8x1xi1>
    %253 = vector.broadcast %252 : vector<8x1xi1> to vector<8x128xi1>
    %254 = vector.broadcast %cst_88 : f32 to vector<8x128xf32>
    %255 = arith.select %253, %243, %254 : vector<8x128xi1>, vector<8x128xf32>
    %256 = arith.truncf %255 : vector<8x128xf32> to vector<8x128xbf16>
    %c16_89 = arith.constant 16 : index
    %c0_90 = arith.constant 0 : index
    %257 = vector.load %arg14[%c16_89, %c0_90] : memref<64x128xbf16, #tpu.memory_space<vmem>>, vector<8x128xbf16>
    tpu.vector_store %arg14[%c16_89, %c0_90], %256 {strides = array<i32>} : memref<64x128xbf16, #tpu.memory_space<vmem>>, vector<8x128xbf16>,
    %c40 = arith.constant 40 : index
    %c0_91 = arith.constant 0 : index
    %258 = vector.load %arg19[%c40, %c0_91] : memref<64x512xf32, #tpu.memory_space<vmem>>, vector<8x512xf32>
    %c5_i32 = arith.constant 5 : i32
    %259 = arith.addi %28, %c5_i32 : i32
    %260 = arith.truncf %203 : vector<8x128xf32> to vector<8x128xbf16>
    %c0_92 = arith.constant 0 : index
    %c0_93 = arith.constant 0 : index
    %261 = vector.load %arg13[%c0_92, %c0_93] : memref<128x512xbf16, #tpu.memory_space<vmem>>, vector<128x512xbf16>
    %cst_94 = arith.constant dense<0.000000e+00> : vector<8x512xf32>
    %262 = tpu.matmul %260, %261, %cst_94 {dimension_numbers = #tpu.dot_dimension_numbers<[1], [0], [0], [1], [0, 0, 1, 1], [], []>} : vector<8x128xbf16>, vector<128x512xbf16>, vector<8x512xf32> -> vector<8x512xf32>
    %263 = arith.addf %258, %262 : vector<8x512xf32>
    %264 = vector.extract_strided_slice %263 {offsets = [0, 0], sizes = [8, 128], strides = [1, 1]} : vector<8x512xf32> to vector<8x128xf32>
    %265 = arith.negf %264 : vector<8x128xf32>
    %266 = math.exp %265 : vector<8x128xf32>
    %cst_95 = arith.constant 1.000000e+00 : f32
    %267 = vector.broadcast %cst_95 : f32 to vector<8x128xf32>
    %268 = arith.addf %267, %266 : vector<8x128xf32>
    %269 = arith.divf %267, %268 : vector<8x128xf32>
    %270 = vector.extract_strided_slice %263 {offsets = [0, 128], sizes = [8, 128], strides = [1, 1]} : vector<8x512xf32> to vector<8x128xf32>
    %271 = arith.negf %270 : vector<8x128xf32>
    %272 = math.exp %271 : vector<8x128xf32>
    %cst_96 = arith.constant 1.000000e+00 : f32
    %273 = vector.broadcast %cst_96 : f32 to vector<8x128xf32>
    %274 = arith.addf %273, %272 : vector<8x128xf32>
    %275 = arith.divf %273, %274 : vector<8x128xf32>
    %276 = vector.extract_strided_slice %263 {offsets = [0, 256], sizes = [8, 128], strides = [1, 1]} : vector<8x512xf32> to vector<8x128xf32>
    %277 = math.tanh %276 : vector<8x128xf32>
    %278 = vector.extract_strided_slice %263 {offsets = [0, 384], sizes = [8, 128], strides = [1, 1]} : vector<8x512xf32> to vector<8x128xf32>
    %279 = arith.negf %278 : vector<8x128xf32>
    %280 = math.exp %279 : vector<8x128xf32>
    %cst_97 = arith.constant 1.000000e+00 : f32
    %281 = vector.broadcast %cst_97 : f32 to vector<8x128xf32>
    %282 = arith.addf %281, %280 : vector<8x128xf32>
    %283 = arith.divf %281, %282 : vector<8x128xf32>
    %284 = arith.mulf %275, %206 : vector<8x128xf32>
    %285 = arith.mulf %269, %277 : vector<8x128xf32>
    %286 = arith.addf %284, %285 : vector<8x128xf32>
    %287 = math.tanh %286 : vector<8x128xf32>
    %288 = arith.mulf %283, %287 : vector<8x128xf32>
    %289 = vector.broadcast %259 : i32 to vector<8x1xi32>
    %290 = arith.cmpi slt, %289, %25 : vector<8x1xi32>
    %291 = vector.shape_cast %290 : vector<8x1xi1> to vector<8x1xi1>
    %292 = vector.broadcast %291 : vector<8x1xi1> to vector<8x128xi1>
    %293 = arith.select %292, %288, %203 : vector<8x128xi1>, vector<8x128xf32>
    %294 = vector.shape_cast %290 : vector<8x1xi1> to vector<8x1xi1>
    %295 = vector.broadcast %294 : vector<8x1xi1> to vector<8x128xi1>
    %296 = arith.select %295, %286, %206 : vector<8x128xi1>, vector<8x128xf32>
    %cst_98 = arith.constant 0.000000e+00 : f32
    %297 = vector.shape_cast %290 : vector<8x1xi1> to vector<8x1xi1>
    %298 = vector.broadcast %297 : vector<8x1xi1> to vector<8x128xi1>
    %299 = vector.broadcast %cst_98 : f32 to vector<8x128xf32>
    %300 = arith.select %298, %288, %299 : vector<8x128xi1>, vector<8x128xf32>
    %301 = arith.truncf %300 : vector<8x128xf32> to vector<8x128xbf16>
    %c40_99 = arith.constant 40 : index
    %c0_100 = arith.constant 0 : index
    %302 = vector.load %arg15[%c40_99, %c0_100] : memref<64x128xbf16, #tpu.memory_space<vmem>>, vector<8x128xbf16>
    tpu.vector_store %arg15[%c40_99, %c0_100], %301 {strides = array<i32>} : memref<64x128xbf16, #tpu.memory_space<vmem>>, vector<8x128xbf16>,
    %c24 = arith.constant 24 : index
    %c0_101 = arith.constant 0 : index
    %303 = vector.load %arg18[%c24, %c0_101] : memref<64x512xf32, #tpu.memory_space<vmem>>, vector<8x512xf32>
    %c3_i32 = arith.constant 3 : i32
    %304 = arith.addi %26, %c3_i32 : i32
    %305 = arith.truncf %248 : vector<8x128xf32> to vector<8x128xbf16>
    %c0_102 = arith.constant 0 : index
    %c0_103 = arith.constant 0 : index
    %306 = vector.load %arg12[%c0_102, %c0_103] : memref<128x512xbf16, #tpu.memory_space<vmem>>, vector<128x512xbf16>
    %cst_104 = arith.constant dense<0.000000e+00> : vector<8x512xf32>
    %307 = tpu.matmul %305, %306, %cst_104 {dimension_numbers = #tpu.dot_dimension_numbers<[1], [0], [0], [1], [0, 0, 1, 1], [], []>} : vector<8x128xbf16>, vector<128x512xbf16>, vector<8x512xf32> -> vector<8x512xf32>
    %308 = arith.addf %303, %307 : vector<8x512xf32>
    %309 = vector.extract_strided_slice %308 {offsets = [0, 0], sizes = [8, 128], strides = [1, 1]} : vector<8x512xf32> to vector<8x128xf32>
    %310 = arith.negf %309 : vector<8x128xf32>
    %311 = math.exp %310 : vector<8x128xf32>
    %cst_105 = arith.constant 1.000000e+00 : f32
    %312 = vector.broadcast %cst_105 : f32 to vector<8x128xf32>
    %313 = arith.addf %312, %311 : vector<8x128xf32>
    %314 = arith.divf %312, %313 : vector<8x128xf32>
    %315 = vector.extract_strided_slice %308 {offsets = [0, 128], sizes = [8, 128], strides = [1, 1]} : vector<8x512xf32> to vector<8x128xf32>
    %316 = arith.negf %315 : vector<8x128xf32>
    %317 = math.exp %316 : vector<8x128xf32>
    %cst_106 = arith.constant 1.000000e+00 : f32
    %318 = vector.broadcast %cst_106 : f32 to vector<8x128xf32>
    %319 = arith.addf %318, %317 : vector<8x128xf32>
    %320 = arith.divf %318, %319 : vector<8x128xf32>
    %321 = vector.extract_strided_slice %308 {offsets = [0, 256], sizes = [8, 128], strides = [1, 1]} : vector<8x512xf32> to vector<8x128xf32>
    %322 = math.tanh %321 : vector<8x128xf32>
    %323 = vector.extract_strided_slice %308 {offsets = [0, 384], sizes = [8, 128], strides = [1, 1]} : vector<8x512xf32> to vector<8x128xf32>
    %324 = arith.negf %323 : vector<8x128xf32>
    %325 = math.exp %324 : vector<8x128xf32>
    %cst_107 = arith.constant 1.000000e+00 : f32
    %326 = vector.broadcast %cst_107 : f32 to vector<8x128xf32>
    %327 = arith.addf %326, %325 : vector<8x128xf32>
    %328 = arith.divf %326, %327 : vector<8x128xf32>
    %329 = arith.mulf %320, %251 : vector<8x128xf32>
    %330 = arith.mulf %314, %322 : vector<8x128xf32>
    %331 = arith.addf %329, %330 : vector<8x128xf32>
    %332 = math.tanh %331 : vector<8x128xf32>
    %333 = arith.mulf %328, %332 : vector<8x128xf32>
    %334 = vector.broadcast %304 : i32 to vector<8x1xi32>
    %335 = arith.cmpi slt, %334, %25 : vector<8x1xi32>
    %336 = vector.shape_cast %335 : vector<8x1xi1> to vector<8x1xi1>
    %337 = vector.broadcast %336 : vector<8x1xi1> to vector<8x128xi1>
    %338 = arith.select %337, %333, %248 : vector<8x128xi1>, vector<8x128xf32>
    %339 = vector.shape_cast %335 : vector<8x1xi1> to vector<8x1xi1>
    %340 = vector.broadcast %339 : vector<8x1xi1> to vector<8x128xi1>
    %341 = arith.select %340, %331, %251 : vector<8x128xi1>, vector<8x128xf32>
    %cst_108 = arith.constant 0.000000e+00 : f32
    %342 = vector.shape_cast %335 : vector<8x1xi1> to vector<8x1xi1>
    %343 = vector.broadcast %342 : vector<8x1xi1> to vector<8x128xi1>
    %344 = vector.broadcast %cst_108 : f32 to vector<8x128xf32>
    %345 = arith.select %343, %333, %344 : vector<8x128xi1>, vector<8x128xf32>
    %346 = arith.truncf %345 : vector<8x128xf32> to vector<8x128xbf16>
    %c24_109 = arith.constant 24 : index
    %c0_110 = arith.constant 0 : index
    %347 = vector.load %arg14[%c24_109, %c0_110] : memref<64x128xbf16, #tpu.memory_space<vmem>>, vector<8x128xbf16>
    tpu.vector_store %arg14[%c24_109, %c0_110], %346 {strides = array<i32>} : memref<64x128xbf16, #tpu.memory_space<vmem>>, vector<8x128xbf16>,
    %c32 = arith.constant 32 : index
    %c0_111 = arith.constant 0 : index
    %348 = vector.load %arg19[%c32, %c0_111] : memref<64x512xf32, #tpu.memory_space<vmem>>, vector<8x512xf32>
    %c4_i32 = arith.constant 4 : i32
    %349 = arith.addi %28, %c4_i32 : i32
    %350 = arith.truncf %293 : vector<8x128xf32> to vector<8x128xbf16>
    %c0_112 = arith.constant 0 : index
    %c0_113 = arith.constant 0 : index
    %351 = vector.load %arg13[%c0_112, %c0_113] : memref<128x512xbf16, #tpu.memory_space<vmem>>, vector<128x512xbf16>
    %cst_114 = arith.constant dense<0.000000e+00> : vector<8x512xf32>
    %352 = tpu.matmul %350, %351, %cst_114 {dimension_numbers = #tpu.dot_dimension_numbers<[1], [0], [0], [1], [0, 0, 1, 1], [], []>} : vector<8x128xbf16>, vector<128x512xbf16>, vector<8x512xf32> -> vector<8x512xf32>
    %353 = arith.addf %348, %352 : vector<8x512xf32>
    %354 = vector.extract_strided_slice %353 {offsets = [0, 0], sizes = [8, 128], strides = [1, 1]} : vector<8x512xf32> to vector<8x128xf32>
    %355 = arith.negf %354 : vector<8x128xf32>
    %356 = math.exp %355 : vector<8x128xf32>
    %cst_115 = arith.constant 1.000000e+00 : f32
    %357 = vector.broadcast %cst_115 : f32 to vector<8x128xf32>
    %358 = arith.addf %357, %356 : vector<8x128xf32>
    %359 = arith.divf %357, %358 : vector<8x128xf32>
    %360 = vector.extract_strided_slice %353 {offsets = [0, 128], sizes = [8, 128], strides = [1, 1]} : vector<8x512xf32> to vector<8x128xf32>
    %361 = arith.negf %360 : vector<8x128xf32>
    %362 = math.exp %361 : vector<8x128xf32>
    %cst_116 = arith.constant 1.000000e+00 : f32
    %363 = vector.broadcast %cst_116 : f32 to vector<8x128xf32>
    %364 = arith.addf %363, %362 : vector<8x128xf32>
    %365 = arith.divf %363, %364 : vector<8x128xf32>
    %366 = vector.extract_strided_slice %353 {offsets = [0, 256], sizes = [8, 128], strides = [1, 1]} : vector<8x512xf32> to vector<8x128xf32>
    %367 = math.tanh %366 : vector<8x128xf32>
    %368 = vector.extract_strided_slice %353 {offsets = [0, 384], sizes = [8, 128], strides = [1, 1]} : vector<8x512xf32> to vector<8x128xf32>
    %369 = arith.negf %368 : vector<8x128xf32>
    %370 = math.exp %369 : vector<8x128xf32>
    %cst_117 = arith.constant 1.000000e+00 : f32
    %371 = vector.broadcast %cst_117 : f32 to vector<8x128xf32>
    %372 = arith.addf %371, %370 : vector<8x128xf32>
    %373 = arith.divf %371, %372 : vector<8x128xf32>
    %374 = arith.mulf %365, %296 : vector<8x128xf32>
    %375 = arith.mulf %359, %367 : vector<8x128xf32>
    %376 = arith.addf %374, %375 : vector<8x128xf32>
    %377 = math.tanh %376 : vector<8x128xf32>
    %378 = arith.mulf %373, %377 : vector<8x128xf32>
    %379 = vector.broadcast %349 : i32 to vector<8x1xi32>
    %380 = arith.cmpi slt, %379, %25 : vector<8x1xi32>
    %381 = vector.shape_cast %380 : vector<8x1xi1> to vector<8x1xi1>
    %382 = vector.broadcast %381 : vector<8x1xi1> to vector<8x128xi1>
    %383 = arith.select %382, %378, %293 : vector<8x128xi1>, vector<8x128xf32>
    %384 = vector.shape_cast %380 : vector<8x1xi1> to vector<8x1xi1>
    %385 = vector.broadcast %384 : vector<8x1xi1> to vector<8x128xi1>
    %386 = arith.select %385, %376, %296 : vector<8x128xi1>, vector<8x128xf32>
    %cst_118 = arith.constant 0.000000e+00 : f32
    %387 = vector.shape_cast %380 : vector<8x1xi1> to vector<8x1xi1>
    %388 = vector.broadcast %387 : vector<8x1xi1> to vector<8x128xi1>
    %389 = vector.broadcast %cst_118 : f32 to vector<8x128xf32>
    %390 = arith.select %388, %378, %389 : vector<8x128xi1>, vector<8x128xf32>
    %391 = arith.truncf %390 : vector<8x128xf32> to vector<8x128xbf16>
    %c32_119 = arith.constant 32 : index
    %c0_120 = arith.constant 0 : index
    %392 = vector.load %arg15[%c32_119, %c0_120] : memref<64x128xbf16, #tpu.memory_space<vmem>>, vector<8x128xbf16>
    tpu.vector_store %arg15[%c32_119, %c0_120], %391 {strides = array<i32>} : memref<64x128xbf16, #tpu.memory_space<vmem>>, vector<8x128xbf16>,
    %c32_121 = arith.constant 32 : index
    %c0_122 = arith.constant 0 : index
    %393 = vector.load %arg18[%c32_121, %c0_122] : memref<64x512xf32, #tpu.memory_space<vmem>>, vector<8x512xf32>
    %c4_i32_123 = arith.constant 4 : i32
    %394 = arith.addi %26, %c4_i32_123 : i32
    %395 = arith.truncf %338 : vector<8x128xf32> to vector<8x128xbf16>
    %c0_124 = arith.constant 0 : index
    %c0_125 = arith.constant 0 : index
    %396 = vector.load %arg12[%c0_124, %c0_125] : memref<128x512xbf16, #tpu.memory_space<vmem>>, vector<128x512xbf16>
    %cst_126 = arith.constant dense<0.000000e+00> : vector<8x512xf32>
    %397 = tpu.matmul %395, %396, %cst_126 {dimension_numbers = #tpu.dot_dimension_numbers<[1], [0], [0], [1], [0, 0, 1, 1], [], []>} : vector<8x128xbf16>, vector<128x512xbf16>, vector<8x512xf32> -> vector<8x512xf32>
    %398 = arith.addf %393, %397 : vector<8x512xf32>
    %399 = vector.extract_strided_slice %398 {offsets = [0, 0], sizes = [8, 128], strides = [1, 1]} : vector<8x512xf32> to vector<8x128xf32>
    %400 = arith.negf %399 : vector<8x128xf32>
    %401 = math.exp %400 : vector<8x128xf32>
    %cst_127 = arith.constant 1.000000e+00 : f32
    %402 = vector.broadcast %cst_127 : f32 to vector<8x128xf32>
    %403 = arith.addf %402, %401 : vector<8x128xf32>
    %404 = arith.divf %402, %403 : vector<8x128xf32>
    %405 = vector.extract_strided_slice %398 {offsets = [0, 128], sizes = [8, 128], strides = [1, 1]} : vector<8x512xf32> to vector<8x128xf32>
    %406 = arith.negf %405 : vector<8x128xf32>
    %407 = math.exp %406 : vector<8x128xf32>
    %cst_128 = arith.constant 1.000000e+00 : f32
    %408 = vector.broadcast %cst_128 : f32 to vector<8x128xf32>
    %409 = arith.addf %408, %407 : vector<8x128xf32>
    %410 = arith.divf %408, %409 : vector<8x128xf32>
    %411 = vector.extract_strided_slice %398 {offsets = [0, 256], sizes = [8, 128], strides = [1, 1]} : vector<8x512xf32> to vector<8x128xf32>
    %412 = math.tanh %411 : vector<8x128xf32>
    %413 = vector.extract_strided_slice %398 {offsets = [0, 384], sizes = [8, 128], strides = [1, 1]} : vector<8x512xf32> to vector<8x128xf32>
    %414 = arith.negf %413 : vector<8x128xf32>
    %415 = math.exp %414 : vector<8x128xf32>
    %cst_129 = arith.constant 1.000000e+00 : f32
    %416 = vector.broadcast %cst_129 : f32 to vector<8x128xf32>
    %417 = arith.addf %416, %415 : vector<8x128xf32>
    %418 = arith.divf %416, %417 : vector<8x128xf32>
    %419 = arith.mulf %410, %341 : vector<8x128xf32>
    %420 = arith.mulf %404, %412 : vector<8x128xf32>
    %421 = arith.addf %419, %420 : vector<8x128xf32>
    %422 = math.tanh %421 : vector<8x128xf32>
    %423 = arith.mulf %418, %422 : vector<8x128xf32>
    %424 = vector.broadcast %394 : i32 to vector<8x1xi32>
    %425 = arith.cmpi slt, %424, %25 : vector<8x1xi32>
    %426 = vector.shape_cast %425 : vector<8x1xi1> to vector<8x1xi1>
    %427 = vector.broadcast %426 : vector<8x1xi1> to vector<8x128xi1>
    %428 = arith.select %427, %423, %338 : vector<8x128xi1>, vector<8x128xf32>
    %429 = vector.shape_cast %425 : vector<8x1xi1> to vector<8x1xi1>
    %430 = vector.broadcast %429 : vector<8x1xi1> to vector<8x128xi1>
    %431 = arith.select %430, %421, %341 : vector<8x128xi1>, vector<8x128xf32>
    %cst_130 = arith.constant 0.000000e+00 : f32
    %432 = vector.shape_cast %425 : vector<8x1xi1> to vector<8x1xi1>
    %433 = vector.broadcast %432 : vector<8x1xi1> to vector<8x128xi1>
    %434 = vector.broadcast %cst_130 : f32 to vector<8x128xf32>
    %435 = arith.select %433, %423, %434 : vector<8x128xi1>, vector<8x128xf32>
    %436 = arith.truncf %435 : vector<8x128xf32> to vector<8x128xbf16>
    %c32_131 = arith.constant 32 : index
    %c0_132 = arith.constant 0 : index
    %437 = vector.load %arg14[%c32_131, %c0_132] : memref<64x128xbf16, #tpu.memory_space<vmem>>, vector<8x128xbf16>
    tpu.vector_store %arg14[%c32_131, %c0_132], %436 {strides = array<i32>} : memref<64x128xbf16, #tpu.memory_space<vmem>>, vector<8x128xbf16>,
    %c24_133 = arith.constant 24 : index
    %c0_134 = arith.constant 0 : index
    %438 = vector.load %arg19[%c24_133, %c0_134] : memref<64x512xf32, #tpu.memory_space<vmem>>, vector<8x512xf32>
    %c3_i32_135 = arith.constant 3 : i32
    %439 = arith.addi %28, %c3_i32_135 : i32
    %440 = arith.truncf %383 : vector<8x128xf32> to vector<8x128xbf16>
    %c0_136 = arith.constant 0 : index
    %c0_137 = arith.constant 0 : index
    %441 = vector.load %arg13[%c0_136, %c0_137] : memref<128x512xbf16, #tpu.memory_space<vmem>>, vector<128x512xbf16>
    %cst_138 = arith.constant dense<0.000000e+00> : vector<8x512xf32>
    %442 = tpu.matmul %440, %441, %cst_138 {dimension_numbers = #tpu.dot_dimension_numbers<[1], [0], [0], [1], [0, 0, 1, 1], [], []>} : vector<8x128xbf16>, vector<128x512xbf16>, vector<8x512xf32> -> vector<8x512xf32>
    %443 = arith.addf %438, %442 : vector<8x512xf32>
    %444 = vector.extract_strided_slice %443 {offsets = [0, 0], sizes = [8, 128], strides = [1, 1]} : vector<8x512xf32> to vector<8x128xf32>
    %445 = arith.negf %444 : vector<8x128xf32>
    %446 = math.exp %445 : vector<8x128xf32>
    %cst_139 = arith.constant 1.000000e+00 : f32
    %447 = vector.broadcast %cst_139 : f32 to vector<8x128xf32>
    %448 = arith.addf %447, %446 : vector<8x128xf32>
    %449 = arith.divf %447, %448 : vector<8x128xf32>
    %450 = vector.extract_strided_slice %443 {offsets = [0, 128], sizes = [8, 128], strides = [1, 1]} : vector<8x512xf32> to vector<8x128xf32>
    %451 = arith.negf %450 : vector<8x128xf32>
    %452 = math.exp %451 : vector<8x128xf32>
    %cst_140 = arith.constant 1.000000e+00 : f32
    %453 = vector.broadcast %cst_140 : f32 to vector<8x128xf32>
    %454 = arith.addf %453, %452 : vector<8x128xf32>
    %455 = arith.divf %453, %454 : vector<8x128xf32>
    %456 = vector.extract_strided_slice %443 {offsets = [0, 256], sizes = [8, 128], strides = [1, 1]} : vector<8x512xf32> to vector<8x128xf32>
    %457 = math.tanh %456 : vector<8x128xf32>
    %458 = vector.extract_strided_slice %443 {offsets = [0, 384], sizes = [8, 128], strides = [1, 1]} : vector<8x512xf32> to vector<8x128xf32>
    %459 = arith.negf %458 : vector<8x128xf32>
    %460 = math.exp %459 : vector<8x128xf32>
    %cst_141 = arith.constant 1.000000e+00 : f32
    %461 = vector.broadcast %cst_141 : f32 to vector<8x128xf32>
    %462 = arith.addf %461, %460 : vector<8x128xf32>
    %463 = arith.divf %461, %462 : vector<8x128xf32>
    %464 = arith.mulf %455, %386 : vector<8x128xf32>
    %465 = arith.mulf %449, %457 : vector<8x128xf32>
    %466 = arith.addf %464, %465 : vector<8x128xf32>
    %467 = math.tanh %466 : vector<8x128xf32>
    %468 = arith.mulf %463, %467 : vector<8x128xf32>
    %469 = vector.broadcast %439 : i32 to vector<8x1xi32>
    %470 = arith.cmpi slt, %469, %25 : vector<8x1xi32>
    %471 = vector.shape_cast %470 : vector<8x1xi1> to vector<8x1xi1>
    %472 = vector.broadcast %471 : vector<8x1xi1> to vector<8x128xi1>
    %473 = arith.select %472, %468, %383 : vector<8x128xi1>, vector<8x128xf32>
    %474 = vector.shape_cast %470 : vector<8x1xi1> to vector<8x1xi1>
    %475 = vector.broadcast %474 : vector<8x1xi1> to vector<8x128xi1>
    %476 = arith.select %475, %466, %386 : vector<8x128xi1>, vector<8x128xf32>
    %cst_142 = arith.constant 0.000000e+00 : f32
    %477 = vector.shape_cast %470 : vector<8x1xi1> to vector<8x1xi1>
    %478 = vector.broadcast %477 : vector<8x1xi1> to vector<8x128xi1>
    %479 = vector.broadcast %cst_142 : f32 to vector<8x128xf32>
    %480 = arith.select %478, %468, %479 : vector<8x128xi1>, vector<8x128xf32>
    %481 = arith.truncf %480 : vector<8x128xf32> to vector<8x128xbf16>
    %c24_143 = arith.constant 24 : index
    %c0_144 = arith.constant 0 : index
    %482 = vector.load %arg15[%c24_143, %c0_144] : memref<64x128xbf16, #tpu.memory_space<vmem>>, vector<8x128xbf16>
    tpu.vector_store %arg15[%c24_143, %c0_144], %481 {strides = array<i32>} : memref<64x128xbf16, #tpu.memory_space<vmem>>, vector<8x128xbf16>,
    %c40_145 = arith.constant 40 : index
    %c0_146 = arith.constant 0 : index
    %483 = vector.load %arg18[%c40_145, %c0_146] : memref<64x512xf32, #tpu.memory_space<vmem>>, vector<8x512xf32>
    %c5_i32_147 = arith.constant 5 : i32
    %484 = arith.addi %26, %c5_i32_147 : i32
    %485 = arith.truncf %428 : vector<8x128xf32> to vector<8x128xbf16>
    %c0_148 = arith.constant 0 : index
    %c0_149 = arith.constant 0 : index
    %486 = vector.load %arg12[%c0_148, %c0_149] : memref<128x512xbf16, #tpu.memory_space<vmem>>, vector<128x512xbf16>
    %cst_150 = arith.constant dense<0.000000e+00> : vector<8x512xf32>
    %487 = tpu.matmul %485, %486, %cst_150 {dimension_numbers = #tpu.dot_dimension_numbers<[1], [0], [0], [1], [0, 0, 1, 1], [], []>} : vector<8x128xbf16>, vector<128x512xbf16>, vector<8x512xf32> -> vector<8x512xf32>
    %488 = arith.addf %483, %487 : vector<8x512xf32>
    %489 = vector.extract_strided_slice %488 {offsets = [0, 0], sizes = [8, 128], strides = [1, 1]} : vector<8x512xf32> to vector<8x128xf32>
    %490 = arith.negf %489 : vector<8x128xf32>
    %491 = math.exp %490 : vector<8x128xf32>
    %cst_151 = arith.constant 1.000000e+00 : f32
    %492 = vector.broadcast %cst_151 : f32 to vector<8x128xf32>
    %493 = arith.addf %492, %491 : vector<8x128xf32>
    %494 = arith.divf %492, %493 : vector<8x128xf32>
    %495 = vector.extract_strided_slice %488 {offsets = [0, 128], sizes = [8, 128], strides = [1, 1]} : vector<8x512xf32> to vector<8x128xf32>
    %496 = arith.negf %495 : vector<8x128xf32>
    %497 = math.exp %496 : vector<8x128xf32>
    %cst_152 = arith.constant 1.000000e+00 : f32
    %498 = vector.broadcast %cst_152 : f32 to vector<8x128xf32>
    %499 = arith.addf %498, %497 : vector<8x128xf32>
    %500 = arith.divf %498, %499 : vector<8x128xf32>
    %501 = vector.extract_strided_slice %488 {offsets = [0, 256], sizes = [8, 128], strides = [1, 1]} : vector<8x512xf32> to vector<8x128xf32>
    %502 = math.tanh %501 : vector<8x128xf32>
    %503 = vector.extract_strided_slice %488 {offsets = [0, 384], sizes = [8, 128], strides = [1, 1]} : vector<8x512xf32> to vector<8x128xf32>
    %504 = arith.negf %503 : vector<8x128xf32>
    %505 = math.exp %504 : vector<8x128xf32>
    %cst_153 = arith.constant 1.000000e+00 : f32
    %506 = vector.broadcast %cst_153 : f32 to vector<8x128xf32>
    %507 = arith.addf %506, %505 : vector<8x128xf32>
    %508 = arith.divf %506, %507 : vector<8x128xf32>
    %509 = arith.mulf %500, %431 : vector<8x128xf32>
    %510 = arith.mulf %494, %502 : vector<8x128xf32>
    %511 = arith.addf %509, %510 : vector<8x128xf32>
    %512 = math.tanh %511 : vector<8x128xf32>
    %513 = arith.mulf %508, %512 : vector<8x128xf32>
    %514 = vector.broadcast %484 : i32 to vector<8x1xi32>
    %515 = arith.cmpi slt, %514, %25 : vector<8x1xi32>
    %516 = vector.shape_cast %515 : vector<8x1xi1> to vector<8x1xi1>
    %517 = vector.broadcast %516 : vector<8x1xi1> to vector<8x128xi1>
    %518 = arith.select %517, %513, %428 : vector<8x128xi1>, vector<8x128xf32>
    %519 = vector.shape_cast %515 : vector<8x1xi1> to vector<8x1xi1>
    %520 = vector.broadcast %519 : vector<8x1xi1> to vector<8x128xi1>
    %521 = arith.select %520, %511, %431 : vector<8x128xi1>, vector<8x128xf32>
    %cst_154 = arith.constant 0.000000e+00 : f32
    %522 = vector.shape_cast %515 : vector<8x1xi1> to vector<8x1xi1>
    %523 = vector.broadcast %522 : vector<8x1xi1> to vector<8x128xi1>
    %524 = vector.broadcast %cst_154 : f32 to vector<8x128xf32>
    %525 = arith.select %523, %513, %524 : vector<8x128xi1>, vector<8x128xf32>
    %526 = arith.truncf %525 : vector<8x128xf32> to vector<8x128xbf16>
    %c40_155 = arith.constant 40 : index
    %c0_156 = arith.constant 0 : index
    %527 = vector.load %arg14[%c40_155, %c0_156] : memref<64x128xbf16, #tpu.memory_space<vmem>>, vector<8x128xbf16>
    tpu.vector_store %arg14[%c40_155, %c0_156], %526 {strides = array<i32>} : memref<64x128xbf16, #tpu.memory_space<vmem>>, vector<8x128xbf16>,
    %c16_157 = arith.constant 16 : index
    %c0_158 = arith.constant 0 : index
    %528 = vector.load %arg19[%c16_157, %c0_158] : memref<64x512xf32, #tpu.memory_space<vmem>>, vector<8x512xf32>
    %c2_i32_159 = arith.constant 2 : i32
    %529 = arith.addi %28, %c2_i32_159 : i32
    %530 = arith.truncf %473 : vector<8x128xf32> to vector<8x128xbf16>
    %c0_160 = arith.constant 0 : index
    %c0_161 = arith.constant 0 : index
    %531 = vector.load %arg13[%c0_160, %c0_161] : memref<128x512xbf16, #tpu.memory_space<vmem>>, vector<128x512xbf16>
    %cst_162 = arith.constant dense<0.000000e+00> : vector<8x512xf32>
    %532 = tpu.matmul %530, %531, %cst_162 {dimension_numbers = #tpu.dot_dimension_numbers<[1], [0], [0], [1], [0, 0, 1, 1], [], []>} : vector<8x128xbf16>, vector<128x512xbf16>, vector<8x512xf32> -> vector<8x512xf32>
    %533 = arith.addf %528, %532 : vector<8x512xf32>
    %534 = vector.extract_strided_slice %533 {offsets = [0, 0], sizes = [8, 128], strides = [1, 1]} : vector<8x512xf32> to vector<8x128xf32>
    %535 = arith.negf %534 : vector<8x128xf32>
    %536 = math.exp %535 : vector<8x128xf32>
    %cst_163 = arith.constant 1.000000e+00 : f32
    %537 = vector.broadcast %cst_163 : f32 to vector<8x128xf32>
    %538 = arith.addf %537, %536 : vector<8x128xf32>
    %539 = arith.divf %537, %538 : vector<8x128xf32>
    %540 = vector.extract_strided_slice %533 {offsets = [0, 128], sizes = [8, 128], strides = [1, 1]} : vector<8x512xf32> to vector<8x128xf32>
    %541 = arith.negf %540 : vector<8x128xf32>
    %542 = math.exp %541 : vector<8x128xf32>
    %cst_164 = arith.constant 1.000000e+00 : f32
    %543 = vector.broadcast %cst_164 : f32 to vector<8x128xf32>
    %544 = arith.addf %543, %542 : vector<8x128xf32>
    %545 = arith.divf %543, %544 : vector<8x128xf32>
    %546 = vector.extract_strided_slice %533 {offsets = [0, 256], sizes = [8, 128], strides = [1, 1]} : vector<8x512xf32> to vector<8x128xf32>
    %547 = math.tanh %546 : vector<8x128xf32>
    %548 = vector.extract_strided_slice %533 {offsets = [0, 384], sizes = [8, 128], strides = [1, 1]} : vector<8x512xf32> to vector<8x128xf32>
    %549 = arith.negf %548 : vector<8x128xf32>
    %550 = math.exp %549 : vector<8x128xf32>
    %cst_165 = arith.constant 1.000000e+00 : f32
    %551 = vector.broadcast %cst_165 : f32 to vector<8x128xf32>
    %552 = arith.addf %551, %550 : vector<8x128xf32>
    %553 = arith.divf %551, %552 : vector<8x128xf32>
    %554 = arith.mulf %545, %476 : vector<8x128xf32>
    %555 = arith.mulf %539, %547 : vector<8x128xf32>
    %556 = arith.addf %554, %555 : vector<8x128xf32>
    %557 = math.tanh %556 : vector<8x128xf32>
    %558 = arith.mulf %553, %557 : vector<8x128xf32>
    %559 = vector.broadcast %529 : i32 to vector<8x1xi32>
    %560 = arith.cmpi slt, %559, %25 : vector<8x1xi32>
    %561 = vector.shape_cast %560 : vector<8x1xi1> to vector<8x1xi1>
    %562 = vector.broadcast %561 : vector<8x1xi1> to vector<8x128xi1>
    %563 = arith.select %562, %558, %473 : vector<8x128xi1>, vector<8x128xf32>
    %564 = vector.shape_cast %560 : vector<8x1xi1> to vector<8x1xi1>
    %565 = vector.broadcast %564 : vector<8x1xi1> to vector<8x128xi1>
    %566 = arith.select %565, %556, %476 : vector<8x128xi1>, vector<8x128xf32>
    %cst_166 = arith.constant 0.000000e+00 : f32
    %567 = vector.shape_cast %560 : vector<8x1xi1> to vector<8x1xi1>
    %568 = vector.broadcast %567 : vector<8x1xi1> to vector<8x128xi1>
    %569 = vector.broadcast %cst_166 : f32 to vector<8x128xf32>
    %570 = arith.select %568, %558, %569 : vector<8x128xi1>, vector<8x128xf32>
    %571 = arith.truncf %570 : vector<8x128xf32> to vector<8x128xbf16>
    %c16_167 = arith.constant 16 : index
    %c0_168 = arith.constant 0 : index
    %572 = vector.load %arg15[%c16_167, %c0_168] : memref<64x128xbf16, #tpu.memory_space<vmem>>, vector<8x128xbf16>
    tpu.vector_store %arg15[%c16_167, %c0_168], %571 {strides = array<i32>} : memref<64x128xbf16, #tpu.memory_space<vmem>>, vector<8x128xbf16>,
    %c48_169 = arith.constant 48 : index
    %c0_170 = arith.constant 0 : index
    %573 = vector.load %arg18[%c48_169, %c0_170] : memref<64x512xf32, #tpu.memory_space<vmem>>, vector<8x512xf32>
    %c6_i32_171 = arith.constant 6 : i32
    %574 = arith.addi %26, %c6_i32_171 : i32
    %575 = arith.truncf %518 : vector<8x128xf32> to vector<8x128xbf16>
    %c0_172 = arith.constant 0 : index
    %c0_173 = arith.constant 0 : index
    %576 = vector.load %arg12[%c0_172, %c0_173] : memref<128x512xbf16, #tpu.memory_space<vmem>>, vector<128x512xbf16>
    %cst_174 = arith.constant dense<0.000000e+00> : vector<8x512xf32>
    %577 = tpu.matmul %575, %576, %cst_174 {dimension_numbers = #tpu.dot_dimension_numbers<[1], [0], [0], [1], [0, 0, 1, 1], [], []>} : vector<8x128xbf16>, vector<128x512xbf16>, vector<8x512xf32> -> vector<8x512xf32>
    %578 = arith.addf %573, %577 : vector<8x512xf32>
    %579 = vector.extract_strided_slice %578 {offsets = [0, 0], sizes = [8, 128], strides = [1, 1]} : vector<8x512xf32> to vector<8x128xf32>
    %580 = arith.negf %579 : vector<8x128xf32>
    %581 = math.exp %580 : vector<8x128xf32>
    %cst_175 = arith.constant 1.000000e+00 : f32
    %582 = vector.broadcast %cst_175 : f32 to vector<8x128xf32>
    %583 = arith.addf %582, %581 : vector<8x128xf32>
    %584 = arith.divf %582, %583 : vector<8x128xf32>
    %585 = vector.extract_strided_slice %578 {offsets = [0, 128], sizes = [8, 128], strides = [1, 1]} : vector<8x512xf32> to vector<8x128xf32>
    %586 = arith.negf %585 : vector<8x128xf32>
    %587 = math.exp %586 : vector<8x128xf32>
    %cst_176 = arith.constant 1.000000e+00 : f32
    %588 = vector.broadcast %cst_176 : f32 to vector<8x128xf32>
    %589 = arith.addf %588, %587 : vector<8x128xf32>
    %590 = arith.divf %588, %589 : vector<8x128xf32>
    %591 = vector.extract_strided_slice %578 {offsets = [0, 256], sizes = [8, 128], strides = [1, 1]} : vector<8x512xf32> to vector<8x128xf32>
    %592 = math.tanh %591 : vector<8x128xf32>
    %593 = vector.extract_strided_slice %578 {offsets = [0, 384], sizes = [8, 128], strides = [1, 1]} : vector<8x512xf32> to vector<8x128xf32>
    %594 = arith.negf %593 : vector<8x128xf32>
    %595 = math.exp %594 : vector<8x128xf32>
    %cst_177 = arith.constant 1.000000e+00 : f32
    %596 = vector.broadcast %cst_177 : f32 to vector<8x128xf32>
    %597 = arith.addf %596, %595 : vector<8x128xf32>
    %598 = arith.divf %596, %597 : vector<8x128xf32>
    %599 = arith.mulf %590, %521 : vector<8x128xf32>
    %600 = arith.mulf %584, %592 : vector<8x128xf32>
    %601 = arith.addf %599, %600 : vector<8x128xf32>
    %602 = math.tanh %601 : vector<8x128xf32>
    %603 = arith.mulf %598, %602 : vector<8x128xf32>
    %604 = vector.broadcast %574 : i32 to vector<8x1xi32>
    %605 = arith.cmpi slt, %604, %25 : vector<8x1xi32>
    %606 = vector.shape_cast %605 : vector<8x1xi1> to vector<8x1xi1>
    %607 = vector.broadcast %606 : vector<8x1xi1> to vector<8x128xi1>
    %608 = arith.select %607, %603, %518 : vector<8x128xi1>, vector<8x128xf32>
    %609 = vector.shape_cast %605 : vector<8x1xi1> to vector<8x1xi1>
    %610 = vector.broadcast %609 : vector<8x1xi1> to vector<8x128xi1>
    %611 = arith.select %610, %601, %521 : vector<8x128xi1>, vector<8x128xf32>
    %cst_178 = arith.constant 0.000000e+00 : f32
    %612 = vector.shape_cast %605 : vector<8x1xi1> to vector<8x1xi1>
    %613 = vector.broadcast %612 : vector<8x1xi1> to vector<8x128xi1>
    %614 = vector.broadcast %cst_178 : f32 to vector<8x128xf32>
    %615 = arith.select %613, %603, %614 : vector<8x128xi1>, vector<8x128xf32>
    %616 = arith.truncf %615 : vector<8x128xf32> to vector<8x128xbf16>
    %c48_179 = arith.constant 48 : index
    %c0_180 = arith.constant 0 : index
    %617 = vector.load %arg14[%c48_179, %c0_180] : memref<64x128xbf16, #tpu.memory_space<vmem>>, vector<8x128xbf16>
    tpu.vector_store %arg14[%c48_179, %c0_180], %616 {strides = array<i32>} : memref<64x128xbf16, #tpu.memory_space<vmem>>, vector<8x128xbf16>,
    %c8_181 = arith.constant 8 : index
    %c0_182 = arith.constant 0 : index
    %618 = vector.load %arg19[%c8_181, %c0_182] : memref<64x512xf32, #tpu.memory_space<vmem>>, vector<8x512xf32>
    %c1_i32_183 = arith.constant 1 : i32
    %619 = arith.addi %28, %c1_i32_183 : i32
    %620 = arith.truncf %563 : vector<8x128xf32> to vector<8x128xbf16>
    %c0_184 = arith.constant 0 : index
    %c0_185 = arith.constant 0 : index
    %621 = vector.load %arg13[%c0_184, %c0_185] : memref<128x512xbf16, #tpu.memory_space<vmem>>, vector<128x512xbf16>
    %cst_186 = arith.constant dense<0.000000e+00> : vector<8x512xf32>
    %622 = tpu.matmul %620, %621, %cst_186 {dimension_numbers = #tpu.dot_dimension_numbers<[1], [0], [0], [1], [0, 0, 1, 1], [], []>} : vector<8x128xbf16>, vector<128x512xbf16>, vector<8x512xf32> -> vector<8x512xf32>
    %623 = arith.addf %618, %622 : vector<8x512xf32>
    %624 = vector.extract_strided_slice %623 {offsets = [0, 0], sizes = [8, 128], strides = [1, 1]} : vector<8x512xf32> to vector<8x128xf32>
    %625 = arith.negf %624 : vector<8x128xf32>
    %626 = math.exp %625 : vector<8x128xf32>
    %cst_187 = arith.constant 1.000000e+00 : f32
    %627 = vector.broadcast %cst_187 : f32 to vector<8x128xf32>
    %628 = arith.addf %627, %626 : vector<8x128xf32>
    %629 = arith.divf %627, %628 : vector<8x128xf32>
    %630 = vector.extract_strided_slice %623 {offsets = [0, 128], sizes = [8, 128], strides = [1, 1]} : vector<8x512xf32> to vector<8x128xf32>
    %631 = arith.negf %630 : vector<8x128xf32>
    %632 = math.exp %631 : vector<8x128xf32>
    %cst_188 = arith.constant 1.000000e+00 : f32
    %633 = vector.broadcast %cst_188 : f32 to vector<8x128xf32>
    %634 = arith.addf %633, %632 : vector<8x128xf32>
    %635 = arith.divf %633, %634 : vector<8x128xf32>
    %636 = vector.extract_strided_slice %623 {offsets = [0, 256], sizes = [8, 128], strides = [1, 1]} : vector<8x512xf32> to vector<8x128xf32>
    %637 = math.tanh %636 : vector<8x128xf32>
    %638 = vector.extract_strided_slice %623 {offsets = [0, 384], sizes = [8, 128], strides = [1, 1]} : vector<8x512xf32> to vector<8x128xf32>
    %639 = arith.negf %638 : vector<8x128xf32>
    %640 = math.exp %639 : vector<8x128xf32>
    %cst_189 = arith.constant 1.000000e+00 : f32
    %641 = vector.broadcast %cst_189 : f32 to vector<8x128xf32>
    %642 = arith.addf %641, %640 : vector<8x128xf32>
    %643 = arith.divf %641, %642 : vector<8x128xf32>
    %644 = arith.mulf %635, %566 : vector<8x128xf32>
    %645 = arith.mulf %629, %637 : vector<8x128xf32>
    %646 = arith.addf %644, %645 : vector<8x128xf32>
    %647 = math.tanh %646 : vector<8x128xf32>
    %648 = arith.mulf %643, %647 : vector<8x128xf32>
    %649 = vector.broadcast %619 : i32 to vector<8x1xi32>
    %650 = arith.cmpi slt, %649, %25 : vector<8x1xi32>
    %651 = vector.shape_cast %650 : vector<8x1xi1> to vector<8x1xi1>
    %652 = vector.broadcast %651 : vector<8x1xi1> to vector<8x128xi1>
    %653 = arith.select %652, %648, %563 : vector<8x128xi1>, vector<8x128xf32>
    %654 = vector.shape_cast %650 : vector<8x1xi1> to vector<8x1xi1>
    %655 = vector.broadcast %654 : vector<8x1xi1> to vector<8x128xi1>
    %656 = arith.select %655, %646, %566 : vector<8x128xi1>, vector<8x128xf32>
    %cst_190 = arith.constant 0.000000e+00 : f32
    %657 = vector.shape_cast %650 : vector<8x1xi1> to vector<8x1xi1>
    %658 = vector.broadcast %657 : vector<8x1xi1> to vector<8x128xi1>
    %659 = vector.broadcast %cst_190 : f32 to vector<8x128xf32>
    %660 = arith.select %658, %648, %659 : vector<8x128xi1>, vector<8x128xf32>
    %661 = arith.truncf %660 : vector<8x128xf32> to vector<8x128xbf16>
    %c8_191 = arith.constant 8 : index
    %c0_192 = arith.constant 0 : index
    %662 = vector.load %arg15[%c8_191, %c0_192] : memref<64x128xbf16, #tpu.memory_space<vmem>>, vector<8x128xbf16>
    tpu.vector_store %arg15[%c8_191, %c0_192], %661 {strides = array<i32>} : memref<64x128xbf16, #tpu.memory_space<vmem>>, vector<8x128xbf16>,
    %c56_193 = arith.constant 56 : index
    %c0_194 = arith.constant 0 : index
    %663 = vector.load %arg18[%c56_193, %c0_194] : memref<64x512xf32, #tpu.memory_space<vmem>>, vector<8x512xf32>
    %c7_i32_195 = arith.constant 7 : i32
    %664 = arith.addi %26, %c7_i32_195 : i32
    %665 = arith.truncf %608 : vector<8x128xf32> to vector<8x128xbf16>
    %c0_196 = arith.constant 0 : index
    %c0_197 = arith.constant 0 : index
    %666 = vector.load %arg12[%c0_196, %c0_197] : memref<128x512xbf16, #tpu.memory_space<vmem>>, vector<128x512xbf16>
    %cst_198 = arith.constant dense<0.000000e+00> : vector<8x512xf32>
    %667 = tpu.matmul %665, %666, %cst_198 {dimension_numbers = #tpu.dot_dimension_numbers<[1], [0], [0], [1], [0, 0, 1, 1], [], []>} : vector<8x128xbf16>, vector<128x512xbf16>, vector<8x512xf32> -> vector<8x512xf32>
    %668 = arith.addf %663, %667 : vector<8x512xf32>
    %669 = vector.extract_strided_slice %668 {offsets = [0, 0], sizes = [8, 128], strides = [1, 1]} : vector<8x512xf32> to vector<8x128xf32>
    %670 = arith.negf %669 : vector<8x128xf32>
    %671 = math.exp %670 : vector<8x128xf32>
    %cst_199 = arith.constant 1.000000e+00 : f32
    %672 = vector.broadcast %cst_199 : f32 to vector<8x128xf32>
    %673 = arith.addf %672, %671 : vector<8x128xf32>
    %674 = arith.divf %672, %673 : vector<8x128xf32>
    %675 = vector.extract_strided_slice %668 {offsets = [0, 128], sizes = [8, 128], strides = [1, 1]} : vector<8x512xf32> to vector<8x128xf32>
    %676 = arith.negf %675 : vector<8x128xf32>
    %677 = math.exp %676 : vector<8x128xf32>
    %cst_200 = arith.constant 1.000000e+00 : f32
    %678 = vector.broadcast %cst_200 : f32 to vector<8x128xf32>
    %679 = arith.addf %678, %677 : vector<8x128xf32>
    %680 = arith.divf %678, %679 : vector<8x128xf32>
    %681 = vector.extract_strided_slice %668 {offsets = [0, 256], sizes = [8, 128], strides = [1, 1]} : vector<8x512xf32> to vector<8x128xf32>
    %682 = math.tanh %681 : vector<8x128xf32>
    %683 = vector.extract_strided_slice %668 {offsets = [0, 384], sizes = [8, 128], strides = [1, 1]} : vector<8x512xf32> to vector<8x128xf32>
    %684 = arith.negf %683 : vector<8x128xf32>
    %685 = math.exp %684 : vector<8x128xf32>
    %cst_201 = arith.constant 1.000000e+00 : f32
    %686 = vector.broadcast %cst_201 : f32 to vector<8x128xf32>
    %687 = arith.addf %686, %685 : vector<8x128xf32>
    %688 = arith.divf %686, %687 : vector<8x128xf32>
    %689 = arith.mulf %680, %611 : vector<8x128xf32>
    %690 = arith.mulf %674, %682 : vector<8x128xf32>
    %691 = arith.addf %689, %690 : vector<8x128xf32>
    %692 = math.tanh %691 : vector<8x128xf32>
    %693 = arith.mulf %688, %692 : vector<8x128xf32>
    %694 = vector.broadcast %664 : i32 to vector<8x1xi32>
    %695 = arith.cmpi slt, %694, %25 : vector<8x1xi32>
    %696 = vector.shape_cast %695 : vector<8x1xi1> to vector<8x1xi1>
    %697 = vector.broadcast %696 : vector<8x1xi1> to vector<8x128xi1>
    %698 = arith.select %697, %693, %608 : vector<8x128xi1>, vector<8x128xf32>
    %699 = vector.shape_cast %695 : vector<8x1xi1> to vector<8x1xi1>
    %700 = vector.broadcast %699 : vector<8x1xi1> to vector<8x128xi1>
    %701 = arith.select %700, %691, %611 : vector<8x128xi1>, vector<8x128xf32>
    %cst_202 = arith.constant 0.000000e+00 : f32
    %702 = vector.shape_cast %695 : vector<8x1xi1> to vector<8x1xi1>
    %703 = vector.broadcast %702 : vector<8x1xi1> to vector<8x128xi1>
    %704 = vector.broadcast %cst_202 : f32 to vector<8x128xf32>
    %705 = arith.select %703, %693, %704 : vector<8x128xi1>, vector<8x128xf32>
    %706 = arith.truncf %705 : vector<8x128xf32> to vector<8x128xbf16>
    %c56_203 = arith.constant 56 : index
    %c0_204 = arith.constant 0 : index
    %707 = vector.load %arg14[%c56_203, %c0_204] : memref<64x128xbf16, #tpu.memory_space<vmem>>, vector<8x128xbf16>
    tpu.vector_store %arg14[%c56_203, %c0_204], %706 {strides = array<i32>} : memref<64x128xbf16, #tpu.memory_space<vmem>>, vector<8x128xbf16>,
    %c0_205 = arith.constant 0 : index
    %c0_206 = arith.constant 0 : index
    %708 = vector.load %arg19[%c0_205, %c0_206] : memref<64x512xf32, #tpu.memory_space<vmem>>, vector<8x512xf32>
    %c0_i32_207 = arith.constant 0 : i32
    %709 = arith.addi %28, %c0_i32_207 : i32
    %710 = arith.truncf %653 : vector<8x128xf32> to vector<8x128xbf16>
    %c0_208 = arith.constant 0 : index
    %c0_209 = arith.constant 0 : index
    %711 = vector.load %arg13[%c0_208, %c0_209] : memref<128x512xbf16, #tpu.memory_space<vmem>>, vector<128x512xbf16>
    %cst_210 = arith.constant dense<0.000000e+00> : vector<8x512xf32>
    %712 = tpu.matmul %710, %711, %cst_210 {dimension_numbers = #tpu.dot_dimension_numbers<[1], [0], [0], [1], [0, 0, 1, 1], [], []>} : vector<8x128xbf16>, vector<128x512xbf16>, vector<8x512xf32> -> vector<8x512xf32>
    %713 = arith.addf %708, %712 : vector<8x512xf32>
    %714 = vector.extract_strided_slice %713 {offsets = [0, 0], sizes = [8, 128], strides = [1, 1]} : vector<8x512xf32> to vector<8x128xf32>
    %715 = arith.negf %714 : vector<8x128xf32>
    %716 = math.exp %715 : vector<8x128xf32>
    %cst_211 = arith.constant 1.000000e+00 : f32
    %717 = vector.broadcast %cst_211 : f32 to vector<8x128xf32>
    %718 = arith.addf %717, %716 : vector<8x128xf32>
    %719 = arith.divf %717, %718 : vector<8x128xf32>
    %720 = vector.extract_strided_slice %713 {offsets = [0, 128], sizes = [8, 128], strides = [1, 1]} : vector<8x512xf32> to vector<8x128xf32>
    %721 = arith.negf %720 : vector<8x128xf32>
    %722 = math.exp %721 : vector<8x128xf32>
    %cst_212 = arith.constant 1.000000e+00 : f32
    %723 = vector.broadcast %cst_212 : f32 to vector<8x128xf32>
    %724 = arith.addf %723, %722 : vector<8x128xf32>
    %725 = arith.divf %723, %724 : vector<8x128xf32>
    %726 = vector.extract_strided_slice %713 {offsets = [0, 256], sizes = [8, 128], strides = [1, 1]} : vector<8x512xf32> to vector<8x128xf32>
    %727 = math.tanh %726 : vector<8x128xf32>
    %728 = vector.extract_strided_slice %713 {offsets = [0, 384], sizes = [8, 128], strides = [1, 1]} : vector<8x512xf32> to vector<8x128xf32>
    %729 = arith.negf %728 : vector<8x128xf32>
    %730 = math.exp %729 : vector<8x128xf32>
    %cst_213 = arith.constant 1.000000e+00 : f32
    %731 = vector.broadcast %cst_213 : f32 to vector<8x128xf32>
    %732 = arith.addf %731, %730 : vector<8x128xf32>
    %733 = arith.divf %731, %732 : vector<8x128xf32>
    %734 = arith.mulf %725, %656 : vector<8x128xf32>
    %735 = arith.mulf %719, %727 : vector<8x128xf32>
    %736 = arith.addf %734, %735 : vector<8x128xf32>
    %737 = math.tanh %736 : vector<8x128xf32>
    %738 = arith.mulf %733, %737 : vector<8x128xf32>
    %739 = vector.broadcast %709 : i32 to vector<8x1xi32>
    %740 = arith.cmpi slt, %739, %25 : vector<8x1xi32>
    %741 = vector.shape_cast %740 : vector<8x1xi1> to vector<8x1xi1>
    %742 = vector.broadcast %741 : vector<8x1xi1> to vector<8x128xi1>
    %743 = arith.select %742, %738, %653 : vector<8x128xi1>, vector<8x128xf32>
    %744 = vector.shape_cast %740 : vector<8x1xi1> to vector<8x1xi1>
    %745 = vector.broadcast %744 : vector<8x1xi1> to vector<8x128xi1>
    %746 = arith.select %745, %736, %656 : vector<8x128xi1>, vector<8x128xf32>
    %cst_214 = arith.constant 0.000000e+00 : f32
    %747 = vector.shape_cast %740 : vector<8x1xi1> to vector<8x1xi1>
    %748 = vector.broadcast %747 : vector<8x1xi1> to vector<8x128xi1>
    %749 = vector.broadcast %cst_214 : f32 to vector<8x128xf32>
    %750 = arith.select %748, %738, %749 : vector<8x128xi1>, vector<8x128xf32>
    %751 = arith.truncf %750 : vector<8x128xf32> to vector<8x128xbf16>
    %c0_215 = arith.constant 0 : index
    %c0_216 = arith.constant 0 : index
    %752 = vector.load %arg15[%c0_215, %c0_216] : memref<64x128xbf16, #tpu.memory_space<vmem>>, vector<8x128xbf16>
    tpu.vector_store %arg15[%c0_215, %c0_216], %751 {strides = array<i32>} : memref<64x128xbf16, #tpu.memory_space<vmem>>, vector<8x128xbf16>,
    %c0_217 = arith.constant 0 : index
    %c0_218 = arith.constant 0 : index
    %753 = vector.load %arg20[%c0_217, %c0_218] : memref<8x128xf32, #tpu.memory_space<vmem>>, vector<8x128xf32>
    tpu.vector_store %arg20[%c0_217, %c0_218], %698 {strides = array<i32>} : memref<8x128xf32, #tpu.memory_space<vmem>>, vector<8x128xf32>,
    %c0_219 = arith.constant 0 : index
    %c0_220 = arith.constant 0 : index
    %754 = vector.load %arg21[%c0_219, %c0_220] : memref<8x128xf32, #tpu.memory_space<vmem>>, vector<8x128xf32>
    tpu.vector_store %arg21[%c0_219, %c0_220], %701 {strides = array<i32>} : memref<8x128xf32, #tpu.memory_space<vmem>>, vector<8x128xf32>,
    %c0_221 = arith.constant 0 : index
    %c0_222 = arith.constant 0 : index
    %755 = vector.load %arg22[%c0_221, %c0_222] : memref<8x128xf32, #tpu.memory_space<vmem>>, vector<8x128xf32>
    tpu.vector_store %arg22[%c0_221, %c0_222], %743 {strides = array<i32>} : memref<8x128xf32, #tpu.memory_space<vmem>>, vector<8x128xf32>,
    %c0_223 = arith.constant 0 : index
    %c0_224 = arith.constant 0 : index
    %756 = vector.load %arg23[%c0_223, %c0_224] : memref<8x128xf32, #tpu.memory_space<vmem>>, vector<8x128xf32>
    tpu.vector_store %arg23[%c0_223, %c0_224], %746 {strides = array<i32>} : memref<8x128xf32, #tpu.memory_space<vmem>>, vector<8x128xf32>,
    %c0_i32_225 = arith.constant 0 : i32
    %757 = arith.cmpi eq, %arg0, %c0_i32_225 : i32
    %758 = arith.extui %757 : i1 to i32
    %c0_i32_226 = arith.constant 0 : i32
    %759 = arith.cmpi ne, %758, %c0_i32_226 : i32
    scf.if %759 {
      %c0_227 = arith.constant 0 : index
      %c0_228 = arith.constant 0 : index
      %760 = vector.load %arg16[%c0_227, %c0_228] : memref<8x128xf32, #tpu.memory_space<vmem>>, vector<8x128xf32>
      tpu.vector_store %arg16[%c0_227, %c0_228], %698 {strides = array<i32>} : memref<8x128xf32, #tpu.memory_space<vmem>>, vector<8x128xf32>,
      %c0_229 = arith.constant 0 : index
      %c0_230 = arith.constant 0 : index
      %761 = vector.load %arg17[%c0_229, %c0_230] : memref<8x128xf32, #tpu.memory_space<vmem>>, vector<8x128xf32>
      tpu.vector_store %arg17[%c0_229, %c0_230], %743 {strides = array<i32>} : memref<8x128xf32, #tpu.memory_space<vmem>>, vector<8x128xf32>,
    } else {
    }
    return
  }
  func.func @transform_0(%arg0: i32) -> (i32, i32) {
    %c0_i32 = arith.constant 0 : i32
    %c0_i32_0 = arith.constant 0 : i32
    %c0_i32_1 = arith.constant 0 : i32
    return %c0_i32, %c0_i32_0 : i32, i32
  }
  func.func @transform_1(%arg0: i32) -> (i32, i32) {
    %c0_i32 = arith.constant 0 : i32
    %c0_i32_0 = arith.constant 0 : i32
    return %arg0, %c0_i32 : i32, i32
  }
  func.func @transform_2(%arg0: i32) -> (i32, i32) {
    %c0_i32 = arith.constant 0 : i32
    %c0_i32_0 = arith.constant 0 : i32
    return %arg0, %c0_i32 : i32, i32
  }
  func.func @transform_3(%arg0: i32) -> (i32, i32) {
    %c0_i32 = arith.constant 0 : i32
    %0 = arith.subi %c0_i32, %arg0 : i32
    %c0_i32_0 = arith.constant 0 : i32
    %c0_i32_1 = arith.constant 0 : i32
    return %0, %c0_i32_0 : i32, i32
  }
  func.func @transform_4(%arg0: i32) -> (i32, i32) {
    %c0_i32 = arith.constant 0 : i32
    %0 = arith.subi %c0_i32, %arg0 : i32
    %c0_i32_0 = arith.constant 0 : i32
    %c0_i32_1 = arith.constant 0 : i32
    return %0, %c0_i32_0 : i32, i32
  }
  func.func @transform_5(%arg0: i32) -> (i32, i32) {
    %c0_i32 = arith.constant 0 : i32
    %c0_i32_0 = arith.constant 0 : i32
    %c0_i32_1 = arith.constant 0 : i32
    return %c0_i32, %c0_i32_0 : i32, i32
  }
  func.func @transform_6(%arg0: i32) -> (i32, i32) {
    %c0_i32 = arith.constant 0 : i32
    %c0_i32_0 = arith.constant 0 : i32
    %c0_i32_1 = arith.constant 0 : i32
    return %c0_i32, %c0_i32_0 : i32, i32
  }
  func.func @transform_7(%arg0: i32) -> (i32, i32) {
    %c0_i32 = arith.constant 0 : i32
    %c0_i32_0 = arith.constant 0 : i32
    %c0_i32_1 = arith.constant 0 : i32
    return %c0_i32, %c0_i32_0 : i32, i32
  }
  func.func @transform_8(%arg0: i32) -> (i32, i32) {
    %c0_i32 = arith.constant 0 : i32
    %c0_i32_0 = arith.constant 0 : i32
    %c0_i32_1 = arith.constant 0 : i32
    return %c0_i32, %c0_i32_0 : i32, i32
  }
  func.func @transform_9(%arg0: i32) -> (i32, i32) {
    %c0_i32 = arith.constant 0 : i32
    %c0_i32_0 = arith.constant 0 : i32
    %c0_i32_1 = arith.constant 0 : i32
    return %c0_i32, %c0_i32_0 : i32, i32
  }
  func.func @transform_10(%arg0: i32) -> (i32, i32) {
    %c0_i32 = arith.constant 0 : i32
    %c0_i32_0 = arith.constant 0 : i32
    %c0_i32_1 = arith.constant 0 : i32
    return %c0_i32, %c0_i32_0 : i32, i32
  }
  func.func @transform_11(%arg0: i32) -> (i32, i32) {
    %c0_i32 = arith.constant 0 : i32
    %c0_i32_0 = arith.constant 0 : i32
    %c0_i32_1 = arith.constant 0 : i32
    return %c0_i32, %c0_i32_0 : i32, i32
  }
  func.func @transform_12(%arg0: i32) -> (i32, i32) {
    %c0_i32 = arith.constant 0 : i32
    %c0_i32_0 = arith.constant 0 : i32
    %c0_i32_1 = arith.constant 0 : i32
    return %c0_i32, %c0_i32_0 : i32, i32
  }
  func.func @transform_13(%arg0: i32) -> (i32, i32) {
    %c0_i32 = arith.constant 0 : i32
    %c0_i32_0 = arith.constant 0 : i32
    return %arg0, %c0_i32 : i32, i32
  }
  func.func @transform_14(%arg0: i32) -> (i32, i32) {
    %c0_i32 = arith.constant 0 : i32
    %0 = arith.subi %c0_i32, %arg0 : i32
    %c0_i32_0 = arith.constant 0 : i32
    %c0_i32_1 = arith.constant 0 : i32
    return %0, %c0_i32_0 : i32, i32
  }
  func.func @transform_15(%arg0: i32) -> (i32, i32) {
    %c0_i32 = arith.constant 0 : i32
    %c0_i32_0 = arith.constant 0 : i32
    %c0_i32_1 = arith.constant 0 : i32
    return %c0_i32, %c0_i32_0 : i32, i32
  }
  func.func @transform_16(%arg0: i32) -> (i32, i32) {
    %c0_i32 = arith.constant 0 : i32
    %c0_i32_0 = arith.constant 0 : i32
    %c0_i32_1 = arith.constant 0 : i32
    return %c0_i32, %c0_i32_0 : i32, i32
  }
}

</mosaic_0001>

<bundles_post_ra>
// kernel: bilstm_forward.2
= control target key start
LH: loop header
LB: loop body
LE: loop exit
PB: predicated region body
PF: predicated region fallthrough
CT: control target
= control target key end

     0   :  { %18 = vsyncpa [#allocation9], 0  ;;  %s9604_s0 = inlined_call_operand.vmem [shape: s32[8,1], index: 0, kind: input, shape index: {}]   ;;  %s9605_s1 = inlined_call_operand.vmem [shape: bf16[64,32], index: 1, kind: input, shape index: {}, may-alias: {1,2}]   ;;  %s9606_s2 = inlined_call_operand.vmem [shape: bf16[64,32], index: 2, kind: input, shape index: {}, may-alias: {1,2}]   ;;  %s9607_s3 = inlined_call_operand.hbm [shape: bf16[32,512], index: 3, kind: input, shape index: {}]   ;;  %s9608_s4 = inlined_call_operand.hbm [shape: bf16[32,512], index: 4, kind: input, shape index: {}]   ;;  %s9609_s5 = inlined_call_operand.vmem [shape: f32[1,512], index: 5, kind: input, shape index: {}]   ;;  %s9610_s6 = inlined_call_operand.vmem [shape: f32[1,512], index: 6, kind: input, shape index: {}]   ;;  %s9611_s7 = inlined_call_operand.vmem [shape: bf16[128,512], index: 7, kind: input, shape index: {}]   ;;  %s9612_s8 = inlined_call_operand.hbm [shape: bf16[128,512], index: 8, kind: input, shape index: {}]   ;;  %s9613_s9 = inlined_call_operand.vmem [shape: bf16[64,128], index: 9, kind: output, shape index: {0}]   ;;  %s9614_s10 = inlined_call_operand.vmem [shape: bf16[64,128], index: 10, kind: output, shape index: {1}]   ;;  %s9615_s11 = inlined_call_operand.hbm [shape: f32[8,128], index: 11, kind: output, shape index: {2}]   ;;  %s9616_s12 = inlined_call_operand.hbm [shape: f32[8,128], index: 12, kind: output, shape index: {3}]  }
   0x1   :  { %19 = vsyncpa [#allocation12], 0 }
   0x2   :  { %20 = vsyncpa [#allocation10], 0 }
   0x3   :  { %21 = vsyncpa [#allocation16], 0  ;;  %s7399_s21 = smov [#allocation11]   ;;  %s7400_s23 = smov [#allocation8]  }
   0x4   :  { %s53_s22 = sshll.u32 %s7399_s21, 4  ;;  %s41_s24 = sshll.u32 %s7400_s23, 4  ;;  %s54_s22 = int_to_ptr.vmem [resolvable:$true] %s53_s22  ;;  %s7473_s24 = int_to_ptr.vmem [resolvable:$true] %s41_s24 }
   0x5   :  { %s7281_s27 = scalar_lea.hbm %s9608_s4, 1024 }
   0x6   :  { %p7282_p0 = scmp.ne.s32.totalorder %s9608_s4, %s7281_s27  ;;  %p7285_p1 = scmp.lt.u32.totalorder %s7281_s27, %s9608_s4 }
   0x8   :  { %p7287_p2 = pnand %p7285_p1, %p7282_p0 }
   0xa   :  { %7290 = shalt.err (!%p7287_p2)
}
   0xb   :  { %s7291_s14 = scalar_lea.vmem %s54_s22, 1024  ;;  %p7296_p4 = scmp.lt.s32.totalorder %s54_s22, %s54_s22 }
   0xc   :  { %p7292_p3 = scmp.ne.s32.totalorder %s54_s22, %s7291_s14  ;;  %p7297_p5 = scmp.lt.s32.totalorder %s7291_s14, %s7291_s14 }
   0xe   :  { %p7298_p6 = por %p7297_p5, %p7296_p4 }
  0x10   :  { %p7299_p7 = pnand %p7298_p6, %p7292_p3 }
  0x12   :  { %7302 = shalt.err (!%p7299_p7)
}
  0x13   :  { %s7401_s15 = smov 256   ;;  %s7402_s16 = smov 16  }
  0x14   :  { %59 = dma.hbm_to_vmem [thread:$0]  %s9608_s4, 1024, %s54_s22, [#allocation12], %s7401_s15, %s7401_s15, %s7402_s16  }
  0x15   :  { %s7303_s21 = scalar_lea.hbm %s9607_s3, 1024 }
  0x16   :  { %p7304_p8 = scmp.ne.s32.totalorder %s9607_s3, %s7303_s21  ;;  %p7307_p9 = scmp.lt.u32.totalorder %s7303_s21, %s9607_s3 }
  0x18   :  { %p7309_p10 = pnand %p7307_p9, %p7304_p8 }
  0x1a   :  { %7312 = shalt.err (!%p7309_p10)
}
  0x1b   :  { %s7313_s28 = scalar_lea.vmem %s7473_s24, 1024  ;;  %p7318_p12 = scmp.lt.s32.totalorder %s7473_s24, %s7473_s24 }
  0x1c   :  { %p7314_p11 = scmp.ne.s32.totalorder %s7473_s24, %s7313_s28  ;;  %p7319_p13 = scmp.lt.s32.totalorder %s7313_s28, %s7313_s28 }
  0x1e   :  { %p7320_p0 = por %p7319_p13, %p7318_p12 }
  0x20   :  { %p7321_p1 = pnand %p7320_p0, %p7314_p11 }
  0x22   :  { %7324 = shalt.err (!%p7321_p1)
}
  0x23   :  { %47 = dma.hbm_to_vmem [thread:$0]  %s9607_s3, 1024, %s7473_s24, [#allocation9], %s7401_s15, %s7401_s15, %s7402_s16  }
  0x24   :  { %s7403_s29 = smov [#allocation13]   ;;  %s7325_s17 = scalar_lea.hbm %s9612_s8, 4096 }
  0x25   :  { %s71_s30 = sshll.u32 %s7403_s29, 4  ;;  %p7326_p2 = scmp.ne.s32.totalorder %s9612_s8, %s7325_s17  ;;  %s72_s30 = int_to_ptr.vmem [resolvable:$true] %s71_s30 }
  0x26   :  { %p7329_p3 = scmp.lt.u32.totalorder %s7325_s17, %s9612_s8 }
  0x28   :  { %p7331_p4 = pnand %p7329_p3, %p7326_p2 }
  0x2a   :  { %7334 = shalt.err (!%p7331_p4)
}
  0x2b   :  { %s7335_s23 = scalar_lea.vmem %s72_s30, 4096  ;;  %p7340_p6 = scmp.lt.s32.totalorder %s72_s30, %s72_s30 }
  0x2c   :  { %p7336_p5 = scmp.ne.s32.totalorder %s72_s30, %s7335_s23  ;;  %p7341_p7 = scmp.lt.s32.totalorder %s7335_s23, %s7335_s23 }
  0x2e   :  { %p7342_p8 = por %p7341_p7, %p7340_p6 }
  0x30   :  { %p7343_p9 = pnand %p7342_p8, %p7336_p5 }
  0x32   :  { %7346 = shalt.err (!%p7343_p9)
}
  0x33   :  { %77 = dma.hbm_to_vmem [thread:$0]  %s9612_s8, 4096, %s72_s30, [#allocation12], %s7401_s15, %s7401_s15, %s7402_s16  }
  0x34   :  { %7391 = dma.done.wait [#allocation9], 1024  }
  0x35   :  { %7392 = vsyncadd [#allocation9], 4294966272 }
  0x36   :  { %7393 = dma.done.wait [#allocation12], 5120  }
  0x37   :  { %7394 = vsyncadd [#allocation12], 4294962176  ;;  %v9622_v0 = vmov 0   ;;  %v6605_v1 = vld [vmem:[#allocation8 + $0x4] ss:$16 sps:$4 sm:$0xff]   ;;  %vm201_vm0 = vcmask 261120  }
  0x38   :  { %246 = vmatprep.mubr.bf16.mxu0 %v9622_v0  ;;  %319 = vmatprep.mubr.bf16.mxu1 %v9622_v0  ;;  %v6607_v2 = vld [vmem:[#allocation8 + $0xc] ss:$16 sps:$4 sm:$0xff]   ;;  %v6609_v3 = vld [vmem:[#allocation8] ss:$16 sps:$4 sm:$0xff]   ;;  %v6610_v4 = vld [vmem:[#allocation8 + $0x8] ss:$16 sps:$4 sm:$0xff]  }
  0x39   :  { %6603 = vset.pattern.permute.xlu0 %v9622_v0  ;;  %6604 = vset.pattern.permute.xlu1 %v9622_v0  ;;  %v6611_v5 = vld [vmem:[#allocation8 + $0x24] ss:$16 sps:$4 sm:$0xff]   ;;  %v6613_v6 = vld [vmem:[#allocation8 + $0x2c] ss:$16 sps:$4 sm:$0xff]   ;;  %v6615_v7 = vld [vmem:[#allocation8 + $0x20] ss:$16 sps:$4 sm:$0xff]  }
  0x3a   :  { %214 = vmatprep.subr.bf16.mxu0 %v6605_v1  ;;  %287 = vmatprep.subr.bf16.mxu1 %v6607_v2  ;;  %v6616_v8 = vld [vmem:[#allocation8 + $0x28] ss:$16 sps:$4 sm:$0xff]   ;;  %v6617_v9 = vld [vmem:[%s9605_s1] sm:$0xff]   ;;  %v6624_v12 = vld [vmem:[#allocation11 + $0xc] ss:$16 sps:$4 sm:$0xff]   ;;  %s7406_s27 = smov [#allocation14]  }
  0x3b   :  { %215 = vmatpush1.bf16.msra.mxu0 %v6609_v3  ;;  %288 = vmatpush1.bf16.msra.mxu1 %v6610_v4  ;;  %v6620_v10 = vld [vmem:[#allocation11 + $0x4] ss:$16 sps:$4 sm:$0xff]   ;;  %v6618_v11 = vld [vmem:[#allocation11] ss:$16 sps:$4 sm:$0xff]   ;;  %v6622_v13 = vld [vmem:[#allocation11 + $0x8] ss:$16 sps:$4 sm:$0xff]  }
  0x3c   :  { %216 = vmatprep.subr.bf16.mxu0 %v6611_v5  ;;  %289 = vmatprep.subr.bf16.mxu1 %v6613_v6  ;;  %v6626_v14 = vld [vmem:[#allocation11 + $0x20] ss:$16 sps:$4 sm:$0xff]   ;;  %v6628_v15 = vld [vmem:[#allocation11 + $0x24] ss:$16 sps:$4 sm:$0xff]   ;;  %v6630_v16 = vld [vmem:[#allocation11 + $0x28] ss:$16 sps:$4 sm:$0xff]  }
  0x3d   :  { %v6632_v17 = vld [vmem:[#allocation11 + $0x2c] ss:$16 sps:$4 sm:$0xff]   ;;  %v7542_v19 = vld [vmem:[%s9611_s7 + $0x4] ss:$16 sps:$4 sm:$0xff]   ;;  %v7572_v23 = vld [vmem:[%s9611_s7] ss:$16 sps:$4 sm:$0xff]  }
  0x3e   :  { %v6621_v18 = vld [vmem:[%s9605_s1 + $0x8] sm:$0xff]   ;;  %v6625_v21 = vld [vmem:[%s9605_s1 + $0x10] sm:$0xff]   ;;  %v6629_v22 = vld [vmem:[%s9605_s1 + $0x18] sm:$0xff]   ;;  %v9617_v5 = vmov 0.0|0.0   ;;  %s5918_s28 = sshll.u32 %s7406_s27, 4  ;;  %s5919_s28 = int_to_ptr.vmem [resolvable:$true] %s5918_s28 }
  0x3f   :  { %217 = vmatpush1.bf16.msra.mxu0 %v6615_v7  ;;  %290 = vmatpush1.bf16.msra.mxu1 %v6616_v8  ;;  %v7548_v20 = vld [vmem:[%s9611_s7 + $0xc] ss:$16 sps:$4 sm:$0xff]   ;;  %v7577_v24 = vld [vmem:[%s9611_s7 + $0x8] ss:$16 sps:$4 sm:$0xff]   ;;  %v6639_v25 = vld [vmem:[%s9606_s2] sm:$0xff]   ;;  %s7347_s4 = scalar_lea.vmem %s5919_s28, 128  ;;  %p7352_p11 = scmp.lt.s32.totalorder %s5919_s28, %s5919_s28 }
  0x40   :  { %534 = vmatprep.subr.bf16.mxu0 %v6620_v10  ;;  %607 = vmatprep.subr.bf16.mxu1 %v6624_v12  ;;  %v7585_v26 = vld [vmem:[%s9611_s7 + $0x24] ss:$16 sps:$4 sm:$0xff]   ;;  %v7590_v27 = vld [vmem:[%s9611_s7 + $0x2c] ss:$16 sps:$4 sm:$0xff]   ;;  %v7597_v28 = vld [vmem:[%s9611_s7 + $0x20] ss:$16 sps:$4 sm:$0xff]   ;;  %p7348_p10 = scmp.ne.s32.totalorder %s5919_s28, %s7347_s4  ;;  %p7353_p12 = scmp.lt.s32.totalorder %s7347_s4, %s7347_s4 }
  0x41   :  { %v7602_v29 = vld [vmem:[%s9611_s7 + $0x28] ss:$16 sps:$4 sm:$0xff]   ;;  %v7609_v30 = vld [vmem:[%s9611_s7 + $0x44] ss:$16 sps:$4 sm:$0xff]   ;;  %v7616_v31 = vld [vmem:[%s9611_s7 + $0x4c] ss:$16 sps:$4 sm:$0xff]  }
  0x42   :  { %5978 = vmatmul.mubr.msk.bf16.vlgmr.msra.gmra.mrb[0].mxu0 %vm201_vm0, %v6617_v9  ;;  %5982 = vmatmul.mubr.msk.bf16.vlgmr.msra.gmra.mrb[0].mxu1 %vm201_vm0, %v6617_v9  ;;  %v7623_v32 = vld [vmem:[%s9611_s7 + $0x40] ss:$16 sps:$4 sm:$0xff]   ;;  %v7628_v33 = vld [vmem:[%s9611_s7 + $0x48] ss:$16 sps:$4 sm:$0xff]   ;;  %v7638_v35 = vld [vmem:[%s9611_s7 + $0x64] ss:$16 sps:$4 sm:$0xff]   ;;  %p7354_p13 = por %p7353_p12, %p7352_p11 }
  0x43   :  { %535 = vmatpush1.bf16.msra.mxu0 %v6618_v11  ;;  %256 = vmatprep.mubr.bf16.mxu0 %v9622_v0  ;;  %v6652_v34 = vld [vmem:[%s9606_s2 + $0x8] sm:$0xff]   ;;  %v7652_v37 = vld [vmem:[%s9611_s7 + $0x60] ss:$16 sps:$4 sm:$0xff]   ;;  %v7664_v39 = vld [vmem:[%s9611_s7 + $0x84] ss:$16 sps:$4 sm:$0xff]  }
  0x44   :  { %329 = vmatprep.mubr.bf16.mxu1 %v9622_v0  ;;  %536 = vmatprep.subr.bf16.mxu0 %v6628_v15  ;;  %v7645_v36 = vld [vmem:[%s9611_s7 + $0x6c] ss:$16 sps:$4 sm:$0xff]   ;;  %v7657_v38 = vld [vmem:[%s9611_s7 + $0x68] ss:$16 sps:$4 sm:$0xff]   ;;  %v7678_v41 = vld [vmem:[%s9611_s7 + $0x80] ss:$16 sps:$4 sm:$0xff]   ;;  %p7355_p0 = pnand %p7354_p13, %p7348_p10 }
  0x45   :  { %608 = vmatpush1.bf16.msra.mxu1 %v6622_v13  ;;  %v7671_v40 = vld [vmem:[%s9611_s7 + $0x8c] ss:$16 sps:$4 sm:$0xff]   ;;  %v7683_v42 = vld [vmem:[%s9611_s7 + $0x88] ss:$16 sps:$4 sm:$0xff]   ;;  %v6665_v43 = vld [vmem:[%s9606_s2 + $0x10] sm:$0xff]  }
  0x46   :  { %609 = vmatprep.subr.bf16.mxu1 %v6632_v17  ;;  %v7693_v44 = vld [vmem:[%s9611_s7 + $0xa4] ss:$16 sps:$4 sm:$0xff]   ;;  %v7700_v45 = vld [vmem:[%s9611_s7 + $0xac] ss:$16 sps:$4 sm:$0xff]   ;;  %v7707_v46 = vld [vmem:[%s9611_s7 + $0xa0] ss:$16 sps:$4 sm:$0xff]  }
  0x47   :  { %537 = vmatpush1.bf16.msra.mxu0 %v6626_v14  ;;  %v7714_v47 = vld [vmem:[%s9611_s7 + $0xa8] ss:$16 sps:$4 sm:$0xff]   ;;  %v7721_v48 = vld [vmem:[%s9611_s7 + $0xc4] ss:$16 sps:$4 sm:$0xff]   ;;  %v7726_v49 = vld [vmem:[%s9611_s7 + $0xcc] ss:$16 sps:$4 sm:$0xff]  }
  0x48   :  { %970 = vmatprep.subr.bf16.mxu0 %v7542_v19  ;;  %v7731_v50 = vld [vmem:[%s9604_s0] sm:$0xff]  ;;  %v7743_v52 = vld [vmem:[%s9611_s7 + $0xc8] ss:$16 sps:$4 sm:$0xff]   ;;  %v7757_v55 = vld [vmem:[%s9611_s7 + $0xec] ss:$16 sps:$4 sm:$0xff]  }
  0x49   :  { %610 = vmatpush1.bf16.msra.mxu1 %v6630_v16  ;;  %v7738_v51 = vld [vmem:[%s9611_s7 + $0xc0] ss:$16 sps:$4 sm:$0xff]   ;;  %v6678_v53 = vld [vmem:[%s9606_s2 + $0x18] sm:$0xff]   ;;  %vm6041_vm1 = vcmp.gt.s32.totalorder %v7731_v50, 0  ;;  %v7752_v54 = vld [vmem:[%s9611_s7 + $0xe4] ss:$16 sps:$4 sm:$0xff]  }
  0x4a   :  { %5979 = vmatmul.mubr.msk.bf16.gmra.mrb[4].mxu0 %vm201_vm0, %v6621_v18  ;;  %5983 = vmatmul.mubr.msk.bf16.gmra.mrb[4].mxu1 %vm201_vm0, %v6621_v18  ;;  %v7760_v56 = vsel %vm6041_vm1, 1, %v9622_v0  ;;  %vm6077_vm2 = vcmp.gt.s32.totalorder %v7731_v50, 7  ;;  %v7770_v57 = vld [vmem:[%s9611_s7 + $0xe0] ss:$16 sps:$4 sm:$0xff]   ;;  %v7775_v58 = vld [vmem:[%s9611_s7 + $0xe8] ss:$16 sps:$4 sm:$0xff]  }
  0x4b   :  { %266 = vmatprep.mubr.bf16.mxu0 %v9622_v0  ;;  %339 = vmatprep.mubr.bf16.mxu1 %v9622_v0  ;;  %v7780_v59 = vld [vmem:[#allocation13 + $0x4] ss:$16 sps:$4 sm:$0xff]   ;;  %v7782_v60 = vld [vmem:[#allocation13 + $0xc] ss:$16 sps:$4 sm:$0xff]   ;;  %v7787_v61 = vsel %vm6077_vm2, 1, %v9622_v0  ;;  %vm6185_vm3 = vcmp.gt.s32.totalorder %v7731_v50, 2 }
  0x4c   :  { %1011 = vmatprep.subr.bf16.mxu1 %v7548_v20  ;;  %1084 = vperm.xlu0 %6603, %v7760_v56   ;;  %v6685_v62 = vld [vmem:[#allocation13] ss:$16 sps:$4 sm:$0xff]   ;;  %v6688_v63 = vld [vmem:[#allocation13 + $0x8] ss:$16 sps:$4 sm:$0xff]   ;;  %v6693_v1 = vld [vmem:[#allocation13 + $0x24] ss:$16 sps:$4 sm:$0xff]  }
  0x4d   :  { %v6696_v2 = vld [vmem:[#allocation13 + $0x2c] ss:$16 sps:$4 sm:$0xff]   ;;  %v7799_v3 = vld [vmem:[#allocation13 + $0x20] ss:$16 sps:$4 sm:$0xff]   ;;  %v7801_v4 = vld [vmem:[#allocation13 + $0x28] ss:$16 sps:$4 sm:$0xff]  }
  0x4e   :  { %v7805_v6 = vld [vmem:[#allocation13 + $0x44] ss:$16 sps:$4 sm:$0xff]   ;;  %v7807_v7 = vld [vmem:[#allocation13 + $0x4c] ss:$16 sps:$4 sm:$0xff]   ;;  %v7810_v8 = vsel %vm6185_vm3, 1, %v9622_v0  ;;  %vm6257_vm4 = vcmp.gt.s32.totalorder %v7731_v50, 3 }
  0x4f   :  { %v7813_v9 = vld [vmem:[#allocation13 + $0x40] ss:$16 sps:$4 sm:$0xff]   ;;  %v7815_v10 = vld [vmem:[#allocation13 + $0x48] ss:$16 sps:$4 sm:$0xff]   ;;  %v7819_v11 = vld [vmem:[#allocation13 + $0x64] ss:$16 sps:$4 sm:$0xff]  }
  0x50   :  { %1404 = vperm.xlu0 %6603, %v7787_v61   ;;  %v7821_v12 = vld [vmem:[#allocation13 + $0x6c] ss:$16 sps:$4 sm:$0xff]   ;;  %v7827_v13 = vsel %vm6257_vm4, 1, %v9622_v0  ;;  %vm6293_vm5 = vcmp.gt.s32.totalorder %v7731_v50, 4  ;;  %v7832_v14 = vld [vmem:[#allocation13 + $0x60] ss:$16 sps:$4 sm:$0xff]  }
  0x51   :  { %v7834_v15 = vld [vmem:[#allocation13 + $0x68] ss:$16 sps:$4 sm:$0xff]   ;;  %v7836_v16 = vld [vmem:[#allocation13 + $0x84] ss:$16 sps:$4 sm:$0xff]   ;;  %v7838_v17 = vld [vmem:[#allocation13 + $0x8c] ss:$16 sps:$4 sm:$0xff]  }
  0x52   :  { %5980 = vmatmul.mubr.msk.bf16.gmra.mrb[8].mxu0 %vm201_vm0, %v6625_v21  ;;  %5984 = vmatmul.mubr.msk.bf16.gmra.mrb[8].mxu1 %vm201_vm0, %v6625_v21  ;;  %9669 = vst [vmem:[#allocation21_spill] sm:$0xff] %v7834_v15  ;;  %9670 = vst [vmem:[#allocation22_spill] sm:$0xff] %v7836_v16  ;;  %v7844_v18 = vsel %vm6293_vm5, 1, %v9622_v0  ;;  %vm6221_vm6 = vcmp.gt.s32.totalorder %v7731_v50, 5  ;;  %v7849_v21 = vld [vmem:[#allocation13 + $0x80] ss:$16 sps:$4 sm:$0xff]  }
  0x53   :  { %276 = vmatprep.mubr.bf16.mxu0 %v9622_v0  ;;  %349 = vmatprep.mubr.bf16.mxu1 %v9622_v0  ;;  %9671 = vst [vmem:[#allocation23_spill] sm:$0xff] %v7838_v17  ;;  %vm6149_vm7 = vcmp.gt.s32.totalorder %v7731_v50, 6  ;;  %vm6113_vm8 = vcmp.gt.s32.totalorder %v7731_v50, 1 }
  0x54   :  { %2364 = vperm.xlu0 %6603, %v7810_v8  }
  0x58   :  { %3004 = vperm.xlu0 %6603, %v7827_v13  }
  0x5a   :  { %5981 = vmatmul.mubr.msk.bf16.gmra.mrb[12].mxu0 %vm201_vm0, %v6629_v22  ;;  %5985 = vmatmul.mubr.msk.bf16.gmra.mrb[12].mxu1 %vm201_vm0, %v6629_v22  ;;  %v7851_v22 = vld [vmem:[#allocation13 + $0x88] ss:$16 sps:$4 sm:$0xff]  }
  0x5b   :  { %566 = vmatprep.mubr.bf16.mxu0 %v9622_v0  ;;  %639 = vmatprep.mubr.bf16.mxu1 %v9622_v0 }
  0x5c   :  { %3644 = vperm.xlu0 %6603, %v7844_v18  }
  0x62   :  { %5998 = vmatmul.mubr.msk.bf16.vlgmr.msra.gmra.mrb[16].mxu0 %vm201_vm0, %v6639_v25  ;;  %6002 = vmatmul.mubr.msk.bf16.vlgmr.msra.gmra.mrb[16].mxu1 %vm201_vm0, %v6639_v25  ;;  %v7853_v25 = vld [vmem:[#allocation13 + $0xa4] ss:$16 sps:$4 sm:$0xff]  }
  0x63   :  { %971 = vmatpush1.bf16.msra.mxu0 %v7572_v23  ;;  %1012 = vmatpush1.bf16.msra.mxu1 %v7577_v24 }
  0x64   :  { %972 = vmatprep.subr.bf16.mxu0 %v7585_v26  ;;  %1013 = vmatprep.subr.bf16.mxu1 %v7590_v27 }
  0x65   :  { %576 = vmatprep.mubr.bf16.mxu0 %v9622_v0  ;;  %649 = vmatprep.mubr.bf16.mxu1 %v9622_v0 }
  0x67   :  { %973 = vmatpush1.bf16.msra.mxu0 %v7597_v28  ;;  %1014 = vmatpush1.bf16.msra.mxu1 %v7602_v29 }
  0x68   :  { %974 = vmatprep.subr.bf16.mxu0 %v7609_v30  ;;  %1015 = vmatprep.subr.bf16.mxu1 %v7616_v31 }
  0x6a   :  { %5999 = vmatmul.mubr.msk.bf16.gmra.mrb[20].mxu0 %vm201_vm0, %v6652_v34  ;;  %6003 = vmatmul.mubr.msk.bf16.gmra.mrb[20].mxu1 %vm201_vm0, %v6652_v34  ;;  %v7855_v34 = vld [vmem:[#allocation13 + $0xac] ss:$16 sps:$4 sm:$0xff]  }
  0x6b   :  { %975 = vmatpush1.bf16.msra.mxu0 %v7623_v32  ;;  %1016 = vmatpush1.bf16.msra.mxu1 %v7628_v33  ;;  %9672 = vst [vmem:[#allocation24_spill] sm:$0xff] %v7855_v34 }
  0x6c   :  { %976 = vmatprep.subr.bf16.mxu0 %v7638_v35  ;;  %1017 = vmatprep.subr.bf16.mxu1 %v7645_v36 }
  0x6d   :  { %586 = vmatprep.mubr.bf16.mxu0 %v9622_v0  ;;  %659 = vmatprep.mubr.bf16.mxu1 %v9622_v0 }
  0x6f   :  { %977 = vmatpush1.bf16.msra.mxu0 %v7652_v37  ;;  %1018 = vmatpush1.bf16.msra.mxu1 %v7657_v38 }
  0x70   :  { %978 = vmatprep.subr.bf16.mxu0 %v7664_v39  ;;  %1019 = vmatprep.subr.bf16.mxu1 %v7671_v40 }
  0x72   :  { %6000 = vmatmul.mubr.msk.bf16.gmra.mrb[24].mxu0 %vm201_vm0, %v6665_v43  ;;  %6004 = vmatmul.mubr.msk.bf16.gmra.mrb[24].mxu1 %vm201_vm0, %v6665_v43  ;;  %v7861_v43 = vsel %vm6221_vm6, 1, %v9622_v0 }
  0x73   :  { %979 = vmatpush1.bf16.msra.mxu0 %v7678_v41  ;;  %1020 = vmatpush1.bf16.msra.mxu1 %v7683_v42 }
  0x74   :  { %980 = vmatprep.subr.bf16.mxu0 %v7693_v44  ;;  %1021 = vmatprep.subr.bf16.mxu1 %v7700_v45 }
  0x75   :  { %596 = vmatprep.mubr.bf16.mxu0 %v9622_v0  ;;  %669 = vmatprep.mubr.bf16.mxu1 %v9622_v0 }
  0x76   :  { %4284 = vperm.xlu0 %6603, %v7861_v43  }
  0x77   :  { %981 = vmatpush1.bf16.msra.mxu0 %v7707_v46  ;;  %1022 = vmatpush1.bf16.msra.mxu1 %v7714_v47 }
  0x78   :  { %982 = vmatprep.subr.bf16.mxu0 %v7721_v48  ;;  %1023 = vmatprep.subr.bf16.mxu1 %v7726_v49 }
  0x7a   :  { %6001 = vmatmul.mubr.msk.bf16.gmra.mrb[28].mxu0 %vm201_vm0, %v6678_v53  ;;  %6005 = vmatmul.mubr.msk.bf16.gmra.mrb[28].mxu1 %vm201_vm0, %v6678_v53  ;;  %v7866_v53 = vld [vmem:[#allocation13 + $0xa0] ss:$16 sps:$4 sm:$0xff]  }
  0x7b   :  { %983 = vmatpush1.bf16.msra.mxu0 %v7738_v51  ;;  %1024 = vmatpush1.bf16.msra.mxu1 %v7743_v52 }
  0x7c   :  { %984 = vmatprep.subr.bf16.mxu0 %v7752_v54  ;;  %1025 = vmatprep.subr.bf16.mxu1 %v7757_v55 }
  0x7d   :  { %1002 = vmatprep.mubr.bf16.mxu0 %v9622_v0  ;;  %1043 = vmatprep.mubr.bf16.mxu1 %v9622_v0 }
  0x7f   :  { %985 = vmatpush1.bf16.msra.mxu0 %v7770_v57  ;;  %1026 = vmatpush1.bf16.msra.mxu1 %v7775_v58 }
  0x80   :  { %1290 = vmatprep.subr.bf16.mxu0 %v7780_v59  ;;  %1331 = vmatprep.subr.bf16.mxu1 %v7782_v60 }
  0x82   :  { %1003 = vmatmul.mubr.bf16.vlgmr.msra.gmra.mrb[32].mxu0 %v9617_v5  ;;  %1044 = vmatmul.mubr.bf16.vlgmr.msra.gmra.mrb[32].mxu1 %v9617_v5  ;;  %v7882_v5 = vld [vmem:[#allocation13 + $0xc0] ss:$16 sps:$4 sm:$0xff]  }
  0x83   :  { %1291 = vmatpush1.bf16.msra.mxu0 %v6685_v62  ;;  %1332 = vmatpush1.bf16.msra.mxu1 %v6688_v63  ;;  %v7868_v62 = vld [vmem:[#allocation13 + $0xa8] ss:$16 sps:$4 sm:$0xff]   ;;  %v7870_v63 = vld [vmem:[#allocation13 + $0xc4] ss:$16 sps:$4 sm:$0xff]  }
  0x84   :  { %1292 = vmatprep.subr.bf16.mxu0 %v6693_v1  ;;  %1333 = vmatprep.subr.bf16.mxu1 %v6696_v2  ;;  %v7872_v1 = vld [vmem:[#allocation13 + $0xcc] ss:$16 sps:$4 sm:$0xff]   ;;  %v7878_v2 = vsel %vm6149_vm7, 1, %v9622_v0 }
  0x85   :  { %1322 = vmatprep.mubr.bf16.mxu0 %v9622_v0  ;;  %1363 = vmatprep.mubr.bf16.mxu1 %v9622_v0  ;;  %9673 = vst [vmem:[#allocation25_spill] sm:$0xff] %v7872_v1  ;;  %v7895_v0 = vld [vmem:[#allocation13 + $0xe0] ss:$16 sps:$4 sm:$0xff]  }
  0x86   :  { %4924 = vperm.xlu0 %6603, %v7878_v2  }
  0x87   :  { %1293 = vmatpush1.bf16.msra.mxu0 %v7799_v3  ;;  %1334 = vmatpush1.bf16.msra.mxu1 %v7801_v4 }
  0x88   :  { %1294 = vmatprep.subr.bf16.mxu0 %v7805_v6  ;;  %1335 = vmatprep.subr.bf16.mxu1 %v7807_v7 }
  0x8a   :  { %5564 = vperm.xlu0 %6603, %v7787_v61   ;;  %v9675_v61 = vmov 0  }
  0x8b   :  { %1295 = vmatpush1.bf16.msra.mxu0 %v7813_v9  ;;  %1336 = vmatpush1.bf16.msra.mxu1 %v7815_v10 }
  0x8c   :  { %1296 = vmatprep.subr.bf16.mxu0 %v7819_v11  ;;  %1337 = vmatprep.subr.bf16.mxu1 %v7821_v12 }
  0x8f   :  { %1297 = vmatpush1.bf16.msra.mxu0 %v7832_v14  ;;  %1338 = vmatpush1.bf16.msra.mxu1 %v7834_v15  ;;  %v7888_v15 = vld [vmem:[#allocation13 + $0xec] ss:$16 sps:$4 sm:$0xff]  }
  0x90   :  { %1298 = vmatprep.subr.bf16.mxu0 %v7836_v16  ;;  %1339 = vmatprep.subr.bf16.mxu1 %v7838_v17  ;;  %v7884_v17 = vld [vmem:[#allocation13 + $0xc8] ss:$16 sps:$4 sm:$0xff]   ;;  %v7886_v16 = vld [vmem:[#allocation13 + $0xe4] ss:$16 sps:$4 sm:$0xff]  }
  0x93   :  { %1299 = vmatpush1.bf16.msra.mxu0 %v7849_v21  ;;  %1340 = vmatpush1.bf16.msra.mxu1 %v7851_v22 }
  0x94   :  { %1300 = vmatprep.subr.bf16.mxu0 %v7853_v25  ;;  %1341 = vmatprep.subr.bf16.mxu1 %v7855_v34  ;;  %v7897_v34 = vld [vmem:[#allocation13 + $0xe8] ss:$16 sps:$4 sm:$0xff]  }
  0x97   :  { %1301 = vmatpush1.bf16.msra.mxu0 %v7866_v53  ;;  %1342 = vmatpush1.bf16.msra.mxu1 %v7868_v62 }
  0x98   :  { %1302 = vmatprep.subr.bf16.mxu0 %v7870_v63  ;;  %1343 = vmatprep.subr.bf16.mxu1 %v7872_v1  ;;  %v9674_v1 = vmov 0.0|0.0  }
  0x9b   :  { %1303 = vmatpush1.bf16.msra.mxu0 %v7882_v5  ;;  %1344 = vmatpush1.bf16.msra.mxu1 %v7884_v17 }
  0x9c   :  { %1304 = vmatprep.subr.bf16.mxu0 %v7886_v16  ;;  %1345 = vmatprep.subr.bf16.mxu1 %v7888_v15 }
  0x9f   :  { %1305 = vmatpush1.bf16.msra.mxu0 %v7895_v0  ;;  %1346 = vmatpush1.bf16.msra.mxu1 %v7897_v34 }
  0xa0   :  { %1610 = vmatprep.subr.bf16.mxu0 %v7542_v19  ;;  %1651 = vmatprep.subr.bf16.mxu1 %v7548_v20  ;;  %v361_v19 = vlaneseq }
  0xa2   :  { %1323 = vmatmul.mubr.bf16.vlgmr.msra.gmra.mrb[36].mxu0 %v9674_v1  ;;  %1364 = vmatmul.mubr.bf16.vlgmr.msra.gmra.mrb[36].mxu1 %v9674_v1  ;;  %v7944_v20 = vshrl.u32 %v361_v19, 7 }
  0xa3   :  { %1611 = vmatpush1.bf16.msra.mxu0 %v7572_v23  ;;  %1652 = vmatpush1.bf16.msra.mxu1 %v7577_v24 }
  0xa4   :  { %1612 = vmatprep.subr.bf16.mxu0 %v7585_v26  ;;  %1653 = vmatprep.subr.bf16.mxu1 %v7590_v27  ;;  %v9628_v23 = vsub.s32 2, %v7944_v20  ;;  %v9626_v24 = vsub.s32 3, %v7944_v20  ;;  %v9629_v26 = vsub.s32 0, %v7944_v20  ;;  %v124_v27 = vld [vmem:[%s9609_s5] sm:$0xf] }
  0xa5   :  { %1642 = vmatprep.mubr.bf16.mxu0 %v9675_v61  ;;  %1683 = vmatprep.mubr.bf16.mxu1 %v9675_v61 }
  0xa7   :  { %1613 = vmatpush1.bf16.msra.mxu0 %v7597_v28  ;;  %1654 = vmatpush1.bf16.msra.mxu1 %v7602_v29  ;;  %v9627_v28 = vsub.s32 1, %v7944_v20  ;;  %v7955_v29 = vrot.slane %v124_v27, %v9628_v23 }
  0xa8   :  { %1614 = vmatprep.subr.bf16.mxu0 %v7609_v30  ;;  %1655 = vmatprep.subr.bf16.mxu1 %v7616_v31 }
  0xab   :  { %1615 = vmatpush1.bf16.msra.mxu0 %v7623_v32  ;;  %1656 = vmatpush1.bf16.msra.mxu1 %v7628_v33  ;;  %v7963_v32 = vrot.slane %v124_v27, %v9626_v24  ;;  %v7967_v33 = vrot.slane %v124_v27, %v9629_v26  ;;  %v8027_v24 = vsel %vm6113_vm8, 1, %v9675_v61 }
  0xac   :  { %1616 = vmatprep.subr.bf16.mxu0 %v7638_v35  ;;  %1657 = vmatprep.subr.bf16.mxu1 %v7645_v36 }
  0xad   :  { %1724 = vperm.xlu1 %6604, %v8027_v24  }
  0xaf   :  { %1617 = vmatpush1.bf16.msra.mxu0 %v7652_v37  ;;  %1658 = vmatpush1.bf16.msra.mxu1 %v7657_v38  ;;  %v7975_v37 = vrot.slane %v124_v27, %v9627_v28 }
  0xb0   :  { %1618 = vmatprep.subr.bf16.mxu0 %v7664_v39  ;;  %1659 = vmatprep.subr.bf16.mxu1 %v7671_v40 }
  0xb1   :  { %2044 = vperm.xlu1 %6604, %v7878_v2  }
  0xb3   :  { %1619 = vmatpush1.bf16.msra.mxu0 %v7678_v41  ;;  %1660 = vmatpush1.bf16.msra.mxu1 %v7683_v42 }
  0xb4   :  { %1620 = vmatprep.subr.bf16.mxu0 %v7693_v44  ;;  %1661 = vmatprep.subr.bf16.mxu1 %v7700_v45 }
  0xb5   :  { %2684 = vperm.xlu1 %6604, %v7861_v43   ;;  %v9703_v43 = vsub.s32 3, %v7944_v20 }
  0xb7   :  { %1621 = vmatpush1.bf16.msra.mxu0 %v7707_v46  ;;  %1662 = vmatpush1.bf16.msra.mxu1 %v7714_v47 }
  0xb8   :  { %1622 = vmatprep.subr.bf16.mxu0 %v7721_v48  ;;  %1663 = vmatprep.subr.bf16.mxu1 %v7726_v49 }
  0xb9   :  { %3324 = vperm.xlu1 %6604, %v7844_v18  }
  0xbb   :  { %1623 = vmatpush1.bf16.msra.mxu0 %v7738_v51  ;;  %1664 = vmatpush1.bf16.msra.mxu1 %v7743_v52 }
  0xbc   :  { %1624 = vmatprep.subr.bf16.mxu0 %v7752_v54  ;;  %1665 = vmatprep.subr.bf16.mxu1 %v7757_v55 }
  0xbd   :  { %3964 = vperm.xlu1 %6604, %v7827_v13  }
  0xbf   :  { %1625 = vmatpush1.bf16.msra.mxu0 %v7770_v57  ;;  %1666 = vmatpush1.bf16.msra.mxu1 %v7775_v58 }
  0xc0   :  { %1930 = vmatprep.subr.bf16.mxu0 %v7780_v59  ;;  %1971 = vmatprep.subr.bf16.mxu1 %v7782_v60 }
  0xc1   :  { %4604 = vperm.xlu1 %6604, %v7810_v8  }
  0xc5   :  { %5244 = vperm.xlu1 %6604, %v8027_v24  }
  0xc9   :  { %5883 = vperm.xlu1 %6604, %v7760_v56  }
 0x115   :  { %v7957_v30 = vpop.f32.mrb[0].mxu0  ;;  %v7959_v31 = vpop.f32.mrb[0].mxu1 }
 0x116   :  { %v7969_v35 = vpop.f32.mrb[1].mxu0  ;;  %v7971_v36 = vpop.f32.mrb[1].mxu1 }
 0x117   :  { %v252_v38 = vpop.f32.mrb[2].mxu0  ;;  %v325_v39 = vpop.f32.mrb[2].mxu1 }
 0x118   :  { %v7978_v40 = vadd.f32 %v7967_v33, %v252_v38  ;;  %v254_v41 = vpop.f32.mrb[3].mxu0  ;;  %v7981_v42 = vadd.f32 %v7955_v29, %v325_v39  ;;  %v327_v44 = vpop.f32.mrb[3].mxu1 }
 0x119   :  { %v7984_v45 = vadd.f32 %v7975_v37, %v254_v41  ;;  %v7987_v46 = vadd.f32 %v7963_v32, %v327_v44 }
 0x11d   :  { %v258_v47 = vpop.f32.mrb[4].mxu0  ;;  %v331_v48 = vpop.f32.mrb[4].mxu1 }
 0x11e   :  { %v7990_v49 = vadd.f32 %v7967_v33, %v258_v47  ;;  %v260_v51 = vpop.f32.mrb[5].mxu0  ;;  %v7993_v52 = vadd.f32 %v7955_v29, %v331_v48  ;;  %v333_v54 = vpop.f32.mrb[5].mxu1 }
 0x11f   :  { %v7996_v55 = vadd.f32 %v7975_v37, %v260_v51  ;;  %v262_v57 = vpop.f32.mrb[6].mxu0  ;;  %v7999_v58 = vadd.f32 %v7963_v32, %v333_v54  ;;  %v335_v59 = vpop.f32.mrb[6].mxu1 }
 0x120   :  { %9676 = vst [vmem:[#allocation26_spill] sm:$0xff] %v7990_v49  ;;  %9677 = vst [vmem:[#allocation27_spill] sm:$0xff] %v7993_v52  ;;  %v8002_v60 = vadd.f32 %v7967_v33, %v262_v57  ;;  %v264_v1 = vpop.f32.mrb[7].mxu0  ;;  %v8005_v19 = vadd.f32 %v7955_v29, %v335_v59  ;;  %v337_v27 = vpop.f32.mrb[7].mxu1 }
 0x121   :  { %9678 = vst [vmem:[#allocation28_spill] sm:$0xff] %v7996_v55  ;;  %9679 = vst [vmem:[#allocation29_spill] sm:$0xff] %v7999_v58  ;;  %v8008_v38 = vadd.f32 %v7975_v37, %v264_v1  ;;  %v8011_v39 = vadd.f32 %v7963_v32, %v337_v27 }
 0x122   :  { %9680 = vst [vmem:[#allocation30_spill] sm:$0xff] %v8002_v60  ;;  %9681 = vst [vmem:[#allocation31_spill] sm:$0xff] %v8005_v19 }
 0x123   :  { %9682 = vst [vmem:[#allocation32_spill] sm:$0xff] %v8008_v38  ;;  %9683 = vst [vmem:[#allocation33_spill] sm:$0xff] %v8011_v39 }
 0x125   :  { %v268_v41 = vpop.f32.mrb[8].mxu0  ;;  %v341_v44 = vpop.f32.mrb[8].mxu1 }
 0x126   :  { %v8014_v47 = vadd.f32 %v7967_v33, %v268_v41  ;;  %v270_v48 = vpop.f32.mrb[9].mxu0  ;;  %v8017_v51 = vadd.f32 %v7955_v29, %v341_v44  ;;  %v343_v54 = vpop.f32.mrb[9].mxu1 }
 0x127   :  { %v8021_v57 = vadd.f32 %v7975_v37, %v270_v48  ;;  %v272_v59 = vpop.f32.mrb[10].mxu0  ;;  %v8024_v1 = vadd.f32 %v7963_v32, %v343_v54  ;;  %v345_v27 = vpop.f32.mrb[10].mxu1 }
 0x128   :  { %9684 = vst [vmem:[#allocation34_spill] sm:$0xff] %v8014_v47  ;;  %9685 = vst [vmem:[#allocation35_spill] sm:$0xff] %v8017_v51  ;;  %v8030_v41 = vadd.f32 %v7967_v33, %v272_v59  ;;  %v274_v28 = vpop.f32.mrb[11].mxu0  ;;  %v8033_v44 = vadd.f32 %v7955_v29, %v345_v27  ;;  %v347_v23 = vpop.f32.mrb[11].mxu1 }
 0x129   :  { %9686 = vst [vmem:[#allocation36_spill] sm:$0xff] %v8021_v57  ;;  %9687 = vst [vmem:[#allocation37_spill] sm:$0xff] %v8024_v1  ;;  %v8037_v50 = vadd.f32 %v7975_v37, %v274_v28  ;;  %v8040_v48 = vadd.f32 %v7963_v32, %v347_v23  ;;  %v445_v23 = vld [vmem:[%s9610_s6] sm:$0xf] }
 0x12a   :  { %9688 = vst [vmem:[#allocation38_spill] sm:$0xff] %v8030_v41  ;;  %9689 = vst [vmem:[#allocation39_spill] sm:$0xff] %v8033_v44 }
 0x12b   :  { %9690 = vst [vmem:[#allocation40_spill] sm:$0xff] %v8037_v50  ;;  %9691 = vst [vmem:[#allocation41_spill] sm:$0xff] %v8040_v48  ;;  %v8085_v50 = vrot.slane %v445_v23, %v9703_v43 }
 0x12d   :  { %v278_v54 = vpop.f32.mrb[12].mxu0  ;;  %v351_v26 = vpop.f32.mrb[12].mxu1 }
 0x12e   :  { %v8044_v59 = vadd.f32 %v7967_v33, %v278_v54  ;;  %v280_v41 = vpop.f32.mrb[13].mxu0  ;;  %v8047_v27 = vadd.f32 %v7955_v29, %v351_v26  ;;  %v353_v44 = vpop.f32.mrb[13].mxu1 }
 0x12f   :  { %v8050_v1 = vadd.f32 %v7975_v37, %v280_v41  ;;  %v282_v28 = vpop.f32.mrb[14].mxu0  ;;  %v8056_v2 = vadd.f32 %v7963_v32, %v353_v44  ;;  %v355_v48 = vpop.f32.mrb[14].mxu1  ;;  %v9700_v44 = vsub.s32 0, %v7944_v20 }
 0x130   :  { %9692 = vst [vmem:[#allocation42_spill] sm:$0xff] %v8044_v59  ;;  %9693 = vst [vmem:[#allocation43_spill] sm:$0xff] %v8047_v27  ;;  %v8059_v54 = vadd.f32 %v7967_v33, %v282_v28  ;;  %v284_v59 = vpop.f32.mrb[15].mxu0  ;;  %v8062_v26 = vadd.f32 %v7955_v29, %v355_v48  ;;  %v357_v27 = vpop.f32.mrb[15].mxu1  ;;  %v9701_v28 = vsub.s32 2, %v7944_v20  ;;  %v9702_v48 = vsub.s32 1, %v7944_v20 }
 0x131   :  { %9694 = vst [vmem:[#allocation44_spill] sm:$0xff] %v8050_v1  ;;  %9695 = vst [vmem:[#allocation45_spill] sm:$0xff] %v8056_v2  ;;  %v8066_v41 = vadd.f32 %v7975_v37, %v284_v59  ;;  %v8069_v1 = vadd.f32 %v7963_v32, %v357_v27  ;;  %v8073_v2 = vrot.slane %v445_v23, %v9700_v44 }
 0x132   :  { %9696 = vst [vmem:[#allocation46_spill] sm:$0xff] %v8059_v54  ;;  %9697 = vst [vmem:[#allocation47_spill] sm:$0xff] %v8062_v26  ;;  %v8077_v54 = vrot.slane %v445_v23, %v9701_v28  ;;  %v8081_v26 = vrot.slane %v445_v23, %v9702_v48 }
 0x133   :  { %9698 = vst [vmem:[#allocation48_spill] sm:$0xff] %v8066_v41  ;;  %9699 = vst [vmem:[#allocation49_spill] sm:$0xff] %v8069_v1 }
 0x135   :  { %v568_v59 = vpop.f32.mrb[16].mxu0  ;;  %v641_v27 = vpop.f32.mrb[16].mxu1 }
 0x136   :  { %v8089_v1 = vadd.f32 %v8073_v2, %v568_v59  ;;  %v570_v44 = vpop.f32.mrb[17].mxu0  ;;  %v8092_v41 = vadd.f32 %v8077_v54, %v641_v27  ;;  %v643_v28 = vpop.f32.mrb[17].mxu1 }
 0x137   :  { %v8095_v57 = vadd.f32 %v8081_v26, %v570_v44  ;;  %v572_v48 = vpop.f32.mrb[18].mxu0  ;;  %v8098_v20 = vadd.f32 %v8085_v50, %v643_v28  ;;  %v645_v23 = vpop.f32.mrb[18].mxu1 }
 0x138   :  { %9704 = vst [vmem:[#allocation50_spill] sm:$0xff] %v8089_v1  ;;  %9705 = vst [vmem:[#allocation51_spill] sm:$0xff] %v8092_v41  ;;  %v8101_v18 = vadd.f32 %v8073_v2, %v572_v48  ;;  %v574_v43 = vpop.f32.mrb[19].mxu0  ;;  %v8104_v59 = vadd.f32 %v8077_v54, %v645_v23  ;;  %v647_v1 = vpop.f32.mrb[19].mxu1 }
 0x139   :  { %9706 = vst [vmem:[#allocation52_spill] sm:$0xff] %v8095_v57  ;;  %9707 = vst [vmem:[#allocation53_spill] sm:$0xff] %v8098_v20  ;;  %v8108_v27 = vadd.f32 %v8081_v26, %v574_v43  ;;  %v8111_v44 = vadd.f32 %v8085_v50, %v647_v1 }
 0x13a   :  { %9708 = vst [vmem:[#allocation54_spill] sm:$0xff] %v8101_v18  ;;  %9709 = vst [vmem:[#allocation55_spill] sm:$0xff] %v8104_v59 }
 0x13b   :  { %9710 = vst [vmem:[#allocation56_spill] sm:$0xff] %v8108_v27  ;;  %9711 = vst [vmem:[#allocation57_spill] sm:$0xff] %v8111_v44 }
 0x13d   :  { %v578_v28 = vpop.f32.mrb[20].mxu0  ;;  %v651_v20 = vpop.f32.mrb[20].mxu1 }
 0x13e   :  { %v8115_v48 = vadd.f32 %v8073_v2, %v578_v28  ;;  %v580_v57 = vpop.f32.mrb[21].mxu0  ;;  %v8118_v23 = vadd.f32 %v8077_v54, %v651_v20  ;;  %v653_v41 = vpop.f32.mrb[21].mxu1 }
 0x13f   :  { %v8121_v13 = vadd.f32 %v8081_v26, %v580_v57  ;;  %v582_v43 = vpop.f32.mrb[22].mxu0  ;;  %v8124_v27 = vadd.f32 %v8085_v50, %v653_v41  ;;  %v655_v1 = vpop.f32.mrb[22].mxu1 }
 0x140   :  { %9712 = vst [vmem:[#allocation58_spill] sm:$0xff] %v8115_v48  ;;  %9713 = vst [vmem:[#allocation59_spill] sm:$0xff] %v8118_v23  ;;  %v8127_v8 = vadd.f32 %v8073_v2, %v582_v43  ;;  %v584_v44 = vpop.f32.mrb[23].mxu0  ;;  %v8130_v28 = vadd.f32 %v8077_v54, %v655_v1  ;;  %v657_v59 = vpop.f32.mrb[23].mxu1 }
 0x141   :  { %9714 = vst [vmem:[#allocation60_spill] sm:$0xff] %v8121_v13  ;;  %9715 = vst [vmem:[#allocation61_spill] sm:$0xff] %v8124_v27  ;;  %v8134_v20 = vadd.f32 %v8081_v26, %v584_v44  ;;  %v8137_v57 = vadd.f32 %v8085_v50, %v657_v59 }
 0x142   :  { %9716 = vst [vmem:[#allocation62_spill] sm:$0xff] %v8127_v8  ;;  %9717 = vst [vmem:[#allocation63_spill] sm:$0xff] %v8130_v28 }
 0x143   :  { %9718 = vst [vmem:[#allocation64_spill] sm:$0xff] %v8134_v20  ;;  %9719 = vst [vmem:[#allocation65_spill] sm:$0xff] %v8137_v57 }
 0x145   :  { %v588_v41 = vpop.f32.mrb[24].mxu0  ;;  %v661_v18 = vpop.f32.mrb[24].mxu1 }
 0x146   :  { %v8141_v43 = vadd.f32 %v8073_v2, %v588_v41  ;;  %v590_v27 = vpop.f32.mrb[25].mxu0  ;;  %v8144_v1 = vadd.f32 %v8077_v54, %v661_v18  ;;  %v663_v13 = vpop.f32.mrb[25].mxu1 }
 0x147   :  { %v8147_v24 = vadd.f32 %v8081_v26, %v590_v27  ;;  %v592_v44 = vpop.f32.mrb[26].mxu0  ;;  %v8150_v23 = vadd.f32 %v8085_v50, %v663_v13  ;;  %v665_v59 = vpop.f32.mrb[26].mxu1 }
 0x148   :  { %9720 = vst [vmem:[#allocation66_spill] sm:$0xff] %v8141_v43  ;;  %9721 = vst [vmem:[#allocation67_spill] sm:$0xff] %v8144_v1  ;;  %v8153_v56 = vadd.f32 %v8073_v2, %v592_v44  ;;  %v594_v48 = vpop.f32.mrb[27].mxu0  ;;  %v8156_v41 = vadd.f32 %v8077_v54, %v665_v59  ;;  %v667_v57 = vpop.f32.mrb[27].mxu1  ;;  %v381_v1 = vadd.f32 %v7967_v33, %v7957_v30 }
 0x149   :  { %9722 = vst [vmem:[#allocation68_spill] sm:$0xff] %v8147_v24  ;;  %9723 = vst [vmem:[#allocation69_spill] sm:$0xff] %v8150_v23  ;;  %v8159_v18 = vadd.f32 %v8081_v26, %v594_v48  ;;  %v8162_v20 = vadd.f32 %v8085_v50, %v667_v57 }
 0x14a   :  { %9724 = vst [vmem:[#allocation70_spill] sm:$0xff] %v8153_v56  ;;  %9725 = vst [vmem:[#allocation71_spill] sm:$0xff] %v8156_v41 }
 0x14b   :  { %9726 = vst [vmem:[#allocation72_spill] sm:$0xff] %v8159_v18  ;;  %9727 = vst [vmem:[#allocation73_spill] sm:$0xff] %v8162_v20 }
 0x14d   :  { %v598_v27 = vpop.f32.mrb[28].mxu0  ;;  %v671_v28 = vpop.f32.mrb[28].mxu1 }
 0x14e   :  { %v8165_v13 = vadd.f32 %v8073_v2, %v598_v27  ;;  %v600_v8 = vpop.f32.mrb[29].mxu0  ;;  %v8168_v44 = vadd.f32 %v8077_v54, %v671_v28  ;;  %v673_v51 = vpop.f32.mrb[29].mxu1  ;;  %v383_v27 = vadd.f32 %v7955_v29, %v7959_v31  ;;  %v382_v28 = vadd.f32 %v7975_v37, %v7969_v35 }
 0x14f   :  { %v8171_v59 = vadd.f32 %v8081_v26, %v600_v8  ;;  %v602_v47 = vpop.f32.mrb[30].mxu0  ;;  %v8174_v48 = vadd.f32 %v8085_v50, %v673_v51  ;;  %v675_v23 = vpop.f32.mrb[30].mxu1  ;;  %v384_v8 = vadd.f32 %v7963_v32, %v7971_v36 }
 0x150   :  { %v604_v57 = vpop.f32.mrb[31].mxu0  ;;  %v677_v24 = vpop.f32.mrb[31].mxu1 }
 0x155   :  { %v1004_v43 = vpop.f32.mrb[32].mxu0  ;;  %v1045_v39 = vpop.f32.mrb[32].mxu1 }
 0x156   :  { %v1052_v38 = vadd.f32 %v1004_v43, %v381_v1  ;;  %v1054_v51 = vadd.f32 %v1045_v39, %v383_v27  ;;  %v1006_v19 = vpop.f32.mrb[33].mxu0  ;;  %v1047_v60 = vpop.f32.mrb[33].mxu1 }
 0x157   :  { %v1053_v20 = vadd.f32 %v1006_v19, %v382_v28  ;;  %v1055_v18 = vadd.f32 %v1047_v60, %v384_v8  ;;  %v1008_v41 = vpop.f32.mrb[34].mxu0  ;;  %v1049_v56 = vpop.f32.mrb[34].mxu1 }
 0x158   :  { %v6038_v30 = vmul.f32 -1.442695, %v1052_v38  ;;  %v1009_v33 = vpop.f32.mrb[35].mxu0  ;;  %v1050_v58 = vpop.f32.mrb[35].mxu1  ;;  %v730_v41 = vadd.f32 %v8081_v26, %v604_v57 }
 0x159   :  { %v6039_v29 = vmul.f32 -1.442695, %v1053_v20  ;;  %v6040_v31 = vmul.f32 -1.442695, %v1055_v18  ;;  %v729_v58 = vadd.f32 %v8073_v2, %v602_v47  ;;  %v731_v20 = vadd.f32 %v8077_v54, %v675_v23 }
 0x15a   :  { %7021 = vpow2.f32 %v6038_v30  ;;  %v732_v18 = vadd.f32 %v8085_v50, %v677_v24 }
 0x15b   :  { %7023 = vpow2.f32 %v6039_v29 }
 0x15c   :  { %7025 = vpow2.f32 %v6040_v31 }
 0x15d   :  { %7027 = vtanh.f32 %v1054_v51 }
 0x164   :  { %v7022_v35 = vpop.eup %7021 }
 0x165   :  { %v7024_v37 = vpop.eup %7023  ;;  %v1059_v32 = vadd.f32 1.0, %v7022_v35 }
 0x166   :  { %v1065_v36 = vadd.f32 1.0, %v7024_v37  ;;  %v7026_v39 = vpop.eup %7025  ;;  %v8191_v37 = vpop.permute.xlu0 %1084 }
 0x167   :  { %7029 = vrcp.f32 %v1059_v32  ;;  %v7028_v19 = vpop.eup %7027  ;;  %v1072_v1 = vadd.f32 1.0, %v7026_v39  ;;  %vm1086_vm9 = vcmp.eq.s32.totalorder %v8191_v37, 1 }
 0x168   :  { %7031 = vrcp.f32 %v1065_v36  ;;  %vm6582_vm10 = vmpackc.low %vm1086_vm9, %vm1086_vm9 }
 0x169   :  { %7033 = vrcp.f32 %v1072_v1 }
 0x171   :  { %v7030_v60 = vpop.eup %7029 }
 0x172   :  { %v7032_v43 = vpop.eup %7031  ;;  %v1076_v38 = vmul.f32 %v7030_v60, %v7028_v19 }
 0x173   :  { %v1075_v56 = vmul.f32 0.0, %v7032_v43  ;;  %v7034_v50 = vpop.eup %7033 }
 0x175   :  { %v8188_v27 = vadd.f32 %v1076_v38, %v1075_v56  ;;  %v1324_v28 = vpop.f32.mrb[36].mxu0  ;;  %v1365_v8 = vpop.f32.mrb[36].mxu1 }
 0x176   :  { %v1372_v51 = vadd.f32 %v1324_v28, %v729_v58  ;;  %v1374_v30 = vadd.f32 %v1365_v8, %v731_v20  ;;  %v1326_v33 = vpop.f32.mrb[37].mxu0  ;;  %v1367_v29 = vpop.f32.mrb[37].mxu1  ;;  %v7277_v58 = vld [vmem:[#allocation13] ss:$16 sps:$4 sm:$0xff]   ;;  %v7278_v20 = vld [vmem:[#allocation13 + $0x8] ss:$16 sps:$4 sm:$0xff]  }
 0x177   :  { %7035 = vtanh.f32 %v8188_v27  ;;  %v1373_v31 = vadd.f32 %v1326_v33, %v730_v41  ;;  %v1375_v35 = vadd.f32 %v1367_v29, %v732_v18  ;;  %v1328_v47 = vpop.f32.mrb[38].mxu0  ;;  %v1369_v2 = vpop.f32.mrb[38].mxu1  ;;  %v7279_v41 = vld [vmem:[#allocation13 + $0x24] ss:$16 sps:$4 sm:$0xff]   ;;  %v7280_v18 = vld [vmem:[#allocation13 + $0x2c] ss:$16 sps:$4 sm:$0xff]  }
 0x178   :  { %v6074_v54 = vmul.f32 -1.442695, %v1372_v51  ;;  %v1329_v23 = vpop.f32.mrb[39].mxu0  ;;  %v1370_v26 = vpop.f32.mrb[39].mxu1  ;;  %v8310_v47 = vld [vmem:[%s9611_s7 + $0x4c] ss:$16 sps:$4 sm:$0xff]  }
 0x179   :  { %v6075_v57 = vmul.f32 -1.442695, %v1373_v31  ;;  %v6076_v32 = vmul.f32 -1.442695, %v1375_v35  ;;  %v8296_v31 = vld [vmem:[%s9611_s7 + $0x28] ss:$16 sps:$4 sm:$0xff]  }
 0x17a   :  { %7037 = vpow2.f32 %v6074_v54  ;;  %v8305_v35 = vld [vmem:[%s9611_s7 + $0x44] ss:$16 sps:$4 sm:$0xff]   ;;  %v8315_v2 = vld [vmem:[%s9611_s7 + $0x40] ss:$16 sps:$4 sm:$0xff]   ;;  %v8320_v54 = vld [vmem:[%s9611_s7 + $0x48] ss:$16 sps:$4 sm:$0xff]  }
 0x17b   :  { %7039 = vpow2.f32 %v6075_v57  ;;  %v8329_v23 = vld [vmem:[%s9611_s7 + $0x64] ss:$16 sps:$4 sm:$0xff]   ;;  %v8334_v26 = vld [vmem:[%s9611_s7 + $0x6c] ss:$16 sps:$4 sm:$0xff]   ;;  %v8339_v57 = vld [vmem:[%s9611_s7 + $0x60] ss:$16 sps:$4 sm:$0xff]  }
 0x17c   :  { %7041 = vpow2.f32 %v6076_v32  ;;  %v8358_v32 = vld [vmem:[%s9611_s7 + $0x8c] ss:$16 sps:$4 sm:$0xff]  }
 0x17d   :  { %7043 = vtanh.f32 %v1374_v30 }
 0x181   :  { %v7036_v24 = vpop.eup %7035 }
 0x182   :  { %v1079_v36 = vmul.f32 %v7036_v24, %v7034_v50  ;;  %v8344_v50 = vld [vmem:[%s9611_s7 + $0x68] ss:$16 sps:$4 sm:$0xff]   ;;  %v8353_v24 = vld [vmem:[%s9611_s7 + $0x84] ss:$16 sps:$4 sm:$0xff]  }
 0x184   :  { %v7038_v39 = vpop.eup %7037  ;;  %v8199_v19 = vsel %vm1086_vm9, %v1079_v36, 0.0  ;;  %v6583_v60 = vpack.c.bf16 %v1079_v36, %v1079_v36  ;;  %v8363_v36 = vld [vmem:[%s9611_s7 + $0x80] ss:$16 sps:$4 sm:$0xff]  }
 0x185   :  { %v7040_v43 = vpop.eup %7039  ;;  %v1090_v1 = vpack.c.bf16 %v8199_v19, %v8199_v19  ;;  %v1379_v38 = vadd.f32 1.0, %v7038_v39  ;;  %v8368_v39 = vld [vmem:[%s9611_s7 + $0x88] ss:$16 sps:$4 sm:$0xff]  }
 0x186   :  { %v1385_v56 = vadd.f32 1.0, %v7040_v43  ;;  %6584 = vmatmul.mubr.msk.bf16.vlgmr.msra.gmra.mrb[40].mxu0 %vm6582_vm10, %v6583_v60  ;;  %6587 = vmatmul.mubr.msk.bf16.vlgmr.msra.gmra.mrb[40].mxu1 %vm6582_vm10, %v6583_v60  ;;  %v7042_v28 = vpop.eup %7041  ;;  %v8377_v60 = vld [vmem:[%s9611_s7 + $0xa4] ss:$16 sps:$4 sm:$0xff]   ;;  %v8382_v43 = vld [vmem:[%s9611_s7 + $0xac] ss:$16 sps:$4 sm:$0xff]  }
 0x187   :  { %1091 = vst [vmem:[%s9613_s9] sm:$0xf] %v1090_v1  ;;  %7045 = vrcp.f32 %v1379_v38  ;;  %1931 = vmatpush1.bf16.msra.mxu0 %v7277_v58  ;;  %1972 = vmatpush1.bf16.msra.mxu1 %v7278_v20  ;;  %v7044_v8 = vpop.eup %7043  ;;  %v8387_v1 = vld [vmem:[%s9611_s7 + $0xa0] ss:$16 sps:$4 sm:$0xff]   ;;  %v8392_v38 = vld [vmem:[%s9611_s7 + $0xa8] ss:$16 sps:$4 sm:$0xff]  }
 0x188   :  { %7047 = vrcp.f32 %v1385_v56  ;;  %1932 = vmatprep.subr.bf16.mxu0 %v7279_v41  ;;  %1973 = vmatprep.subr.bf16.mxu1 %v7280_v18  ;;  %v8401_v56 = vld [vmem:[%s9611_s7 + $0xc4] ss:$16 sps:$4 sm:$0xff]   ;;  %v8406_v58 = vld [vmem:[%s9611_s7 + $0xcc] ss:$16 sps:$4 sm:$0xff]   ;;  %v8411_v20 = vld [vmem:[%s9611_s7 + $0xc0] ss:$16 sps:$4 sm:$0xff]  }
 0x189   :  { %1962 = vmatprep.mubr.bf16.mxu0 %v9675_v61  ;;  %2003 = vmatprep.mubr.bf16.mxu1 %v9675_v61  ;;  %v8416_v41 = vld [vmem:[%s9611_s7 + $0xc8] ss:$16 sps:$4 sm:$0xff]   ;;  %v8425_v18 = vld [vmem:[%s9611_s7 + $0xe4] ss:$16 sps:$4 sm:$0xff]  }
 0x18b   :  { %1933 = vmatpush1.bf16.msra.mxu0 %v7799_v3  ;;  %1974 = vmatpush1.bf16.msra.mxu1 %v7801_v4  ;;  %v1392_v3 = vadd.f32 1.0, %v7042_v28  ;;  %v9728_v4 = vld [vmem:[#allocation21_spill] sm:$0xff]  ;;  %v8430_v28 = vld [vmem:[%s9611_s7 + $0xec] ss:$16 sps:$4 sm:$0xff]  }
 0x18c   :  { %1934 = vmatprep.subr.bf16.mxu0 %v7805_v6  ;;  %1975 = vmatprep.subr.bf16.mxu1 %v7807_v7  ;;  %v9729_v6 = vld [vmem:[#allocation22_spill] sm:$0xff]  ;;  %v9730_v7 = vld [vmem:[#allocation23_spill] sm:$0xff] }
 0x18d   :  { %7049 = vrcp.f32 %v1392_v3 }
 0x18f   :  { %1935 = vmatpush1.bf16.msra.mxu0 %v7813_v9  ;;  %1976 = vmatpush1.bf16.msra.mxu1 %v7815_v10  ;;  %v9731_v10 = vld [vmem:[#allocation24_spill] sm:$0xff] }
 0x190   :  { %1936 = vmatprep.subr.bf16.mxu0 %v7819_v11  ;;  %1977 = vmatprep.subr.bf16.mxu1 %v7821_v12  ;;  %v9732_v11 = vld [vmem:[#allocation25_spill] sm:$0xff] }
 0x191   :  { %v7046_v51 = vpop.eup %7045 }
 0x192   :  { %v7048_v30 = vpop.eup %7047  ;;  %v1396_v33 = vmul.f32 %v7046_v51, %v7044_v8  ;;  %v8435_v8 = vld [vmem:[%s9611_s7 + $0xe0] ss:$16 sps:$4 sm:$0xff]   ;;  %v8440_v51 = vld [vmem:[%s9611_s7 + $0xe8] ss:$16 sps:$4 sm:$0xff]  }
 0x193   :  { %v1395_v29 = vmul.f32 0.0, %v7048_v30  ;;  %1937 = vmatpush1.bf16.msra.mxu0 %v7832_v14  ;;  %1978 = vmatpush1.bf16.msra.mxu1 %v9728_v4  ;;  %v8446_v30 = vld [vmem:[#allocation13 + $0x4] ss:$16 sps:$4 sm:$0xff]  }
 0x194   :  { %1938 = vmatprep.subr.bf16.mxu0 %v9729_v6  ;;  %1979 = vmatprep.subr.bf16.mxu1 %v9730_v7  ;;  %9733 = vst [vmem:[#allocation21_spill] sm:$0xff] %v8446_v30 }
 0x195   :  { %v8220_v9 = vadd.f32 %v1396_v33, %v1395_v29  ;;  %v8448_v33 = vld [vmem:[#allocation13 + $0xc] ss:$16 sps:$4 sm:$0xff]  }
 0x196   :  { %9734 = vst [vmem:[#allocation22_spill] sm:$0xff] %v8448_v33 }
 0x197   :  { %7051 = vtanh.f32 %v8220_v9  ;;  %1939 = vmatpush1.bf16.msra.mxu0 %v7849_v21  ;;  %1980 = vmatpush1.bf16.msra.mxu1 %v7851_v22  ;;  %v7050_v12 = vpop.eup %7049  ;;  %v8235_v21 = vpop.permute.xlu0 %1404 }
 0x198   :  { %1940 = vmatprep.subr.bf16.mxu0 %v7853_v25  ;;  %1981 = vmatprep.subr.bf16.mxu1 %v9731_v10  ;;  %vm1406_vm11 = vcmp.eq.s32.totalorder %v8235_v21, 1 }
 0x199   :  { %vm6588_vm12 = vmpackc.low %vm1406_vm11, %vm1406_vm11 }
 0x19b   :  { %1941 = vmatpush1.bf16.msra.mxu0 %v7866_v53  ;;  %1982 = vmatpush1.bf16.msra.mxu1 %v7868_v62  ;;  %v8281_v53 = vld [vmem:[%s9611_s7 + $0x24] ss:$16 sps:$4 sm:$0xff]   ;;  %v8286_v62 = vld [vmem:[%s9611_s7 + $0x2c] ss:$16 sps:$4 sm:$0xff]  }
 0x19c   :  { %1942 = vmatprep.subr.bf16.mxu0 %v7870_v63  ;;  %1983 = vmatprep.subr.bf16.mxu1 %v9732_v11  ;;  %v8291_v63 = vld [vmem:[%s9611_s7 + $0x20] ss:$16 sps:$4 sm:$0xff]  }
 0x19f   :  { %1943 = vmatpush1.bf16.msra.mxu0 %v7882_v5  ;;  %1984 = vmatpush1.bf16.msra.mxu1 %v7884_v17  ;;  %v8267_v17 = vld [vmem:[%s9611_s7] ss:$16 sps:$4 sm:$0xff]  }
 0x1a0   :  { %1944 = vmatprep.subr.bf16.mxu0 %v7886_v16  ;;  %1985 = vmatprep.subr.bf16.mxu1 %v7888_v15  ;;  %v8262_v16 = vld [vmem:[%s9611_s7 + $0xc] ss:$16 sps:$4 sm:$0xff]  }
 0x1a1   :  { %v7052_v14 = vpop.eup %7051 }
 0x1a2   :  { %v1399_v22 = vmul.f32 %v7052_v14, %v7050_v12 }
 0x1a3   :  { %1945 = vmatpush1.bf16.msra.mxu0 %v7895_v0  ;;  %1986 = vmatpush1.bf16.msra.mxu1 %v7897_v34  ;;  %v8257_v0 = vld [vmem:[%s9611_s7 + $0x4] ss:$16 sps:$4 sm:$0xff]   ;;  %v8272_v34 = vld [vmem:[%s9611_s7 + $0x8] ss:$16 sps:$4 sm:$0xff]  }
 0x1a4   :  { %v6589_v25 = vpack.c.bf16 %v1399_v22, %v1399_v22  ;;  %v8242_v5 = vsel %vm1406_vm11, %v1399_v22, 0.0  ;;  %2250 = vmatprep.subr.bf16.mxu0 %v8257_v0  ;;  %2291 = vmatprep.subr.bf16.mxu1 %v8262_v16 }
 0x1a5   :  { %v1410_v15 = vpack.c.bf16 %v8242_v5, %v8242_v5 }
 0x1a6   :  { %6590 = vmatmul.mubr.msk.bf16.vlgmr.msra.gmra.mrb[44].mxu0 %vm6588_vm12, %v6589_v25  ;;  %6593 = vmatmul.mubr.msk.bf16.vlgmr.msra.gmra.mrb[44].mxu1 %vm6588_vm12, %v6589_v25 }
 0x1a7   :  { %2282 = vmatprep.mubr.bf16.mxu0 %v9675_v61  ;;  %2323 = vmatprep.mubr.bf16.mxu1 %v9675_v61  ;;  %1411 = vst [vmem:[%s9614_s10 + $0x1c] sm:$0xf] %v1410_v15 }
 0x1a8   :  { %2251 = vmatpush1.bf16.msra.mxu0 %v8267_v17  ;;  %2292 = vmatpush1.bf16.msra.mxu1 %v8272_v34 }
 0x1a9   :  { %2252 = vmatprep.subr.bf16.mxu0 %v8281_v53  ;;  %2293 = vmatprep.subr.bf16.mxu1 %v8286_v62 }
 0x1ac   :  { %2253 = vmatpush1.bf16.msra.mxu0 %v8291_v63  ;;  %2294 = vmatpush1.bf16.msra.mxu1 %v8296_v31 }
 0x1ad   :  { %2254 = vmatprep.subr.bf16.mxu0 %v8305_v35  ;;  %2295 = vmatprep.subr.bf16.mxu1 %v8310_v47 }
 0x1b0   :  { %2255 = vmatpush1.bf16.msra.mxu0 %v8315_v2  ;;  %2296 = vmatpush1.bf16.msra.mxu1 %v8320_v54 }
 0x1b1   :  { %2256 = vmatprep.subr.bf16.mxu0 %v8329_v23  ;;  %2297 = vmatprep.subr.bf16.mxu1 %v8334_v26 }
 0x1b4   :  { %2257 = vmatpush1.bf16.msra.mxu0 %v8339_v57  ;;  %2298 = vmatpush1.bf16.msra.mxu1 %v8344_v50 }
 0x1b5   :  { %2258 = vmatprep.subr.bf16.mxu0 %v8353_v24  ;;  %2299 = vmatprep.subr.bf16.mxu1 %v8358_v32 }
 0x1b8   :  { %2259 = vmatpush1.bf16.msra.mxu0 %v8363_v36  ;;  %2300 = vmatpush1.bf16.msra.mxu1 %v8368_v39 }
 0x1b9   :  { %2260 = vmatprep.subr.bf16.mxu0 %v8377_v60  ;;  %2301 = vmatprep.subr.bf16.mxu1 %v8382_v43 }
 0x1bc   :  { %2261 = vmatpush1.bf16.msra.mxu0 %v8387_v1  ;;  %2302 = vmatpush1.bf16.msra.mxu1 %v8392_v38 }
 0x1bd   :  { %2262 = vmatprep.subr.bf16.mxu0 %v8401_v56  ;;  %2303 = vmatprep.subr.bf16.mxu1 %v8406_v58 }
 0x1c0   :  { %2263 = vmatpush1.bf16.msra.mxu0 %v8411_v20  ;;  %2304 = vmatpush1.bf16.msra.mxu1 %v8416_v41 }
 0x1c1   :  { %2264 = vmatprep.subr.bf16.mxu0 %v8425_v18  ;;  %2305 = vmatprep.subr.bf16.mxu1 %v8430_v28 }
 0x1c4   :  { %2265 = vmatpush1.bf16.msra.mxu0 %v8435_v8  ;;  %2306 = vmatpush1.bf16.msra.mxu1 %v8440_v51 }
 0x1c5   :  { %2570 = vmatprep.subr.bf16.mxu0 %v8446_v30  ;;  %2611 = vmatprep.subr.bf16.mxu1 %v8448_v33 }
 0x259   :  { %v1644_v3 = vpop.f32.mrb[40].mxu0  ;;  %v1685_v29 = vpop.f32.mrb[40].mxu1 }
 0x25a   :  { %v1692_v4 = vadd.f32 %v1644_v3, %v7978_v40  ;;  %v1694_v6 = vadd.f32 %v1685_v29, %v7981_v42  ;;  %v1646_v7 = vpop.f32.mrb[41].mxu0  ;;  %v1687_v10 = vpop.f32.mrb[41].mxu1 }
 0x25b   :  { %v1693_v11 = vadd.f32 %v1646_v7, %v7984_v45  ;;  %v1695_v12 = vadd.f32 %v1687_v10, %v7987_v46  ;;  %v1648_v14 = vpop.f32.mrb[42].mxu0  ;;  %v1689_v22 = vpop.f32.mrb[42].mxu1 }
 0x25c   :  { %v6110_v25 = vmul.f32 -1.442695, %v1692_v4  ;;  %v1649_v15 = vpop.f32.mrb[43].mxu0  ;;  %v1690_v55 = vpop.f32.mrb[43].mxu1 }
 0x25d   :  { %v6111_v52 = vmul.f32 -1.442695, %v1693_v11  ;;  %v6112_v49 = vmul.f32 -1.442695, %v1695_v12  ;;  %v1088_v55 = vsel %vm1086_vm9, %v8188_v27, 0.0 }
 0x25e   :  { %7053 = vpow2.f32 %v6110_v25 }
 0x25f   :  { %7055 = vpow2.f32 %v6111_v52  ;;  %v1725_v52 = vpop.permute.xlu1 %1724 }
 0x260   :  { %7057 = vpow2.f32 %v6112_v49  ;;  %vm1726_vm13 = vcmp.eq.s32.totalorder %v1725_v52, 1  ;;  %v8486_v52 = vld [vmem:[#allocation13 + $0x20] ss:$16 sps:$4 sm:$0xff]  }
 0x261   :  { %7059 = vtanh.f32 %v1694_v6 }
 0x268   :  { %v7054_v33 = vpop.eup %7053 }
 0x269   :  { %v7056_v30 = vpop.eup %7055  ;;  %v1699_v40 = vadd.f32 1.0, %v7054_v33 }
 0x26a   :  { %v1705_v42 = vadd.f32 1.0, %v7056_v30  ;;  %v7058_v45 = vpop.eup %7057 }
 0x26b   :  { %7061 = vrcp.f32 %v1699_v40  ;;  %v7060_v3 = vpop.eup %7059  ;;  %v1712_v4 = vadd.f32 1.0, %v7058_v45 }
 0x26c   :  { %7063 = vrcp.f32 %v1705_v42 }
 0x26d   :  { %7065 = vrcp.f32 %v1712_v4 }
 0x275   :  { %v7062_v46 = vpop.eup %7061 }
 0x276   :  { %v7064_v29 = vpop.eup %7063  ;;  %v1716_v7 = vmul.f32 %v7062_v46, %v7060_v3 }
 0x277   :  { %v1715_v10 = vmul.f32 %v7064_v29, %v1088_v55 }
 0x279   :  { %v1717_v11 = vadd.f32 %v1716_v7, %v1715_v10  ;;  %v1964_v33 = vpop.f32.mrb[44].mxu0  ;;  %v2005_v49 = vpop.f32.mrb[44].mxu1  ;;  %v8473_v7 = vld [vmem:[#allocation13 + $0x8] ss:$16 sps:$4 sm:$0xff]  }
 0x27a   :  { %v2012_v30 = vadd.f32 %v1964_v33, %v8165_v13  ;;  %v2014_v6 = vadd.f32 %v2005_v49, %v8168_v44  ;;  %v1966_v12 = vpop.f32.mrb[45].mxu0  ;;  %v2007_v14 = vpop.f32.mrb[45].mxu1 }
 0x27b   :  { %7067 = vtanh.f32 %v1717_v11  ;;  %v8462_v22 = vsel %vm1726_vm13, %v1717_v11, %v1088_v55  ;;  %v2013_v27 = vadd.f32 %v1966_v12, %v8171_v59  ;;  %v2015_v37 = vadd.f32 %v2007_v14, %v8174_v48  ;;  %v1968_v25 = vpop.f32.mrb[46].mxu0  ;;  %v2009_v15 = vpop.f32.mrb[46].mxu1  ;;  %v8471_v48 = vld [vmem:[#allocation13] ss:$16 sps:$4 sm:$0xff]   ;;  %v8479_v12 = vld [vmem:[#allocation13 + $0x2c] ss:$16 sps:$4 sm:$0xff]  }
 0x27c   :  { %v6146_v40 = vmul.f32 -1.442695, %v2012_v30  ;;  %v1969_v42 = vpop.f32.mrb[47].mxu0  ;;  %v2010_v45 = vpop.f32.mrb[47].mxu1  ;;  %v8477_v30 = vld [vmem:[#allocation13 + $0x24] ss:$16 sps:$4 sm:$0xff]  }
 0x27d   :  { %v6147_v3 = vmul.f32 -1.442695, %v2013_v27  ;;  %v7066_v13 = vpop.eup %7065  ;;  %v6148_v46 = vmul.f32 -1.442695, %v2015_v37  ;;  %v8488_v14 = vld [vmem:[#allocation13 + $0x28] ss:$16 sps:$4 sm:$0xff]  }
 0x27e   :  { %7069 = vpow2.f32 %v6146_v40  ;;  %v8494_v27 = vld [vmem:[#allocation13 + $0x4c] ss:$16 sps:$4 sm:$0xff]   ;;  %v8500_v37 = vld [vmem:[#allocation13 + $0x40] ss:$16 sps:$4 sm:$0xff]   ;;  %v8502_v25 = vld [vmem:[#allocation13 + $0x48] ss:$16 sps:$4 sm:$0xff]  }
 0x27f   :  { %7071 = vpow2.f32 %v6147_v3  ;;  %9735 = vst [vmem:[#allocation23_spill] sm:$0xff] %v8502_v25  ;;  %v8506_v15 = vld [vmem:[#allocation13 + $0x64] ss:$16 sps:$4 sm:$0xff]   ;;  %v8508_v40 = vld [vmem:[#allocation13 + $0x6c] ss:$16 sps:$4 sm:$0xff]  }
 0x280   :  { %7073 = vpow2.f32 %v6148_v46  ;;  %9736 = vst [vmem:[#allocation24_spill] sm:$0xff] %v8506_v15  ;;  %9737 = vst [vmem:[#allocation25_spill] sm:$0xff] %v8508_v40  ;;  %v8512_v3 = vld [vmem:[#allocation13 + $0x60] ss:$16 sps:$4 sm:$0xff]   ;;  %v8518_v46 = vld [vmem:[#allocation13 + $0x84] ss:$16 sps:$4 sm:$0xff]  }
 0x281   :  { %7075 = vtanh.f32 %v2014_v6  ;;  %v8492_v6 = vld [vmem:[#allocation13 + $0x44] ss:$16 sps:$4 sm:$0xff]  }
 0x285   :  { %v7068_v44 = vpop.eup %7067 }
 0x286   :  { %v1719_v29 = vmul.f32 %v7068_v44, %v7066_v13  ;;  %v8514_v13 = vld [vmem:[#allocation13 + $0x68] ss:$16 sps:$4 sm:$0xff]  }
 0x288   :  { %v7070_v4 = vpop.eup %7069  ;;  %v8468_v55 = vsel %vm1726_vm13, %v1719_v29, %v8199_v19  ;;  %v1729_v59 = vsel %vm1726_vm13, %v1719_v29, 0.0  ;;  %v8520_v29 = vld [vmem:[#allocation13 + $0x8c] ss:$16 sps:$4 sm:$0xff]  }
 0x289   :  { %v7072_v10 = vpop.eup %7071  ;;  %v1730_v11 = vpack.c.bf16 %v1729_v59, %v1729_v59  ;;  %v2057_v33 = vpack.c.bf16 %v8468_v55, %v8468_v55  ;;  %v2019_v49 = vadd.f32 1.0, %v7070_v4  ;;  %v1408_v59 = vsel %vm1406_vm11, %v8220_v9, 0.0  ;;  %v8535_v9 = vld [vmem:[#allocation13 + $0xac] ss:$16 sps:$4 sm:$0xff]  }
 0x28a   :  { %v2025_v19 = vadd.f32 1.0, %v7072_v10  ;;  %v7074_v42 = vpop.eup %7073  ;;  %9739 = vst [vmem:[#allocation75_spill] sm:$0xff] %v8535_v9 }
 0x28b   :  { %1731 = vst [vmem:[%s9613_s9 + $0x4] sm:$0xf] %v1730_v11  ;;  %7077 = vrcp.f32 %v2019_v49  ;;  %2283 = vmatmul.mubr.bf16.vlgmr.msra.gmra.mrb[48].mxu0 %v2057_v33  ;;  %2324 = vmatmul.mubr.bf16.vlgmr.msra.gmra.mrb[48].mxu1 %v2057_v33  ;;  %v7076_v45 = vpop.eup %7075  ;;  %v2032_v11 = vadd.f32 1.0, %v7074_v42  ;;  %v8527_v49 = vld [vmem:[#allocation13 + $0x80] ss:$16 sps:$4 sm:$0xff]  }
 0x28c   :  { %7079 = vrcp.f32 %v2025_v19  ;;  %2571 = vmatpush1.bf16.msra.mxu0 %v8471_v48  ;;  %2612 = vmatpush1.bf16.msra.mxu1 %v8473_v7  ;;  %v8529_v19 = vld [vmem:[#allocation13 + $0x88] ss:$16 sps:$4 sm:$0xff]   ;;  %v8542_v42 = vld [vmem:[#allocation13 + $0xa0] ss:$16 sps:$4 sm:$0xff]  }
 0x28d   :  { %2572 = vmatprep.subr.bf16.mxu0 %v8477_v30  ;;  %2613 = vmatprep.subr.bf16.mxu1 %v8479_v12  ;;  %7081 = vrcp.f32 %v2032_v11  ;;  %9740 = vst [vmem:[#allocation76_spill] sm:$0xff] %v8542_v42  ;;  %v8562_v11 = vld [vmem:[#allocation13 + $0xec] ss:$16 sps:$4 sm:$0xff]  }
 0x28e   :  { %2602 = vmatprep.mubr.bf16.mxu0 %v9675_v61  ;;  %2643 = vmatprep.mubr.bf16.mxu1 %v9675_v61 }
 0x290   :  { %2573 = vmatpush1.bf16.msra.mxu0 %v8486_v52  ;;  %2614 = vmatpush1.bf16.msra.mxu1 %v8488_v14 }
 0x291   :  { %2574 = vmatprep.subr.bf16.mxu0 %v8492_v6  ;;  %2615 = vmatprep.subr.bf16.mxu1 %v8494_v27 }
 0x294   :  { %2575 = vmatpush1.bf16.msra.mxu0 %v8500_v37  ;;  %2616 = vmatpush1.bf16.msra.mxu1 %v8502_v25  ;;  %v8533_v25 = vld [vmem:[#allocation13 + $0xa4] ss:$16 sps:$4 sm:$0xff]  }
 0x295   :  { %v7078_v44 = vpop.eup %7077  ;;  %2576 = vmatprep.subr.bf16.mxu0 %v8506_v15  ;;  %2617 = vmatprep.subr.bf16.mxu1 %v8508_v40  ;;  %v2045_v40 = vpop.permute.xlu1 %2044  ;;  %9738 = vst [vmem:[#allocation74_spill] sm:$0xff] %v8533_v25 }
 0x296   :  { %v7080_v4 = vpop.eup %7079  ;;  %v2036_v10 = vmul.f32 %v7078_v44, %v7076_v45  ;;  %vm2046_vm14 = vcmp.eq.s32.totalorder %v2045_v40, 1  ;;  %v8544_v45 = vld [vmem:[#allocation13 + $0xa8] ss:$16 sps:$4 sm:$0xff]   ;;  %v8548_v44 = vld [vmem:[#allocation13 + $0xc4] ss:$16 sps:$4 sm:$0xff]  }
 0x297   :  { %v2035_v33 = vmul.f32 %v7080_v4, %v1408_v59  ;;  %9741 = vst [vmem:[#allocation77_spill] sm:$0xff] %v8544_v45  ;;  %9742 = vst [vmem:[#allocation78_spill] sm:$0xff] %v8548_v44  ;;  %v8550_v4 = vld [vmem:[#allocation13 + $0xcc] ss:$16 sps:$4 sm:$0xff]  }
 0x298   :  { %2577 = vmatpush1.bf16.msra.mxu0 %v8512_v3  ;;  %2618 = vmatpush1.bf16.msra.mxu1 %v8514_v13  ;;  %9743 = vst [vmem:[#allocation79_spill] sm:$0xff] %v8550_v4 }
 0x299   :  { %v2037_v15 = vadd.f32 %v2036_v10, %v2035_v33  ;;  %2578 = vmatprep.subr.bf16.mxu0 %v8518_v46  ;;  %2619 = vmatprep.subr.bf16.mxu1 %v8520_v29  ;;  %v8560_v10 = vld [vmem:[#allocation13 + $0xe4] ss:$16 sps:$4 sm:$0xff]   ;;  %v7082_v33 = vpop.eup %7081 }
 0x29b   :  { %7083 = vtanh.f32 %v2037_v15  ;;  %v8538_v21 = vsel %vm2046_vm14, %v2037_v15, %v1408_v59  ;;  %v8554_v15 = vld [vmem:[#allocation13 + $0xc0] ss:$16 sps:$4 sm:$0xff]   ;;  %v8556_v59 = vld [vmem:[#allocation13 + $0xc8] ss:$16 sps:$4 sm:$0xff]  }
 0x29c   :  { %2579 = vmatpush1.bf16.msra.mxu0 %v8527_v49  ;;  %2620 = vmatpush1.bf16.msra.mxu1 %v8529_v19  ;;  %9744 = vst [vmem:[#allocation80_spill] sm:$0xff] %v8554_v15  ;;  %9745 = vst [vmem:[#allocation81_spill] sm:$0xff] %v8556_v59 }
 0x29d   :  { %2580 = vmatprep.subr.bf16.mxu0 %v8533_v25  ;;  %2621 = vmatprep.subr.bf16.mxu1 %v8535_v9 }
 0x2a0   :  { %2581 = vmatpush1.bf16.msra.mxu0 %v8542_v42  ;;  %2622 = vmatpush1.bf16.msra.mxu1 %v8544_v45  ;;  %v8566_v42 = vld [vmem:[#allocation13 + $0xe0] ss:$16 sps:$4 sm:$0xff]   ;;  %v8568_v45 = vld [vmem:[#allocation13 + $0xe8] ss:$16 sps:$4 sm:$0xff]  }
 0x2a1   :  { %2582 = vmatprep.subr.bf16.mxu0 %v8548_v44  ;;  %2623 = vmatprep.subr.bf16.mxu1 %v8550_v4 }
 0x2a4   :  { %2583 = vmatpush1.bf16.msra.mxu0 %v8554_v15  ;;  %2624 = vmatpush1.bf16.msra.mxu1 %v8556_v59 }
 0x2a5   :  { %v7084_v9 = vpop.eup %7083  ;;  %2584 = vmatprep.subr.bf16.mxu0 %v8560_v10  ;;  %2625 = vmatprep.subr.bf16.mxu1 %v8562_v11 }
 0x2a6   :  { %v2039_v44 = vmul.f32 %v7084_v9, %v7082_v33 }
 0x2a8   :  { %2585 = vmatpush1.bf16.msra.mxu0 %v8566_v42  ;;  %2626 = vmatpush1.bf16.msra.mxu1 %v8568_v45  ;;  %v8576_v4 = vsel %vm2046_vm14, %v2039_v44, %v8242_v5  ;;  %v2049_v59 = vsel %vm2046_vm14, %v2039_v44, 0.0  ;;  %v9746_v5 = vld [vmem:[#allocation21_spill] sm:$0xff]  ;;  %v9752_v44 = vld [vmem:[#allocation70_spill] sm:$0xff] }
 0x2a9   :  { %v2050_v15 = vpack.c.bf16 %v2049_v59, %v2049_v59  ;;  %v2377_v25 = vpack.c.bf16 %v8576_v4, %v8576_v4  ;;  %2890 = vmatprep.subr.bf16.mxu0 %v8257_v0  ;;  %2931 = vmatprep.subr.bf16.mxu1 %v8262_v16  ;;  %v9747_v0 = vld [vmem:[#allocation22_spill] sm:$0xff]  ;;  %v9753_v59 = vld [vmem:[#allocation71_spill] sm:$0xff] }
 0x2ab   :  { %2051 = vst [vmem:[%s9614_s10 + $0x18] sm:$0xf] %v2050_v15  ;;  %2603 = vmatmul.mubr.bf16.vlgmr.msra.gmra.mrb[52].mxu0 %v2377_v25  ;;  %2644 = vmatmul.mubr.bf16.vlgmr.msra.gmra.mrb[52].mxu1 %v2377_v25 }
 0x2ac   :  { %2891 = vmatpush1.bf16.msra.mxu0 %v8267_v17  ;;  %2932 = vmatpush1.bf16.msra.mxu1 %v8272_v34  ;;  %v9748_v34 = vld [vmem:[#allocation26_spill] sm:$0xff] }
 0x2ad   :  { %2892 = vmatprep.subr.bf16.mxu0 %v8281_v53  ;;  %2933 = vmatprep.subr.bf16.mxu1 %v8286_v62  ;;  %v9749_v62 = vld [vmem:[#allocation27_spill] sm:$0xff] }
 0x2ae   :  { %2922 = vmatprep.mubr.bf16.mxu0 %v9675_v61  ;;  %2963 = vmatprep.mubr.bf16.mxu1 %v9675_v61 }
 0x2b0   :  { %2893 = vmatpush1.bf16.msra.mxu0 %v8291_v63  ;;  %2934 = vmatpush1.bf16.msra.mxu1 %v8296_v31 }
 0x2b1   :  { %2894 = vmatprep.subr.bf16.mxu0 %v8305_v35  ;;  %2935 = vmatprep.subr.bf16.mxu1 %v8310_v47  ;;  %v9750_v47 = vld [vmem:[#allocation28_spill] sm:$0xff] }
 0x2b4   :  { %2895 = vmatpush1.bf16.msra.mxu0 %v8315_v2  ;;  %2936 = vmatpush1.bf16.msra.mxu1 %v8320_v54  ;;  %v9751_v54 = vld [vmem:[#allocation29_spill] sm:$0xff] }
 0x2b5   :  { %2896 = vmatprep.subr.bf16.mxu0 %v8329_v23  ;;  %2937 = vmatprep.subr.bf16.mxu1 %v8334_v26 }
 0x2b8   :  { %2897 = vmatpush1.bf16.msra.mxu0 %v8339_v57  ;;  %2938 = vmatpush1.bf16.msra.mxu1 %v8344_v50 }
 0x2b9   :  { %2898 = vmatprep.subr.bf16.mxu0 %v8353_v24  ;;  %2939 = vmatprep.subr.bf16.mxu1 %v8358_v32 }
 0x2bc   :  { %2899 = vmatpush1.bf16.msra.mxu0 %v8363_v36  ;;  %2940 = vmatpush1.bf16.msra.mxu1 %v8368_v39 }
 0x2bd   :  { %2900 = vmatprep.subr.bf16.mxu0 %v8377_v60  ;;  %2941 = vmatprep.subr.bf16.mxu1 %v8382_v43 }
 0x2c0   :  { %2901 = vmatpush1.bf16.msra.mxu0 %v8387_v1  ;;  %2942 = vmatpush1.bf16.msra.mxu1 %v8392_v38 }
 0x2c1   :  { %2902 = vmatprep.subr.bf16.mxu0 %v8401_v56  ;;  %2943 = vmatprep.subr.bf16.mxu1 %v8406_v58 }
 0x2c4   :  { %2903 = vmatpush1.bf16.msra.mxu0 %v8411_v20  ;;  %2944 = vmatpush1.bf16.msra.mxu1 %v8416_v41 }
 0x2c5   :  { %2904 = vmatprep.subr.bf16.mxu0 %v8425_v18  ;;  %2945 = vmatprep.subr.bf16.mxu1 %v8430_v28 }
 0x2c8   :  { %2905 = vmatpush1.bf16.msra.mxu0 %v8435_v8  ;;  %2946 = vmatpush1.bf16.msra.mxu1 %v8440_v51  ;;  %v2365_v51 = vpop.permute.xlu0 %2364 }
 0x2c9   :  { %3210 = vmatprep.subr.bf16.mxu0 %v9746_v5  ;;  %3251 = vmatprep.subr.bf16.mxu1 %v9747_v0  ;;  %vm2366_vm15 = vcmp.eq.s32.totalorder %v2365_v51, 1 }
 0x35e   :  { %v2284_v16 = vpop.f32.mrb[48].mxu0  ;;  %v2325_v17 = vpop.f32.mrb[48].mxu1 }
 0x35f   :  { %v2332_v53 = vadd.f32 %v2284_v16, %v9748_v34  ;;  %v2334_v63 = vadd.f32 %v2325_v17, %v9749_v62  ;;  %v2286_v31 = vpop.f32.mrb[49].mxu0  ;;  %v2327_v35 = vpop.f32.mrb[49].mxu1  ;;  %v9754_v16 = vld [vmem:[#allocation72_spill] sm:$0xff]  ;;  %v9755_v34 = vld [vmem:[#allocation73_spill] sm:$0xff] }
 0x360   :  { %v2333_v2 = vadd.f32 %v2286_v31, %v9750_v47  ;;  %v2335_v23 = vadd.f32 %v2327_v35, %v9751_v54  ;;  %v2288_v26 = vpop.f32.mrb[50].mxu0  ;;  %v2329_v57 = vpop.f32.mrb[50].mxu1 }
 0x361   :  { %v6182_v50 = vmul.f32 -1.442695, %v2332_v53  ;;  %v2289_v24 = vpop.f32.mrb[51].mxu0  ;;  %v2330_v32 = vpop.f32.mrb[51].mxu1 }
 0x362   :  { %v6183_v36 = vmul.f32 -1.442695, %v2333_v2  ;;  %v6184_v39 = vmul.f32 -1.442695, %v2335_v23 }
 0x363   :  { %7085 = vpow2.f32 %v6182_v50 }
 0x364   :  { %7087 = vpow2.f32 %v6183_v36 }
 0x365   :  { %7089 = vpow2.f32 %v6184_v39 }
 0x366   :  { %7091 = vtanh.f32 %v2334_v63 }
 0x36d   :  { %v7086_v60 = vpop.eup %7085 }
 0x36e   :  { %v7088_v43 = vpop.eup %7087  ;;  %v2339_v1 = vadd.f32 1.0, %v7086_v60 }
 0x36f   :  { %v2345_v38 = vadd.f32 1.0, %v7088_v43  ;;  %v7090_v56 = vpop.eup %7089 }
 0x370   :  { %7093 = vrcp.f32 %v2339_v1  ;;  %v7092_v58 = vpop.eup %7091  ;;  %v2352_v28 = vadd.f32 1.0, %v7090_v56 }
 0x371   :  { %7095 = vrcp.f32 %v2345_v38  ;;  %v9758_v38 = vld [vmem:[#allocation25_spill] sm:$0xff] }
 0x372   :  { %7097 = vrcp.f32 %v2352_v28  ;;  %v9765_v28 = vld [vmem:[#allocation80_spill] sm:$0xff] }
 0x37a   :  { %v7094_v20 = vpop.eup %7093 }
 0x37b   :  { %v7096_v41 = vpop.eup %7095  ;;  %v2356_v18 = vmul.f32 %v7094_v20, %v7092_v58  ;;  %v9761_v20 = vld [vmem:[#allocation76_spill] sm:$0xff] }
 0x37c   :  { %v2355_v8 = vmul.f32 %v7096_v41, %v8462_v22  ;;  %v7098_v23 = vpop.eup %7097  ;;  %v9764_v41 = vld [vmem:[#allocation79_spill] sm:$0xff] }
 0x37e   :  { %v2357_v25 = vadd.f32 %v2356_v18, %v2355_v8  ;;  %v2604_v40 = vpop.f32.mrb[52].mxu0  ;;  %v2645_v9 = vpop.f32.mrb[52].mxu1 }
 0x37f   :  { %v2652_v15 = vadd.f32 %v2604_v40, %v9752_v44  ;;  %v2654_v33 = vadd.f32 %v2645_v9, %v9753_v59  ;;  %v2606_v5 = vpop.f32.mrb[53].mxu0  ;;  %v2647_v0 = vpop.f32.mrb[53].mxu1  ;;  %v8724_v9 = vld [vmem:[%s9611_s7 + $0x2c] ss:$16 sps:$4 sm:$0xff]   ;;  %v8729_v44 = vld [vmem:[%s9611_s7 + $0x20] ss:$16 sps:$4 sm:$0xff]  }
 0x380   :  { %7099 = vtanh.f32 %v2357_v25  ;;  %v2653_v17 = vadd.f32 %v2606_v5, %v9754_v16  ;;  %v2655_v53 = vadd.f32 %v2647_v0, %v9755_v34  ;;  %v2608_v62 = vpop.f32.mrb[54].mxu0  ;;  %v2649_v63 = vpop.f32.mrb[54].mxu1  ;;  %v8631_v31 = vsel %vm2366_vm15, %v2357_v25, %v8462_v22  ;;  %v8743_v59 = vld [vmem:[%s9611_s7 + $0x44] ss:$16 sps:$4 sm:$0xff]   ;;  %v8753_v5 = vld [vmem:[%s9611_s7 + $0x40] ss:$16 sps:$4 sm:$0xff]  }
 0x381   :  { %v6218_v35 = vmul.f32 -1.442695, %v2652_v15  ;;  %v2609_v47 = vpop.f32.mrb[55].mxu0  ;;  %v2650_v2 = vpop.f32.mrb[55].mxu1  ;;  %v8734_v15 = vld [vmem:[%s9611_s7 + $0x28] ss:$16 sps:$4 sm:$0xff]  }
 0x382   :  { %v6219_v54 = vmul.f32 -1.442695, %v2653_v17  ;;  %v6220_v57 = vmul.f32 -1.442695, %v2655_v53  ;;  %v8758_v0 = vld [vmem:[%s9611_s7 + $0x48] ss:$16 sps:$4 sm:$0xff]  }
 0x383   :  { %7101 = vpow2.f32 %v6218_v35  ;;  %v8767_v16 = vld [vmem:[%s9611_s7 + $0x64] ss:$16 sps:$4 sm:$0xff]   ;;  %v8772_v17 = vld [vmem:[%s9611_s7 + $0x6c] ss:$16 sps:$4 sm:$0xff]   ;;  %v8777_v34 = vld [vmem:[%s9611_s7 + $0x60] ss:$16 sps:$4 sm:$0xff]  }
 0x384   :  { %7103 = vpow2.f32 %v6219_v54  ;;  %v8782_v53 = vld [vmem:[%s9611_s7 + $0x68] ss:$16 sps:$4 sm:$0xff]   ;;  %v8791_v62 = vld [vmem:[%s9611_s7 + $0x84] ss:$16 sps:$4 sm:$0xff]   ;;  %v8796_v63 = vld [vmem:[%s9611_s7 + $0x8c] ss:$16 sps:$4 sm:$0xff]  }
 0x385   :  { %7105 = vpow2.f32 %v6220_v57  ;;  %v8801_v35 = vld [vmem:[%s9611_s7 + $0x80] ss:$16 sps:$4 sm:$0xff]   ;;  %v8806_v47 = vld [vmem:[%s9611_s7 + $0x88] ss:$16 sps:$4 sm:$0xff]   ;;  %v8815_v2 = vld [vmem:[%s9611_s7 + $0xa4] ss:$16 sps:$4 sm:$0xff]  }
 0x386   :  { %7107 = vtanh.f32 %v2654_v33  ;;  %v8748_v33 = vld [vmem:[%s9611_s7 + $0x4c] ss:$16 sps:$4 sm:$0xff]   ;;  %v8839_v57 = vld [vmem:[%s9611_s7 + $0xc4] ss:$16 sps:$4 sm:$0xff]  }
 0x387   :  { %v8820_v54 = vld [vmem:[%s9611_s7 + $0xac] ss:$16 sps:$4 sm:$0xff]  }
 0x38a   :  { %v7100_v26 = vpop.eup %7099 }
 0x38b   :  { %v2359_v50 = vmul.f32 %v7100_v26, %v7098_v23  ;;  %v8825_v23 = vld [vmem:[%s9611_s7 + $0xa0] ss:$16 sps:$4 sm:$0xff]   ;;  %v8830_v26 = vld [vmem:[%s9611_s7 + $0xa8] ss:$16 sps:$4 sm:$0xff]  }
 0x38d   :  { %v7102_v24 = vpop.eup %7101  ;;  %v8635_v32 = vsel %vm2366_vm15, %v2359_v50, %v8468_v55  ;;  %v2369_v36 = vsel %vm2366_vm15, %v2359_v50, 0.0  ;;  %v8844_v50 = vld [vmem:[%s9611_s7 + $0xcc] ss:$16 sps:$4 sm:$0xff]  }
 0x38e   :  { %v7104_v39 = vpop.eup %7103  ;;  %v2659_v22 = vadd.f32 1.0, %v7102_v24  ;;  %v2370_v60 = vpack.c.bf16 %v2369_v36, %v2369_v36  ;;  %v2697_v43 = vpack.c.bf16 %v8635_v32, %v8635_v32  ;;  %v8849_v24 = vld [vmem:[%s9611_s7 + $0xc0] ss:$16 sps:$4 sm:$0xff]   ;;  %v8854_v36 = vld [vmem:[%s9611_s7 + $0xc8] ss:$16 sps:$4 sm:$0xff]  }
 0x38f   :  { %v2665_v1 = vadd.f32 1.0, %v7104_v39  ;;  %v7106_v55 = vpop.eup %7105  ;;  %v8863_v39 = vld [vmem:[%s9611_s7 + $0xe4] ss:$16 sps:$4 sm:$0xff]  }
 0x390   :  { %7109 = vrcp.f32 %v2659_v22  ;;  %2371 = vst [vmem:[%s9613_s9 + $0x8] sm:$0xf] %v2370_v60  ;;  %2923 = vmatmul.mubr.bf16.vlgmr.msra.gmra.mrb[56].mxu0 %v2697_v43  ;;  %2964 = vmatmul.mubr.bf16.vlgmr.msra.gmra.mrb[56].mxu1 %v2697_v43  ;;  %v8868_v22 = vld [vmem:[%s9611_s7 + $0xec] ss:$16 sps:$4 sm:$0xff]   ;;  %v8873_v60 = vld [vmem:[%s9611_s7 + $0xe0] ss:$16 sps:$4 sm:$0xff]  }
 0x391   :  { %7111 = vrcp.f32 %v2665_v1  ;;  %3211 = vmatpush1.bf16.msra.mxu0 %v8471_v48  ;;  %3252 = vmatpush1.bf16.msra.mxu1 %v8473_v7  ;;  %v7108_v48 = vpop.eup %7107  ;;  %v9756_v7 = vld [vmem:[#allocation23_spill] sm:$0xff]  ;;  %v8878_v43 = vld [vmem:[%s9611_s7 + $0xe8] ss:$16 sps:$4 sm:$0xff]  }
 0x392   :  { %3212 = vmatprep.subr.bf16.mxu0 %v8477_v30  ;;  %3253 = vmatprep.subr.bf16.mxu1 %v8479_v12  ;;  %v9757_v12 = vld [vmem:[#allocation24_spill] sm:$0xff]  ;;  %v8884_v1 = vld [vmem:[#allocation13 + $0x4] ss:$16 sps:$4 sm:$0xff]  }
 0x393   :  { %3242 = vmatprep.mubr.bf16.mxu0 %v9675_v61  ;;  %3283 = vmatprep.mubr.bf16.mxu1 %v9675_v61 }
 0x395   :  { %3213 = vmatpush1.bf16.msra.mxu0 %v8486_v52  ;;  %3254 = vmatpush1.bf16.msra.mxu1 %v8488_v14  ;;  %v2672_v52 = vadd.f32 1.0, %v7106_v55  ;;  %v8886_v55 = vld [vmem:[#allocation13 + $0xc] ss:$16 sps:$4 sm:$0xff]  }
 0x396   :  { %3214 = vmatprep.subr.bf16.mxu0 %v8492_v6  ;;  %3255 = vmatprep.subr.bf16.mxu1 %v8494_v27  ;;  %v2685_v6 = vpop.permute.xlu1 %2684 }
 0x397   :  { %vm2686_vm0 = vcmp.eq.s32.totalorder %v2685_v6, 1  ;;  %7113 = vrcp.f32 %v2672_v52 }
 0x399   :  { %3215 = vmatpush1.bf16.msra.mxu0 %v8500_v37  ;;  %3256 = vmatpush1.bf16.msra.mxu1 %v9756_v7 }
 0x39a   :  { %v7110_v30 = vpop.eup %7109  ;;  %3216 = vmatprep.subr.bf16.mxu0 %v9757_v12  ;;  %3257 = vmatprep.subr.bf16.mxu1 %v9758_v38  ;;  %v9768_v38 = vld [vmem:[#allocation31_spill] sm:$0xff] }
 0x39b   :  { %v7112_v56 = vpop.eup %7111  ;;  %v2676_v58 = vmul.f32 %v7110_v30, %v7108_v48  ;;  %v9767_v30 = vld [vmem:[#allocation30_spill] sm:$0xff] }
 0x39c   :  { %v2675_v14 = vmul.f32 %v7112_v56, %v8538_v21 }
 0x39d   :  { %3217 = vmatpush1.bf16.msra.mxu0 %v8512_v3  ;;  %3258 = vmatpush1.bf16.msra.mxu1 %v8514_v13  ;;  %v9759_v3 = vld [vmem:[#allocation74_spill] sm:$0xff]  ;;  %v9760_v13 = vld [vmem:[#allocation75_spill] sm:$0xff] }
 0x39e   :  { %v2677_v27 = vadd.f32 %v2676_v58, %v2675_v14  ;;  %3218 = vmatprep.subr.bf16.mxu0 %v8518_v46  ;;  %3259 = vmatprep.subr.bf16.mxu1 %v8520_v29  ;;  %v9762_v46 = vld [vmem:[#allocation77_spill] sm:$0xff]  ;;  %v9763_v29 = vld [vmem:[#allocation78_spill] sm:$0xff]  ;;  %v9769_v14 = vld [vmem:[#allocation32_spill] sm:$0xff] }
 0x3a0   :  { %7115 = vtanh.f32 %v2677_v27  ;;  %v8664_v37 = vsel %vm2686_vm0, %v2677_v27, %v8538_v21  ;;  %v9766_v21 = vld [vmem:[#allocation81_spill] sm:$0xff] }
 0x3a1   :  { %3219 = vmatpush1.bf16.msra.mxu0 %v8527_v49  ;;  %3260 = vmatpush1.bf16.msra.mxu1 %v8529_v19  ;;  %v7114_v18 = vpop.eup %7113  ;;  %v9770_v27 = vld [vmem:[#allocation33_spill] sm:$0xff] }
 0x3a2   :  { %3220 = vmatprep.subr.bf16.mxu0 %v9759_v3  ;;  %3261 = vmatprep.subr.bf16.mxu1 %v9760_v13 }
 0x3a5   :  { %3221 = vmatpush1.bf16.msra.mxu0 %v9761_v20  ;;  %3262 = vmatpush1.bf16.msra.mxu1 %v9762_v46 }
 0x3a6   :  { %3222 = vmatprep.subr.bf16.mxu0 %v9763_v29  ;;  %3263 = vmatprep.subr.bf16.mxu1 %v9764_v41 }
 0x3a9   :  { %3223 = vmatpush1.bf16.msra.mxu0 %v9765_v28  ;;  %3264 = vmatpush1.bf16.msra.mxu1 %v9766_v21 }
 0x3aa   :  { %v7116_v49 = vpop.eup %7115  ;;  %3224 = vmatprep.subr.bf16.mxu0 %v8560_v10  ;;  %3265 = vmatprep.subr.bf16.mxu1 %v8562_v11  ;;  %v8710_v10 = vld [vmem:[%s9611_s7 + $0x8] ss:$16 sps:$4 sm:$0xff]   ;;  %v8719_v11 = vld [vmem:[%s9611_s7 + $0x24] ss:$16 sps:$4 sm:$0xff]  }
 0x3ab   :  { %v2679_v19 = vmul.f32 %v7116_v49, %v7114_v18 }
 0x3ad   :  { %3225 = vmatpush1.bf16.msra.mxu0 %v8566_v42  ;;  %3266 = vmatpush1.bf16.msra.mxu1 %v8568_v45  ;;  %v8682_v8 = vsel %vm2686_vm0, %v2679_v19, %v8576_v4  ;;  %v2689_v51 = vsel %vm2686_vm0, %v2679_v19, 0.0  ;;  %v8695_v42 = vld [vmem:[%s9611_s7 + $0x4] ss:$16 sps:$4 sm:$0xff]   ;;  %v8700_v45 = vld [vmem:[%s9611_s7 + $0xc] ss:$16 sps:$4 sm:$0xff]  }
 0x3ae   :  { %v2690_v25 = vpack.c.bf16 %v2689_v51, %v2689_v51  ;;  %v3017_v40 = vpack.c.bf16 %v8682_v8, %v8682_v8  ;;  %v8705_v4 = vld [vmem:[%s9611_s7] ss:$16 sps:$4 sm:$0xff]   ;;  %3530 = vmatprep.subr.bf16.mxu0 %v8695_v42  ;;  %3571 = vmatprep.subr.bf16.mxu1 %v8700_v45 }
 0x3b0   :  { %2691 = vst [vmem:[%s9614_s10 + $0x14] sm:$0xf] %v2690_v25  ;;  %3243 = vmatmul.mubr.bf16.vlgmr.msra.gmra.mrb[60].mxu0 %v3017_v40  ;;  %3284 = vmatmul.mubr.bf16.vlgmr.msra.gmra.mrb[60].mxu1 %v3017_v40 }
 0x3b1   :  { %3562 = vmatprep.mubr.bf16.mxu0 %v9675_v61  ;;  %3603 = vmatprep.mubr.bf16.mxu1 %v9675_v61 }
 0x3b2   :  { %3531 = vmatpush1.bf16.msra.mxu0 %v8705_v4  ;;  %3572 = vmatpush1.bf16.msra.mxu1 %v8710_v10 }
 0x3b3   :  { %3532 = vmatprep.subr.bf16.mxu0 %v8719_v11  ;;  %3573 = vmatprep.subr.bf16.mxu1 %v8724_v9 }
 0x3b6   :  { %3533 = vmatpush1.bf16.msra.mxu0 %v8729_v44  ;;  %3574 = vmatpush1.bf16.msra.mxu1 %v8734_v15 }
 0x3b7   :  { %3534 = vmatprep.subr.bf16.mxu0 %v8743_v59  ;;  %3575 = vmatprep.subr.bf16.mxu1 %v8748_v33 }
 0x3ba   :  { %3535 = vmatpush1.bf16.msra.mxu0 %v8753_v5  ;;  %3576 = vmatpush1.bf16.msra.mxu1 %v8758_v0 }
 0x3bb   :  { %3536 = vmatprep.subr.bf16.mxu0 %v8767_v16  ;;  %3577 = vmatprep.subr.bf16.mxu1 %v8772_v17 }
 0x3be   :  { %3537 = vmatpush1.bf16.msra.mxu0 %v8777_v34  ;;  %3578 = vmatpush1.bf16.msra.mxu1 %v8782_v53 }
 0x3bf   :  { %3538 = vmatprep.subr.bf16.mxu0 %v8791_v62  ;;  %3579 = vmatprep.subr.bf16.mxu1 %v8796_v63 }
 0x3c2   :  { %3539 = vmatpush1.bf16.msra.mxu0 %v8801_v35  ;;  %3580 = vmatpush1.bf16.msra.mxu1 %v8806_v47 }
 0x3c3   :  { %3540 = vmatprep.subr.bf16.mxu0 %v8815_v2  ;;  %3581 = vmatprep.subr.bf16.mxu1 %v8820_v54 }
 0x3c6   :  { %3541 = vmatpush1.bf16.msra.mxu0 %v8825_v23  ;;  %3582 = vmatpush1.bf16.msra.mxu1 %v8830_v26 }
 0x3c7   :  { %3542 = vmatprep.subr.bf16.mxu0 %v8839_v57  ;;  %3583 = vmatprep.subr.bf16.mxu1 %v8844_v50 }
 0x3ca   :  { %3543 = vmatpush1.bf16.msra.mxu0 %v8849_v24  ;;  %3584 = vmatpush1.bf16.msra.mxu1 %v8854_v36 }
 0x3cb   :  { %3544 = vmatprep.subr.bf16.mxu0 %v8863_v39  ;;  %3585 = vmatprep.subr.bf16.mxu1 %v8868_v22 }
 0x3ce   :  { %3545 = vmatpush1.bf16.msra.mxu0 %v8873_v60  ;;  %3586 = vmatpush1.bf16.msra.mxu1 %v8878_v43 }
 0x3cf   :  { %3850 = vmatprep.subr.bf16.mxu0 %v8884_v1  ;;  %3891 = vmatprep.subr.bf16.mxu1 %v8886_v55 }
 0x463   :  { %v2924_v48 = vpop.f32.mrb[56].mxu0  ;;  %v2965_v7 = vpop.f32.mrb[56].mxu1 }
 0x464   :  { %v2972_v12 = vadd.f32 %v2924_v48, %v9767_v30  ;;  %v2974_v56 = vadd.f32 %v2965_v7, %v9768_v38  ;;  %v2926_v58 = vpop.f32.mrb[57].mxu0  ;;  %v2967_v52 = vpop.f32.mrb[57].mxu1 }
 0x465   :  { %v2973_v6 = vadd.f32 %v2926_v58, %v9769_v14  ;;  %v2975_v3 = vadd.f32 %v2967_v52, %v9770_v27  ;;  %v2928_v13 = vpop.f32.mrb[58].mxu0  ;;  %v2969_v20 = vpop.f32.mrb[58].mxu1  ;;  %v9771_v27 = vld [vmem:[#allocation66_spill] sm:$0xff] }
 0x466   :  { %v6254_v46 = vmul.f32 -1.442695, %v2972_v12  ;;  %v2929_v29 = vpop.f32.mrb[59].mxu0  ;;  %v2970_v41 = vpop.f32.mrb[59].mxu1 }
 0x467   :  { %v6255_v18 = vmul.f32 -1.442695, %v2973_v6  ;;  %v6256_v28 = vmul.f32 -1.442695, %v2975_v3  ;;  %v3005_v58 = vpop.permute.xlu0 %3004  ;;  %v9773_v29 = vld [vmem:[#allocation68_spill] sm:$0xff] }
 0x468   :  { %7117 = vpow2.f32 %v6254_v46  ;;  %vm3006_vm1 = vcmp.eq.s32.totalorder %v3005_v58, 1  ;;  %v8925_v58 = vld [vmem:[#allocation13 + $0x28] ss:$16 sps:$4 sm:$0xff]  }
 0x469   :  { %7119 = vpow2.f32 %v6255_v18  ;;  %v9774_v18 = vld [vmem:[#allocation69_spill] sm:$0xff] }
 0x46a   :  { %7121 = vpow2.f32 %v6256_v28 }
 0x46b   :  { %7123 = vtanh.f32 %v2974_v56  ;;  %v9772_v56 = vld [vmem:[#allocation67_spill] sm:$0xff] }
 0x472   :  { %v7118_v21 = vpop.eup %7117 }
 0x473   :  { %v7120_v49 = vpop.eup %7119  ;;  %v2979_v19 = vadd.f32 1.0, %v7118_v21 }
 0x474   :  { %v2985_v51 = vadd.f32 1.0, %v7120_v49  ;;  %v7122_v25 = vpop.eup %7121 }
 0x475   :  { %7125 = vrcp.f32 %v2979_v19  ;;  %v7124_v40 = vpop.eup %7123  ;;  %v2992_v12 = vadd.f32 1.0, %v7122_v25 }
 0x476   :  { %7127 = vrcp.f32 %v2985_v51 }
 0x477   :  { %7129 = vrcp.f32 %v2992_v12 }
 0x47f   :  { %v7126_v48 = vpop.eup %7125 }
 0x480   :  { %v7128_v7 = vpop.eup %7127  ;;  %v2996_v30 = vmul.f32 %v7126_v48, %v7124_v40 }
 0x481   :  { %v2995_v38 = vmul.f32 %v7128_v7, %v8631_v31  ;;  %v7130_v7 = vpop.eup %7129 }
 0x483   :  { %v2997_v52 = vadd.f32 %v2996_v30, %v2995_v38  ;;  %v3244_v14 = vpop.f32.mrb[60].mxu0  ;;  %v3285_v6 = vpop.f32.mrb[60].mxu1 }
 0x484   :  { %v3292_v3 = vadd.f32 %v3244_v14, %v9771_v27  ;;  %v3294_v13 = vadd.f32 %v3285_v6, %v9772_v56  ;;  %v3246_v20 = vpop.f32.mrb[61].mxu0  ;;  %v3287_v46 = vpop.f32.mrb[61].mxu1  ;;  %v8903_v6 = vld [vmem:[#allocation13] ss:$16 sps:$4 sm:$0xff]   ;;  %v8905_v27 = vld [vmem:[#allocation13 + $0x8] ss:$16 sps:$4 sm:$0xff]  }
 0x485   :  { %7131 = vtanh.f32 %v2997_v52  ;;  %v3293_v41 = vadd.f32 %v3246_v20, %v9773_v29  ;;  %v3295_v28 = vadd.f32 %v3287_v46, %v9774_v18  ;;  %v3248_v21 = vpop.f32.mrb[62].mxu0  ;;  %v3289_v49 = vpop.f32.mrb[62].mxu1  ;;  %v8901_v19 = vsel %vm3006_vm1, %v2997_v52, %v8631_v31  ;;  %v8914_v29 = vld [vmem:[#allocation13 + $0x24] ss:$16 sps:$4 sm:$0xff]  }
 0x486   :  { %v6290_v51 = vmul.f32 -1.442695, %v3292_v3  ;;  %v3249_v25 = vpop.f32.mrb[63].mxu0  ;;  %v3290_v40 = vpop.f32.mrb[63].mxu1  ;;  %v8937_v21 = vld [vmem:[#allocation13 + $0x40] ss:$16 sps:$4 sm:$0xff]  }
 0x487   :  { %v6291_v48 = vmul.f32 -1.442695, %v3293_v41  ;;  %v6292_v12 = vmul.f32 -1.442695, %v3295_v28  ;;  %v8916_v41 = vld [vmem:[#allocation13 + $0x2c] ss:$16 sps:$4 sm:$0xff]  }
 0x488   :  { %7133 = vpow2.f32 %v6290_v51  ;;  %v8931_v28 = vld [vmem:[#allocation13 + $0x4c] ss:$16 sps:$4 sm:$0xff]   ;;  %v8939_v49 = vld [vmem:[#allocation13 + $0x48] ss:$16 sps:$4 sm:$0xff]   ;;  %v8943_v51 = vld [vmem:[#allocation13 + $0x64] ss:$16 sps:$4 sm:$0xff]  }
 0x489   :  { %7135 = vpow2.f32 %v6291_v48  ;;  %9775 = vst [vmem:[#allocation21_spill] sm:$0xff] %v8939_v49  ;;  %9776 = vst [vmem:[#allocation22_spill] sm:$0xff] %v8943_v51  ;;  %v8945_v25 = vld [vmem:[#allocation13 + $0x6c] ss:$16 sps:$4 sm:$0xff]  }
 0x48a   :  { %7137 = vpow2.f32 %v6292_v12  ;;  %9777 = vst [vmem:[#allocation26_spill] sm:$0xff] %v8945_v25 }
 0x48b   :  { %7139 = vtanh.f32 %v3294_v13  ;;  %v8929_v13 = vld [vmem:[#allocation13 + $0x44] ss:$16 sps:$4 sm:$0xff]  }
 0x48f   :  { %v7132_v30 = vpop.eup %7131 }
 0x490   :  { %v2999_v38 = vmul.f32 %v7132_v30, %v7130_v7  ;;  %v8949_v7 = vld [vmem:[#allocation13 + $0x60] ss:$16 sps:$4 sm:$0xff]   ;;  %v8951_v30 = vld [vmem:[#allocation13 + $0x68] ss:$16 sps:$4 sm:$0xff]  }
 0x492   :  { %v7134_v14 = vpop.eup %7133  ;;  %v8909_v56 = vsel %vm3006_vm1, %v2999_v38, %v8635_v32  ;;  %v3009_v31 = vsel %vm3006_vm1, %v2999_v38, 0.0  ;;  %v8923_v32 = vld [vmem:[#allocation13 + $0x20] ss:$16 sps:$4 sm:$0xff]   ;;  %v8955_v38 = vld [vmem:[#allocation13 + $0x84] ss:$16 sps:$4 sm:$0xff]  }
 0x493   :  { %v7136_v52 = vpop.eup %7135  ;;  %v3299_v3 = vadd.f32 1.0, %v7134_v14  ;;  %v3010_v20 = vpack.c.bf16 %v3009_v31, %v3009_v31  ;;  %v3337_v46 = vpack.c.bf16 %v8909_v56, %v8909_v56  ;;  %v8957_v14 = vld [vmem:[#allocation13 + $0x8c] ss:$16 sps:$4 sm:$0xff]  }
 0x494   :  { %v3305_v18 = vadd.f32 1.0, %v7136_v52  ;;  %v7138_v40 = vpop.eup %7137 }
 0x495   :  { %7141 = vrcp.f32 %v3299_v3  ;;  %3011 = vst [vmem:[%s9613_s9 + $0xc] sm:$0xf] %v3010_v20  ;;  %3563 = vmatmul.mubr.bf16.vlgmr.msra.gmra.mrb[64].mxu0 %v3337_v46  ;;  %3604 = vmatmul.mubr.bf16.vlgmr.msra.gmra.mrb[64].mxu1 %v3337_v46  ;;  %v7140_v48 = vpop.eup %7139  ;;  %v3312_v3 = vadd.f32 1.0, %v7138_v40  ;;  %v8962_v46 = vld [vmem:[#allocation13 + $0x80] ss:$16 sps:$4 sm:$0xff]  }
 0x496   :  { %7143 = vrcp.f32 %v3305_v18  ;;  %3851 = vmatpush1.bf16.msra.mxu0 %v8903_v6  ;;  %3892 = vmatpush1.bf16.msra.mxu1 %v8905_v27  ;;  %9778 = vst [vmem:[#allocation27_spill] sm:$0xff] %v8962_v46  ;;  %v8964_v18 = vld [vmem:[#allocation13 + $0x88] ss:$16 sps:$4 sm:$0xff]  }
 0x497   :  { %3852 = vmatprep.subr.bf16.mxu0 %v8914_v29  ;;  %3893 = vmatprep.subr.bf16.mxu1 %v8916_v41  ;;  %9779 = vst [vmem:[#allocation28_spill] sm:$0xff] %v8964_v18  ;;  %7145 = vrcp.f32 %v3312_v3  ;;  %v8986_v3 = vld [vmem:[#allocation13 + $0xcc] ss:$16 sps:$4 sm:$0xff]  }
 0x498   :  { %3882 = vmatprep.mubr.bf16.mxu0 %v9675_v61  ;;  %3923 = vmatprep.mubr.bf16.mxu1 %v9675_v61  ;;  %9785 = vst [vmem:[#allocation23_spill] sm:$0xff] %v8986_v3 }
 0x49a   :  { %3853 = vmatpush1.bf16.msra.mxu0 %v8923_v32  ;;  %3894 = vmatpush1.bf16.msra.mxu1 %v8925_v58 }
 0x49b   :  { %3854 = vmatprep.subr.bf16.mxu0 %v8929_v13  ;;  %3895 = vmatprep.subr.bf16.mxu1 %v8931_v28 }
 0x49e   :  { %3855 = vmatpush1.bf16.msra.mxu0 %v8937_v21  ;;  %3896 = vmatpush1.bf16.msra.mxu1 %v8939_v49 }
 0x49f   :  { %v7142_v12 = vpop.eup %7141  ;;  %3856 = vmatprep.subr.bf16.mxu0 %v8943_v51  ;;  %3897 = vmatprep.subr.bf16.mxu1 %v8945_v25  ;;  %v3325_v51 = vpop.permute.xlu1 %3324  ;;  %v8968_v25 = vld [vmem:[#allocation13 + $0xa4] ss:$16 sps:$4 sm:$0xff]  }
 0x4a0   :  { %v7144_v31 = vpop.eup %7143  ;;  %v3316_v52 = vmul.f32 %v7142_v12, %v7140_v48  ;;  %9780 = vst [vmem:[#allocation29_spill] sm:$0xff] %v8968_v25  ;;  %v8970_v48 = vld [vmem:[#allocation13 + $0xac] ss:$16 sps:$4 sm:$0xff]   ;;  %vm3326_vm2 = vcmp.eq.s32.totalorder %v3325_v51, 1  ;;  %v8978_v12 = vld [vmem:[#allocation13 + $0xa0] ss:$16 sps:$4 sm:$0xff]  }
 0x4a1   :  { %v3315_v20 = vmul.f32 %v7144_v31, %v8664_v37  ;;  %9781 = vst [vmem:[#allocation70_spill] sm:$0xff] %v8970_v48  ;;  %9782 = vst [vmem:[#allocation71_spill] sm:$0xff] %v8978_v12  ;;  %v8980_v31 = vld [vmem:[#allocation13 + $0xa8] ss:$16 sps:$4 sm:$0xff]  }
 0x4a2   :  { %3857 = vmatpush1.bf16.msra.mxu0 %v8949_v7  ;;  %3898 = vmatpush1.bf16.msra.mxu1 %v8951_v30  ;;  %9783 = vst [vmem:[#allocation72_spill] sm:$0xff] %v8980_v31 }
 0x4a3   :  { %v3317_v49 = vadd.f32 %v3316_v52, %v3315_v20  ;;  %3858 = vmatprep.subr.bf16.mxu0 %v8955_v38  ;;  %3899 = vmatprep.subr.bf16.mxu1 %v8957_v14  ;;  %v8984_v52 = vld [vmem:[#allocation13 + $0xc4] ss:$16 sps:$4 sm:$0xff]  }
 0x4a4   :  { %9784 = vst [vmem:[#allocation73_spill] sm:$0xff] %v8984_v52  ;;  %v8996_v20 = vld [vmem:[#allocation13 + $0xe4] ss:$16 sps:$4 sm:$0xff]  }
 0x4a5   :  { %7147 = vtanh.f32 %v3317_v49  ;;  %v8974_v40 = vsel %vm3326_vm2, %v3317_v49, %v8664_v37  ;;  %v8990_v37 = vld [vmem:[#allocation13 + $0xc0] ss:$16 sps:$4 sm:$0xff]   ;;  %v8992_v49 = vld [vmem:[#allocation13 + $0xc8] ss:$16 sps:$4 sm:$0xff]  }
 0x4a6   :  { %3859 = vmatpush1.bf16.msra.mxu0 %v8962_v46  ;;  %3900 = vmatpush1.bf16.msra.mxu1 %v8964_v18  ;;  %9786 = vst [vmem:[#allocation24_spill] sm:$0xff] %v8990_v37  ;;  %9787 = vst [vmem:[#allocation25_spill] sm:$0xff] %v8992_v49 }
 0x4a7   :  { %3860 = vmatprep.subr.bf16.mxu0 %v8968_v25  ;;  %3901 = vmatprep.subr.bf16.mxu1 %v8970_v48  ;;  %v8998_v25 = vld [vmem:[#allocation13 + $0xec] ss:$16 sps:$4 sm:$0xff]   ;;  %v7146_v48 = vpop.eup %7145 }
 0x4aa   :  { %3861 = vmatpush1.bf16.msra.mxu0 %v8978_v12  ;;  %3902 = vmatpush1.bf16.msra.mxu1 %v8980_v31  ;;  %v9002_v12 = vld [vmem:[#allocation13 + $0xe0] ss:$16 sps:$4 sm:$0xff]   ;;  %v9004_v31 = vld [vmem:[#allocation13 + $0xe8] ss:$16 sps:$4 sm:$0xff]  }
 0x4ab   :  { %3862 = vmatprep.subr.bf16.mxu0 %v8984_v52  ;;  %3903 = vmatprep.subr.bf16.mxu1 %v8986_v3 }
 0x4ae   :  { %3863 = vmatpush1.bf16.msra.mxu0 %v8990_v37  ;;  %3904 = vmatpush1.bf16.msra.mxu1 %v8992_v49 }
 0x4af   :  { %v7148_v18 = vpop.eup %7147  ;;  %3864 = vmatprep.subr.bf16.mxu0 %v8996_v20  ;;  %3905 = vmatprep.subr.bf16.mxu1 %v8998_v25 }
 0x4b0   :  { %v3319_v52 = vmul.f32 %v7148_v18, %v7146_v48 }
 0x4b2   :  { %3865 = vmatpush1.bf16.msra.mxu0 %v9002_v12  ;;  %3906 = vmatpush1.bf16.msra.mxu1 %v9004_v31  ;;  %v9012_v3 = vsel %vm3326_vm2, %v3319_v52, %v8682_v8  ;;  %v3329_v49 = vsel %vm3326_vm2, %v3319_v52, 0.0 }
 0x4b3   :  { %v3330_v37 = vpack.c.bf16 %v3329_v49, %v3329_v49  ;;  %v3657_v46 = vpack.c.bf16 %v9012_v3, %v9012_v3  ;;  %4170 = vmatprep.subr.bf16.mxu0 %v8695_v42  ;;  %4211 = vmatprep.subr.bf16.mxu1 %v8700_v45  ;;  %v9788_v45 = vld [vmem:[#allocation34_spill] sm:$0xff] }
 0x4b5   :  { %3331 = vst [vmem:[%s9614_s10 + $0x10] sm:$0xf] %v3330_v37  ;;  %3883 = vmatmul.mubr.bf16.vlgmr.msra.gmra.mrb[68].mxu0 %v3657_v46  ;;  %3924 = vmatmul.mubr.bf16.vlgmr.msra.gmra.mrb[68].mxu1 %v3657_v46  ;;  %v9793_v46 = vld [vmem:[#allocation63_spill] sm:$0xff]  ;;  %v9794_v37 = vld [vmem:[#allocation64_spill] sm:$0xff] }
 0x4b6   :  { %4171 = vmatpush1.bf16.msra.mxu0 %v8705_v4  ;;  %4212 = vmatpush1.bf16.msra.mxu1 %v8710_v10  ;;  %v9789_v10 = vld [vmem:[#allocation35_spill] sm:$0xff] }
 0x4b7   :  { %4172 = vmatprep.subr.bf16.mxu0 %v8719_v11  ;;  %4213 = vmatprep.subr.bf16.mxu1 %v8724_v9 }
 0x4b8   :  { %4202 = vmatprep.mubr.bf16.mxu0 %v9675_v61  ;;  %4243 = vmatprep.mubr.bf16.mxu1 %v9675_v61 }
 0x4ba   :  { %4173 = vmatpush1.bf16.msra.mxu0 %v8729_v44  ;;  %4214 = vmatpush1.bf16.msra.mxu1 %v8734_v15  ;;  %v9790_v15 = vld [vmem:[#allocation36_spill] sm:$0xff] }
 0x4bb   :  { %4174 = vmatprep.subr.bf16.mxu0 %v8743_v59  ;;  %4215 = vmatprep.subr.bf16.mxu1 %v8748_v33  ;;  %v9791_v33 = vld [vmem:[#allocation37_spill] sm:$0xff] }
 0x4be   :  { %4175 = vmatpush1.bf16.msra.mxu0 %v8753_v5  ;;  %4216 = vmatpush1.bf16.msra.mxu1 %v8758_v0 }
 0x4bf   :  { %4176 = vmatprep.subr.bf16.mxu0 %v8767_v16  ;;  %4217 = vmatprep.subr.bf16.mxu1 %v8772_v17 }
 0x4c2   :  { %4177 = vmatpush1.bf16.msra.mxu0 %v8777_v34  ;;  %4218 = vmatpush1.bf16.msra.mxu1 %v8782_v53 }
 0x4c3   :  { %4178 = vmatprep.subr.bf16.mxu0 %v8791_v62  ;;  %4219 = vmatprep.subr.bf16.mxu1 %v8796_v63 }
 0x4c6   :  { %4179 = vmatpush1.bf16.msra.mxu0 %v8801_v35  ;;  %4220 = vmatpush1.bf16.msra.mxu1 %v8806_v47 }
 0x4c7   :  { %4180 = vmatprep.subr.bf16.mxu0 %v8815_v2  ;;  %4221 = vmatprep.subr.bf16.mxu1 %v8820_v54 }
 0x4ca   :  { %4181 = vmatpush1.bf16.msra.mxu0 %v8825_v23  ;;  %4222 = vmatpush1.bf16.msra.mxu1 %v8830_v26 }
 0x4cb   :  { %4182 = vmatprep.subr.bf16.mxu0 %v8839_v57  ;;  %4223 = vmatprep.subr.bf16.mxu1 %v8844_v50 }
 0x4ce   :  { %4183 = vmatpush1.bf16.msra.mxu0 %v8849_v24  ;;  %4224 = vmatpush1.bf16.msra.mxu1 %v8854_v36 }
 0x4cf   :  { %4184 = vmatprep.subr.bf16.mxu0 %v8863_v39  ;;  %4225 = vmatprep.subr.bf16.mxu1 %v8868_v22  ;;  %v3645_v22 = vpop.permute.xlu0 %3644 }
 0x4d0   :  { %vm3646_vm3 = vcmp.eq.s32.totalorder %v3645_v22, 1 }
 0x4d2   :  { %4185 = vmatpush1.bf16.msra.mxu0 %v8873_v60  ;;  %4226 = vmatpush1.bf16.msra.mxu1 %v8878_v43 }
 0x4d3   :  { %4490 = vmatprep.subr.bf16.mxu0 %v8884_v1  ;;  %4531 = vmatprep.subr.bf16.mxu1 %v8886_v55  ;;  %v9792_v55 = vld [vmem:[#allocation62_spill] sm:$0xff] }
 0x568   :  { %v3564_v8 = vpop.f32.mrb[64].mxu0  ;;  %v3605_v42 = vpop.f32.mrb[64].mxu1 }
 0x569   :  { %v3612_v4 = vadd.f32 %v3564_v8, %v9788_v45  ;;  %v3614_v11 = vadd.f32 %v3605_v42, %v9789_v10  ;;  %v3566_v9 = vpop.f32.mrb[65].mxu0  ;;  %v3607_v44 = vpop.f32.mrb[65].mxu1  ;;  %v9795_v8 = vld [vmem:[#allocation65_spill] sm:$0xff] }
 0x56a   :  { %v3613_v59 = vadd.f32 %v3566_v9, %v9790_v15  ;;  %v3615_v5 = vadd.f32 %v3607_v44, %v9791_v33  ;;  %v3568_v0 = vpop.f32.mrb[66].mxu0  ;;  %v3609_v16 = vpop.f32.mrb[66].mxu1 }
 0x56b   :  { %v6326_v17 = vmul.f32 -1.442695, %v3612_v4  ;;  %v3569_v34 = vpop.f32.mrb[67].mxu0  ;;  %v3610_v53 = vpop.f32.mrb[67].mxu1 }
 0x56c   :  { %v6327_v62 = vmul.f32 -1.442695, %v3613_v59  ;;  %v6328_v63 = vmul.f32 -1.442695, %v3615_v5 }
 0x56d   :  { %7149 = vpow2.f32 %v6326_v17 }
 0x56e   :  { %7151 = vpow2.f32 %v6327_v62 }
 0x56f   :  { %7153 = vpow2.f32 %v6328_v63 }
 0x570   :  { %7155 = vtanh.f32 %v3614_v11 }
 0x577   :  { %v7150_v35 = vpop.eup %7149 }
 0x578   :  { %v7152_v47 = vpop.eup %7151  ;;  %v3619_v2 = vadd.f32 1.0, %v7150_v35 }
 0x579   :  { %v3625_v54 = vadd.f32 1.0, %v7152_v47  ;;  %v7154_v23 = vpop.eup %7153  ;;  %v9798_v47 = vld [vmem:[#allocation26_spill] sm:$0xff] }
 0x57a   :  { %7157 = vrcp.f32 %v3619_v2  ;;  %v7156_v26 = vpop.eup %7155  ;;  %v3632_v36 = vadd.f32 1.0, %v7154_v23  ;;  %v9799_v23 = vld [vmem:[#allocation27_spill] sm:$0xff] }
 0x57b   :  { %7159 = vrcp.f32 %v3625_v54 }
 0x57c   :  { %7161 = vrcp.f32 %v3632_v36  ;;  %v9807_v36 = vld [vmem:[#allocation24_spill] sm:$0xff] }
 0x584   :  { %v7158_v57 = vpop.eup %7157 }
 0x585   :  { %v7160_v50 = vpop.eup %7159  ;;  %v3636_v24 = vmul.f32 %v7158_v57, %v7156_v26  ;;  %v9800_v26 = vld [vmem:[#allocation28_spill] sm:$0xff]  ;;  %v9803_v57 = vld [vmem:[#allocation71_spill] sm:$0xff] }
 0x586   :  { %v3635_v39 = vmul.f32 %v7160_v50, %v8901_v19  ;;  %v7162_v59 = vpop.eup %7161  ;;  %v9806_v50 = vld [vmem:[#allocation23_spill] sm:$0xff] }
 0x588   :  { %v3637_v60 = vadd.f32 %v3636_v24, %v3635_v39  ;;  %v3884_v43 = vpop.f32.mrb[68].mxu0  ;;  %v3925_v1 = vpop.f32.mrb[68].mxu1 }
 0x589   :  { %v3932_v51 = vadd.f32 %v3884_v43, %v9792_v55  ;;  %v3934_v18 = vadd.f32 %v3925_v1, %v9793_v46  ;;  %v3886_v48 = vpop.f32.mrb[69].mxu0  ;;  %v3927_v52 = vpop.f32.mrb[69].mxu1  ;;  %v9165_v46 = vld [vmem:[%s9611_s7 + $0x20] ss:$16 sps:$4 sm:$0xff]  }
 0x58a   :  { %7163 = vtanh.f32 %v3637_v60  ;;  %v3933_v49 = vadd.f32 %v3886_v48, %v9794_v37  ;;  %v3935_v42 = vadd.f32 %v3927_v52, %v9795_v8  ;;  %v3888_v45 = vpop.f32.mrb[70].mxu0  ;;  %v3929_v4 = vpop.f32.mrb[70].mxu1  ;;  %v9067_v10 = vsel %vm3646_vm3, %v3637_v60, %v8901_v19  ;;  %v9179_v48 = vld [vmem:[%s9611_s7 + $0x44] ss:$16 sps:$4 sm:$0xff]   ;;  %v9184_v52 = vld [vmem:[%s9611_s7 + $0x4c] ss:$16 sps:$4 sm:$0xff]  }
 0x58b   :  { %v6362_v11 = vmul.f32 -1.442695, %v3932_v51  ;;  %v3889_v9 = vpop.f32.mrb[71].mxu0  ;;  %v3930_v44 = vpop.f32.mrb[71].mxu1  ;;  %v9160_v51 = vld [vmem:[%s9611_s7 + $0x2c] ss:$16 sps:$4 sm:$0xff]  }
 0x58c   :  { %v6363_v15 = vmul.f32 -1.442695, %v3933_v49  ;;  %v6364_v5 = vmul.f32 -1.442695, %v3935_v42  ;;  %v9189_v37 = vld [vmem:[%s9611_s7 + $0x40] ss:$16 sps:$4 sm:$0xff]  }
 0x58d   :  { %7165 = vpow2.f32 %v6362_v11  ;;  %v9194_v49 = vld [vmem:[%s9611_s7 + $0x48] ss:$16 sps:$4 sm:$0xff]   ;;  %v9203_v8 = vld [vmem:[%s9611_s7 + $0x64] ss:$16 sps:$4 sm:$0xff]   ;;  %v9208_v42 = vld [vmem:[%s9611_s7 + $0x6c] ss:$16 sps:$4 sm:$0xff]  }
 0x58e   :  { %7167 = vpow2.f32 %v6363_v15  ;;  %v9213_v45 = vld [vmem:[%s9611_s7 + $0x60] ss:$16 sps:$4 sm:$0xff]   ;;  %v9218_v4 = vld [vmem:[%s9611_s7 + $0x68] ss:$16 sps:$4 sm:$0xff]   ;;  %v9227_v11 = vld [vmem:[%s9611_s7 + $0x84] ss:$16 sps:$4 sm:$0xff]  }
 0x58f   :  { %7169 = vpow2.f32 %v6364_v5  ;;  %v9232_v9 = vld [vmem:[%s9611_s7 + $0x8c] ss:$16 sps:$4 sm:$0xff]   ;;  %v9237_v44 = vld [vmem:[%s9611_s7 + $0x80] ss:$16 sps:$4 sm:$0xff]   ;;  %v9242_v15 = vld [vmem:[%s9611_s7 + $0x88] ss:$16 sps:$4 sm:$0xff]  }
 0x590   :  { %7171 = vtanh.f32 %v3934_v18  ;;  %v9170_v18 = vld [vmem:[%s9611_s7 + $0x28] ss:$16 sps:$4 sm:$0xff]   ;;  %v9261_v5 = vld [vmem:[%s9611_s7 + $0xa0] ss:$16 sps:$4 sm:$0xff]  }
 0x594   :  { %v7164_v33 = vpop.eup %7163 }
 0x595   :  { %v3639_v0 = vmul.f32 %v7164_v33, %v7162_v59  ;;  %v9251_v59 = vld [vmem:[%s9611_s7 + $0xa4] ss:$16 sps:$4 sm:$0xff]   ;;  %v9256_v33 = vld [vmem:[%s9611_s7 + $0xac] ss:$16 sps:$4 sm:$0xff]  }
 0x597   :  { %v7166_v16 = vpop.eup %7165  ;;  %v9071_v17 = vsel %vm3646_vm3, %v3639_v0, %v8909_v56  ;;  %v3649_v34 = vsel %vm3646_vm3, %v3639_v0, 0.0  ;;  %v9266_v0 = vld [vmem:[%s9611_s7 + $0xa8] ss:$16 sps:$4 sm:$0xff]  }
 0x598   :  { %v7168_v53 = vpop.eup %7167  ;;  %v3939_v19 = vadd.f32 1.0, %v7166_v16  ;;  %v3650_v62 = vpack.c.bf16 %v3649_v34, %v3649_v34  ;;  %v3977_v63 = vpack.c.bf16 %v9071_v17, %v9071_v17  ;;  %v9275_v16 = vld [vmem:[%s9611_s7 + $0xc4] ss:$16 sps:$4 sm:$0xff]   ;;  %v9280_v34 = vld [vmem:[%s9611_s7 + $0xcc] ss:$16 sps:$4 sm:$0xff]  }
 0x599   :  { %v3945_v35 = vadd.f32 1.0, %v7168_v53  ;;  %v7170_v56 = vpop.eup %7169  ;;  %v9285_v53 = vld [vmem:[%s9611_s7 + $0xc0] ss:$16 sps:$4 sm:$0xff]  }
 0x59a   :  { %7173 = vrcp.f32 %v3939_v19  ;;  %3651 = vst [vmem:[%s9613_s9 + $0x10] sm:$0xf] %v3650_v62  ;;  %4203 = vmatmul.mubr.bf16.vlgmr.msra.gmra.mrb[72].mxu0 %v3977_v63  ;;  %4244 = vmatmul.mubr.bf16.vlgmr.msra.gmra.mrb[72].mxu1 %v3977_v63  ;;  %v9290_v19 = vld [vmem:[%s9611_s7 + $0xc8] ss:$16 sps:$4 sm:$0xff]   ;;  %v9299_v62 = vld [vmem:[%s9611_s7 + $0xe4] ss:$16 sps:$4 sm:$0xff]  }
 0x59b   :  { %7175 = vrcp.f32 %v3945_v35  ;;  %4491 = vmatpush1.bf16.msra.mxu0 %v8903_v6  ;;  %4532 = vmatpush1.bf16.msra.mxu1 %v8905_v27  ;;  %v7172_v6 = vpop.eup %7171  ;;  %v9796_v27 = vld [vmem:[#allocation21_spill] sm:$0xff]  ;;  %v9304_v63 = vld [vmem:[%s9611_s7 + $0xec] ss:$16 sps:$4 sm:$0xff]  }
 0x59c   :  { %4492 = vmatprep.subr.bf16.mxu0 %v8914_v29  ;;  %4533 = vmatprep.subr.bf16.mxu1 %v8916_v41  ;;  %v9797_v41 = vld [vmem:[#allocation22_spill] sm:$0xff]  ;;  %v9309_v35 = vld [vmem:[%s9611_s7 + $0xe0] ss:$16 sps:$4 sm:$0xff]  }
 0x59d   :  { %4522 = vmatprep.mubr.bf16.mxu0 %v9675_v61  ;;  %4563 = vmatprep.mubr.bf16.mxu1 %v9675_v61 }
 0x59f   :  { %4493 = vmatpush1.bf16.msra.mxu0 %v8923_v32  ;;  %4534 = vmatpush1.bf16.msra.mxu1 %v8925_v58  ;;  %v3952_v32 = vadd.f32 1.0, %v7170_v56  ;;  %v9314_v56 = vld [vmem:[%s9611_s7 + $0xe8] ss:$16 sps:$4 sm:$0xff]  }
 0x5a0   :  { %4494 = vmatprep.subr.bf16.mxu0 %v8929_v13  ;;  %4535 = vmatprep.subr.bf16.mxu1 %v8931_v28  ;;  %v3965_v13 = vpop.permute.xlu1 %3964 }
 0x5a1   :  { %vm3966_vm4 = vcmp.eq.s32.totalorder %v3965_v13, 1  ;;  %7177 = vrcp.f32 %v3952_v32 }
 0x5a3   :  { %4495 = vmatpush1.bf16.msra.mxu0 %v8937_v21  ;;  %4536 = vmatpush1.bf16.msra.mxu1 %v9796_v27  ;;  %v9322_v27 = vld [vmem:[#allocation13 + $0xc] ss:$16 sps:$4 sm:$0xff]  }
 0x5a4   :  { %v7174_v29 = vpop.eup %7173  ;;  %4496 = vmatprep.subr.bf16.mxu0 %v9797_v41  ;;  %4537 = vmatprep.subr.bf16.mxu1 %v9798_v47  ;;  %v9809_v47 = vld [vmem:[#allocation38_spill] sm:$0xff] }
 0x5a5   :  { %v7176_v2 = vpop.eup %7175  ;;  %v3956_v54 = vmul.f32 %v7174_v29, %v7172_v6  ;;  %v9320_v6 = vld [vmem:[#allocation13 + $0x4] ss:$16 sps:$4 sm:$0xff]  }
 0x5a6   :  { %v3955_v58 = vmul.f32 %v7176_v2, %v8974_v40 }
 0x5a7   :  { %4497 = vmatpush1.bf16.msra.mxu0 %v8949_v7  ;;  %4538 = vmatpush1.bf16.msra.mxu1 %v8951_v30  ;;  %v9801_v7 = vld [vmem:[#allocation29_spill] sm:$0xff]  ;;  %v9802_v30 = vld [vmem:[#allocation70_spill] sm:$0xff] }
 0x5a8   :  { %v3957_v28 = vadd.f32 %v3956_v54, %v3955_v58  ;;  %4498 = vmatprep.subr.bf16.mxu0 %v8955_v38  ;;  %4539 = vmatprep.subr.bf16.mxu1 %v8957_v14  ;;  %v9804_v38 = vld [vmem:[#allocation72_spill] sm:$0xff]  ;;  %v9805_v14 = vld [vmem:[#allocation73_spill] sm:$0xff]  ;;  %v9810_v54 = vld [vmem:[#allocation39_spill] sm:$0xff] }
 0x5aa   :  { %7179 = vtanh.f32 %v3957_v28  ;;  %v9100_v21 = vsel %vm3966_vm4, %v3957_v28, %v8974_v40  ;;  %v9808_v40 = vld [vmem:[#allocation25_spill] sm:$0xff]  ;;  %v9811_v28 = vld [vmem:[#allocation40_spill] sm:$0xff] }
 0x5ab   :  { %4499 = vmatpush1.bf16.msra.mxu0 %v9799_v23  ;;  %4540 = vmatpush1.bf16.msra.mxu1 %v9800_v26  ;;  %v7178_v24 = vpop.eup %7177  ;;  %v9812_v26 = vld [vmem:[#allocation41_spill] sm:$0xff] }
 0x5ac   :  { %4500 = vmatprep.subr.bf16.mxu0 %v9801_v7  ;;  %4541 = vmatprep.subr.bf16.mxu1 %v9802_v30 }
 0x5af   :  { %4501 = vmatpush1.bf16.msra.mxu0 %v9803_v57  ;;  %4542 = vmatpush1.bf16.msra.mxu1 %v9804_v38 }
 0x5b0   :  { %4502 = vmatprep.subr.bf16.mxu0 %v9805_v14  ;;  %4543 = vmatprep.subr.bf16.mxu1 %v9806_v50 }
 0x5b3   :  { %4503 = vmatpush1.bf16.msra.mxu0 %v9807_v36  ;;  %4544 = vmatpush1.bf16.msra.mxu1 %v9808_v40 }
 0x5b4   :  { %v7180_v39 = vpop.eup %7179  ;;  %4504 = vmatprep.subr.bf16.mxu0 %v8996_v20  ;;  %4545 = vmatprep.subr.bf16.mxu1 %v8998_v25  ;;  %v9131_v25 = vld [vmem:[%s9611_s7 + $0x4] ss:$16 sps:$4 sm:$0xff]  }
 0x5b5   :  { %v3959_v22 = vmul.f32 %v7180_v39, %v7178_v24  ;;  %v9155_v20 = vld [vmem:[%s9611_s7 + $0x24] ss:$16 sps:$4 sm:$0xff]  }
 0x5b7   :  { %4505 = vmatpush1.bf16.msra.mxu0 %v9002_v12  ;;  %4546 = vmatpush1.bf16.msra.mxu1 %v9004_v31  ;;  %v9118_v60 = vsel %vm3966_vm4, %v3959_v22, %v9012_v3  ;;  %v3969_v43 = vsel %vm3966_vm4, %v3959_v22, 0.0  ;;  %v9136_v12 = vld [vmem:[%s9611_s7 + $0xc] ss:$16 sps:$4 sm:$0xff]   ;;  %v9141_v31 = vld [vmem:[%s9611_s7] ss:$16 sps:$4 sm:$0xff]  }
 0x5b8   :  { %v3970_v1 = vpack.c.bf16 %v3969_v43, %v3969_v43  ;;  %v4297_v55 = vpack.c.bf16 %v9118_v60, %v9118_v60  ;;  %v9146_v3 = vld [vmem:[%s9611_s7 + $0x8] ss:$16 sps:$4 sm:$0xff]   ;;  %4810 = vmatprep.subr.bf16.mxu0 %v9131_v25  ;;  %4851 = vmatprep.subr.bf16.mxu1 %v9136_v12 }
 0x5ba   :  { %3971 = vst [vmem:[%s9614_s10 + $0xc] sm:$0xf] %v3970_v1  ;;  %4523 = vmatmul.mubr.bf16.vlgmr.msra.gmra.mrb[76].mxu0 %v4297_v55  ;;  %4564 = vmatmul.mubr.bf16.vlgmr.msra.gmra.mrb[76].mxu1 %v4297_v55 }
 0x5bb   :  { %4842 = vmatprep.mubr.bf16.mxu0 %v9675_v61  ;;  %4883 = vmatprep.mubr.bf16.mxu1 %v9675_v61 }
 0x5bc   :  { %4811 = vmatpush1.bf16.msra.mxu0 %v9141_v31  ;;  %4852 = vmatpush1.bf16.msra.mxu1 %v9146_v3 }
 0x5bd   :  { %4812 = vmatprep.subr.bf16.mxu0 %v9155_v20  ;;  %4853 = vmatprep.subr.bf16.mxu1 %v9160_v51 }
 0x5c0   :  { %4813 = vmatpush1.bf16.msra.mxu0 %v9165_v46  ;;  %4854 = vmatpush1.bf16.msra.mxu1 %v9170_v18 }
 0x5c1   :  { %4814 = vmatprep.subr.bf16.mxu0 %v9179_v48  ;;  %4855 = vmatprep.subr.bf16.mxu1 %v9184_v52 }
 0x5c4   :  { %4815 = vmatpush1.bf16.msra.mxu0 %v9189_v37  ;;  %4856 = vmatpush1.bf16.msra.mxu1 %v9194_v49 }
 0x5c5   :  { %4816 = vmatprep.subr.bf16.mxu0 %v9203_v8  ;;  %4857 = vmatprep.subr.bf16.mxu1 %v9208_v42 }
 0x5c8   :  { %4817 = vmatpush1.bf16.msra.mxu0 %v9213_v45  ;;  %4858 = vmatpush1.bf16.msra.mxu1 %v9218_v4 }
 0x5c9   :  { %4818 = vmatprep.subr.bf16.mxu0 %v9227_v11  ;;  %4859 = vmatprep.subr.bf16.mxu1 %v9232_v9 }
 0x5cc   :  { %4819 = vmatpush1.bf16.msra.mxu0 %v9237_v44  ;;  %4860 = vmatpush1.bf16.msra.mxu1 %v9242_v15 }
 0x5cd   :  { %4820 = vmatprep.subr.bf16.mxu0 %v9251_v59  ;;  %4861 = vmatprep.subr.bf16.mxu1 %v9256_v33 }
 0x5d0   :  { %4821 = vmatpush1.bf16.msra.mxu0 %v9261_v5  ;;  %4862 = vmatpush1.bf16.msra.mxu1 %v9266_v0 }
 0x5d1   :  { %4822 = vmatprep.subr.bf16.mxu0 %v9275_v16  ;;  %4863 = vmatprep.subr.bf16.mxu1 %v9280_v34 }
 0x5d4   :  { %4823 = vmatpush1.bf16.msra.mxu0 %v9285_v53  ;;  %4864 = vmatpush1.bf16.msra.mxu1 %v9290_v19 }
 0x5d5   :  { %4824 = vmatprep.subr.bf16.mxu0 %v9299_v62  ;;  %4865 = vmatprep.subr.bf16.mxu1 %v9304_v63 }
 0x5d8   :  { %4825 = vmatpush1.bf16.msra.mxu0 %v9309_v35  ;;  %4866 = vmatpush1.bf16.msra.mxu1 %v9314_v56 }
 0x5d9   :  { %5130 = vmatprep.subr.bf16.mxu0 %v9320_v6  ;;  %5171 = vmatprep.subr.bf16.mxu1 %v9322_v27 }
 0x66d   :  { %v4204_v29 = vpop.f32.mrb[72].mxu0  ;;  %v4245_v41 = vpop.f32.mrb[72].mxu1 }
 0x66e   :  { %v4252_v2 = vadd.f32 %v4204_v29, %v9809_v47  ;;  %v4254_v32 = vadd.f32 %v4245_v41, %v9810_v54  ;;  %v4206_v58 = vpop.f32.mrb[73].mxu0  ;;  %v4247_v13 = vpop.f32.mrb[73].mxu1 }
 0x66f   :  { %v4253_v23 = vadd.f32 %v4206_v58, %v9811_v28  ;;  %v4255_v7 = vadd.f32 %v4247_v13, %v9812_v26  ;;  %v4208_v30 = vpop.f32.mrb[74].mxu0  ;;  %v4249_v57 = vpop.f32.mrb[74].mxu1  ;;  %v9813_v26 = vld [vmem:[#allocation58_spill] sm:$0xff] }
 0x670   :  { %v6398_v38 = vmul.f32 -1.442695, %v4252_v2  ;;  %v4209_v14 = vpop.f32.mrb[75].mxu0  ;;  %v4250_v50 = vpop.f32.mrb[75].mxu1 }
 0x671   :  { %v6399_v24 = vmul.f32 -1.442695, %v4253_v23  ;;  %v6400_v36 = vmul.f32 -1.442695, %v4255_v7  ;;  %v4285_v58 = vpop.permute.xlu0 %4284  ;;  %v9815_v14 = vld [vmem:[#allocation60_spill] sm:$0xff] }
 0x672   :  { %7181 = vpow2.f32 %v6398_v38  ;;  %vm4286_vm5 = vcmp.eq.s32.totalorder %v4285_v58, 1  ;;  %v9361_v58 = vld [vmem:[#allocation13 + $0x28] ss:$16 sps:$4 sm:$0xff]  }
 0x673   :  { %7183 = vpow2.f32 %v6399_v24  ;;  %v9816_v24 = vld [vmem:[#allocation61_spill] sm:$0xff] }
 0x674   :  { %7185 = vpow2.f32 %v6400_v36 }
 0x675   :  { %7187 = vtanh.f32 %v4254_v32  ;;  %v9814_v32 = vld [vmem:[#allocation59_spill] sm:$0xff] }
 0x67c   :  { %v7182_v40 = vpop.eup %7181 }
 0x67d   :  { %v7184_v39 = vpop.eup %7183  ;;  %v4259_v22 = vadd.f32 1.0, %v7182_v40 }
 0x67e   :  { %v4265_v43 = vadd.f32 1.0, %v7184_v39  ;;  %v7186_v1 = vpop.eup %7185 }
 0x67f   :  { %7189 = vrcp.f32 %v4259_v22  ;;  %v7188_v55 = vpop.eup %7187  ;;  %v4272_v2 = vadd.f32 1.0, %v7186_v1 }
 0x680   :  { %7191 = vrcp.f32 %v4265_v43 }
 0x681   :  { %7193 = vrcp.f32 %v4272_v2 }
 0x689   :  { %v7190_v29 = vpop.eup %7189 }
 0x68a   :  { %v7192_v41 = vpop.eup %7191  ;;  %v4276_v47 = vmul.f32 %v7190_v29, %v7188_v55 }
 0x68b   :  { %v4275_v54 = vmul.f32 %v7192_v41, %v9067_v10  ;;  %v7194_v41 = vpop.eup %7193 }
 0x68d   :  { %v4277_v13 = vadd.f32 %v4276_v47, %v4275_v54  ;;  %v4524_v28 = vpop.f32.mrb[76].mxu0  ;;  %v4565_v23 = vpop.f32.mrb[76].mxu1 }
 0x68e   :  { %v4572_v7 = vadd.f32 %v4524_v28, %v9813_v26  ;;  %v4574_v30 = vadd.f32 %v4565_v23, %v9814_v32  ;;  %v4526_v57 = vpop.f32.mrb[77].mxu0  ;;  %v4567_v38 = vpop.f32.mrb[77].mxu1  ;;  %v9339_v23 = vld [vmem:[#allocation13] ss:$16 sps:$4 sm:$0xff]   ;;  %v9341_v26 = vld [vmem:[#allocation13 + $0x8] ss:$16 sps:$4 sm:$0xff]  }
 0x68f   :  { %7195 = vtanh.f32 %v4277_v13  ;;  %v4573_v50 = vadd.f32 %v4526_v57, %v9815_v14  ;;  %v4575_v36 = vadd.f32 %v4567_v38, %v9816_v24  ;;  %v4528_v40 = vpop.f32.mrb[78].mxu0  ;;  %v4569_v39 = vpop.f32.mrb[78].mxu1  ;;  %v9337_v22 = vsel %vm4286_vm5, %v4277_v13, %v9067_v10  ;;  %v9350_v14 = vld [vmem:[#allocation13 + $0x24] ss:$16 sps:$4 sm:$0xff]  }
 0x690   :  { %v6434_v43 = vmul.f32 -1.442695, %v4572_v7  ;;  %v4529_v1 = vpop.f32.mrb[79].mxu0  ;;  %v4570_v55 = vpop.f32.mrb[79].mxu1  ;;  %v9373_v40 = vld [vmem:[#allocation13 + $0x40] ss:$16 sps:$4 sm:$0xff]  }
 0x691   :  { %v6435_v29 = vmul.f32 -1.442695, %v4573_v50  ;;  %v6436_v2 = vmul.f32 -1.442695, %v4575_v36  ;;  %v9352_v50 = vld [vmem:[#allocation13 + $0x2c] ss:$16 sps:$4 sm:$0xff]  }
 0x692   :  { %7197 = vpow2.f32 %v6434_v43  ;;  %v9367_v36 = vld [vmem:[#allocation13 + $0x4c] ss:$16 sps:$4 sm:$0xff]   ;;  %v9375_v39 = vld [vmem:[#allocation13 + $0x48] ss:$16 sps:$4 sm:$0xff]   ;;  %v9379_v43 = vld [vmem:[#allocation13 + $0x64] ss:$16 sps:$4 sm:$0xff]  }
 0x693   :  { %7199 = vpow2.f32 %v6435_v29  ;;  %9817 = vst [vmem:[#allocation74_spill] sm:$0xff] %v9375_v39  ;;  %9818 = vst [vmem:[#allocation75_spill] sm:$0xff] %v9379_v43  ;;  %v9381_v1 = vld [vmem:[#allocation13 + $0x6c] ss:$16 sps:$4 sm:$0xff]  }
 0x694   :  { %7201 = vpow2.f32 %v6436_v2  ;;  %9819 = vst [vmem:[#allocation76_spill] sm:$0xff] %v9381_v1 }
 0x695   :  { %7203 = vtanh.f32 %v4574_v30  ;;  %v9365_v30 = vld [vmem:[#allocation13 + $0x44] ss:$16 sps:$4 sm:$0xff]  }
 0x699   :  { %v7196_v47 = vpop.eup %7195 }
 0x69a   :  { %v4279_v54 = vmul.f32 %v7196_v47, %v7194_v41  ;;  %v9385_v41 = vld [vmem:[#allocation13 + $0x60] ss:$16 sps:$4 sm:$0xff]   ;;  %v9387_v47 = vld [vmem:[#allocation13 + $0x68] ss:$16 sps:$4 sm:$0xff]  }
 0x69c   :  { %v7198_v28 = vpop.eup %7197  ;;  %v9345_v32 = vsel %vm4286_vm5, %v4279_v54, %v9071_v17  ;;  %v4289_v10 = vsel %vm4286_vm5, %v4279_v54, 0.0  ;;  %v9359_v17 = vld [vmem:[#allocation13 + $0x20] ss:$16 sps:$4 sm:$0xff]   ;;  %v9391_v54 = vld [vmem:[#allocation13 + $0x84] ss:$16 sps:$4 sm:$0xff]  }
 0x69d   :  { %v7200_v13 = vpop.eup %7199  ;;  %v4579_v7 = vadd.f32 1.0, %v7198_v28  ;;  %v4290_v57 = vpack.c.bf16 %v4289_v10, %v4289_v10  ;;  %v4617_v38 = vpack.c.bf16 %v9345_v32, %v9345_v32  ;;  %v9393_v28 = vld [vmem:[#allocation13 + $0x8c] ss:$16 sps:$4 sm:$0xff]  }
 0x69e   :  { %v4585_v24 = vadd.f32 1.0, %v7200_v13  ;;  %v7202_v55 = vpop.eup %7201 }
 0x69f   :  { %7205 = vrcp.f32 %v4579_v7  ;;  %4291 = vst [vmem:[%s9613_s9 + $0x14] sm:$0xf] %v4290_v57  ;;  %4843 = vmatmul.mubr.bf16.vlgmr.msra.gmra.mrb[80].mxu0 %v4617_v38  ;;  %4884 = vmatmul.mubr.bf16.vlgmr.msra.gmra.mrb[80].mxu1 %v4617_v38  ;;  %v7204_v29 = vpop.eup %7203  ;;  %v4592_v7 = vadd.f32 1.0, %v7202_v55  ;;  %v9398_v38 = vld [vmem:[#allocation13 + $0x80] ss:$16 sps:$4 sm:$0xff]  }
 0x6a0   :  { %7207 = vrcp.f32 %v4585_v24  ;;  %5131 = vmatpush1.bf16.msra.mxu0 %v9339_v23  ;;  %5172 = vmatpush1.bf16.msra.mxu1 %v9341_v26  ;;  %9820 = vst [vmem:[#allocation77_spill] sm:$0xff] %v9398_v38  ;;  %v9400_v24 = vld [vmem:[#allocation13 + $0x88] ss:$16 sps:$4 sm:$0xff]  }
 0x6a1   :  { %5132 = vmatprep.subr.bf16.mxu0 %v9350_v14  ;;  %5173 = vmatprep.subr.bf16.mxu1 %v9352_v50  ;;  %9821 = vst [vmem:[#allocation78_spill] sm:$0xff] %v9400_v24  ;;  %7209 = vrcp.f32 %v4592_v7  ;;  %v9422_v7 = vld [vmem:[#allocation13 + $0xcc] ss:$16 sps:$4 sm:$0xff]  }
 0x6a2   :  { %5162 = vmatprep.mubr.bf16.mxu0 %v9675_v61  ;;  %5203 = vmatprep.mubr.bf16.mxu1 %v9675_v61  ;;  %9827 = vst [vmem:[#allocation32_spill] sm:$0xff] %v9422_v7 }
 0x6a4   :  { %5133 = vmatpush1.bf16.msra.mxu0 %v9359_v17  ;;  %5174 = vmatpush1.bf16.msra.mxu1 %v9361_v58 }
 0x6a5   :  { %5134 = vmatprep.subr.bf16.mxu0 %v9365_v30  ;;  %5175 = vmatprep.subr.bf16.mxu1 %v9367_v36 }
 0x6a8   :  { %5135 = vmatpush1.bf16.msra.mxu0 %v9373_v40  ;;  %5176 = vmatpush1.bf16.msra.mxu1 %v9375_v39 }
 0x6a9   :  { %v7206_v2 = vpop.eup %7205  ;;  %5136 = vmatprep.subr.bf16.mxu0 %v9379_v43  ;;  %5177 = vmatprep.subr.bf16.mxu1 %v9381_v1  ;;  %v4605_v43 = vpop.permute.xlu1 %4604  ;;  %v9404_v1 = vld [vmem:[#allocation13 + $0xa4] ss:$16 sps:$4 sm:$0xff]  }
 0x6aa   :  { %v7208_v10 = vpop.eup %7207  ;;  %v4596_v13 = vmul.f32 %v7206_v2, %v7204_v29  ;;  %9822 = vst [vmem:[#allocation79_spill] sm:$0xff] %v9404_v1  ;;  %v9406_v29 = vld [vmem:[#allocation13 + $0xac] ss:$16 sps:$4 sm:$0xff]   ;;  %vm4606_vm6 = vcmp.eq.s32.totalorder %v4605_v43, 1  ;;  %v9414_v2 = vld [vmem:[#allocation13 + $0xa0] ss:$16 sps:$4 sm:$0xff]  }
 0x6ab   :  { %v4595_v57 = vmul.f32 %v7208_v10, %v9100_v21  ;;  %9823 = vst [vmem:[#allocation80_spill] sm:$0xff] %v9406_v29  ;;  %9824 = vst [vmem:[#allocation81_spill] sm:$0xff] %v9414_v2  ;;  %v9416_v10 = vld [vmem:[#allocation13 + $0xa8] ss:$16 sps:$4 sm:$0xff]  }
 0x6ac   :  { %5137 = vmatpush1.bf16.msra.mxu0 %v9385_v41  ;;  %5178 = vmatpush1.bf16.msra.mxu1 %v9387_v47  ;;  %9825 = vst [vmem:[#allocation30_spill] sm:$0xff] %v9416_v10 }
 0x6ad   :  { %v4597_v39 = vadd.f32 %v4596_v13, %v4595_v57  ;;  %5138 = vmatprep.subr.bf16.mxu0 %v9391_v54  ;;  %5179 = vmatprep.subr.bf16.mxu1 %v9393_v28  ;;  %v9420_v13 = vld [vmem:[#allocation13 + $0xc4] ss:$16 sps:$4 sm:$0xff]  }
 0x6ae   :  { %9826 = vst [vmem:[#allocation31_spill] sm:$0xff] %v9420_v13  ;;  %v9432_v57 = vld [vmem:[#allocation13 + $0xe4] ss:$16 sps:$4 sm:$0xff]  }
 0x6af   :  { %7211 = vtanh.f32 %v4597_v39  ;;  %v9410_v55 = vsel %vm4606_vm6, %v4597_v39, %v9100_v21  ;;  %v9426_v21 = vld [vmem:[#allocation13 + $0xc0] ss:$16 sps:$4 sm:$0xff]   ;;  %v9428_v39 = vld [vmem:[#allocation13 + $0xc8] ss:$16 sps:$4 sm:$0xff]  }
 0x6b0   :  { %5139 = vmatpush1.bf16.msra.mxu0 %v9398_v38  ;;  %5180 = vmatpush1.bf16.msra.mxu1 %v9400_v24  ;;  %9828 = vst [vmem:[#allocation33_spill] sm:$0xff] %v9426_v21  ;;  %9829 = vst [vmem:[#allocation66_spill] sm:$0xff] %v9428_v39 }
 0x6b1   :  { %5140 = vmatprep.subr.bf16.mxu0 %v9404_v1  ;;  %5181 = vmatprep.subr.bf16.mxu1 %v9406_v29  ;;  %v9434_v1 = vld [vmem:[#allocation13 + $0xec] ss:$16 sps:$4 sm:$0xff]   ;;  %v7210_v29 = vpop.eup %7209 }
 0x6b4   :  { %5141 = vmatpush1.bf16.msra.mxu0 %v9414_v2  ;;  %5182 = vmatpush1.bf16.msra.mxu1 %v9416_v10  ;;  %v9438_v2 = vld [vmem:[#allocation13 + $0xe0] ss:$16 sps:$4 sm:$0xff]   ;;  %v9440_v10 = vld [vmem:[#allocation13 + $0xe8] ss:$16 sps:$4 sm:$0xff]  }
 0x6b5   :  { %5142 = vmatprep.subr.bf16.mxu0 %v9420_v13  ;;  %5183 = vmatprep.subr.bf16.mxu1 %v9422_v7 }
 0x6b8   :  { %5143 = vmatpush1.bf16.msra.mxu0 %v9426_v21  ;;  %5184 = vmatpush1.bf16.msra.mxu1 %v9428_v39 }
 0x6b9   :  { %v7212_v24 = vpop.eup %7211  ;;  %5144 = vmatprep.subr.bf16.mxu0 %v9432_v57  ;;  %5185 = vmatprep.subr.bf16.mxu1 %v9434_v1 }
 0x6ba   :  { %v4599_v13 = vmul.f32 %v7212_v24, %v7210_v29 }
 0x6bc   :  { %5145 = vmatpush1.bf16.msra.mxu0 %v9438_v2  ;;  %5186 = vmatpush1.bf16.msra.mxu1 %v9440_v10  ;;  %v9448_v7 = vsel %vm4606_vm6, %v4599_v13, %v9118_v60  ;;  %v4609_v39 = vsel %vm4606_vm6, %v4599_v13, 0.0 }
 0x6bd   :  { %v4610_v21 = vpack.c.bf16 %v4609_v39, %v4609_v39  ;;  %v4937_v38 = vpack.c.bf16 %v9448_v7, %v9448_v7  ;;  %5450 = vmatprep.subr.bf16.mxu0 %v9131_v25  ;;  %5491 = vmatprep.subr.bf16.mxu1 %v9136_v12  ;;  %v9830_v12 = vld [vmem:[#allocation42_spill] sm:$0xff] }
 0x6bf   :  { %4611 = vst [vmem:[%s9614_s10 + $0x8] sm:$0xf] %v4610_v21  ;;  %5163 = vmatmul.mubr.bf16.vlgmr.msra.gmra.mrb[84].mxu0 %v4937_v38  ;;  %5204 = vmatmul.mubr.bf16.vlgmr.msra.gmra.mrb[84].mxu1 %v4937_v38  ;;  %v9835_v38 = vld [vmem:[#allocation55_spill] sm:$0xff]  ;;  %v9836_v21 = vld [vmem:[#allocation56_spill] sm:$0xff] }
 0x6c0   :  { %5451 = vmatpush1.bf16.msra.mxu0 %v9141_v31  ;;  %5492 = vmatpush1.bf16.msra.mxu1 %v9146_v3  ;;  %v9831_v3 = vld [vmem:[#allocation43_spill] sm:$0xff] }
 0x6c1   :  { %5452 = vmatprep.subr.bf16.mxu0 %v9155_v20  ;;  %5493 = vmatprep.subr.bf16.mxu1 %v9160_v51 }
 0x6c2   :  { %5482 = vmatprep.mubr.bf16.mxu0 %v9675_v61  ;;  %5523 = vmatprep.mubr.bf16.mxu1 %v9675_v61 }
 0x6c4   :  { %5453 = vmatpush1.bf16.msra.mxu0 %v9165_v46  ;;  %5494 = vmatpush1.bf16.msra.mxu1 %v9170_v18  ;;  %v9832_v18 = vld [vmem:[#allocation44_spill] sm:$0xff] }
 0x6c5   :  { %5454 = vmatprep.subr.bf16.mxu0 %v9179_v48  ;;  %5495 = vmatprep.subr.bf16.mxu1 %v9184_v52  ;;  %v9833_v52 = vld [vmem:[#allocation45_spill] sm:$0xff] }
 0x6c8   :  { %5455 = vmatpush1.bf16.msra.mxu0 %v9189_v37  ;;  %5496 = vmatpush1.bf16.msra.mxu1 %v9194_v49 }
 0x6c9   :  { %5456 = vmatprep.subr.bf16.mxu0 %v9203_v8  ;;  %5497 = vmatprep.subr.bf16.mxu1 %v9208_v42 }
 0x6cc   :  { %5457 = vmatpush1.bf16.msra.mxu0 %v9213_v45  ;;  %5498 = vmatpush1.bf16.msra.mxu1 %v9218_v4 }
 0x6cd   :  { %5458 = vmatprep.subr.bf16.mxu0 %v9227_v11  ;;  %5499 = vmatprep.subr.bf16.mxu1 %v9232_v9 }
 0x6d0   :  { %5459 = vmatpush1.bf16.msra.mxu0 %v9237_v44  ;;  %5500 = vmatpush1.bf16.msra.mxu1 %v9242_v15 }
 0x6d1   :  { %5460 = vmatprep.subr.bf16.mxu0 %v9251_v59  ;;  %5501 = vmatprep.subr.bf16.mxu1 %v9256_v33 }
 0x6d4   :  { %5461 = vmatpush1.bf16.msra.mxu0 %v9261_v5  ;;  %5502 = vmatpush1.bf16.msra.mxu1 %v9266_v0 }
 0x6d5   :  { %5462 = vmatprep.subr.bf16.mxu0 %v9275_v16  ;;  %5503 = vmatprep.subr.bf16.mxu1 %v9280_v34 }
 0x6d8   :  { %5463 = vmatpush1.bf16.msra.mxu0 %v9285_v53  ;;  %5504 = vmatpush1.bf16.msra.mxu1 %v9290_v19 }
 0x6d9   :  { %5464 = vmatprep.subr.bf16.mxu0 %v9299_v62  ;;  %5505 = vmatprep.subr.bf16.mxu1 %v9304_v63  ;;  %v4925_v63 = vpop.permute.xlu0 %4924 }
 0x6da   :  { %vm4926_vm7 = vcmp.eq.s32.totalorder %v4925_v63, 1 }
 0x6dc   :  { %5465 = vmatpush1.bf16.msra.mxu0 %v9309_v35  ;;  %5506 = vmatpush1.bf16.msra.mxu1 %v9314_v56 }
 0x6dd   :  { %5769 = vmatprep.subr.bf16.mxu0 %v9320_v6  ;;  %5810 = vmatprep.subr.bf16.mxu1 %v9322_v27  ;;  %v9834_v27 = vld [vmem:[#allocation54_spill] sm:$0xff] }
 0x772   :  { %v4844_v60 = vpop.f32.mrb[80].mxu0  ;;  %v4885_v25 = vpop.f32.mrb[80].mxu1 }
 0x773   :  { %v4892_v31 = vadd.f32 %v4844_v60, %v9830_v12  ;;  %v4894_v20 = vadd.f32 %v4885_v25, %v9831_v3  ;;  %v4846_v51 = vpop.f32.mrb[81].mxu0  ;;  %v4887_v46 = vpop.f32.mrb[81].mxu1  ;;  %v9837_v60 = vld [vmem:[#allocation57_spill] sm:$0xff] }
 0x774   :  { %v4893_v48 = vadd.f32 %v4846_v51, %v9832_v18  ;;  %v4895_v37 = vadd.f32 %v4887_v46, %v9833_v52  ;;  %v4848_v49 = vpop.f32.mrb[82].mxu0  ;;  %v4889_v8 = vpop.f32.mrb[82].mxu1 }
 0x775   :  { %v6470_v42 = vmul.f32 -1.442695, %v4892_v31  ;;  %v4849_v45 = vpop.f32.mrb[83].mxu0  ;;  %v4890_v4 = vpop.f32.mrb[83].mxu1 }
 0x776   :  { %v6471_v11 = vmul.f32 -1.442695, %v4893_v48  ;;  %v6472_v9 = vmul.f32 -1.442695, %v4895_v37 }
 0x777   :  { %7213 = vpow2.f32 %v6470_v42 }
 0x778   :  { %7215 = vpow2.f32 %v6471_v11 }
 0x779   :  { %7217 = vpow2.f32 %v6472_v9 }
 0x77a   :  { %7219 = vtanh.f32 %v4894_v20 }
 0x781   :  { %v7214_v44 = vpop.eup %7213 }
 0x782   :  { %v7216_v15 = vpop.eup %7215  ;;  %v4899_v59 = vadd.f32 1.0, %v7214_v44 }
 0x783   :  { %v4905_v33 = vadd.f32 1.0, %v7216_v15  ;;  %v7218_v5 = vpop.eup %7217  ;;  %v9840_v15 = vld [vmem:[#allocation76_spill] sm:$0xff] }
 0x784   :  { %7221 = vrcp.f32 %v4899_v59  ;;  %v7220_v0 = vpop.eup %7219  ;;  %v4912_v19 = vadd.f32 1.0, %v7218_v5  ;;  %v9842_v5 = vld [vmem:[#allocation78_spill] sm:$0xff] }
 0x785   :  { %7223 = vrcp.f32 %v4905_v33  ;;  %v9841_v33 = vld [vmem:[#allocation77_spill] sm:$0xff] }
 0x786   :  { %7225 = vrcp.f32 %v4912_v19 }
 0x78e   :  { %v7222_v16 = vpop.eup %7221 }
 0x78f   :  { %v7224_v34 = vpop.eup %7223  ;;  %v4916_v53 = vmul.f32 %v7222_v16, %v7220_v0  ;;  %v9845_v0 = vld [vmem:[#allocation81_spill] sm:$0xff]  ;;  %v9848_v16 = vld [vmem:[#allocation32_spill] sm:$0xff] }
 0x790   :  { %v4915_v62 = vmul.f32 %v7224_v34, %v9337_v22  ;;  %v7226_v48 = vpop.eup %7225 }
 0x792   :  { %v4917_v35 = vadd.f32 %v4916_v53, %v4915_v62  ;;  %v5164_v56 = vpop.f32.mrb[84].mxu0  ;;  %v5205_v6 = vpop.f32.mrb[84].mxu1  ;;  %v9849_v53 = vld [vmem:[#allocation33_spill] sm:$0xff] }
 0x793   :  { %v5212_v43 = vadd.f32 %v5164_v56, %v9834_v27  ;;  %v5214_v24 = vadd.f32 %v5205_v6, %v9835_v38  ;;  %v5166_v29 = vpop.f32.mrb[85].mxu0  ;;  %v5207_v13 = vpop.f32.mrb[85].mxu1  ;;  %v9852_v27 = vld [vmem:[#allocation47_spill] sm:$0xff] }
 0x794   :  { %7227 = vtanh.f32 %v4917_v35  ;;  %v5213_v39 = vadd.f32 %v5166_v29, %v9836_v21  ;;  %v5215_v25 = vadd.f32 %v5207_v13, %v9837_v60  ;;  %v5168_v12 = vpop.f32.mrb[86].mxu0  ;;  %v5209_v31 = vpop.f32.mrb[86].mxu1  ;;  %v9503_v3 = vsel %vm4926_vm7, %v4917_v35, %v9337_v22  ;;  %v9854_v13 = vld [vmem:[#allocation49_spill] sm:$0xff] }
 0x795   :  { %v6506_v20 = vmul.f32 -1.442695, %v5212_v43  ;;  %v5169_v51 = vpop.f32.mrb[87].mxu0  ;;  %v5210_v46 = vpop.f32.mrb[87].mxu1 }
 0x796   :  { %v6507_v18 = vmul.f32 -1.442695, %v5213_v39  ;;  %v6508_v37 = vmul.f32 -1.442695, %v5215_v25 }
 0x797   :  { %7229 = vpow2.f32 %v6506_v20 }
 0x798   :  { %7231 = vpow2.f32 %v6507_v18 }
 0x799   :  { %7233 = vpow2.f32 %v6508_v37 }
 0x79a   :  { %7235 = vtanh.f32 %v5214_v24  ;;  %v9853_v24 = vld [vmem:[#allocation48_spill] sm:$0xff] }
 0x79e   :  { %v7228_v52 = vpop.eup %7227 }
 0x79f   :  { %v4919_v49 = vmul.f32 %v7228_v52, %v7226_v48 }
 0x7a1   :  { %v7230_v8 = vpop.eup %7229  ;;  %v9507_v42 = vsel %vm4926_vm7, %v4919_v49, %v9345_v32  ;;  %v4929_v45 = vsel %vm4926_vm7, %v4919_v49, 0.0 }
 0x7a2   :  { %v7232_v4 = vpop.eup %7231  ;;  %v5219_v22 = vadd.f32 1.0, %v7230_v8  ;;  %v4930_v11 = vpack.c.bf16 %v4929_v45, %v4929_v45  ;;  %v5257_v9 = vpack.c.bf16 %v9507_v42, %v9507_v42 }
 0x7a3   :  { %v5225_v44 = vadd.f32 1.0, %v7232_v4  ;;  %v7234_v32 = vpop.eup %7233 }
 0x7a4   :  { %7237 = vrcp.f32 %v5219_v22  ;;  %4931 = vst [vmem:[%s9613_s9 + $0x18] sm:$0xf] %v4930_v11  ;;  %5483 = vmatmul.mubr.bf16.vlgmr.msra.gmra.mrb[88].mxu0 %v5257_v9  ;;  %5524 = vmatmul.mubr.bf16.vlgmr.msra.gmra.mrb[88].mxu1 %v5257_v9 }
 0x7a5   :  { %7239 = vrcp.f32 %v5225_v44  ;;  %5770 = vmatpush1.bf16.msra.mxu0 %v9339_v23  ;;  %5811 = vmatpush1.bf16.msra.mxu1 %v9341_v26  ;;  %v7236_v23 = vpop.eup %7235  ;;  %v9838_v26 = vld [vmem:[#allocation74_spill] sm:$0xff] }
 0x7a6   :  { %5771 = vmatprep.subr.bf16.mxu0 %v9350_v14  ;;  %5812 = vmatprep.subr.bf16.mxu1 %v9352_v50  ;;  %v9839_v50 = vld [vmem:[#allocation75_spill] sm:$0xff] }
 0x7a7   :  { %5801 = vmatprep.mubr.bf16.mxu0 %v9675_v61  ;;  %5842 = vmatprep.mubr.bf16.mxu1 %v9675_v61 }
 0x7a9   :  { %5772 = vmatpush1.bf16.msra.mxu0 %v9359_v17  ;;  %5813 = vmatpush1.bf16.msra.mxu1 %v9361_v58  ;;  %v5232_v17 = vadd.f32 1.0, %v7234_v32 }
 0x7aa   :  { %5773 = vmatprep.subr.bf16.mxu0 %v9365_v30  ;;  %5814 = vmatprep.subr.bf16.mxu1 %v9367_v36  ;;  %v5245_v30 = vpop.permute.xlu1 %5244 }
 0x7ab   :  { %vm5246_vm8 = vcmp.eq.s32.totalorder %v5245_v30, 1  ;;  %7241 = vrcp.f32 %v5232_v17 }
 0x7ad   :  { %5774 = vmatpush1.bf16.msra.mxu0 %v9373_v40  ;;  %5815 = vmatpush1.bf16.msra.mxu1 %v9838_v26 }
 0x7ae   :  { %v7238_v14 = vpop.eup %7237  ;;  %5775 = vmatprep.subr.bf16.mxu0 %v9839_v50  ;;  %5816 = vmatprep.subr.bf16.mxu1 %v9840_v15 }
 0x7af   :  { %v7240_v61 = vpop.eup %7239  ;;  %v5236_v59 = vmul.f32 %v7238_v14, %v7236_v23  ;;  %v9855_v23 = vld [vmem:[#allocation50_spill] sm:$0xff]  ;;  %v9856_v14 = vld [vmem:[#allocation51_spill] sm:$0xff] }
 0x7b0   :  { %v5235_v58 = vmul.f32 %v7240_v61, %v9410_v55 }
 0x7b1   :  { %5776 = vmatpush1.bf16.msra.mxu0 %v9385_v41  ;;  %5817 = vmatpush1.bf16.msra.mxu1 %v9387_v47  ;;  %v9843_v41 = vld [vmem:[#allocation79_spill] sm:$0xff]  ;;  %v9844_v47 = vld [vmem:[#allocation80_spill] sm:$0xff] }
 0x7b2   :  { %v5237_v36 = vadd.f32 %v5236_v59, %v5235_v58  ;;  %5777 = vmatprep.subr.bf16.mxu0 %v9391_v54  ;;  %5818 = vmatprep.subr.bf16.mxu1 %v9393_v28  ;;  %v9846_v54 = vld [vmem:[#allocation30_spill] sm:$0xff]  ;;  %v9847_v28 = vld [vmem:[#allocation31_spill] sm:$0xff]  ;;  %v9857_v59 = vld [vmem:[#allocation52_spill] sm:$0xff] }
 0x7b3   :  { %v9858_v58 = vld [vmem:[#allocation53_spill] sm:$0xff] }
 0x7b4   :  { %7243 = vtanh.f32 %v5237_v36  ;;  %v9536_v40 = vsel %vm5246_vm8, %v5237_v36, %v9410_v55  ;;  %v9850_v55 = vld [vmem:[#allocation66_spill] sm:$0xff] }
 0x7b5   :  { %5778 = vmatpush1.bf16.msra.mxu0 %v9841_v33  ;;  %5819 = vmatpush1.bf16.msra.mxu1 %v9842_v5  ;;  %v7242_v34 = vpop.eup %7241 }
 0x7b6   :  { %5779 = vmatprep.subr.bf16.mxu0 %v9843_v41  ;;  %5820 = vmatprep.subr.bf16.mxu1 %v9844_v47 }
 0x7b9   :  { %5780 = vmatpush1.bf16.msra.mxu0 %v9845_v0  ;;  %5821 = vmatpush1.bf16.msra.mxu1 %v9846_v54  ;;  %v5565_v54 = vpop.permute.xlu0 %5564 }
 0x7ba   :  { %5781 = vmatprep.subr.bf16.mxu0 %v9847_v28  ;;  %5822 = vmatprep.subr.bf16.mxu1 %v9848_v16  ;;  %vm5566_vm9 = vcmp.eq.s32.totalorder %v5565_v54, 1 }
 0x7bd   :  { %5782 = vmatpush1.bf16.msra.mxu0 %v9849_v53  ;;  %5823 = vmatpush1.bf16.msra.mxu1 %v9850_v55 }
 0x7be   :  { %v7244_v19 = vpop.eup %7243  ;;  %5783 = vmatprep.subr.bf16.mxu0 %v9432_v57  ;;  %5824 = vmatprep.subr.bf16.mxu1 %v9434_v1  ;;  %v9851_v57 = vld [vmem:[#allocation46_spill] sm:$0xff] }
 0x7bf   :  { %v5239_v62 = vmul.f32 %v7244_v19, %v7242_v34 }
 0x7c1   :  { %5784 = vmatpush1.bf16.msra.mxu0 %v9438_v2  ;;  %5825 = vmatpush1.bf16.msra.mxu1 %v9440_v10  ;;  %v9554_v63 = vsel %vm5246_vm8, %v5239_v62, %v9448_v7  ;;  %v5249_v35 = vsel %vm5246_vm8, %v5239_v62, 0.0 }
 0x7c2   :  { %v5250_v56 = vpack.c.bf16 %v5249_v35, %v5249_v35  ;;  %v5576_v6 = vpack.c.bf16 %v9554_v63, %v9554_v63 }
 0x7c4   :  { %5251 = vst [vmem:[%s9614_s10 + $0x4] sm:$0xf] %v5250_v56  ;;  %5802 = vmatmul.mubr.bf16.vlgmr.msra.gmra.mrb[92].mxu0 %v5576_v6  ;;  %5843 = vmatmul.mubr.bf16.vlgmr.msra.gmra.mrb[92].mxu1 %v5576_v6 }
 0x877   :  { %v5484_v1 = vpop.f32.mrb[88].mxu0  ;;  %v5525_v2 = vpop.f32.mrb[88].mxu1 }
 0x878   :  { %v5532_v10 = vadd.f32 %v5484_v1, %v9851_v57  ;;  %v5534_v43 = vadd.f32 %v5525_v2, %v9852_v27  ;;  %v5486_v7 = vpop.f32.mrb[89].mxu0  ;;  %v5527_v38 = vpop.f32.mrb[89].mxu1 }
 0x879   :  { %v5533_v29 = vadd.f32 %v5486_v7, %v9853_v24  ;;  %v5535_v21 = vadd.f32 %v5527_v38, %v9854_v13  ;;  %v5488_v39 = vpop.f32.mrb[90].mxu0  ;;  %v5529_v60 = vpop.f32.mrb[90].mxu1 }
 0x87a   :  { %v6542_v25 = vmul.f32 -1.442695, %v5532_v10  ;;  %v5489_v12 = vpop.f32.mrb[91].mxu0  ;;  %v5530_v31 = vpop.f32.mrb[91].mxu1 }
 0x87b   :  { %v6543_v20 = vmul.f32 -1.442695, %v5533_v29  ;;  %v6544_v51 = vmul.f32 -1.442695, %v5535_v21 }
 0x87c   :  { %7245 = vpow2.f32 %v6542_v25 }
 0x87d   :  { %7247 = vpow2.f32 %v6543_v20 }
 0x87e   :  { %7249 = vpow2.f32 %v6544_v51 }
 0x87f   :  { %7251 = vtanh.f32 %v5534_v43 }
 0x886   :  { %v7246_v46 = vpop.eup %7245 }
 0x887   :  { %v7248_v18 = vpop.eup %7247  ;;  %v5539_v48 = vadd.f32 1.0, %v7246_v46 }
 0x888   :  { %v5545_v52 = vadd.f32 1.0, %v7248_v18  ;;  %v7250_v37 = vpop.eup %7249 }
 0x889   :  { %7253 = vrcp.f32 %v5539_v48  ;;  %v7252_v49 = vpop.eup %7251  ;;  %v5552_v22 = vadd.f32 1.0, %v7250_v37 }
 0x88a   :  { %7255 = vrcp.f32 %v5545_v52 }
 0x88b   :  { %7257 = vrcp.f32 %v5552_v22 }
 0x893   :  { %v7254_v8 = vpop.eup %7253 }
 0x894   :  { %v7256_v45 = vpop.eup %7255  ;;  %v5556_v4 = vmul.f32 %v7254_v8, %v7252_v49 }
 0x895   :  { %v5555_v11 = vmul.f32 %v7256_v45, %v9503_v3  ;;  %v7258_v0 = vpop.eup %7257 }
 0x897   :  { %v5557_v9 = vadd.f32 %v5556_v4, %v5555_v11  ;;  %v5803_v44 = vpop.f32.mrb[92].mxu0  ;;  %v5844_v32 = vpop.f32.mrb[92].mxu1 }
 0x898   :  { %v5851_v26 = vadd.f32 %v5803_v44, %v9855_v23  ;;  %v5853_v50 = vadd.f32 %v5844_v32, %v9856_v14  ;;  %v5805_v15 = vpop.f32.mrb[93].mxu0  ;;  %v5846_v61 = vpop.f32.mrb[93].mxu1 }
 0x899   :  { %v5852_v17 = vadd.f32 %v5805_v15, %v9857_v59  ;;  %v5854_v30 = vadd.f32 %v5846_v61, %v9858_v58  ;;  %v5807_v36 = vpop.f32.mrb[94].mxu0  ;;  %v5848_v33 = vpop.f32.mrb[94].mxu1  ;;  %7259 = vtanh.f32 %v5557_v9 }
 0x89a   :  { %v6578_v5 = vmul.f32 -1.442695, %v5851_v26  ;;  %v5808_v41 = vpop.f32.mrb[95].mxu0  ;;  %v5849_v3 = vpop.f32.mrb[95].mxu1 }
 0x89b   :  { %v6579_v47 = vmul.f32 -1.442695, %v5852_v17  ;;  %v6580_v16 = vmul.f32 -1.442695, %v5854_v30 }
 0x89c   :  { %7261 = vpow2.f32 %v6578_v5 }
 0x89d   :  { %7263 = vpow2.f32 %v6579_v47 }
 0x89e   :  { %7265 = vpow2.f32 %v6580_v16 }
 0x89f   :  { %7267 = vtanh.f32 %v5853_v50 }
 0x8a3   :  { %v7260_v28 = vpop.eup %7259 }
 0x8a4   :  { %v5559_v34 = vmul.f32 %v7260_v28, %v7258_v0 }
 0x8a6   :  { %v7262_v53 = vpop.eup %7261  ;;  %v5567_v55 = vsel %vm5566_vm9, %v5559_v34, %v9507_v42  ;;  %v5569_v19 = vsel %vm5566_vm9, %v5559_v34, 0.0 }
 0x8a7   :  { %v7264_v62 = vpop.eup %7263  ;;  %v5858_v35 = vadd.f32 1.0, %v7262_v53  ;;  %v5570_v56 = vpack.c.bf16 %v5569_v19, %v5569_v19  ;;  %5898 = vst [vmem:[#allocation14] sm:$0xff] %v5567_v55 }
 0x8a8   :  { %v5864_v6 = vadd.f32 1.0, %v7264_v62 }
 0x8a9   :  { %7358 = shalt.err (!%p7355_p0)
}
 0x8aa   :  { %s7359_s29 = scalar_lea.hbm %s9615_s11, 128 }
 0x8ab   :  { %p7360_p1 = scmp.ne.s32.totalorder %s9615_s11, %s7359_s29  ;;  %p7363_p2 = scmp.lt.u32.totalorder %s7359_s29, %s9615_s11 }
 0x8ad   :  { %p7365_p3 = pnand %p7363_p2, %p7360_p1 }
 0x8af   :  { %7368 = shalt.err (!%p7365_p3)
}
 0x8b0   :  { %5921 = dma.vmem_to_hbm [thread:$0]  %s5919_s28, 128, %s9615_s11, [#allocation10]   ;;  %7269 = vrcp.f32 %v5858_v35  ;;  %5571 = vst [vmem:[%s9613_s9 + $0x1c] sm:$0xf] %v5570_v56  ;;  %v7266_v42 = vpop.eup %7265  ;;  %v5884_v24 = vpop.permute.xlu1 %5883 }
 0x8b1   :  { %7271 = vrcp.f32 %v5864_v6  ;;  %v7268_v1 = vpop.eup %7267  ;;  %v5871_v27 = vadd.f32 1.0, %v7266_v42  ;;  %s7407_s11 = smov [#allocation15]   ;;  %vm5885_vm10 = vcmp.eq.s32.totalorder %v5884_v24, 1 }
 0x8b2   :  { %s5928_s20 = sshll.u32 %s7407_s11, 4  ;;  %s5929_s20 = int_to_ptr.vmem [resolvable:$true] %s5928_s20 }
 0x8b3   :  { %7273 = vrcp.f32 %v5871_v27  ;;  %s7369_s9 = scalar_lea.vmem %s5929_s20, 128  ;;  %p7374_p5 = scmp.lt.s32.totalorder %s5929_s20, %s5929_s20 }
 0x8b4   :  { %p7370_p4 = scmp.ne.s32.totalorder %s5929_s20, %s7369_s9  ;;  %p7375_p6 = scmp.lt.s32.totalorder %s7369_s9, %s7369_s9 }
 0x8b6   :  { %p7376_p7 = por %p7375_p6, %p7374_p5 }
 0x8b8   :  { %p7377_p8 = pnand %p7376_p7, %p7370_p4 }
 0x8ba   :  { %v7270_v2 = vpop.eup %7269 }
 0x8bb   :  { %v7272_v57 = vpop.eup %7271  ;;  %v5875_v10 = vmul.f32 %v7270_v2, %v7268_v1 }
 0x8bc   :  { %v5874_v43 = vmul.f32 %v7272_v57, %v9536_v40 }
 0x8bd   :  { %v7274_v38 = vpop.eup %7273 }
 0x8be   :  { %v5876_v7 = vadd.f32 %v5875_v10, %v5874_v43 }
 0x8c0   :  { %7275 = vtanh.f32 %v5876_v7 }
 0x8ca   :  { %v7276_v29 = vpop.eup %7275 }
 0x8cb   :  { %v5878_v13 = vmul.f32 %v7276_v29, %v7274_v38 }
 0x8cd   :  { %v5886_v21 = vsel %vm5885_vm10, %v5878_v13, %v9554_v63  ;;  %v5888_v39 = vsel %vm5885_vm10, %v5878_v13, 0.0 }
 0x8ce   :  { %v5889_v60 = vpack.c.bf16 %v5888_v39, %v5888_v39  ;;  %5899 = vst [vmem:[#allocation15] sm:$0xff] %v5886_v21 }
 0x8cf   :  { %7380 = shalt.err (!%p7377_p8)
}
 0x8d0   :  { %s7381_s21 = scalar_lea.hbm %s9616_s12, 128 }
 0x8d1   :  { %p7382_p9 = scmp.ne.s32.totalorder %s9616_s12, %s7381_s21  ;;  %p7385_p10 = scmp.lt.u32.totalorder %s7381_s21, %s9616_s12 }
 0x8d3   :  { %p7387_p11 = pnand %p7385_p10, %p7382_p9 }
 0x8d5   :  { %7390 = shalt.err (!%p7387_p11)
}
 0x8d6   :  { %5931 = dma.vmem_to_hbm [thread:$0]  %s5929_s20, 128, %s9616_s12, [#allocation16]   ;;  %5890 = vst [vmem:[%s9614_s10] sm:$0xf] %v5889_v60 }
 0x8d7   :  { %7395 = dma.done.wait [#allocation10], 128  }
 0x8d8   :  { %7396 = vsyncadd [#allocation10], 4294967168 }
 0x8d9   :  { %7397 = dma.done.wait [#allocation16], 128  }
 0x8da   :  { %7398 = vsyncadd [#allocation16], 4294967168 }
 0x8db   :  { %5948 = vsyncpa [#allocation9], 1 }
 0x8dc   :  { %5949 = vsyncpa [#allocation12], 1 }
 0x8dd   :  { %5950 = vsyncpa [#allocation10], 1 }
 0x8de   :  { %5951 = vsyncpa [#allocation16], 1 }

// kernel: bilstm_forward.3
= control target key start
LH: loop header
LB: loop body
LE: loop exit
PB: predicated region body
PF: predicated region fallthrough
CT: control target
= control target key end

     0   :  { %s11027_s0 = inlined_call_operand.vmem [shape: s32[8,1], index: 0, kind: input, shape index: {}]   ;;  %s11028_s1 = inlined_call_operand.vmem [shape: bf16[64,128], index: 1, kind: input, shape index: {}, may-alias: {1,3}]   ;;  %s11029_s2 = inlined_call_operand.vmem [shape: bf16[64,128], index: 2, kind: input, shape index: {}, may-alias: {2,4}]   ;;  %s11030_s3 = inlined_call_operand.vmem [shape: bf16[64,128], index: 3, kind: input, shape index: {}, may-alias: {1,3}]   ;;  %s11031_s4 = inlined_call_operand.vmem [shape: bf16[64,128], index: 4, kind: input, shape index: {}, may-alias: {2,4}]   ;;  %s11032_s5 = inlined_call_operand.vmem [shape: bf16[128,512], index: 5, kind: input, shape index: {}]   ;;  %s11033_s6 = inlined_call_operand.vmem [shape: bf16[128,512], index: 6, kind: input, shape index: {}]   ;;  %s11034_s7 = inlined_call_operand.vmem [shape: bf16[128,512], index: 7, kind: input, shape index: {}]   ;;  %s11035_s8 = inlined_call_operand.hbm [shape: bf16[128,512], index: 8, kind: input, shape index: {}]   ;;  %s11036_s9 = inlined_call_operand.vmem [shape: f32[1,512], index: 9, kind: input, shape index: {}]   ;;  %s11037_s10 = inlined_call_operand.vmem [shape: f32[1,512], index: 10, kind: input, shape index: {}]   ;;  %s11038_s11 = inlined_call_operand.hbm [shape: bf16[128,512], index: 11, kind: input, shape index: {}]   ;;  %s11039_s12 = inlined_call_operand.hbm [shape: bf16[128,512], index: 12, kind: input, shape index: {}]   ;;  %s11040_s13 = inlined_call_operand.hbm [shape: bf16[64,128], index: 13, kind: output, shape index: {0}]   ;;  %s11041_s14 = inlined_call_operand.hbm [shape: bf16[64,128], index: 14, kind: output, shape index: {1}]   ;;  %s11042_s15 = inlined_call_operand.vmem [shape: f32[8,128], index: 15, kind: output, shape index: {2}]   ;;  %s11043_s16 = inlined_call_operand.vmem [shape: f32[8,128], index: 16, kind: output, shape index: {3}]  }
   0x1   :  { %11100 = sst [smem:[#allocation82_spill]] %s11027_s0 }
   0x2   :  { %22 = vsyncpa [#allocation9], 0 }
   0x3   :  { %23 = vsyncpa [#allocation12], 0 }
   0x4   :  { %24 = vsyncpa [#allocation10], 0 }
   0x5   :  { %25 = vsyncpa [#allocation16], 0  ;;  %s8896_s21 = smov [#allocation11]   ;;  %s8897_s23 = smov [#allocation8]  }
   0x6   :  { %s79_s22 = sshll.u32 %s8896_s21, 4  ;;  %s63_s24 = sshll.u32 %s8897_s23, 4  ;;  %s80_s22 = int_to_ptr.vmem [resolvable:$true] %s79_s22  ;;  %s8992_s24 = int_to_ptr.vmem [resolvable:$true] %s63_s24 }
   0x7   :  { %s8778_s27 = scalar_lea.hbm %s11038_s11, 4096 }
   0x8   :  { %p8779_p0 = scmp.ne.s32.totalorder %s11038_s11, %s8778_s27  ;;  %p8782_p1 = scmp.lt.u32.totalorder %s8778_s27, %s11038_s11 }
   0xa   :  { %p8784_p2 = pnand %p8782_p1, %p8779_p0 }
   0xc   :  { %8787 = shalt.err (!%p8784_p2)
}
   0xd   :  { %s8788_s17 = scalar_lea.vmem %s80_s22, 4096  ;;  %p8793_p4 = scmp.lt.s32.totalorder %s80_s22, %s80_s22 }
   0xe   :  { %p8789_p3 = scmp.ne.s32.totalorder %s80_s22, %s8788_s17  ;;  %p8794_p5 = scmp.lt.s32.totalorder %s8788_s17, %s8788_s17 }
  0x10   :  { %p8795_p6 = por %p8794_p5, %p8793_p4 }
  0x12   :  { %p8796_p7 = pnand %p8795_p6, %p8789_p3 }
  0x14   :  { %8799 = shalt.err (!%p8796_p7)
}
  0x15   :  { %s8898_s18 = smov 256   ;;  %s8899_s19 = smov 16  }
  0x16   :  { %85 = dma.hbm_to_vmem [thread:$0]  %s11038_s11, 4096, %s80_s22, [#allocation12], %s8898_s18, %s8898_s18, %s8899_s19  }
  0x17   :  { %s8800_s26 = scalar_lea.hbm %s11035_s8, 4096 }
  0x18   :  { %p8801_p8 = scmp.ne.s32.totalorder %s11035_s8, %s8800_s26  ;;  %p8804_p9 = scmp.lt.u32.totalorder %s8800_s26, %s11035_s8 }
  0x1a   :  { %p8806_p10 = pnand %p8804_p9, %p8801_p8 }
  0x1c   :  { %8809 = shalt.err (!%p8806_p10)
}
  0x1d   :  { %s8810_s0 = scalar_lea.vmem %s8992_s24, 4096  ;;  %p8815_p12 = scmp.lt.s32.totalorder %s8992_s24, %s8992_s24 }
  0x1e   :  { %p8811_p11 = scmp.ne.s32.totalorder %s8992_s24, %s8810_s0  ;;  %p8816_p13 = scmp.lt.s32.totalorder %s8810_s0, %s8810_s0 }
  0x20   :  { %p8817_p0 = por %p8816_p13, %p8815_p12 }
  0x22   :  { %p8818_p1 = pnand %p8817_p0, %p8811_p11 }
  0x24   :  { %8821 = shalt.err (!%p8818_p1)
}
  0x25   :  { %69 = dma.hbm_to_vmem [thread:$0]  %s11035_s8, 4096, %s8992_s24, [#allocation9], %s8898_s18, %s8898_s18, %s8899_s19  }
  0x26   :  { %s8900_s17 = smov [#allocation13]   ;;  %s8822_s25 = scalar_lea.hbm %s11039_s12, 4096 }
  0x27   :  { %s91_s20 = sshll.u32 %s8900_s17, 4  ;;  %p8823_p2 = scmp.ne.s32.totalorder %s11039_s12, %s8822_s25  ;;  %s92_s20 = int_to_ptr.vmem [resolvable:$true] %s91_s20 }
  0x28   :  { %p8826_p3 = scmp.lt.u32.totalorder %s8822_s25, %s11039_s12 }
  0x2a   :  { %p8828_p4 = pnand %p8826_p3, %p8823_p2 }
  0x2c   :  { %8831 = shalt.err (!%p8828_p4)
}
  0x2d   :  { %s8832_s30 = scalar_lea.vmem %s92_s20, 4096  ;;  %p8837_p6 = scmp.lt.s32.totalorder %s92_s20, %s92_s20 }
  0x2e   :  { %p8833_p5 = scmp.ne.s32.totalorder %s92_s20, %s8832_s30  ;;  %p8838_p7 = scmp.lt.s32.totalorder %s8832_s30, %s8832_s30 }
  0x30   :  { %p8839_p8 = por %p8838_p7, %p8837_p6 }
  0x32   :  { %p8840_p9 = pnand %p8839_p8, %p8833_p5 }
  0x34   :  { %8843 = shalt.err (!%p8840_p9)
}
  0x35   :  { %97 = dma.hbm_to_vmem [thread:$0]  %s11039_s12, 4096, %s92_s20, [#allocation12], %s8898_s18, %s8898_s18, %s8899_s19  }
  0x36   :  { %8888 = dma.done.wait [#allocation9], 4096  }
  0x37   :  { %8889 = vsyncadd [#allocation9], 4294963200 }
  0x38   :  { %8890 = dma.done.wait [#allocation12], 8192  }
  0x39   :  { %8891 = vsyncadd [#allocation12], 4294959104  ;;  %v11053_v0 = vmov 0   ;;  %v7930_v1 = vld [vmem:[%s11032_s5 + $0x4] ss:$16 sps:$4 sm:$0xff]   ;;  %v7991_v44 = vld [vmem:[%s11028_s1 + $0x8] sm:$0xff]  }
  0x3a   :  { %403 = vmatprep.mubr.bf16.mxu0 %v11053_v0  ;;  %476 = vmatprep.mubr.bf16.mxu1 %v11053_v0  ;;  %v7932_v2 = vld [vmem:[%s11032_s5 + $0xc] ss:$16 sps:$4 sm:$0xff]   ;;  %v7934_v3 = vld [vmem:[%s11032_s5] ss:$16 sps:$4 sm:$0xff]   ;;  %v7935_v4 = vld [vmem:[%s11032_s5 + $0x8] ss:$16 sps:$4 sm:$0xff]  }
  0x3b   :  { %7928 = vset.pattern.permute.xlu0 %v11053_v0  ;;  %7929 = vset.pattern.permute.xlu1 %v11053_v0  ;;  %v7936_v5 = vld [vmem:[%s11032_s5 + $0x24] ss:$16 sps:$4 sm:$0xff]   ;;  %v7938_v6 = vld [vmem:[%s11032_s5 + $0x2c] ss:$16 sps:$4 sm:$0xff]   ;;  %v7940_v7 = vld [vmem:[%s11032_s5 + $0x20] ss:$16 sps:$4 sm:$0xff]  }
  0x3c   :  { %371 = vmatprep.subr.bf16.mxu0 %v7930_v1  ;;  %444 = vmatprep.subr.bf16.mxu1 %v7932_v2  ;;  %v7941_v8 = vld [vmem:[%s11032_s5 + $0x28] ss:$16 sps:$4 sm:$0xff]   ;;  %v7942_v9 = vld [vmem:[%s11032_s5 + $0x44] ss:$16 sps:$4 sm:$0xff]   ;;  %v7944_v10 = vld [vmem:[%s11032_s5 + $0x4c] ss:$16 sps:$4 sm:$0xff]  }
  0x3d   :  { %372 = vmatpush1.bf16.msra.mxu0 %v7934_v3  ;;  %445 = vmatpush1.bf16.msra.mxu1 %v7935_v4  ;;  %v7946_v11 = vld [vmem:[%s11032_s5 + $0x40] ss:$16 sps:$4 sm:$0xff]   ;;  %v7947_v12 = vld [vmem:[%s11032_s5 + $0x48] ss:$16 sps:$4 sm:$0xff]   ;;  %v7948_v13 = vld [vmem:[%s11032_s5 + $0x64] ss:$16 sps:$4 sm:$0xff]  }
  0x3e   :  { %373 = vmatprep.subr.bf16.mxu0 %v7936_v5  ;;  %446 = vmatprep.subr.bf16.mxu1 %v7938_v6  ;;  %v7950_v14 = vld [vmem:[%s11032_s5 + $0x6c] ss:$16 sps:$4 sm:$0xff]   ;;  %v7952_v15 = vld [vmem:[%s11032_s5 + $0x60] ss:$16 sps:$4 sm:$0xff]   ;;  %v7953_v16 = vld [vmem:[%s11032_s5 + $0x68] ss:$16 sps:$4 sm:$0xff]  }
  0x3f   :  { %v7954_v17 = vld [vmem:[%s11032_s5 + $0x84] ss:$16 sps:$4 sm:$0xff]   ;;  %v7956_v18 = vld [vmem:[%s11032_s5 + $0x8c] ss:$16 sps:$4 sm:$0xff]   ;;  %v7958_v19 = vld [vmem:[%s11032_s5 + $0x80] ss:$16 sps:$4 sm:$0xff]  }
  0x40   :  { %v7959_v20 = vld [vmem:[%s11032_s5 + $0x88] ss:$16 sps:$4 sm:$0xff]   ;;  %v7960_v21 = vld [vmem:[%s11032_s5 + $0xa4] ss:$16 sps:$4 sm:$0xff]   ;;  %v7962_v22 = vld [vmem:[%s11032_s5 + $0xac] ss:$16 sps:$4 sm:$0xff]  }
  0x41   :  { %374 = vmatpush1.bf16.msra.mxu0 %v7940_v7  ;;  %447 = vmatpush1.bf16.msra.mxu1 %v7941_v8  ;;  %v7964_v23 = vld [vmem:[%s11032_s5 + $0xa0] ss:$16 sps:$4 sm:$0xff]   ;;  %v7965_v24 = vld [vmem:[%s11032_s5 + $0xa8] ss:$16 sps:$4 sm:$0xff]   ;;  %v7966_v25 = vld [vmem:[%s11032_s5 + $0xc4] ss:$16 sps:$4 sm:$0xff]  }
  0x42   :  { %375 = vmatprep.subr.bf16.mxu0 %v7942_v9  ;;  %448 = vmatprep.subr.bf16.mxu1 %v7944_v10  ;;  %v7968_v26 = vld [vmem:[%s11032_s5 + $0xcc] ss:$16 sps:$4 sm:$0xff]   ;;  %v7970_v27 = vld [vmem:[%s11032_s5 + $0xc0] ss:$16 sps:$4 sm:$0xff]   ;;  %v7971_v28 = vld [vmem:[%s11032_s5 + $0xc8] ss:$16 sps:$4 sm:$0xff]  }
  0x43   :  { %v7972_v29 = vld [vmem:[%s11032_s5 + $0xe4] ss:$16 sps:$4 sm:$0xff]   ;;  %v7974_v30 = vld [vmem:[%s11032_s5 + $0xec] ss:$16 sps:$4 sm:$0xff]   ;;  %v7976_v31 = vld [vmem:[%s11032_s5 + $0xe0] ss:$16 sps:$4 sm:$0xff]  }
  0x44   :  { %v7977_v32 = vld [vmem:[%s11032_s5 + $0xe8] ss:$16 sps:$4 sm:$0xff]   ;;  %v7981_v33 = vld [vmem:[%s11033_s6 + $0x4] ss:$16 sps:$4 sm:$0xff]   ;;  %v7984_v34 = vld [vmem:[%s11033_s6 + $0xc] ss:$16 sps:$4 sm:$0xff]  }
  0x45   :  { %376 = vmatpush1.bf16.msra.mxu0 %v7946_v11  ;;  %449 = vmatpush1.bf16.msra.mxu1 %v7947_v12  ;;  %v7978_v35 = vld [vmem:[%s11028_s1] sm:$0xff]   ;;  %v7982_v37 = vld [vmem:[%s11033_s6 + $0x8] ss:$16 sps:$4 sm:$0xff]   ;;  %v7990_v39 = vld [vmem:[%s11033_s6 + $0x2c] ss:$16 sps:$4 sm:$0xff]   ;;  %s11101_s19 = sld [smem:[#allocation82_spill]] }
  0x46   :  { %377 = vmatprep.subr.bf16.mxu0 %v7948_v13  ;;  %450 = vmatprep.subr.bf16.mxu1 %v7950_v14  ;;  %v7979_v36 = vld [vmem:[%s11033_s6] ss:$16 sps:$4 sm:$0xff]   ;;  %v7987_v38 = vld [vmem:[%s11033_s6 + $0x24] ss:$16 sps:$4 sm:$0xff]   ;;  %v7988_v41 = vld [vmem:[%s11033_s6 + $0x28] ss:$16 sps:$4 sm:$0xff]  }
  0x47   :  { %v7985_v40 = vld [vmem:[%s11033_s6 + $0x20] ss:$16 sps:$4 sm:$0xff]   ;;  %v7994_v42 = vld [vmem:[%s11033_s6 + $0x44] ss:$16 sps:$4 sm:$0xff]   ;;  %v7997_v43 = vld [vmem:[%s11033_s6 + $0x4c] ss:$16 sps:$4 sm:$0xff]  }
  0x48   :  { %v7992_v45 = vld [vmem:[%s11033_s6 + $0x40] ss:$16 sps:$4 sm:$0xff]   ;;  %v7995_v46 = vld [vmem:[%s11033_s6 + $0x48] ss:$16 sps:$4 sm:$0xff]   ;;  %v8000_v47 = vld [vmem:[%s11033_s6 + $0x64] ss:$16 sps:$4 sm:$0xff]  }
  0x49   :  { %378 = vmatpush1.bf16.msra.mxu0 %v7952_v15  ;;  %451 = vmatpush1.bf16.msra.mxu1 %v7953_v16  ;;  %v8003_v48 = vld [vmem:[%s11033_s6 + $0x6c] ss:$16 sps:$4 sm:$0xff]   ;;  %v7998_v49 = vld [vmem:[%s11033_s6 + $0x60] ss:$16 sps:$4 sm:$0xff]   ;;  %v8001_v50 = vld [vmem:[%s11033_s6 + $0x68] ss:$16 sps:$4 sm:$0xff]  }
  0x4a   :  { %379 = vmatprep.subr.bf16.mxu0 %v7954_v17  ;;  %452 = vmatprep.subr.bf16.mxu1 %v7956_v18  ;;  %v8007_v51 = vld [vmem:[%s11033_s6 + $0x84] ss:$16 sps:$4 sm:$0xff]   ;;  %v8010_v52 = vld [vmem:[%s11033_s6 + $0x8c] ss:$16 sps:$4 sm:$0xff]   ;;  %v8005_v54 = vld [vmem:[%s11033_s6 + $0x80] ss:$16 sps:$4 sm:$0xff]  }
  0x4b   :  { %v8004_v53 = vld [vmem:[%s11028_s1 + $0x10] sm:$0xff]   ;;  %v8008_v55 = vld [vmem:[%s11033_s6 + $0x88] ss:$16 sps:$4 sm:$0xff]   ;;  %v8016_v57 = vld [vmem:[%s11033_s6 + $0xac] ss:$16 sps:$4 sm:$0xff]  }
  0x4c   :  { %v8013_v56 = vld [vmem:[%s11033_s6 + $0xa4] ss:$16 sps:$4 sm:$0xff]   ;;  %v8011_v58 = vld [vmem:[%s11033_s6 + $0xa0] ss:$16 sps:$4 sm:$0xff]   ;;  %v8014_v59 = vld [vmem:[%s11033_s6 + $0xa8] ss:$16 sps:$4 sm:$0xff]  }
  0x4d   :  { %380 = vmatpush1.bf16.msra.mxu0 %v7958_v19  ;;  %453 = vmatpush1.bf16.msra.mxu1 %v7959_v20  ;;  %v8020_v60 = vld [vmem:[%s11033_s6 + $0xc4] ss:$16 sps:$4 sm:$0xff]   ;;  %v8023_v61 = vld [vmem:[%s11033_s6 + $0xcc] ss:$16 sps:$4 sm:$0xff]   ;;  %v8018_v63 = vld [vmem:[%s11033_s6 + $0xc0] ss:$16 sps:$4 sm:$0xff]  }
  0x4e   :  { %381 = vmatprep.subr.bf16.mxu0 %v7960_v21  ;;  %454 = vmatprep.subr.bf16.mxu1 %v7962_v22  ;;  %v8017_v62 = vld [vmem:[%s11028_s1 + $0x18] sm:$0xff]   ;;  %v8026_v2 = vld [vmem:[%s11033_s6 + $0xe4] ss:$16 sps:$4 sm:$0xff]   ;;  %v8024_v4 = vld [vmem:[%s11033_s6 + $0xe0] ss:$16 sps:$4 sm:$0xff]  }
  0x4f   :  { %v8021_v1 = vld [vmem:[%s11033_s6 + $0xc8] ss:$16 sps:$4 sm:$0xff]   ;;  %v8029_v3 = vld [vmem:[%s11033_s6 + $0xec] ss:$16 sps:$4 sm:$0xff]   ;;  %v8033_v6 = vld [vmem:[%s11034_s7 + $0x4] ss:$16 sps:$4 sm:$0xff]  }
  0x50   :  { %v8027_v5 = vld [vmem:[%s11033_s6 + $0xe8] ss:$16 sps:$4 sm:$0xff]   ;;  %v8036_v7 = vld [vmem:[%s11034_s7 + $0xc] ss:$16 sps:$4 sm:$0xff]   ;;  %v8030_v8 = vld [vmem:[%s11029_s2] sm:$0xff]  }
  0x51   :  { %382 = vmatpush1.bf16.msra.mxu0 %v7964_v23  ;;  %455 = vmatpush1.bf16.msra.mxu1 %v7965_v24  ;;  %v8031_v9 = vld [vmem:[%s11034_s7] ss:$16 sps:$4 sm:$0xff]   ;;  %v8034_v10 = vld [vmem:[%s11034_s7 + $0x8] ss:$16 sps:$4 sm:$0xff]   ;;  %v8039_v11 = vld [vmem:[%s11034_s7 + $0x24] ss:$16 sps:$4 sm:$0xff]  }
  0x52   :  { %383 = vmatprep.subr.bf16.mxu0 %v7966_v25  ;;  %456 = vmatprep.subr.bf16.mxu1 %v7968_v26  ;;  %v8042_v12 = vld [vmem:[%s11034_s7 + $0x2c] ss:$16 sps:$4 sm:$0xff]   ;;  %v8037_v13 = vld [vmem:[%s11034_s7 + $0x20] ss:$16 sps:$4 sm:$0xff]   ;;  %v8040_v14 = vld [vmem:[%s11034_s7 + $0x28] ss:$16 sps:$4 sm:$0xff]  }
  0x53   :  { %v8046_v15 = vld [vmem:[%s11034_s7 + $0x44] ss:$16 sps:$4 sm:$0xff]   ;;  %v8049_v16 = vld [vmem:[%s11034_s7 + $0x4c] ss:$16 sps:$4 sm:$0xff]   ;;  %v8044_v18 = vld [vmem:[%s11034_s7 + $0x40] ss:$16 sps:$4 sm:$0xff]  }
  0x54   :  { %v8043_v17 = vld [vmem:[%s11029_s2 + $0x8] sm:$0xff]   ;;  %v8052_v20 = vld [vmem:[%s11034_s7 + $0x64] ss:$16 sps:$4 sm:$0xff]   ;;  %v8050_v22 = vld [vmem:[%s11034_s7 + $0x60] ss:$16 sps:$4 sm:$0xff]  }
  0x55   :  { %384 = vmatpush1.bf16.msra.mxu0 %v7970_v27  ;;  %457 = vmatpush1.bf16.msra.mxu1 %v7971_v28  ;;  %v8047_v19 = vld [vmem:[%s11034_s7 + $0x48] ss:$16 sps:$4 sm:$0xff]   ;;  %v8055_v21 = vld [vmem:[%s11034_s7 + $0x6c] ss:$16 sps:$4 sm:$0xff]   ;;  %v8059_v24 = vld [vmem:[%s11034_s7 + $0x84] ss:$16 sps:$4 sm:$0xff]  }
  0x56   :  { %385 = vmatprep.subr.bf16.mxu0 %v7972_v29  ;;  %458 = vmatprep.subr.bf16.mxu1 %v7974_v30  ;;  %v8053_v23 = vld [vmem:[%s11034_s7 + $0x68] ss:$16 sps:$4 sm:$0xff]   ;;  %v8062_v25 = vld [vmem:[%s11034_s7 + $0x8c] ss:$16 sps:$4 sm:$0xff]   ;;  %v8056_v26 = vld [vmem:[%s11029_s2 + $0x10] sm:$0xff]  }
  0x57   :  { %v8057_v27 = vld [vmem:[%s11034_s7 + $0x80] ss:$16 sps:$4 sm:$0xff]   ;;  %v8060_v28 = vld [vmem:[%s11034_s7 + $0x88] ss:$16 sps:$4 sm:$0xff]   ;;  %v8065_v29 = vld [vmem:[%s11034_s7 + $0xa4] ss:$16 sps:$4 sm:$0xff]  }
  0x58   :  { %v8068_v30 = vld [vmem:[%s11034_s7 + $0xac] ss:$16 sps:$4 sm:$0xff]  }
  0x59   :  { %386 = vmatpush1.bf16.msra.mxu0 %v7976_v31  ;;  %459 = vmatpush1.bf16.msra.mxu1 %v7977_v32  ;;  %v8063_v31 = vld [vmem:[%s11034_s7 + $0xa0] ss:$16 sps:$4 sm:$0xff]   ;;  %v8066_v32 = vld [vmem:[%s11034_s7 + $0xa8] ss:$16 sps:$4 sm:$0xff]  }
  0x5a   :  { %794 = vmatprep.subr.bf16.mxu0 %v7981_v33  ;;  %867 = vmatprep.subr.bf16.mxu1 %v7984_v34  ;;  %v8072_v33 = vld [vmem:[%s11034_s7 + $0xc4] ss:$16 sps:$4 sm:$0xff]   ;;  %v8075_v34 = vld [vmem:[%s11034_s7 + $0xcc] ss:$16 sps:$4 sm:$0xff]  }
  0x5c   :  { %404 = vmatmul.mubr.bf16.vlgmr.msra.gmra.mrb[0].mxu0 %v7978_v35  ;;  %477 = vmatmul.mubr.bf16.vlgmr.msra.gmra.mrb[0].mxu1 %v7978_v35  ;;  %v8069_v35 = vld [vmem:[%s11029_s2 + $0x18] sm:$0xff]  }
  0x5d   :  { %795 = vmatpush1.bf16.msra.mxu0 %v7979_v36  ;;  %868 = vmatpush1.bf16.msra.mxu1 %v7982_v37  ;;  %v8070_v36 = vld [vmem:[%s11034_s7 + $0xc0] ss:$16 sps:$4 sm:$0xff]   ;;  %v8073_v37 = vld [vmem:[%s11034_s7 + $0xc8] ss:$16 sps:$4 sm:$0xff]  }
  0x5e   :  { %796 = vmatprep.subr.bf16.mxu0 %v7987_v38  ;;  %869 = vmatprep.subr.bf16.mxu1 %v7990_v39  ;;  %v8078_v38 = vld [vmem:[%s11034_s7 + $0xe4] ss:$16 sps:$4 sm:$0xff]   ;;  %v8081_v39 = vld [vmem:[%s11034_s7 + $0xec] ss:$16 sps:$4 sm:$0xff]  }
  0x5f   :  { %413 = vmatprep.mubr.bf16.mxu0 %v11053_v0  ;;  %486 = vmatprep.mubr.bf16.mxu1 %v11053_v0 }
  0x61   :  { %797 = vmatpush1.bf16.msra.mxu0 %v7985_v40  ;;  %870 = vmatpush1.bf16.msra.mxu1 %v7988_v41  ;;  %v8076_v40 = vld [vmem:[%s11034_s7 + $0xe0] ss:$16 sps:$4 sm:$0xff]   ;;  %v8079_v41 = vld [vmem:[%s11034_s7 + $0xe8] ss:$16 sps:$4 sm:$0xff]  }
  0x62   :  { %798 = vmatprep.subr.bf16.mxu0 %v7994_v42  ;;  %871 = vmatprep.subr.bf16.mxu1 %v7997_v43  ;;  %v8085_v42 = vld [vmem:[#allocation8 + $0x4] ss:$16 sps:$4 sm:$0xff]   ;;  %v8088_v43 = vld [vmem:[#allocation8 + $0xc] ss:$16 sps:$4 sm:$0xff]  }
  0x64   :  { %414 = vmatmul.mubr.bf16.gmra.mrb[4].mxu0 %v7991_v44  ;;  %487 = vmatmul.mubr.bf16.gmra.mrb[4].mxu1 %v7991_v44  ;;  %v8082_v44 = vld [vmem:[%s11030_s3] sm:$0xff]  }
  0x65   :  { %799 = vmatpush1.bf16.msra.mxu0 %v7992_v45  ;;  %872 = vmatpush1.bf16.msra.mxu1 %v7995_v46  ;;  %v8083_v45 = vld [vmem:[#allocation8] ss:$16 sps:$4 sm:$0xff]   ;;  %v8086_v46 = vld [vmem:[#allocation8 + $0x8] ss:$16 sps:$4 sm:$0xff]  }
  0x66   :  { %800 = vmatprep.subr.bf16.mxu0 %v8000_v47  ;;  %873 = vmatprep.subr.bf16.mxu1 %v8003_v48  ;;  %v8091_v47 = vld [vmem:[#allocation8 + $0x24] ss:$16 sps:$4 sm:$0xff]   ;;  %v8094_v48 = vld [vmem:[#allocation8 + $0x2c] ss:$16 sps:$4 sm:$0xff]  }
  0x67   :  { %423 = vmatprep.mubr.bf16.mxu0 %v11053_v0  ;;  %496 = vmatprep.mubr.bf16.mxu1 %v11053_v0 }
  0x69   :  { %801 = vmatpush1.bf16.msra.mxu0 %v7998_v49  ;;  %874 = vmatpush1.bf16.msra.mxu1 %v8001_v50  ;;  %v8089_v49 = vld [vmem:[#allocation8 + $0x20] ss:$16 sps:$4 sm:$0xff]   ;;  %v8092_v50 = vld [vmem:[#allocation8 + $0x28] ss:$16 sps:$4 sm:$0xff]  }
  0x6a   :  { %802 = vmatprep.subr.bf16.mxu0 %v8007_v51  ;;  %875 = vmatprep.subr.bf16.mxu1 %v8010_v52  ;;  %v8098_v51 = vld [vmem:[#allocation8 + $0x44] ss:$16 sps:$4 sm:$0xff]   ;;  %v8101_v52 = vld [vmem:[#allocation8 + $0x4c] ss:$16 sps:$4 sm:$0xff]  }
  0x6c   :  { %424 = vmatmul.mubr.bf16.gmra.mrb[8].mxu0 %v8004_v53  ;;  %497 = vmatmul.mubr.bf16.gmra.mrb[8].mxu1 %v8004_v53  ;;  %v8095_v53 = vld [vmem:[%s11030_s3 + $0x8] sm:$0xff]  }
  0x6d   :  { %803 = vmatpush1.bf16.msra.mxu0 %v8005_v54  ;;  %876 = vmatpush1.bf16.msra.mxu1 %v8008_v55  ;;  %v8096_v54 = vld [vmem:[#allocation8 + $0x40] ss:$16 sps:$4 sm:$0xff]   ;;  %v8099_v55 = vld [vmem:[#allocation8 + $0x48] ss:$16 sps:$4 sm:$0xff]  }
  0x6e   :  { %804 = vmatprep.subr.bf16.mxu0 %v8013_v56  ;;  %877 = vmatprep.subr.bf16.mxu1 %v8016_v57  ;;  %v8104_v56 = vld [vmem:[#allocation8 + $0x64] ss:$16 sps:$4 sm:$0xff]   ;;  %v8107_v57 = vld [vmem:[#allocation8 + $0x6c] ss:$16 sps:$4 sm:$0xff]  }
  0x6f   :  { %433 = vmatprep.mubr.bf16.mxu0 %v11053_v0  ;;  %506 = vmatprep.mubr.bf16.mxu1 %v11053_v0 }
  0x71   :  { %805 = vmatpush1.bf16.msra.mxu0 %v8011_v58  ;;  %878 = vmatpush1.bf16.msra.mxu1 %v8014_v59  ;;  %v8102_v58 = vld [vmem:[#allocation8 + $0x60] ss:$16 sps:$4 sm:$0xff]   ;;  %v8105_v59 = vld [vmem:[#allocation8 + $0x68] ss:$16 sps:$4 sm:$0xff]  }
  0x72   :  { %806 = vmatprep.subr.bf16.mxu0 %v8020_v60  ;;  %879 = vmatprep.subr.bf16.mxu1 %v8023_v61  ;;  %v8111_v60 = vld [vmem:[#allocation8 + $0x84] ss:$16 sps:$4 sm:$0xff]   ;;  %v8114_v61 = vld [vmem:[#allocation8 + $0x8c] ss:$16 sps:$4 sm:$0xff]  }
  0x74   :  { %434 = vmatmul.mubr.bf16.gmra.mrb[12].mxu0 %v8017_v62  ;;  %507 = vmatmul.mubr.bf16.gmra.mrb[12].mxu1 %v8017_v62  ;;  %v8108_v62 = vld [vmem:[%s11030_s3 + $0x10] sm:$0xff]  }
  0x75   :  { %807 = vmatpush1.bf16.msra.mxu0 %v8018_v63  ;;  %880 = vmatpush1.bf16.msra.mxu1 %v8021_v1  ;;  %v8109_v63 = vld [vmem:[#allocation8 + $0x80] ss:$16 sps:$4 sm:$0xff]   ;;  %v8112_v1 = vld [vmem:[#allocation8 + $0x88] ss:$16 sps:$4 sm:$0xff]  }
  0x76   :  { %808 = vmatprep.subr.bf16.mxu0 %v8026_v2  ;;  %881 = vmatprep.subr.bf16.mxu1 %v8029_v3  ;;  %v8117_v2 = vld [vmem:[#allocation8 + $0xa4] ss:$16 sps:$4 sm:$0xff]   ;;  %v8120_v3 = vld [vmem:[#allocation8 + $0xac] ss:$16 sps:$4 sm:$0xff]  }
  0x77   :  { %826 = vmatprep.mubr.bf16.mxu0 %v11053_v0  ;;  %899 = vmatprep.mubr.bf16.mxu1 %v11053_v0 }
  0x79   :  { %809 = vmatpush1.bf16.msra.mxu0 %v8024_v4  ;;  %882 = vmatpush1.bf16.msra.mxu1 %v8027_v5  ;;  %v8115_v4 = vld [vmem:[#allocation8 + $0xa0] ss:$16 sps:$4 sm:$0xff]   ;;  %v8118_v5 = vld [vmem:[#allocation8 + $0xa8] ss:$16 sps:$4 sm:$0xff]  }
  0x7a   :  { %1229 = vmatprep.subr.bf16.mxu0 %v8033_v6  ;;  %1302 = vmatprep.subr.bf16.mxu1 %v8036_v7  ;;  %v8124_v6 = vld [vmem:[#allocation8 + $0xc4] ss:$16 sps:$4 sm:$0xff]   ;;  %v8127_v7 = vld [vmem:[#allocation8 + $0xcc] ss:$16 sps:$4 sm:$0xff]  }
  0x7c   :  { %827 = vmatmul.mubr.bf16.vlgmr.msra.gmra.mrb[0].mxu0 %v8030_v8  ;;  %900 = vmatmul.mubr.bf16.vlgmr.msra.gmra.mrb[0].mxu1 %v8030_v8  ;;  %v8121_v8 = vld [vmem:[%s11030_s3 + $0x18] sm:$0xff]  }
  0x7d   :  { %1230 = vmatpush1.bf16.msra.mxu0 %v8031_v9  ;;  %1303 = vmatpush1.bf16.msra.mxu1 %v8034_v10  ;;  %v8122_v9 = vld [vmem:[#allocation8 + $0xc0] ss:$16 sps:$4 sm:$0xff]   ;;  %v8125_v10 = vld [vmem:[#allocation8 + $0xc8] ss:$16 sps:$4 sm:$0xff]  }
  0x7e   :  { %1231 = vmatprep.subr.bf16.mxu0 %v8039_v11  ;;  %1304 = vmatprep.subr.bf16.mxu1 %v8042_v12  ;;  %v8130_v11 = vld [vmem:[#allocation8 + $0xe4] ss:$16 sps:$4 sm:$0xff]   ;;  %v8133_v12 = vld [vmem:[#allocation8 + $0xec] ss:$16 sps:$4 sm:$0xff]  }
  0x7f   :  { %836 = vmatprep.mubr.bf16.mxu0 %v11053_v0  ;;  %909 = vmatprep.mubr.bf16.mxu1 %v11053_v0 }
  0x81   :  { %1232 = vmatpush1.bf16.msra.mxu0 %v8037_v13  ;;  %1305 = vmatpush1.bf16.msra.mxu1 %v8040_v14  ;;  %v8128_v13 = vld [vmem:[#allocation8 + $0xe0] ss:$16 sps:$4 sm:$0xff]   ;;  %v8131_v14 = vld [vmem:[#allocation8 + $0xe8] ss:$16 sps:$4 sm:$0xff]  }
  0x82   :  { %1233 = vmatprep.subr.bf16.mxu0 %v8046_v15  ;;  %1306 = vmatprep.subr.bf16.mxu1 %v8049_v16  ;;  %v9394_v15 = vld [vmem:[#allocation11 + $0x4] ss:$16 sps:$4 sm:$0xff]   ;;  %v9396_v16 = vld [vmem:[#allocation11 + $0xc] ss:$16 sps:$4 sm:$0xff]  }
  0x84   :  { %837 = vmatmul.mubr.bf16.gmra.mrb[4].mxu0 %v8043_v17  ;;  %910 = vmatmul.mubr.bf16.gmra.mrb[4].mxu1 %v8043_v17  ;;  %v8134_v17 = vld [vmem:[%s11031_s4] sm:$0xff]  }
  0x85   :  { %1234 = vmatpush1.bf16.msra.mxu0 %v8044_v18  ;;  %1307 = vmatpush1.bf16.msra.mxu1 %v8047_v19  ;;  %v9403_v18 = vld [vmem:[#allocation11] ss:$16 sps:$4 sm:$0xff]   ;;  %v9405_v19 = vld [vmem:[#allocation11 + $0x8] ss:$16 sps:$4 sm:$0xff]  }
  0x86   :  { %1235 = vmatprep.subr.bf16.mxu0 %v8052_v20  ;;  %1308 = vmatprep.subr.bf16.mxu1 %v8055_v21  ;;  %v9407_v20 = vld [vmem:[#allocation11 + $0x24] ss:$16 sps:$4 sm:$0xff]   ;;  %v9411_v21 = vld [vmem:[#allocation11 + $0x2c] ss:$16 sps:$4 sm:$0xff]  }
  0x87   :  { %846 = vmatprep.mubr.bf16.mxu0 %v11053_v0  ;;  %919 = vmatprep.mubr.bf16.mxu1 %v11053_v0 }
  0x89   :  { %1236 = vmatpush1.bf16.msra.mxu0 %v8050_v22  ;;  %1309 = vmatpush1.bf16.msra.mxu1 %v8053_v23  ;;  %v9413_v22 = vld [vmem:[#allocation11 + $0x20] ss:$16 sps:$4 sm:$0xff]   ;;  %v9415_v23 = vld [vmem:[#allocation11 + $0x28] ss:$16 sps:$4 sm:$0xff]  }
  0x8a   :  { %1237 = vmatprep.subr.bf16.mxu0 %v8059_v24  ;;  %1310 = vmatprep.subr.bf16.mxu1 %v8062_v25  ;;  %v9419_v24 = vld [vmem:[#allocation11 + $0x44] ss:$16 sps:$4 sm:$0xff]   ;;  %v9423_v25 = vld [vmem:[#allocation11 + $0x4c] ss:$16 sps:$4 sm:$0xff]  }
  0x8c   :  { %847 = vmatmul.mubr.bf16.gmra.mrb[8].mxu0 %v8056_v26  ;;  %920 = vmatmul.mubr.bf16.gmra.mrb[8].mxu1 %v8056_v26  ;;  %v8147_v26 = vld [vmem:[%s11031_s4 + $0x8] sm:$0xff]  }
  0x8d   :  { %1238 = vmatpush1.bf16.msra.mxu0 %v8057_v27  ;;  %1311 = vmatpush1.bf16.msra.mxu1 %v8060_v28  ;;  %v9430_v27 = vld [vmem:[#allocation11 + $0x40] ss:$16 sps:$4 sm:$0xff]   ;;  %v9432_v28 = vld [vmem:[#allocation11 + $0x48] ss:$16 sps:$4 sm:$0xff]  }
  0x8e   :  { %1239 = vmatprep.subr.bf16.mxu0 %v8065_v29  ;;  %1312 = vmatprep.subr.bf16.mxu1 %v8068_v30  ;;  %v9436_v29 = vld [vmem:[#allocation11 + $0x64] ss:$16 sps:$4 sm:$0xff]   ;;  %v9440_v30 = vld [vmem:[#allocation11 + $0x6c] ss:$16 sps:$4 sm:$0xff]  }
  0x8f   :  { %856 = vmatprep.mubr.bf16.mxu0 %v11053_v0  ;;  %929 = vmatprep.mubr.bf16.mxu1 %v11053_v0 }
  0x91   :  { %1240 = vmatpush1.bf16.msra.mxu0 %v8063_v31  ;;  %1313 = vmatpush1.bf16.msra.mxu1 %v8066_v32  ;;  %v9442_v31 = vld [vmem:[#allocation11 + $0x60] ss:$16 sps:$4 sm:$0xff]   ;;  %v9444_v32 = vld [vmem:[#allocation11 + $0x68] ss:$16 sps:$4 sm:$0xff]  }
  0x92   :  { %1241 = vmatprep.subr.bf16.mxu0 %v8072_v33  ;;  %1314 = vmatprep.subr.bf16.mxu1 %v8075_v34  ;;  %v9448_v33 = vld [vmem:[#allocation11 + $0x84] ss:$16 sps:$4 sm:$0xff]   ;;  %v9452_v34 = vld [vmem:[#allocation11 + $0x8c] ss:$16 sps:$4 sm:$0xff]  }
  0x94   :  { %857 = vmatmul.mubr.bf16.gmra.mrb[12].mxu0 %v8069_v35  ;;  %930 = vmatmul.mubr.bf16.gmra.mrb[12].mxu1 %v8069_v35  ;;  %v8160_v35 = vld [vmem:[%s11031_s4 + $0x10] sm:$0xff]  }
  0x95   :  { %1242 = vmatpush1.bf16.msra.mxu0 %v8070_v36  ;;  %1315 = vmatpush1.bf16.msra.mxu1 %v8073_v37  ;;  %v9459_v36 = vld [vmem:[#allocation11 + $0x80] ss:$16 sps:$4 sm:$0xff]   ;;  %v9461_v37 = vld [vmem:[#allocation11 + $0x88] ss:$16 sps:$4 sm:$0xff]  }
  0x96   :  { %1243 = vmatprep.subr.bf16.mxu0 %v8078_v38  ;;  %1316 = vmatprep.subr.bf16.mxu1 %v8081_v39  ;;  %v9465_v38 = vld [vmem:[#allocation11 + $0xa4] ss:$16 sps:$4 sm:$0xff]  }
  0x97   :  { %1261 = vmatprep.mubr.bf16.mxu0 %v11053_v0  ;;  %1334 = vmatprep.mubr.bf16.mxu1 %v11053_v0  ;;  %v9470_v39 = vld [vmem:[%s11101_s19] sm:$0xff] }
  0x98   :  { %vm7236_vm0 = vcmp.gt.s32.totalorder %v9470_v39, 0  ;;  %vm7272_vm1 = vcmp.gt.s32.totalorder %v9470_v39, 7  ;;  %vm7380_vm2 = vcmp.gt.s32.totalorder %v9470_v39, 2  ;;  %vm7452_vm3 = vcmp.gt.s32.totalorder %v9470_v39, 3 }
  0x99   :  { %1244 = vmatpush1.bf16.msra.mxu0 %v8076_v40  ;;  %1317 = vmatpush1.bf16.msra.mxu1 %v8079_v41  ;;  %v9474_v40 = vld [vmem:[#allocation11 + $0xac] ss:$16 sps:$4 sm:$0xff]   ;;  %v9477_v41 = vld [vmem:[#allocation11 + $0xa0] ss:$16 sps:$4 sm:$0xff]   ;;  %vm7488_vm4 = vcmp.gt.s32.totalorder %v9470_v39, 4  ;;  %vm7416_vm5 = vcmp.gt.s32.totalorder %v9470_v39, 5 }
  0x9a   :  { %1652 = vmatprep.subr.bf16.mxu0 %v8085_v42  ;;  %1725 = vmatprep.subr.bf16.mxu1 %v8088_v43  ;;  %v9479_v42 = vld [vmem:[#allocation11 + $0xa8] ss:$16 sps:$4 sm:$0xff]   ;;  %v9481_v43 = vld [vmem:[#allocation11 + $0xc4] ss:$16 sps:$4 sm:$0xff]   ;;  %vm7344_vm6 = vcmp.gt.s32.totalorder %v9470_v39, 6  ;;  %vm7308_vm7 = vcmp.gt.s32.totalorder %v9470_v39, 1 }
  0x9c   :  { %1262 = vmatmul.mubr.bf16.vlgmr.msra.gmra.mrb[16].mxu0 %v8082_v44  ;;  %1335 = vmatmul.mubr.bf16.vlgmr.msra.gmra.mrb[16].mxu1 %v8082_v44  ;;  %v9483_v44 = vld [vmem:[#allocation11 + $0xcc] ss:$16 sps:$4 sm:$0xff]  }
  0x9d   :  { %1653 = vmatpush1.bf16.msra.mxu0 %v8083_v45  ;;  %1726 = vmatpush1.bf16.msra.mxu1 %v8086_v46  ;;  %v9488_v45 = vsel %vm7236_vm0, 1, %v11053_v0  ;;  %v8173_v46 = vld [vmem:[%s11031_s4 + $0x18] sm:$0xff]  }
  0x9e   :  { %1654 = vmatprep.subr.bf16.mxu0 %v8091_v47  ;;  %1727 = vmatprep.subr.bf16.mxu1 %v8094_v48  ;;  %v9497_v47 = vld [vmem:[#allocation11 + $0xc0] ss:$16 sps:$4 sm:$0xff]   ;;  %v9499_v48 = vld [vmem:[#allocation11 + $0xc8] ss:$16 sps:$4 sm:$0xff]  }
  0x9f   :  { %1271 = vmatprep.mubr.bf16.mxu0 %v11053_v0  ;;  %1344 = vmatprep.mubr.bf16.mxu1 %v11053_v0 }
  0xa0   :  { %2181 = vperm.xlu0 %7928, %v9488_v45  }
  0xa1   :  { %1655 = vmatpush1.bf16.msra.mxu0 %v8089_v49  ;;  %1728 = vmatpush1.bf16.msra.mxu1 %v8092_v50  ;;  %v9501_v49 = vld [vmem:[#allocation11 + $0xe4] ss:$16 sps:$4 sm:$0xff]   ;;  %v9503_v50 = vld [vmem:[#allocation11 + $0xec] ss:$16 sps:$4 sm:$0xff]  }
  0xa2   :  { %1656 = vmatprep.subr.bf16.mxu0 %v8098_v51  ;;  %1729 = vmatprep.subr.bf16.mxu1 %v8101_v52  ;;  %v9511_v51 = vld [vmem:[#allocation11 + $0xe0] ss:$16 sps:$4 sm:$0xff]   ;;  %v9513_v52 = vld [vmem:[#allocation11 + $0xe8] ss:$16 sps:$4 sm:$0xff]  }
  0xa4   :  { %1272 = vmatmul.mubr.bf16.gmra.mrb[20].mxu0 %v8095_v53  ;;  %1345 = vmatmul.mubr.bf16.gmra.mrb[20].mxu1 %v8095_v53  ;;  %v9515_v53 = vld [vmem:[#allocation13 + $0x4] ss:$16 sps:$4 sm:$0xff]  }
  0xa5   :  { %1657 = vmatpush1.bf16.msra.mxu0 %v8096_v54  ;;  %1730 = vmatpush1.bf16.msra.mxu1 %v8099_v55  ;;  %v9517_v54 = vld [vmem:[#allocation13 + $0xc] ss:$16 sps:$4 sm:$0xff]   ;;  %v9522_v55 = vsel %vm7272_vm1, 1, %v11053_v0 }
  0xa6   :  { %1658 = vmatprep.subr.bf16.mxu0 %v8104_v56  ;;  %1731 = vmatprep.subr.bf16.mxu1 %v8107_v57  ;;  %v9528_v56 = vld [vmem:[#allocation13] ss:$16 sps:$4 sm:$0xff]   ;;  %v9530_v57 = vld [vmem:[#allocation13 + $0x8] ss:$16 sps:$4 sm:$0xff]  }
  0xa7   :  { %1281 = vmatprep.mubr.bf16.mxu0 %v11053_v0  ;;  %1354 = vmatprep.mubr.bf16.mxu1 %v11053_v0 }
  0xa8   :  { %2501 = vperm.xlu0 %7928, %v9522_v55  }
  0xa9   :  { %1659 = vmatpush1.bf16.msra.mxu0 %v8102_v58  ;;  %1732 = vmatpush1.bf16.msra.mxu1 %v8105_v59  ;;  %v9532_v58 = vld [vmem:[#allocation13 + $0x24] ss:$16 sps:$4 sm:$0xff]   ;;  %v9534_v59 = vld [vmem:[#allocation13 + $0x2c] ss:$16 sps:$4 sm:$0xff]  }
  0xaa   :  { %1660 = vmatprep.subr.bf16.mxu0 %v8111_v60  ;;  %1733 = vmatprep.subr.bf16.mxu1 %v8114_v61  ;;  %v9542_v60 = vld [vmem:[#allocation13 + $0x20] ss:$16 sps:$4 sm:$0xff]   ;;  %v9544_v61 = vld [vmem:[#allocation13 + $0x28] ss:$16 sps:$4 sm:$0xff]  }
  0xac   :  { %1282 = vmatmul.mubr.bf16.gmra.mrb[24].mxu0 %v8108_v62  ;;  %1355 = vmatmul.mubr.bf16.gmra.mrb[24].mxu1 %v8108_v62  ;;  %v11044_v62 = vmov 0.0|0.0  }
  0xad   :  { %1661 = vmatpush1.bf16.msra.mxu0 %v8109_v63  ;;  %1734 = vmatpush1.bf16.msra.mxu1 %v8112_v1  ;;  %v9548_v63 = vld [vmem:[#allocation13 + $0x44] ss:$16 sps:$4 sm:$0xff]   ;;  %v9550_v1 = vld [vmem:[#allocation13 + $0x4c] ss:$16 sps:$4 sm:$0xff]  }
  0xae   :  { %1662 = vmatprep.subr.bf16.mxu0 %v8117_v2  ;;  %1735 = vmatprep.subr.bf16.mxu1 %v8120_v3  ;;  %v9555_v2 = vsel %vm7380_vm2, 1, %v11053_v0  ;;  %v9560_v3 = vld [vmem:[#allocation13 + $0x40] ss:$16 sps:$4 sm:$0xff]  }
  0xaf   :  { %1291 = vmatprep.mubr.bf16.mxu0 %v11053_v0  ;;  %1364 = vmatprep.mubr.bf16.mxu1 %v11053_v0 }
  0xb0   :  { %3461 = vperm.xlu0 %7928, %v9555_v2  }
  0xb1   :  { %1663 = vmatpush1.bf16.msra.mxu0 %v8115_v4  ;;  %1736 = vmatpush1.bf16.msra.mxu1 %v8118_v5  ;;  %v9562_v4 = vld [vmem:[#allocation13 + $0x48] ss:$16 sps:$4 sm:$0xff]   ;;  %v9566_v5 = vld [vmem:[#allocation13 + $0x64] ss:$16 sps:$4 sm:$0xff]  }
  0xb2   :  { %1664 = vmatprep.subr.bf16.mxu0 %v8124_v6  ;;  %1737 = vmatprep.subr.bf16.mxu1 %v8127_v7  ;;  %11102 = vst [vmem:[#allocation21_spill] sm:$0xff] %v9562_v4  ;;  %11103 = vst [vmem:[#allocation22_spill] sm:$0xff] %v9566_v5  ;;  %v9568_v6 = vld [vmem:[#allocation13 + $0x6c] ss:$16 sps:$4 sm:$0xff]   ;;  %v9574_v7 = vsel %vm7452_vm3, 1, %v11053_v0 }
  0xb3   :  { %11104 = vst [vmem:[#allocation23_spill] sm:$0xff] %v9568_v6 }
  0xb4   :  { %1292 = vmatmul.mubr.bf16.gmra.mrb[28].mxu0 %v8121_v8  ;;  %1365 = vmatmul.mubr.bf16.gmra.mrb[28].mxu1 %v8121_v8  ;;  %v9579_v8 = vld [vmem:[#allocation13 + $0x60] ss:$16 sps:$4 sm:$0xff]  }
  0xb5   :  { %1665 = vmatpush1.bf16.msra.mxu0 %v8122_v9  ;;  %1738 = vmatpush1.bf16.msra.mxu1 %v8125_v10  ;;  %11105 = vst [vmem:[#allocation24_spill] sm:$0xff] %v9579_v8  ;;  %v9581_v9 = vld [vmem:[#allocation13 + $0x68] ss:$16 sps:$4 sm:$0xff]   ;;  %v9583_v10 = vld [vmem:[#allocation13 + $0x84] ss:$16 sps:$4 sm:$0xff]  }
  0xb6   :  { %1666 = vmatprep.subr.bf16.mxu0 %v8130_v11  ;;  %1739 = vmatprep.subr.bf16.mxu1 %v8133_v12  ;;  %11106 = vst [vmem:[#allocation25_spill] sm:$0xff] %v9581_v9  ;;  %11107 = vst [vmem:[#allocation26_spill] sm:$0xff] %v9583_v10  ;;  %v9585_v11 = vld [vmem:[#allocation13 + $0x8c] ss:$16 sps:$4 sm:$0xff]   ;;  %v9591_v12 = vsel %vm7488_vm4, 1, %v11053_v0 }
  0xb7   :  { %1684 = vmatprep.mubr.bf16.mxu0 %v11053_v0  ;;  %1757 = vmatprep.mubr.bf16.mxu1 %v11053_v0  ;;  %11108 = vst [vmem:[#allocation27_spill] sm:$0xff] %v9585_v11 }
  0xb8   :  { %4101 = vperm.xlu0 %7928, %v9574_v7  }
  0xb9   :  { %1667 = vmatpush1.bf16.msra.mxu0 %v8128_v13  ;;  %1740 = vmatpush1.bf16.msra.mxu1 %v8131_v14  ;;  %v9596_v13 = vld [vmem:[#allocation13 + $0x80] ss:$16 sps:$4 sm:$0xff]   ;;  %v9598_v14 = vld [vmem:[#allocation13 + $0x88] ss:$16 sps:$4 sm:$0xff]  }
  0xba   :  { %2067 = vmatprep.subr.bf16.mxu0 %v9394_v15  ;;  %2108 = vmatprep.subr.bf16.mxu1 %v9396_v16 }
  0xbc   :  { %1685 = vmatmul.mubr.bf16.vlgmr.msra.gmra.mrb[16].mxu0 %v8134_v17  ;;  %1758 = vmatmul.mubr.bf16.vlgmr.msra.gmra.mrb[16].mxu1 %v8134_v17  ;;  %v9600_v17 = vld [vmem:[#allocation13 + $0xa4] ss:$16 sps:$4 sm:$0xff]  }
  0xbd   :  { %2068 = vmatpush1.bf16.msra.mxu0 %v9403_v18  ;;  %2109 = vmatpush1.bf16.msra.mxu1 %v9405_v19 }
  0xbe   :  { %2069 = vmatprep.subr.bf16.mxu0 %v9407_v20  ;;  %2110 = vmatprep.subr.bf16.mxu1 %v9411_v21 }
  0xbf   :  { %1694 = vmatprep.mubr.bf16.mxu0 %v11053_v0  ;;  %1767 = vmatprep.mubr.bf16.mxu1 %v11053_v0 }
  0xc0   :  { %4741 = vperm.xlu0 %7928, %v9591_v12  }
  0xc1   :  { %2070 = vmatpush1.bf16.msra.mxu0 %v9413_v22  ;;  %2111 = vmatpush1.bf16.msra.mxu1 %v9415_v23 }
  0xc2   :  { %2071 = vmatprep.subr.bf16.mxu0 %v9419_v24  ;;  %2112 = vmatprep.subr.bf16.mxu1 %v9423_v25 }
  0xc4   :  { %1695 = vmatmul.mubr.bf16.gmra.mrb[20].mxu0 %v8147_v26  ;;  %1768 = vmatmul.mubr.bf16.gmra.mrb[20].mxu1 %v8147_v26  ;;  %v9602_v26 = vld [vmem:[#allocation13 + $0xac] ss:$16 sps:$4 sm:$0xff]  }
  0xc5   :  { %2072 = vmatpush1.bf16.msra.mxu0 %v9430_v27  ;;  %2113 = vmatpush1.bf16.msra.mxu1 %v9432_v28  ;;  %11109 = vst [vmem:[#allocation28_spill] sm:$0xff] %v9602_v26 }
  0xc6   :  { %2073 = vmatprep.subr.bf16.mxu0 %v9436_v29  ;;  %2114 = vmatprep.subr.bf16.mxu1 %v9440_v30 }
  0xc7   :  { %1704 = vmatprep.mubr.bf16.mxu0 %v11053_v0  ;;  %1777 = vmatprep.mubr.bf16.mxu1 %v11053_v0 }
  0xc9   :  { %2074 = vmatpush1.bf16.msra.mxu0 %v9442_v31  ;;  %2115 = vmatpush1.bf16.msra.mxu1 %v9444_v32 }
  0xca   :  { %2075 = vmatprep.subr.bf16.mxu0 %v9448_v33  ;;  %2116 = vmatprep.subr.bf16.mxu1 %v9452_v34 }
  0xcc   :  { %1705 = vmatmul.mubr.bf16.gmra.mrb[24].mxu0 %v8160_v35  ;;  %1778 = vmatmul.mubr.bf16.gmra.mrb[24].mxu1 %v8160_v35  ;;  %v9608_v35 = vsel %vm7416_vm5, 1, %v11053_v0 }
  0xcd   :  { %2076 = vmatpush1.bf16.msra.mxu0 %v9459_v36  ;;  %2117 = vmatpush1.bf16.msra.mxu1 %v9461_v37 }
  0xce   :  { %2077 = vmatprep.subr.bf16.mxu0 %v9465_v38  ;;  %2118 = vmatprep.subr.bf16.mxu1 %v9474_v40 }
  0xcf   :  { %1714 = vmatprep.mubr.bf16.mxu0 %v11053_v0  ;;  %1787 = vmatprep.mubr.bf16.mxu1 %v11053_v0 }
  0xd0   :  { %5381 = vperm.xlu0 %7928, %v9608_v35  }
  0xd1   :  { %2078 = vmatpush1.bf16.msra.mxu0 %v9477_v41  ;;  %2119 = vmatpush1.bf16.msra.mxu1 %v9479_v42 }
  0xd2   :  { %2079 = vmatprep.subr.bf16.mxu0 %v9481_v43  ;;  %2120 = vmatprep.subr.bf16.mxu1 %v9483_v44 }
  0xd4   :  { %1715 = vmatmul.mubr.bf16.gmra.mrb[28].mxu0 %v8173_v46  ;;  %1788 = vmatmul.mubr.bf16.gmra.mrb[28].mxu1 %v8173_v46  ;;  %v9613_v46 = vld [vmem:[#allocation13 + $0xa0] ss:$16 sps:$4 sm:$0xff]  }
  0xd5   :  { %2080 = vmatpush1.bf16.msra.mxu0 %v9497_v47  ;;  %2121 = vmatpush1.bf16.msra.mxu1 %v9499_v48 }
  0xd6   :  { %2081 = vmatprep.subr.bf16.mxu0 %v9501_v49  ;;  %2122 = vmatprep.subr.bf16.mxu1 %v9503_v50 }
  0xd7   :  { %2099 = vmatprep.mubr.bf16.mxu0 %v11053_v0  ;;  %2140 = vmatprep.mubr.bf16.mxu1 %v11053_v0 }
  0xd9   :  { %2082 = vmatpush1.bf16.msra.mxu0 %v9511_v51  ;;  %2123 = vmatpush1.bf16.msra.mxu1 %v9513_v52 }
  0xda   :  { %2387 = vmatprep.subr.bf16.mxu0 %v9515_v53  ;;  %2428 = vmatprep.subr.bf16.mxu1 %v9517_v54 }
  0xdc   :  { %2100 = vmatmul.mubr.bf16.vlgmr.msra.gmra.mrb[32].mxu0 %v11044_v62  ;;  %2141 = vmatmul.mubr.bf16.vlgmr.msra.gmra.mrb[32].mxu1 %v11044_v62  ;;  %v9615_v62 = vld [vmem:[#allocation13 + $0xa8] ss:$16 sps:$4 sm:$0xff]  }
  0xdd   :  { %2388 = vmatpush1.bf16.msra.mxu0 %v9528_v56  ;;  %2429 = vmatpush1.bf16.msra.mxu1 %v9530_v57 }
  0xde   :  { %2389 = vmatprep.subr.bf16.mxu0 %v9532_v58  ;;  %2430 = vmatprep.subr.bf16.mxu1 %v9534_v59 }
  0xdf   :  { %2419 = vmatprep.mubr.bf16.mxu0 %v11053_v0  ;;  %2460 = vmatprep.mubr.bf16.mxu1 %v11053_v0 }
  0xe1   :  { %2390 = vmatpush1.bf16.msra.mxu0 %v9542_v60  ;;  %2431 = vmatpush1.bf16.msra.mxu1 %v9544_v61 }
  0xe2   :  { %2391 = vmatprep.subr.bf16.mxu0 %v9548_v63  ;;  %2432 = vmatprep.subr.bf16.mxu1 %v9550_v1 }
  0xe5   :  { %2392 = vmatpush1.bf16.msra.mxu0 %v9560_v3  ;;  %2433 = vmatpush1.bf16.msra.mxu1 %v9562_v4  ;;  %v9635_v4 = vld [vmem:[#allocation13 + $0xec] ss:$16 sps:$4 sm:$0xff]  }
  0xe6   :  { %2393 = vmatprep.subr.bf16.mxu0 %v9566_v5  ;;  %2434 = vmatprep.subr.bf16.mxu1 %v9568_v6  ;;  %v9617_v6 = vld [vmem:[#allocation13 + $0xc4] ss:$16 sps:$4 sm:$0xff]   ;;  %v9619_v5 = vld [vmem:[#allocation13 + $0xcc] ss:$16 sps:$4 sm:$0xff]  }
  0xe7   :  { %11110 = vst [vmem:[#allocation29_spill] sm:$0xff] %v9619_v5 }
  0xe9   :  { %2394 = vmatpush1.bf16.msra.mxu0 %v9579_v8  ;;  %2435 = vmatpush1.bf16.msra.mxu1 %v9581_v9  ;;  %v9631_v9 = vld [vmem:[#allocation13 + $0xc8] ss:$16 sps:$4 sm:$0xff]   ;;  %v9633_v8 = vld [vmem:[#allocation13 + $0xe4] ss:$16 sps:$4 sm:$0xff]  }
  0xea   :  { %2395 = vmatprep.subr.bf16.mxu0 %v9583_v10  ;;  %2436 = vmatprep.subr.bf16.mxu1 %v9585_v11  ;;  %v9625_v10 = vsel %vm7344_vm6, 1, %v11053_v0  ;;  %v9629_v11 = vld [vmem:[#allocation13 + $0xc0] ss:$16 sps:$4 sm:$0xff]  }
  0xeb   :  { %6021 = vperm.xlu0 %7928, %v9625_v10   ;;  %v9642_v0 = vld [vmem:[#allocation13 + $0xe0] ss:$16 sps:$4 sm:$0xff]  }
  0xed   :  { %2396 = vmatpush1.bf16.msra.mxu0 %v9596_v13  ;;  %2437 = vmatpush1.bf16.msra.mxu1 %v9598_v14 }
  0xee   :  { %2397 = vmatprep.subr.bf16.mxu0 %v9600_v17  ;;  %2438 = vmatprep.subr.bf16.mxu1 %v9602_v26  ;;  %v9644_v26 = vld [vmem:[#allocation13 + $0xe8] ss:$16 sps:$4 sm:$0xff]  }
  0xef   :  { %6661 = vperm.xlu0 %7928, %v9522_v55   ;;  %v11112_v55 = vmov 0  }
  0xf1   :  { %2398 = vmatpush1.bf16.msra.mxu0 %v9613_v46  ;;  %2439 = vmatpush1.bf16.msra.mxu1 %v9615_v62 }
  0xf2   :  { %2399 = vmatprep.subr.bf16.mxu0 %v9617_v6  ;;  %2440 = vmatprep.subr.bf16.mxu1 %v9619_v5  ;;  %v11111_v5 = vmov 0.0|0.0  }
  0xf5   :  { %2400 = vmatpush1.bf16.msra.mxu0 %v9629_v11  ;;  %2441 = vmatpush1.bf16.msra.mxu1 %v9631_v9 }
  0xf6   :  { %2401 = vmatprep.subr.bf16.mxu0 %v9633_v8  ;;  %2442 = vmatprep.subr.bf16.mxu1 %v9635_v4 }
  0xf9   :  { %2402 = vmatpush1.bf16.msra.mxu0 %v9642_v0  ;;  %2443 = vmatpush1.bf16.msra.mxu1 %v9644_v26 }
  0xfa   :  { %2707 = vmatprep.subr.bf16.mxu0 %v9394_v15  ;;  %2748 = vmatprep.subr.bf16.mxu1 %v9396_v16  ;;  %v518_v15 = vlaneseq }
  0xfc   :  { %2420 = vmatmul.mubr.bf16.vlgmr.msra.gmra.mrb[36].mxu0 %v11111_v5  ;;  %2461 = vmatmul.mubr.bf16.vlgmr.msra.gmra.mrb[36].mxu1 %v11111_v5  ;;  %v9691_v16 = vshrl.u32 %v518_v15, 7 }
  0xfd   :  { %2708 = vmatpush1.bf16.msra.mxu0 %v9403_v18  ;;  %2749 = vmatpush1.bf16.msra.mxu1 %v9405_v19 }
  0xfe   :  { %2709 = vmatprep.subr.bf16.mxu0 %v9407_v20  ;;  %2750 = vmatprep.subr.bf16.mxu1 %v9411_v21  ;;  %v11060_v18 = vsub.s32 0, %v9691_v16  ;;  %v11059_v19 = vsub.s32 2, %v9691_v16  ;;  %v146_v20 = vld [vmem:[%s11036_s9] sm:$0xf]  ;;  %v11058_v21 = vsub.s32 1, %v9691_v16  ;;  %v11139_v39 = vsub.s32 1, %v9691_v16 }
  0xff   :  { %2739 = vmatprep.mubr.bf16.mxu0 %v11112_v55  ;;  %2780 = vmatprep.mubr.bf16.mxu1 %v11112_v55 }
 0x101   :  { %2710 = vmatpush1.bf16.msra.mxu0 %v9413_v22  ;;  %2751 = vmatpush1.bf16.msra.mxu1 %v9415_v23  ;;  %v11057_v22 = vsub.s32 3, %v9691_v16 }
 0x102   :  { %2711 = vmatprep.subr.bf16.mxu0 %v9419_v24  ;;  %2752 = vmatprep.subr.bf16.mxu1 %v9423_v25  ;;  %v9706_v25 = vrot.slane %v146_v20, %v11060_v18 }
 0x105   :  { %2712 = vmatpush1.bf16.msra.mxu0 %v9430_v27  ;;  %2753 = vmatpush1.bf16.msra.mxu1 %v9432_v28  ;;  %v9710_v27 = vrot.slane %v146_v20, %v11059_v19 }
 0x106   :  { %2713 = vmatprep.subr.bf16.mxu0 %v9436_v29  ;;  %2754 = vmatprep.subr.bf16.mxu1 %v9440_v30  ;;  %v9718_v30 = vrot.slane %v146_v20, %v11058_v21 }
 0x109   :  { %2714 = vmatpush1.bf16.msra.mxu0 %v9442_v31  ;;  %2755 = vmatpush1.bf16.msra.mxu1 %v9444_v32  ;;  %v9722_v31 = vrot.slane %v146_v20, %v11057_v22 }
 0x10a   :  { %2715 = vmatprep.subr.bf16.mxu0 %v9448_v33  ;;  %2756 = vmatprep.subr.bf16.mxu1 %v9452_v34 }
 0x10d   :  { %2716 = vmatpush1.bf16.msra.mxu0 %v9459_v36  ;;  %2757 = vmatpush1.bf16.msra.mxu1 %v9461_v37 }
 0x10e   :  { %2717 = vmatprep.subr.bf16.mxu0 %v9465_v38  ;;  %2758 = vmatprep.subr.bf16.mxu1 %v9474_v40 }
 0x111   :  { %2718 = vmatpush1.bf16.msra.mxu0 %v9477_v41  ;;  %2759 = vmatpush1.bf16.msra.mxu1 %v9479_v42 }
 0x112   :  { %2719 = vmatprep.subr.bf16.mxu0 %v9481_v43  ;;  %2760 = vmatprep.subr.bf16.mxu1 %v9483_v44 }
 0x115   :  { %2720 = vmatpush1.bf16.msra.mxu0 %v9497_v47  ;;  %2761 = vmatpush1.bf16.msra.mxu1 %v9499_v48 }
 0x116   :  { %2721 = vmatprep.subr.bf16.mxu0 %v9501_v49  ;;  %2762 = vmatprep.subr.bf16.mxu1 %v9503_v50 }
 0x119   :  { %2722 = vmatpush1.bf16.msra.mxu0 %v9511_v51  ;;  %2763 = vmatpush1.bf16.msra.mxu1 %v9513_v52 }
 0x11a   :  { %3027 = vmatprep.subr.bf16.mxu0 %v9515_v53  ;;  %3068 = vmatprep.subr.bf16.mxu1 %v9517_v54 }
 0x14f   :  { %v9700_v23 = vpop.f32.mrb[0].mxu0  ;;  %v9702_v24 = vpop.f32.mrb[0].mxu1 }
 0x150   :  { %v9712_v28 = vpop.f32.mrb[1].mxu0  ;;  %v9714_v29 = vpop.f32.mrb[1].mxu1 }
 0x151   :  { %v832_v32 = vpop.f32.mrb[2].mxu0  ;;  %v905_v33 = vpop.f32.mrb[2].mxu1 }
 0x152   :  { %v9725_v34 = vadd.f32 %v832_v32, %v9706_v25  ;;  %v9728_v36 = vadd.f32 %v905_v33, %v9710_v27  ;;  %v834_v37 = vpop.f32.mrb[3].mxu0  ;;  %v907_v38 = vpop.f32.mrb[3].mxu1 }
 0x153   :  { %v9731_v40 = vadd.f32 %v834_v37, %v9718_v30  ;;  %v9734_v41 = vadd.f32 %v907_v38, %v9722_v31 }
 0x157   :  { %v838_v42 = vpop.f32.mrb[4].mxu0  ;;  %v911_v43 = vpop.f32.mrb[4].mxu1 }
 0x158   :  { %v9737_v44 = vadd.f32 %v838_v42, %v9706_v25  ;;  %v9740_v47 = vadd.f32 %v911_v43, %v9710_v27  ;;  %v840_v48 = vpop.f32.mrb[5].mxu0  ;;  %v913_v49 = vpop.f32.mrb[5].mxu1 }
 0x159   :  { %v9743_v50 = vadd.f32 %v840_v48, %v9718_v30  ;;  %v9746_v51 = vadd.f32 %v913_v49, %v9722_v31  ;;  %v842_v52 = vpop.f32.mrb[6].mxu0  ;;  %v915_v53 = vpop.f32.mrb[6].mxu1 }
 0x15a   :  { %11113 = vst [vmem:[#allocation30_spill] sm:$0xff] %v9737_v44  ;;  %11114 = vst [vmem:[#allocation31_spill] sm:$0xff] %v9740_v47  ;;  %v9749_v54 = vadd.f32 %v842_v52, %v9706_v25  ;;  %v9752_v5 = vadd.f32 %v915_v53, %v9710_v27  ;;  %v844_v15 = vpop.f32.mrb[7].mxu0  ;;  %v917_v20 = vpop.f32.mrb[7].mxu1 }
 0x15b   :  { %11115 = vst [vmem:[#allocation32_spill] sm:$0xff] %v9743_v50  ;;  %11116 = vst [vmem:[#allocation33_spill] sm:$0xff] %v9746_v51  ;;  %v9755_v32 = vadd.f32 %v844_v15, %v9718_v30  ;;  %v9758_v33 = vadd.f32 %v917_v20, %v9722_v31 }
 0x15c   :  { %11117 = vst [vmem:[#allocation34_spill] sm:$0xff] %v9749_v54  ;;  %11118 = vst [vmem:[#allocation35_spill] sm:$0xff] %v9752_v5 }
 0x15d   :  { %11119 = vst [vmem:[#allocation36_spill] sm:$0xff] %v9755_v32  ;;  %11120 = vst [vmem:[#allocation37_spill] sm:$0xff] %v9758_v33 }
 0x15f   :  { %v848_v37 = vpop.f32.mrb[8].mxu0  ;;  %v921_v38 = vpop.f32.mrb[8].mxu1 }
 0x160   :  { %v9761_v42 = vadd.f32 %v848_v37, %v9706_v25  ;;  %v9764_v43 = vadd.f32 %v921_v38, %v9710_v27  ;;  %v850_v48 = vpop.f32.mrb[9].mxu0  ;;  %v923_v49 = vpop.f32.mrb[9].mxu1 }
 0x161   :  { %v9767_v52 = vadd.f32 %v850_v48, %v9718_v30  ;;  %v9770_v53 = vadd.f32 %v923_v49, %v9722_v31  ;;  %v852_v15 = vpop.f32.mrb[10].mxu0  ;;  %v925_v22 = vpop.f32.mrb[10].mxu1 }
 0x162   :  { %11121 = vst [vmem:[#allocation38_spill] sm:$0xff] %v9761_v42  ;;  %11122 = vst [vmem:[#allocation39_spill] sm:$0xff] %v9764_v43  ;;  %v9773_v20 = vadd.f32 %v852_v15, %v9706_v25  ;;  %v9776_v21 = vadd.f32 %v925_v22, %v9710_v27  ;;  %v854_v37 = vpop.f32.mrb[11].mxu0  ;;  %v927_v19 = vpop.f32.mrb[11].mxu1 }
 0x163   :  { %11123 = vst [vmem:[#allocation40_spill] sm:$0xff] %v9767_v52  ;;  %11124 = vst [vmem:[#allocation41_spill] sm:$0xff] %v9770_v53  ;;  %v9779_v38 = vadd.f32 %v854_v37, %v9718_v30  ;;  %v9782_v18 = vadd.f32 %v927_v19, %v9722_v31 }
 0x164   :  { %11125 = vst [vmem:[#allocation42_spill] sm:$0xff] %v9773_v20  ;;  %11126 = vst [vmem:[#allocation43_spill] sm:$0xff] %v9776_v21 }
 0x165   :  { %11127 = vst [vmem:[#allocation44_spill] sm:$0xff] %v9779_v38  ;;  %11128 = vst [vmem:[#allocation45_spill] sm:$0xff] %v9782_v18 }
 0x167   :  { %v858_v48 = vpop.f32.mrb[12].mxu0  ;;  %v931_v52 = vpop.f32.mrb[12].mxu1 }
 0x168   :  { %v9785_v49 = vadd.f32 %v858_v48, %v9706_v25  ;;  %v9788_v53 = vadd.f32 %v931_v52, %v9710_v27  ;;  %v860_v15 = vpop.f32.mrb[13].mxu0  ;;  %v933_v20 = vpop.f32.mrb[13].mxu1 }
 0x169   :  { %v9791_v22 = vadd.f32 %v860_v15, %v9718_v30  ;;  %v9794_v21 = vadd.f32 %v933_v20, %v9722_v31  ;;  %v862_v37 = vpop.f32.mrb[14].mxu0  ;;  %v935_v38 = vpop.f32.mrb[14].mxu1  ;;  %v2819_v20 = vsel %vm7308_vm7, 1, %v11112_v55  ;;  %v11137_v15 = vsub.s32 0, %v9691_v16 }
 0x16a   :  { %11129 = vst [vmem:[#allocation46_spill] sm:$0xff] %v9785_v49  ;;  %11130 = vst [vmem:[#allocation47_spill] sm:$0xff] %v9788_v53  ;;  %v9797_v19 = vadd.f32 %v862_v37, %v9706_v25  ;;  %v9800_v18 = vadd.f32 %v935_v38, %v9710_v27  ;;  %v864_v48 = vpop.f32.mrb[15].mxu0  ;;  %v937_v49 = vpop.f32.mrb[15].mxu1  ;;  %2821 = vperm.xlu1 %7929, %v2819_v20   ;;  %v1004_v38 = vld [vmem:[%s11037_s10] sm:$0xf] }
 0x16b   :  { %11131 = vst [vmem:[#allocation48_spill] sm:$0xff] %v9791_v22  ;;  %11132 = vst [vmem:[#allocation49_spill] sm:$0xff] %v9794_v21  ;;  %v9803_v52 = vadd.f32 %v864_v48, %v9718_v30  ;;  %v9806_v53 = vadd.f32 %v937_v49, %v9722_v31  ;;  %v9817_v37 = vrot.slane %v1004_v38, %v11137_v15  ;;  %v11138_v49 = vsub.s32 2, %v9691_v16  ;;  %s8903_s10 = smov [#allocation14]  }
 0x16c   :  { %11133 = vst [vmem:[#allocation50_spill] sm:$0xff] %v9797_v19  ;;  %11134 = vst [vmem:[#allocation51_spill] sm:$0xff] %v9800_v18  ;;  %s7002_s25 = sshll.u32 %s8903_s10, 4  ;;  %s7003_s25 = int_to_ptr.vmem [resolvable:$true] %s7002_s25 }
 0x16d   :  { %11135 = vst [vmem:[#allocation52_spill] sm:$0xff] %v9803_v52  ;;  %11136 = vst [vmem:[#allocation53_spill] sm:$0xff] %v9806_v53  ;;  %v9821_v48 = vrot.slane %v1004_v38, %v11138_v49  ;;  %v9825_v53 = vrot.slane %v1004_v38, %v11139_v39  ;;  %s8844_s27 = scalar_lea.vmem %s7003_s25, 512  ;;  %p8849_p11 = scmp.lt.s32.totalorder %s7003_s25, %s7003_s25 }
 0x16e   :  { %3141 = vperm.xlu1 %7929, %v9625_v10   ;;  %v11140_v10 = vsub.s32 3, %v9691_v16  ;;  %p8845_p10 = scmp.ne.s32.totalorder %s7003_s25, %s8844_s27  ;;  %p8850_p12 = scmp.lt.s32.totalorder %s8844_s27, %s8844_s27 }
 0x170   :  { %v9829_v52 = vrot.slane %v1004_v38, %v11140_v10  ;;  %p8851_p13 = por %p8850_p12, %p8849_p11 }
 0x172   :  { %3781 = vperm.xlu1 %7929, %v9608_v35   ;;  %p8852_p0 = pnand %p8851_p13, %p8845_p10 }
 0x176   :  { %4421 = vperm.xlu1 %7929, %v9591_v12  }
 0x17a   :  { %5061 = vperm.xlu1 %7929, %v9574_v7  }
 0x17e   :  { %5701 = vperm.xlu1 %7929, %v9555_v2  }
 0x182   :  { %6341 = vperm.xlu1 %7929, %v2819_v20  }
 0x186   :  { %6980 = vperm.xlu1 %7929, %v9488_v45  }
 0x18f   :  { %v1686_v18 = vpop.f32.mrb[16].mxu0  ;;  %v1759_v35 = vpop.f32.mrb[16].mxu1 }
 0x190   :  { %v9833_v19 = vadd.f32 %v1686_v18, %v9817_v37  ;;  %v9836_v15 = vadd.f32 %v1759_v35, %v9821_v48  ;;  %v1688_v49 = vpop.f32.mrb[17].mxu0  ;;  %v1761_v21 = vpop.f32.mrb[17].mxu1 }
 0x191   :  { %v9839_v22 = vadd.f32 %v1688_v49, %v9825_v53  ;;  %v9842_v39 = vadd.f32 %v1761_v21, %v9829_v52  ;;  %v1690_v16 = vpop.f32.mrb[18].mxu0  ;;  %v1763_v38 = vpop.f32.mrb[18].mxu1 }
 0x192   :  { %11141 = vst [vmem:[#allocation54_spill] sm:$0xff] %v9833_v19  ;;  %11142 = vst [vmem:[#allocation55_spill] sm:$0xff] %v9836_v15  ;;  %v9845_v12 = vadd.f32 %v1690_v16, %v9817_v37  ;;  %v9848_v10 = vadd.f32 %v1763_v38, %v9821_v48  ;;  %v1692_v18 = vpop.f32.mrb[19].mxu0  ;;  %v1765_v19 = vpop.f32.mrb[19].mxu1 }
 0x193   :  { %11143 = vst [vmem:[#allocation56_spill] sm:$0xff] %v9839_v22  ;;  %11144 = vst [vmem:[#allocation57_spill] sm:$0xff] %v9842_v39  ;;  %v9852_v35 = vadd.f32 %v1692_v18, %v9825_v53  ;;  %v9855_v49 = vadd.f32 %v1765_v19, %v9829_v52 }
 0x194   :  { %11145 = vst [vmem:[#allocation58_spill] sm:$0xff] %v9845_v12  ;;  %11146 = vst [vmem:[#allocation59_spill] sm:$0xff] %v9848_v10 }
 0x195   :  { %11147 = vst [vmem:[#allocation60_spill] sm:$0xff] %v9852_v35  ;;  %11148 = vst [vmem:[#allocation61_spill] sm:$0xff] %v9855_v49 }
 0x197   :  { %v1696_v21 = vpop.f32.mrb[20].mxu0  ;;  %v1769_v39 = vpop.f32.mrb[20].mxu1 }
 0x198   :  { %v9859_v16 = vadd.f32 %v1696_v21, %v9817_v37  ;;  %v9862_v38 = vadd.f32 %v1769_v39, %v9821_v48  ;;  %v1698_v22 = vpop.f32.mrb[21].mxu0  ;;  %v1771_v15 = vpop.f32.mrb[21].mxu1 }
 0x199   :  { %v9865_v7 = vadd.f32 %v1698_v22, %v9825_v53  ;;  %v9868_v18 = vadd.f32 %v1771_v15, %v9829_v52  ;;  %v1700_v19 = vpop.f32.mrb[22].mxu0  ;;  %v1773_v49 = vpop.f32.mrb[22].mxu1 }
 0x19a   :  { %11149 = vst [vmem:[#allocation62_spill] sm:$0xff] %v9859_v16  ;;  %11150 = vst [vmem:[#allocation63_spill] sm:$0xff] %v9862_v38  ;;  %v9871_v2 = vadd.f32 %v1700_v19, %v9817_v37  ;;  %v9874_v35 = vadd.f32 %v1773_v49, %v9821_v48  ;;  %v1702_v21 = vpop.f32.mrb[23].mxu0  ;;  %v1775_v10 = vpop.f32.mrb[23].mxu1 }
 0x19b   :  { %11151 = vst [vmem:[#allocation64_spill] sm:$0xff] %v9865_v7  ;;  %11152 = vst [vmem:[#allocation65_spill] sm:$0xff] %v9868_v18  ;;  %v9877_v39 = vadd.f32 %v1702_v21, %v9825_v53  ;;  %v9880_v22 = vadd.f32 %v1775_v10, %v9829_v52 }
 0x19c   :  { %11153 = vst [vmem:[#allocation66_spill] sm:$0xff] %v9871_v2  ;;  %11154 = vst [vmem:[#allocation67_spill] sm:$0xff] %v9874_v35 }
 0x19d   :  { %11155 = vst [vmem:[#allocation68_spill] sm:$0xff] %v9877_v39  ;;  %11156 = vst [vmem:[#allocation69_spill] sm:$0xff] %v9880_v22 }
 0x19f   :  { %v1706_v15 = vpop.f32.mrb[24].mxu0  ;;  %v1779_v12 = vpop.f32.mrb[24].mxu1 }
 0x1a0   :  { %v9884_v18 = vadd.f32 %v1706_v15, %v9817_v37  ;;  %v9887_v19 = vadd.f32 %v1779_v12, %v9821_v48  ;;  %v1708_v49 = vpop.f32.mrb[25].mxu0  ;;  %v1781_v7 = vpop.f32.mrb[25].mxu1 }
 0x1a1   :  { %v9890_v20 = vadd.f32 %v1708_v49, %v9825_v53  ;;  %v9893_v21 = vadd.f32 %v1781_v7, %v9829_v52  ;;  %v1710_v10 = vpop.f32.mrb[26].mxu0  ;;  %v1783_v38 = vpop.f32.mrb[26].mxu1 }
 0x1a2   :  { %11157 = vst [vmem:[#allocation70_spill] sm:$0xff] %v9884_v18  ;;  %11158 = vst [vmem:[#allocation71_spill] sm:$0xff] %v9887_v19  ;;  %v9896_v45 = vadd.f32 %v1710_v10, %v9817_v37  ;;  %v9899_v16 = vadd.f32 %v1783_v38, %v9821_v48  ;;  %v1712_v15 = vpop.f32.mrb[27].mxu0  ;;  %v1785_v22 = vpop.f32.mrb[27].mxu1  ;;  %v7789_v19 = vadd.f32 %v9700_v23, %v9706_v25 }
 0x1a3   :  { %11159 = vst [vmem:[#allocation72_spill] sm:$0xff] %v9890_v20  ;;  %11160 = vst [vmem:[#allocation73_spill] sm:$0xff] %v9893_v21  ;;  %v9902_v12 = vadd.f32 %v1712_v15, %v9825_v53  ;;  %v9905_v39 = vadd.f32 %v1785_v22, %v9829_v52 }
 0x1a4   :  { %11161 = vst [vmem:[#allocation74_spill] sm:$0xff] %v9896_v45  ;;  %11162 = vst [vmem:[#allocation75_spill] sm:$0xff] %v9899_v16 }
 0x1a5   :  { %11163 = vst [vmem:[#allocation76_spill] sm:$0xff] %v9902_v12  ;;  %11164 = vst [vmem:[#allocation77_spill] sm:$0xff] %v9905_v39 }
 0x1a7   :  { %v1716_v49 = vpop.f32.mrb[28].mxu0  ;;  %v1789_v35 = vpop.f32.mrb[28].mxu1 }
 0x1a8   :  { %v9908_v7 = vadd.f32 %v1716_v49, %v9817_v37  ;;  %v9911_v2 = vadd.f32 %v1789_v35, %v9821_v48  ;;  %v1718_v10 = vpop.f32.mrb[29].mxu0  ;;  %v1791_v43 = vpop.f32.mrb[29].mxu1  ;;  %v7805_v49 = vadd.f32 %v9702_v24, %v9710_v27  ;;  %v7790_v35 = vadd.f32 %v9712_v28, %v9718_v30 }
 0x1a9   :  { %v9914_v38 = vadd.f32 %v1718_v10, %v9825_v53  ;;  %v9917_v42 = vadd.f32 %v1791_v43, %v9829_v52  ;;  %v1720_v15 = vpop.f32.mrb[30].mxu0  ;;  %v1793_v21 = vpop.f32.mrb[30].mxu1  ;;  %v7806_v10 = vadd.f32 %v9714_v29, %v9722_v31 }
 0x1aa   :  { %v1722_v22 = vpop.f32.mrb[31].mxu0  ;;  %v1795_v20 = vpop.f32.mrb[31].mxu1 }
 0x1af   :  { %v2101_v18 = vpop.f32.mrb[32].mxu0  ;;  %v2142_v33 = vpop.f32.mrb[32].mxu1 }
 0x1b0   :  { %v2149_v43 = vadd.f32 %v7789_v19, %v2101_v18  ;;  %v2151_v32 = vadd.f32 %v7805_v49, %v2142_v33  ;;  %v2103_v5 = vpop.f32.mrb[33].mxu0  ;;  %v2144_v54 = vpop.f32.mrb[33].mxu1  ;;  %v7852_v49 = vadd.f32 %v1795_v20, %v9829_v52 }
 0x1b1   :  { %v2150_v39 = vadd.f32 %v7790_v35, %v2103_v5  ;;  %v2152_v12 = vadd.f32 %v7806_v10, %v2144_v54  ;;  %v2105_v16 = vpop.f32.mrb[34].mxu0  ;;  %v2146_v45 = vpop.f32.mrb[34].mxu1 }
 0x1b2   :  { %v7233_v23 = vmul.f32 -1.442695, %v2149_v43  ;;  %v2106_v25 = vpop.f32.mrb[35].mxu0  ;;  %v2147_v51 = vpop.f32.mrb[35].mxu1 }
 0x1b3   :  { %v7234_v24 = vmul.f32 -1.442695, %v2150_v39  ;;  %v7235_v27 = vmul.f32 -1.442695, %v2152_v12  ;;  %v7835_v51 = vadd.f32 %v1720_v15, %v9817_v37  ;;  %v7851_v39 = vadd.f32 %v1793_v21, %v9821_v48 }
 0x1b4   :  { %8522 = vpow2.f32 %v7233_v23  ;;  %v7836_v12 = vadd.f32 %v1722_v22, %v9825_v53 }
 0x1b5   :  { %8524 = vpow2.f32 %v7234_v24 }
 0x1b6   :  { %8526 = vpow2.f32 %v7235_v27 }
 0x1b7   :  { %8528 = vtanh.f32 %v2151_v32 }
 0x1be   :  { %v8523_v28 = vpop.eup %8522 }
 0x1bf   :  { %v8525_v30 = vpop.eup %8524  ;;  %v2156_v29 = vadd.f32 1.0, %v8523_v28 }
 0x1c0   :  { %v2162_v31 = vadd.f32 1.0, %v8525_v30  ;;  %v8527_v33 = vpop.eup %8526  ;;  %v9934_v30 = vpop.permute.xlu0 %2181 }
 0x1c1   :  { %8530 = vrcp.f32 %v2156_v29  ;;  %v8529_v5 = vpop.eup %8528  ;;  %v2169_v18 = vadd.f32 1.0, %v8527_v33  ;;  %vm2183_vm8 = vcmp.eq.s32.totalorder %v9934_v30, 1 }
 0x1c2   :  { %8532 = vrcp.f32 %v2162_v31  ;;  %vm7777_vm9 = vmpackc.low %vm2183_vm8, %vm2183_vm8 }
 0x1c3   :  { %8534 = vrcp.f32 %v2169_v18 }
 0x1cb   :  { %v8531_v54 = vpop.eup %8530 }
 0x1cc   :  { %v8533_v16 = vpop.eup %8532  ;;  %v2173_v19 = vmul.f32 %v8531_v54, %v8529_v5 }
 0x1cd   :  { %v2172_v45 = vmul.f32 0.0, %v8533_v16  ;;  %v8535_v52 = vpop.eup %8534 }
 0x1cf   :  { %v9931_v35 = vadd.f32 %v2173_v19, %v2172_v45  ;;  %v2421_v32 = vpop.f32.mrb[36].mxu0  ;;  %v2462_v10 = vpop.f32.mrb[36].mxu1 }
 0x1d0   :  { %v2469_v43 = vadd.f32 %v7835_v51, %v2421_v32  ;;  %v2471_v23 = vadd.f32 %v7851_v39, %v2462_v10  ;;  %v2423_v25 = vpop.f32.mrb[37].mxu0  ;;  %v2464_v24 = vpop.f32.mrb[37].mxu1  ;;  %v11166_v51 = vld [vmem:[#allocation22_spill] sm:$0xff]  ;;  %v11171_v10 = vld [vmem:[#allocation27_spill] sm:$0xff] }
 0x1d1   :  { %8536 = vtanh.f32 %v9931_v35  ;;  %v2470_v27 = vadd.f32 %v7836_v12, %v2423_v25  ;;  %v2472_v28 = vadd.f32 %v7852_v49, %v2464_v24  ;;  %v2425_v37 = vpop.f32.mrb[38].mxu0  ;;  %v2466_v15 = vpop.f32.mrb[38].mxu1  ;;  %v10011_v24 = vld [vmem:[#allocation11 + $0x20] ss:$16 sps:$4 sm:$0xff]  }
 0x1d2   :  { %v7269_v48 = vmul.f32 -1.442695, %v2469_v43  ;;  %v2426_v21 = vpop.f32.mrb[39].mxu0  ;;  %v2467_v53 = vpop.f32.mrb[39].mxu1  ;;  %v11172_v43 = vld [vmem:[#allocation28_spill] sm:$0xff] }
 0x1d3   :  { %v7270_v22 = vmul.f32 -1.442695, %v2470_v27  ;;  %v7271_v29 = vmul.f32 -1.442695, %v2472_v28  ;;  %v10013_v27 = vld [vmem:[#allocation11 + $0x28] ss:$16 sps:$4 sm:$0xff]  }
 0x1d4   :  { %8538 = vpow2.f32 %v7269_v48  ;;  %v10019_v28 = vld [vmem:[#allocation11 + $0x44] ss:$16 sps:$4 sm:$0xff]   ;;  %v10021_v37 = vld [vmem:[#allocation11 + $0x4c] ss:$16 sps:$4 sm:$0xff]   ;;  %v10023_v15 = vld [vmem:[#allocation11 + $0x40] ss:$16 sps:$4 sm:$0xff]  }
 0x1d5   :  { %8540 = vpow2.f32 %v7270_v22  ;;  %v10025_v48 = vld [vmem:[#allocation11 + $0x48] ss:$16 sps:$4 sm:$0xff]   ;;  %v10031_v21 = vld [vmem:[#allocation11 + $0x64] ss:$16 sps:$4 sm:$0xff]   ;;  %v10033_v53 = vld [vmem:[#allocation11 + $0x6c] ss:$16 sps:$4 sm:$0xff]  }
 0x1d6   :  { %8542 = vpow2.f32 %v7271_v29  ;;  %v10035_v22 = vld [vmem:[#allocation11 + $0x60] ss:$16 sps:$4 sm:$0xff]   ;;  %v10045_v29 = vld [vmem:[#allocation11 + $0x8c] ss:$16 sps:$4 sm:$0xff]  }
 0x1d7   :  { %8544 = vtanh.f32 %v2471_v23  ;;  %v11173_v23 = vld [vmem:[#allocation29_spill] sm:$0xff] }
 0x1db   :  { %v8537_v20 = vpop.eup %8536 }
 0x1dc   :  { %v2176_v31 = vmul.f32 %v8537_v20, %v8535_v52  ;;  %v10037_v52 = vld [vmem:[#allocation11 + $0x68] ss:$16 sps:$4 sm:$0xff]   ;;  %v10043_v20 = vld [vmem:[#allocation11 + $0x84] ss:$16 sps:$4 sm:$0xff]  }
 0x1de   :  { %v8539_v33 = vpop.eup %8538  ;;  %v9942_v5 = vsel %vm2183_vm8, %v2176_v31, 0.0  ;;  %v7778_v54 = vpack.c.bf16 %v2176_v31, %v2176_v31  ;;  %v10047_v31 = vld [vmem:[#allocation11 + $0x80] ss:$16 sps:$4 sm:$0xff]  }
 0x1df   :  { %v8541_v16 = vpop.eup %8540  ;;  %v2187_v18 = vpack.c.bf16 %v9942_v5, %v9942_v5  ;;  %v2476_v19 = vadd.f32 1.0, %v8539_v33  ;;  %v10049_v33 = vld [vmem:[#allocation11 + $0x88] ss:$16 sps:$4 sm:$0xff]  }
 0x1e0   :  { %v2482_v45 = vadd.f32 1.0, %v8541_v16  ;;  %7779 = vmatmul.mubr.msk.bf16.vlgmr.msra.gmra.mrb[40].mxu0 %vm7777_vm9, %v7778_v54  ;;  %7782 = vmatmul.mubr.msk.bf16.vlgmr.msra.gmra.mrb[40].mxu1 %vm7777_vm9, %v7778_v54  ;;  %v10055_v54 = vld [vmem:[#allocation11 + $0xa4] ss:$16 sps:$4 sm:$0xff]   ;;  %v10057_v16 = vld [vmem:[#allocation11 + $0xac] ss:$16 sps:$4 sm:$0xff]  }
 0x1e1   :  { %2188 = vst [vmem:[#allocation14] sm:$0xf] %v2187_v18  ;;  %8546 = vrcp.f32 %v2476_v19  ;;  %3028 = vmatpush1.bf16.msra.mxu0 %v9528_v56  ;;  %3069 = vmatpush1.bf16.msra.mxu1 %v9530_v57  ;;  %v8543_v56 = vpop.eup %8542  ;;  %v11165_v57 = vld [vmem:[#allocation21_spill] sm:$0xff]  ;;  %v10061_v19 = vld [vmem:[#allocation11 + $0xa8] ss:$16 sps:$4 sm:$0xff]  }
 0x1e2   :  { %8548 = vrcp.f32 %v2482_v45  ;;  %3029 = vmatprep.subr.bf16.mxu0 %v9532_v58  ;;  %3070 = vmatprep.subr.bf16.mxu1 %v9534_v59  ;;  %v8545_v58 = vpop.eup %8544  ;;  %v11167_v59 = vld [vmem:[#allocation23_spill] sm:$0xff] }
 0x1e3   :  { %3059 = vmatprep.mubr.bf16.mxu0 %v11112_v55  ;;  %3100 = vmatprep.mubr.bf16.mxu1 %v11112_v55  ;;  %v10059_v18 = vld [vmem:[#allocation11 + $0xa0] ss:$16 sps:$4 sm:$0xff]   ;;  %v10067_v45 = vld [vmem:[#allocation11 + $0xc4] ss:$16 sps:$4 sm:$0xff]  }
 0x1e5   :  { %3030 = vmatpush1.bf16.msra.mxu0 %v9542_v60  ;;  %3071 = vmatpush1.bf16.msra.mxu1 %v9544_v61  ;;  %v2489_v60 = vadd.f32 1.0, %v8543_v56  ;;  %v11168_v61 = vld [vmem:[#allocation24_spill] sm:$0xff] }
 0x1e6   :  { %3031 = vmatprep.subr.bf16.mxu0 %v9548_v63  ;;  %3072 = vmatprep.subr.bf16.mxu1 %v9550_v1  ;;  %v11169_v63 = vld [vmem:[#allocation25_spill] sm:$0xff]  ;;  %v11170_v1 = vld [vmem:[#allocation26_spill] sm:$0xff] }
 0x1e7   :  { %8550 = vrcp.f32 %v2489_v60  ;;  %v10069_v56 = vld [vmem:[#allocation11 + $0xcc] ss:$16 sps:$4 sm:$0xff]  }
 0x1e8   :  { %v10093_v60 = vld [vmem:[#allocation13 + $0xc] ss:$16 sps:$4 sm:$0xff]  }
 0x1e9   :  { %3032 = vmatpush1.bf16.msra.mxu0 %v9560_v3  ;;  %3073 = vmatpush1.bf16.msra.mxu1 %v11165_v57  ;;  %v10071_v57 = vld [vmem:[#allocation11 + $0xc0] ss:$16 sps:$4 sm:$0xff]   ;;  %11175 = vst [vmem:[#allocation22_spill] sm:$0xff] %v10093_v60 }
 0x1ea   :  { %3033 = vmatprep.subr.bf16.mxu0 %v11166_v51  ;;  %3074 = vmatprep.subr.bf16.mxu1 %v11167_v59  ;;  %v10079_v51 = vld [vmem:[#allocation11 + $0xe4] ss:$16 sps:$4 sm:$0xff]   ;;  %v10081_v59 = vld [vmem:[#allocation11 + $0xec] ss:$16 sps:$4 sm:$0xff]  }
 0x1eb   :  { %v8547_v39 = vpop.eup %8546 }
 0x1ec   :  { %v8549_v12 = vpop.eup %8548  ;;  %v2493_v49 = vmul.f32 %v8547_v39, %v8545_v58  ;;  %v10073_v58 = vld [vmem:[#allocation11 + $0xc8] ss:$16 sps:$4 sm:$0xff]   ;;  %v10083_v39 = vld [vmem:[#allocation11 + $0xe0] ss:$16 sps:$4 sm:$0xff]  }
 0x1ed   :  { %v2492_v32 = vmul.f32 0.0, %v8549_v12  ;;  %3034 = vmatpush1.bf16.msra.mxu0 %v11168_v61  ;;  %3075 = vmatpush1.bf16.msra.mxu1 %v11169_v63  ;;  %v10085_v12 = vld [vmem:[#allocation11 + $0xe8] ss:$16 sps:$4 sm:$0xff]  }
 0x1ee   :  { %3035 = vmatprep.subr.bf16.mxu0 %v11170_v1  ;;  %3076 = vmatprep.subr.bf16.mxu1 %v11171_v10 }
 0x1ef   :  { %v9964_v3 = vadd.f32 %v2493_v49, %v2492_v32  ;;  %v10091_v49 = vld [vmem:[#allocation13 + $0x4] ss:$16 sps:$4 sm:$0xff]  }
 0x1f0   :  { %11174 = vst [vmem:[#allocation21_spill] sm:$0xff] %v10091_v49 }
 0x1f1   :  { %8552 = vtanh.f32 %v9964_v3  ;;  %3036 = vmatpush1.bf16.msra.mxu0 %v9596_v13  ;;  %3077 = vmatpush1.bf16.msra.mxu1 %v9598_v14  ;;  %v8551_v25 = vpop.eup %8550  ;;  %v9979_v14 = vpop.permute.xlu0 %2501 }
 0x1f2   :  { %3037 = vmatprep.subr.bf16.mxu0 %v9600_v17  ;;  %3078 = vmatprep.subr.bf16.mxu1 %v11172_v43  ;;  %vm2503_vm10 = vcmp.eq.s32.totalorder %v9979_v14, 1 }
 0x1f3   :  { %vm7783_vm11 = vmpackc.low %vm2503_vm10, %vm2503_vm10 }
 0x1f5   :  { %3038 = vmatpush1.bf16.msra.mxu0 %v9613_v46  ;;  %3079 = vmatpush1.bf16.msra.mxu1 %v9615_v62  ;;  %v10009_v46 = vld [vmem:[#allocation11 + $0x2c] ss:$16 sps:$4 sm:$0xff]  }
 0x1f6   :  { %3039 = vmatprep.subr.bf16.mxu0 %v9617_v6  ;;  %3080 = vmatprep.subr.bf16.mxu1 %v11173_v23 }
 0x1f9   :  { %3040 = vmatpush1.bf16.msra.mxu0 %v9629_v11  ;;  %3081 = vmatpush1.bf16.msra.mxu1 %v9631_v9  ;;  %v9999_v9 = vld [vmem:[#allocation11] ss:$16 sps:$4 sm:$0xff]   ;;  %v10001_v11 = vld [vmem:[#allocation11 + $0x8] ss:$16 sps:$4 sm:$0xff]  }
 0x1fa   :  { %3041 = vmatprep.subr.bf16.mxu0 %v9633_v8  ;;  %3082 = vmatprep.subr.bf16.mxu1 %v9635_v4  ;;  %v9997_v8 = vld [vmem:[#allocation11 + $0xc] ss:$16 sps:$4 sm:$0xff]  }
 0x1fb   :  { %v8553_v13 = vpop.eup %8552 }
 0x1fc   :  { %v2496_v17 = vmul.f32 %v8553_v13, %v8551_v25 }
 0x1fd   :  { %3042 = vmatpush1.bf16.msra.mxu0 %v9642_v0  ;;  %3083 = vmatpush1.bf16.msra.mxu1 %v9644_v26  ;;  %v9995_v0 = vld [vmem:[#allocation11 + $0x4] ss:$16 sps:$4 sm:$0xff]  }
 0x1fe   :  { %v7784_v62 = vpack.c.bf16 %v2496_v17, %v2496_v17  ;;  %v9986_v6 = vsel %vm2503_vm10, %v2496_v17, 0.0  ;;  %3347 = vmatprep.subr.bf16.mxu0 %v9995_v0  ;;  %3388 = vmatprep.subr.bf16.mxu1 %v9997_v8  ;;  %v10007_v26 = vld [vmem:[#allocation11 + $0x24] ss:$16 sps:$4 sm:$0xff]  }
 0x1ff   :  { %v2507_v4 = vpack.c.bf16 %v9986_v6, %v9986_v6 }
 0x200   :  { %7785 = vmatmul.mubr.msk.bf16.vlgmr.msra.gmra.mrb[44].mxu0 %vm7783_vm11, %v7784_v62  ;;  %7788 = vmatmul.mubr.msk.bf16.vlgmr.msra.gmra.mrb[44].mxu1 %vm7783_vm11, %v7784_v62 }
 0x201   :  { %3379 = vmatprep.mubr.bf16.mxu0 %v11112_v55  ;;  %3420 = vmatprep.mubr.bf16.mxu1 %v11112_v55  ;;  %2508 = vst [vmem:[#allocation15 + $0x1c] sm:$0xf] %v2507_v4 }
 0x202   :  { %3348 = vmatpush1.bf16.msra.mxu0 %v9999_v9  ;;  %3389 = vmatpush1.bf16.msra.mxu1 %v10001_v11 }
 0x203   :  { %3349 = vmatprep.subr.bf16.mxu0 %v10007_v26  ;;  %3390 = vmatprep.subr.bf16.mxu1 %v10009_v46 }
 0x206   :  { %3350 = vmatpush1.bf16.msra.mxu0 %v10011_v24  ;;  %3391 = vmatpush1.bf16.msra.mxu1 %v10013_v27 }
 0x207   :  { %3351 = vmatprep.subr.bf16.mxu0 %v10019_v28  ;;  %3392 = vmatprep.subr.bf16.mxu1 %v10021_v37 }
 0x20a   :  { %3352 = vmatpush1.bf16.msra.mxu0 %v10023_v15  ;;  %3393 = vmatpush1.bf16.msra.mxu1 %v10025_v48 }
 0x20b   :  { %3353 = vmatprep.subr.bf16.mxu0 %v10031_v21  ;;  %3394 = vmatprep.subr.bf16.mxu1 %v10033_v53 }
 0x20e   :  { %3354 = vmatpush1.bf16.msra.mxu0 %v10035_v22  ;;  %3395 = vmatpush1.bf16.msra.mxu1 %v10037_v52 }
 0x20f   :  { %3355 = vmatprep.subr.bf16.mxu0 %v10043_v20  ;;  %3396 = vmatprep.subr.bf16.mxu1 %v10045_v29 }
 0x212   :  { %3356 = vmatpush1.bf16.msra.mxu0 %v10047_v31  ;;  %3397 = vmatpush1.bf16.msra.mxu1 %v10049_v33 }
 0x213   :  { %3357 = vmatprep.subr.bf16.mxu0 %v10055_v54  ;;  %3398 = vmatprep.subr.bf16.mxu1 %v10057_v16 }
 0x216   :  { %3358 = vmatpush1.bf16.msra.mxu0 %v10059_v18  ;;  %3399 = vmatpush1.bf16.msra.mxu1 %v10061_v19 }
 0x217   :  { %3359 = vmatprep.subr.bf16.mxu0 %v10067_v45  ;;  %3400 = vmatprep.subr.bf16.mxu1 %v10069_v56 }
 0x21a   :  { %3360 = vmatpush1.bf16.msra.mxu0 %v10071_v57  ;;  %3401 = vmatpush1.bf16.msra.mxu1 %v10073_v58 }
 0x21b   :  { %3361 = vmatprep.subr.bf16.mxu0 %v10079_v51  ;;  %3402 = vmatprep.subr.bf16.mxu1 %v10081_v59 }
 0x21e   :  { %3362 = vmatpush1.bf16.msra.mxu0 %v10083_v39  ;;  %3403 = vmatpush1.bf16.msra.mxu1 %v10085_v12 }
 0x21f   :  { %3667 = vmatprep.subr.bf16.mxu0 %v10091_v49  ;;  %3708 = vmatprep.subr.bf16.mxu1 %v10093_v60 }
 0x2b3   :  { %v2741_v32 = vpop.f32.mrb[40].mxu0  ;;  %v2782_v61 = vpop.f32.mrb[40].mxu1 }
 0x2b4   :  { %v2789_v63 = vadd.f32 %v9725_v34, %v2741_v32  ;;  %v2791_v1 = vadd.f32 %v9728_v36, %v2782_v61  ;;  %v2743_v10 = vpop.f32.mrb[41].mxu0  ;;  %v2784_v43 = vpop.f32.mrb[41].mxu1 }
 0x2b5   :  { %v2790_v23 = vadd.f32 %v9731_v40, %v2743_v10  ;;  %v2792_v25 = vadd.f32 %v9734_v41, %v2784_v43  ;;  %v2745_v13 = vpop.f32.mrb[42].mxu0  ;;  %v2786_v17 = vpop.f32.mrb[42].mxu1 }
 0x2b6   :  { %v7305_v62 = vmul.f32 -1.442695, %v2789_v63  ;;  %v2746_v4 = vpop.f32.mrb[43].mxu0  ;;  %v2787_v50 = vpop.f32.mrb[43].mxu1 }
 0x2b7   :  { %v7306_v47 = vmul.f32 -1.442695, %v2790_v23  ;;  %v7307_v44 = vmul.f32 -1.442695, %v2792_v25  ;;  %v2185_v50 = vsel %vm2183_vm8, %v9931_v35, 0.0 }
 0x2b8   :  { %8554 = vpow2.f32 %v7305_v62 }
 0x2b9   :  { %8556 = vpow2.f32 %v7306_v47  ;;  %v2822_v47 = vpop.permute.xlu1 %2821 }
 0x2ba   :  { %8558 = vpow2.f32 %v7307_v44  ;;  %vm2823_vm12 = vcmp.eq.s32.totalorder %v2822_v47, 1  ;;  %v10128_v47 = vld [vmem:[#allocation13 + $0x20] ss:$16 sps:$4 sm:$0xff]  }
 0x2bb   :  { %8560 = vtanh.f32 %v2791_v1 }
 0x2c2   :  { %v8555_v60 = vpop.eup %8554 }
 0x2c3   :  { %v8557_v49 = vpop.eup %8556  ;;  %v2796_v34 = vadd.f32 1.0, %v8555_v60 }
 0x2c4   :  { %v2802_v36 = vadd.f32 1.0, %v8557_v49  ;;  %v8559_v40 = vpop.eup %8558 }
 0x2c5   :  { %8562 = vrcp.f32 %v2796_v34  ;;  %v8561_v32 = vpop.eup %8560  ;;  %v2809_v63 = vadd.f32 1.0, %v8559_v40 }
 0x2c6   :  { %8564 = vrcp.f32 %v2802_v36 }
 0x2c7   :  { %8566 = vrcp.f32 %v2809_v63 }
 0x2cf   :  { %v8563_v41 = vpop.eup %8562 }
 0x2d0   :  { %v8565_v61 = vpop.eup %8564  ;;  %v2813_v10 = vmul.f32 %v8563_v41, %v8561_v32 }
 0x2d1   :  { %v2812_v43 = vmul.f32 %v8565_v61, %v2185_v50 }
 0x2d3   :  { %v2814_v23 = vadd.f32 %v2813_v10, %v2812_v43  ;;  %v3061_v60 = vpop.f32.mrb[44].mxu0  ;;  %v3102_v44 = vpop.f32.mrb[44].mxu1  ;;  %v10118_v10 = vld [vmem:[#allocation13 + $0x8] ss:$16 sps:$4 sm:$0xff]  }
 0x2d4   :  { %v3109_v49 = vadd.f32 %v9908_v7, %v3061_v60  ;;  %v3111_v1 = vadd.f32 %v9911_v2, %v3102_v44  ;;  %v3063_v25 = vpop.f32.mrb[45].mxu0  ;;  %v3104_v13 = vpop.f32.mrb[45].mxu1 }
 0x2d5   :  { %8568 = vtanh.f32 %v2814_v23  ;;  %v10107_v17 = vsel %vm2823_vm12, %v2814_v23, %v2185_v50  ;;  %v3110_v35 = vadd.f32 %v9914_v38, %v3063_v25  ;;  %v3112_v30 = vadd.f32 %v9917_v42, %v3104_v13  ;;  %v3065_v62 = vpop.f32.mrb[46].mxu0  ;;  %v3106_v4 = vpop.f32.mrb[46].mxu1  ;;  %v10116_v42 = vld [vmem:[#allocation13] ss:$16 sps:$4 sm:$0xff]   ;;  %v10124_v25 = vld [vmem:[#allocation13 + $0x2c] ss:$16 sps:$4 sm:$0xff]  }
 0x2d6   :  { %v7341_v34 = vmul.f32 -1.442695, %v3109_v49  ;;  %v3066_v36 = vpop.f32.mrb[47].mxu0  ;;  %v3107_v40 = vpop.f32.mrb[47].mxu1  ;;  %v10122_v49 = vld [vmem:[#allocation13 + $0x24] ss:$16 sps:$4 sm:$0xff]  }
 0x2d7   :  { %v7342_v32 = vmul.f32 -1.442695, %v3110_v35  ;;  %v8567_v7 = vpop.eup %8566  ;;  %v7343_v41 = vmul.f32 -1.442695, %v3112_v30  ;;  %v10130_v13 = vld [vmem:[#allocation13 + $0x28] ss:$16 sps:$4 sm:$0xff]  }
 0x2d8   :  { %8570 = vpow2.f32 %v7341_v34  ;;  %v10134_v35 = vld [vmem:[#allocation13 + $0x44] ss:$16 sps:$4 sm:$0xff]   ;;  %v10142_v30 = vld [vmem:[#allocation13 + $0x40] ss:$16 sps:$4 sm:$0xff]   ;;  %v10144_v62 = vld [vmem:[#allocation13 + $0x48] ss:$16 sps:$4 sm:$0xff]  }
 0x2d9   :  { %8572 = vpow2.f32 %v7342_v32  ;;  %11176 = vst [vmem:[#allocation23_spill] sm:$0xff] %v10144_v62  ;;  %v10148_v4 = vld [vmem:[#allocation13 + $0x64] ss:$16 sps:$4 sm:$0xff]   ;;  %v10150_v34 = vld [vmem:[#allocation13 + $0x6c] ss:$16 sps:$4 sm:$0xff]  }
 0x2da   :  { %8574 = vpow2.f32 %v7343_v41  ;;  %11177 = vst [vmem:[#allocation24_spill] sm:$0xff] %v10148_v4  ;;  %11178 = vst [vmem:[#allocation25_spill] sm:$0xff] %v10150_v34  ;;  %v10154_v32 = vld [vmem:[#allocation13 + $0x60] ss:$16 sps:$4 sm:$0xff]   ;;  %v10160_v41 = vld [vmem:[#allocation13 + $0x84] ss:$16 sps:$4 sm:$0xff]  }
 0x2db   :  { %8576 = vtanh.f32 %v3111_v1  ;;  %v10136_v1 = vld [vmem:[#allocation13 + $0x4c] ss:$16 sps:$4 sm:$0xff]  }
 0x2df   :  { %v8569_v2 = vpop.eup %8568 }
 0x2e0   :  { %v2816_v61 = vmul.f32 %v8569_v2, %v8567_v7  ;;  %v10156_v7 = vld [vmem:[#allocation13 + $0x68] ss:$16 sps:$4 sm:$0xff]  }
 0x2e2   :  { %v8571_v63 = vpop.eup %8570  ;;  %v10113_v50 = vsel %vm2823_vm12, %v2816_v61, %v9942_v5  ;;  %v2826_v38 = vsel %vm2823_vm12, %v2816_v61, 0.0  ;;  %v10162_v61 = vld [vmem:[#allocation13 + $0x8c] ss:$16 sps:$4 sm:$0xff]  }
 0x2e3   :  { %v8573_v43 = vpop.eup %8572  ;;  %v2827_v23 = vpack.c.bf16 %v2826_v38, %v2826_v38  ;;  %v3154_v60 = vpack.c.bf16 %v10113_v50, %v10113_v50  ;;  %v3116_v44 = vadd.f32 1.0, %v8571_v63  ;;  %v2505_v38 = vsel %vm2503_vm10, %v9964_v3, 0.0  ;;  %v10177_v3 = vld [vmem:[#allocation13 + $0xac] ss:$16 sps:$4 sm:$0xff]  }
 0x2e4   :  { %v3122_v5 = vadd.f32 1.0, %v8573_v43  ;;  %v8575_v36 = vpop.eup %8574  ;;  %11180 = vst [vmem:[#allocation27_spill] sm:$0xff] %v10177_v3 }
 0x2e5   :  { %2828 = vst [vmem:[#allocation14 + $0x4] sm:$0xf] %v2827_v23  ;;  %8578 = vrcp.f32 %v3116_v44  ;;  %3380 = vmatmul.mubr.bf16.vlgmr.msra.gmra.mrb[48].mxu0 %v3154_v60  ;;  %3421 = vmatmul.mubr.bf16.vlgmr.msra.gmra.mrb[48].mxu1 %v3154_v60  ;;  %v8577_v40 = vpop.eup %8576  ;;  %v3129_v23 = vadd.f32 1.0, %v8575_v36  ;;  %v10169_v44 = vld [vmem:[#allocation13 + $0x80] ss:$16 sps:$4 sm:$0xff]  }
 0x2e6   :  { %8580 = vrcp.f32 %v3122_v5  ;;  %3668 = vmatpush1.bf16.msra.mxu0 %v10116_v42  ;;  %3709 = vmatpush1.bf16.msra.mxu1 %v10118_v10  ;;  %v10171_v5 = vld [vmem:[#allocation13 + $0x88] ss:$16 sps:$4 sm:$0xff]   ;;  %v10184_v36 = vld [vmem:[#allocation13 + $0xa0] ss:$16 sps:$4 sm:$0xff]  }
 0x2e7   :  { %3669 = vmatprep.subr.bf16.mxu0 %v10122_v49  ;;  %3710 = vmatprep.subr.bf16.mxu1 %v10124_v25  ;;  %8582 = vrcp.f32 %v3129_v23  ;;  %11181 = vst [vmem:[#allocation28_spill] sm:$0xff] %v10184_v36  ;;  %v10204_v23 = vld [vmem:[#allocation13 + $0xec] ss:$16 sps:$4 sm:$0xff]  }
 0x2e8   :  { %3699 = vmatprep.mubr.bf16.mxu0 %v11112_v55  ;;  %3740 = vmatprep.mubr.bf16.mxu1 %v11112_v55 }
 0x2ea   :  { %3670 = vmatpush1.bf16.msra.mxu0 %v10128_v47  ;;  %3711 = vmatpush1.bf16.msra.mxu1 %v10130_v13 }
 0x2eb   :  { %3671 = vmatprep.subr.bf16.mxu0 %v10134_v35  ;;  %3712 = vmatprep.subr.bf16.mxu1 %v10136_v1 }
 0x2ee   :  { %3672 = vmatpush1.bf16.msra.mxu0 %v10142_v30  ;;  %3713 = vmatpush1.bf16.msra.mxu1 %v10144_v62  ;;  %v10175_v62 = vld [vmem:[#allocation13 + $0xa4] ss:$16 sps:$4 sm:$0xff]  }
 0x2ef   :  { %v8579_v2 = vpop.eup %8578  ;;  %3673 = vmatprep.subr.bf16.mxu0 %v10148_v4  ;;  %3714 = vmatprep.subr.bf16.mxu1 %v10150_v34  ;;  %v3142_v34 = vpop.permute.xlu1 %3141  ;;  %11179 = vst [vmem:[#allocation26_spill] sm:$0xff] %v10175_v62 }
 0x2f0   :  { %v8581_v63 = vpop.eup %8580  ;;  %v3133_v43 = vmul.f32 %v8579_v2, %v8577_v40  ;;  %vm3143_vm13 = vcmp.eq.s32.totalorder %v3142_v34, 1  ;;  %v10186_v40 = vld [vmem:[#allocation13 + $0xa8] ss:$16 sps:$4 sm:$0xff]   ;;  %v10190_v2 = vld [vmem:[#allocation13 + $0xc4] ss:$16 sps:$4 sm:$0xff]  }
 0x2f1   :  { %v3132_v60 = vmul.f32 %v8581_v63, %v2505_v38  ;;  %11182 = vst [vmem:[#allocation29_spill] sm:$0xff] %v10186_v40  ;;  %11183 = vst [vmem:[#allocation78_spill] sm:$0xff] %v10190_v2  ;;  %v10192_v63 = vld [vmem:[#allocation13 + $0xcc] ss:$16 sps:$4 sm:$0xff]  }
 0x2f2   :  { %3674 = vmatpush1.bf16.msra.mxu0 %v10154_v32  ;;  %3715 = vmatpush1.bf16.msra.mxu1 %v10156_v7  ;;  %11184 = vst [vmem:[#allocation79_spill] sm:$0xff] %v10192_v63 }
 0x2f3   :  { %v3134_v4 = vadd.f32 %v3133_v43, %v3132_v60  ;;  %3675 = vmatprep.subr.bf16.mxu0 %v10160_v41  ;;  %3716 = vmatprep.subr.bf16.mxu1 %v10162_v61  ;;  %v10202_v43 = vld [vmem:[#allocation13 + $0xe4] ss:$16 sps:$4 sm:$0xff]   ;;  %v8583_v60 = vpop.eup %8582 }
 0x2f5   :  { %8584 = vtanh.f32 %v3134_v4  ;;  %v10180_v14 = vsel %vm3143_vm13, %v3134_v4, %v2505_v38  ;;  %v10196_v4 = vld [vmem:[#allocation13 + $0xc0] ss:$16 sps:$4 sm:$0xff]   ;;  %v10198_v38 = vld [vmem:[#allocation13 + $0xc8] ss:$16 sps:$4 sm:$0xff]  }
 0x2f6   :  { %3676 = vmatpush1.bf16.msra.mxu0 %v10169_v44  ;;  %3717 = vmatpush1.bf16.msra.mxu1 %v10171_v5  ;;  %11185 = vst [vmem:[#allocation80_spill] sm:$0xff] %v10196_v4  ;;  %11186 = vst [vmem:[#allocation81_spill] sm:$0xff] %v10198_v38 }
 0x2f7   :  { %3677 = vmatprep.subr.bf16.mxu0 %v10175_v62  ;;  %3718 = vmatprep.subr.bf16.mxu1 %v10177_v3 }
 0x2fa   :  { %3678 = vmatpush1.bf16.msra.mxu0 %v10184_v36  ;;  %3719 = vmatpush1.bf16.msra.mxu1 %v10186_v40  ;;  %v10208_v36 = vld [vmem:[#allocation13 + $0xe0] ss:$16 sps:$4 sm:$0xff]   ;;  %v10210_v40 = vld [vmem:[#allocation13 + $0xe8] ss:$16 sps:$4 sm:$0xff]  }
 0x2fb   :  { %3679 = vmatprep.subr.bf16.mxu0 %v10190_v2  ;;  %3720 = vmatprep.subr.bf16.mxu1 %v10192_v63 }
 0x2fe   :  { %3680 = vmatpush1.bf16.msra.mxu0 %v10196_v4  ;;  %3721 = vmatpush1.bf16.msra.mxu1 %v10198_v38 }
 0x2ff   :  { %v8585_v3 = vpop.eup %8584  ;;  %3681 = vmatprep.subr.bf16.mxu0 %v10202_v43  ;;  %3722 = vmatprep.subr.bf16.mxu1 %v10204_v23 }
 0x300   :  { %v3136_v2 = vmul.f32 %v8585_v3, %v8583_v60 }
 0x302   :  { %3682 = vmatpush1.bf16.msra.mxu0 %v10208_v36  ;;  %3723 = vmatpush1.bf16.msra.mxu1 %v10210_v40  ;;  %v10218_v63 = vsel %vm3143_vm13, %v3136_v2, %v9986_v6  ;;  %v3146_v38 = vsel %vm3143_vm13, %v3136_v2, 0.0  ;;  %v11187_v6 = vld [vmem:[#allocation21_spill] sm:$0xff]  ;;  %v11193_v2 = vld [vmem:[#allocation74_spill] sm:$0xff] }
 0x303   :  { %v3147_v4 = vpack.c.bf16 %v3146_v38, %v3146_v38  ;;  %v3474_v62 = vpack.c.bf16 %v10218_v63, %v10218_v63  ;;  %3987 = vmatprep.subr.bf16.mxu0 %v9995_v0  ;;  %4028 = vmatprep.subr.bf16.mxu1 %v9997_v8  ;;  %v11188_v0 = vld [vmem:[#allocation22_spill] sm:$0xff]  ;;  %v11194_v38 = vld [vmem:[#allocation75_spill] sm:$0xff] }
 0x305   :  { %3148 = vst [vmem:[#allocation15 + $0x18] sm:$0xf] %v3147_v4  ;;  %3700 = vmatmul.mubr.bf16.vlgmr.msra.gmra.mrb[52].mxu0 %v3474_v62  ;;  %3741 = vmatmul.mubr.bf16.vlgmr.msra.gmra.mrb[52].mxu1 %v3474_v62 }
 0x306   :  { %3988 = vmatpush1.bf16.msra.mxu0 %v9999_v9  ;;  %4029 = vmatpush1.bf16.msra.mxu1 %v10001_v11  ;;  %v11189_v11 = vld [vmem:[#allocation30_spill] sm:$0xff] }
 0x307   :  { %3989 = vmatprep.subr.bf16.mxu0 %v10007_v26  ;;  %4030 = vmatprep.subr.bf16.mxu1 %v10009_v46  ;;  %v11190_v46 = vld [vmem:[#allocation31_spill] sm:$0xff] }
 0x308   :  { %4019 = vmatprep.mubr.bf16.mxu0 %v11112_v55  ;;  %4060 = vmatprep.mubr.bf16.mxu1 %v11112_v55 }
 0x30a   :  { %3990 = vmatpush1.bf16.msra.mxu0 %v10011_v24  ;;  %4031 = vmatpush1.bf16.msra.mxu1 %v10013_v27 }
 0x30b   :  { %3991 = vmatprep.subr.bf16.mxu0 %v10019_v28  ;;  %4032 = vmatprep.subr.bf16.mxu1 %v10021_v37  ;;  %v11191_v37 = vld [vmem:[#allocation32_spill] sm:$0xff] }
 0x30e   :  { %3992 = vmatpush1.bf16.msra.mxu0 %v10023_v15  ;;  %4033 = vmatpush1.bf16.msra.mxu1 %v10025_v48  ;;  %v11192_v48 = vld [vmem:[#allocation33_spill] sm:$0xff] }
 0x30f   :  { %3993 = vmatprep.subr.bf16.mxu0 %v10031_v21  ;;  %4034 = vmatprep.subr.bf16.mxu1 %v10033_v53 }
 0x312   :  { %3994 = vmatpush1.bf16.msra.mxu0 %v10035_v22  ;;  %4035 = vmatpush1.bf16.msra.mxu1 %v10037_v52 }
 0x313   :  { %3995 = vmatprep.subr.bf16.mxu0 %v10043_v20  ;;  %4036 = vmatprep.subr.bf16.mxu1 %v10045_v29 }
 0x316   :  { %3996 = vmatpush1.bf16.msra.mxu0 %v10047_v31  ;;  %4037 = vmatpush1.bf16.msra.mxu1 %v10049_v33 }
 0x317   :  { %3997 = vmatprep.subr.bf16.mxu0 %v10055_v54  ;;  %4038 = vmatprep.subr.bf16.mxu1 %v10057_v16 }
 0x31a   :  { %3998 = vmatpush1.bf16.msra.mxu0 %v10059_v18  ;;  %4039 = vmatpush1.bf16.msra.mxu1 %v10061_v19 }
 0x31b   :  { %3999 = vmatprep.subr.bf16.mxu0 %v10067_v45  ;;  %4040 = vmatprep.subr.bf16.mxu1 %v10069_v56 }
 0x31e   :  { %4000 = vmatpush1.bf16.msra.mxu0 %v10071_v57  ;;  %4041 = vmatpush1.bf16.msra.mxu1 %v10073_v58 }
 0x31f   :  { %4001 = vmatprep.subr.bf16.mxu0 %v10079_v51  ;;  %4042 = vmatprep.subr.bf16.mxu1 %v10081_v59 }
 0x322   :  { %4002 = vmatpush1.bf16.msra.mxu0 %v10083_v39  ;;  %4043 = vmatpush1.bf16.msra.mxu1 %v10085_v12  ;;  %v3462_v12 = vpop.permute.xlu0 %3461 }
 0x323   :  { %4307 = vmatprep.subr.bf16.mxu0 %v11187_v6  ;;  %4348 = vmatprep.subr.bf16.mxu1 %v11188_v0  ;;  %vm3463_vm14 = vcmp.eq.s32.totalorder %v3462_v12, 1 }
 0x3b8   :  { %v3381_v8 = vpop.f32.mrb[48].mxu0  ;;  %v3422_v9 = vpop.f32.mrb[48].mxu1 }
 0x3b9   :  { %v3429_v26 = vadd.f32 %v11189_v11, %v3381_v8  ;;  %v3431_v24 = vadd.f32 %v11190_v46, %v3422_v9  ;;  %v3383_v27 = vpop.f32.mrb[49].mxu0  ;;  %v3424_v28 = vpop.f32.mrb[49].mxu1  ;;  %v11195_v8 = vld [vmem:[#allocation76_spill] sm:$0xff]  ;;  %v11196_v11 = vld [vmem:[#allocation77_spill] sm:$0xff] }
 0x3ba   :  { %v3430_v15 = vadd.f32 %v11191_v37, %v3383_v27  ;;  %v3432_v21 = vadd.f32 %v11192_v48, %v3424_v28  ;;  %v3385_v53 = vpop.f32.mrb[50].mxu0  ;;  %v3426_v22 = vpop.f32.mrb[50].mxu1 }
 0x3bb   :  { %v7377_v52 = vmul.f32 -1.442695, %v3429_v26  ;;  %v3386_v20 = vpop.f32.mrb[51].mxu0  ;;  %v3427_v29 = vpop.f32.mrb[51].mxu1 }
 0x3bc   :  { %v7378_v31 = vmul.f32 -1.442695, %v3430_v15  ;;  %v7379_v33 = vmul.f32 -1.442695, %v3432_v21 }
 0x3bd   :  { %8586 = vpow2.f32 %v7377_v52 }
 0x3be   :  { %8588 = vpow2.f32 %v7378_v31 }
 0x3bf   :  { %8590 = vpow2.f32 %v7379_v33 }
 0x3c0   :  { %8592 = vtanh.f32 %v3431_v24 }
 0x3c7   :  { %v8587_v54 = vpop.eup %8586 }
 0x3c8   :  { %v8589_v16 = vpop.eup %8588  ;;  %v3436_v18 = vadd.f32 1.0, %v8587_v54 }
 0x3c9   :  { %v3442_v19 = vadd.f32 1.0, %v8589_v16  ;;  %v8591_v45 = vpop.eup %8590 }
 0x3ca   :  { %8594 = vrcp.f32 %v3436_v18  ;;  %v8593_v56 = vpop.eup %8592  ;;  %v3449_v59 = vadd.f32 1.0, %v8591_v45 }
 0x3cb   :  { %8596 = vrcp.f32 %v3442_v19  ;;  %v11199_v19 = vld [vmem:[#allocation25_spill] sm:$0xff] }
 0x3cc   :  { %8598 = vrcp.f32 %v3449_v59  ;;  %v11206_v59 = vld [vmem:[#allocation80_spill] sm:$0xff] }
 0x3d4   :  { %v8595_v57 = vpop.eup %8594 }
 0x3d5   :  { %v8597_v58 = vpop.eup %8596  ;;  %v3453_v51 = vmul.f32 %v8595_v57, %v8593_v56  ;;  %v11202_v57 = vld [vmem:[#allocation28_spill] sm:$0xff] }
 0x3d6   :  { %v3452_v39 = vmul.f32 %v8597_v58, %v10107_v17  ;;  %v8599_v21 = vpop.eup %8598  ;;  %v11205_v58 = vld [vmem:[#allocation79_spill] sm:$0xff] }
 0x3d8   :  { %v3454_v62 = vadd.f32 %v3453_v51, %v3452_v39  ;;  %v3701_v34 = vpop.f32.mrb[52].mxu0  ;;  %v3742_v3 = vpop.f32.mrb[52].mxu1 }
 0x3d9   :  { %v3749_v4 = vadd.f32 %v11193_v2, %v3701_v34  ;;  %v3751_v60 = vadd.f32 %v11194_v38, %v3742_v3  ;;  %v3703_v6 = vpop.f32.mrb[53].mxu0  ;;  %v3744_v0 = vpop.f32.mrb[53].mxu1  ;;  %v10339_v3 = vld [vmem:[#allocation11 + $0x2c] ss:$16 sps:$4 sm:$0xff]   ;;  %v10341_v2 = vld [vmem:[#allocation11 + $0x20] ss:$16 sps:$4 sm:$0xff]  }
 0x3da   :  { %8600 = vtanh.f32 %v3454_v62  ;;  %v3750_v9 = vadd.f32 %v11195_v8, %v3703_v6  ;;  %v3752_v26 = vadd.f32 %v11196_v11, %v3744_v0  ;;  %v3705_v46 = vpop.f32.mrb[54].mxu0  ;;  %v3746_v24 = vpop.f32.mrb[54].mxu1  ;;  %v10270_v27 = vsel %vm3463_vm14, %v3454_v62, %v10107_v17  ;;  %v10349_v38 = vld [vmem:[#allocation11 + $0x44] ss:$16 sps:$4 sm:$0xff]   ;;  %v10353_v6 = vld [vmem:[#allocation11 + $0x40] ss:$16 sps:$4 sm:$0xff]  }
 0x3db   :  { %v7413_v28 = vmul.f32 -1.442695, %v3749_v4  ;;  %v3706_v37 = vpop.f32.mrb[55].mxu0  ;;  %v3747_v15 = vpop.f32.mrb[55].mxu1  ;;  %v10343_v4 = vld [vmem:[#allocation11 + $0x28] ss:$16 sps:$4 sm:$0xff]  }
 0x3dc   :  { %v7414_v48 = vmul.f32 -1.442695, %v3750_v9  ;;  %v7415_v22 = vmul.f32 -1.442695, %v3752_v26  ;;  %v10355_v0 = vld [vmem:[#allocation11 + $0x48] ss:$16 sps:$4 sm:$0xff]  }
 0x3dd   :  { %8602 = vpow2.f32 %v7413_v28  ;;  %v10361_v8 = vld [vmem:[#allocation11 + $0x64] ss:$16 sps:$4 sm:$0xff]   ;;  %v10363_v9 = vld [vmem:[#allocation11 + $0x6c] ss:$16 sps:$4 sm:$0xff]   ;;  %v10365_v11 = vld [vmem:[#allocation11 + $0x60] ss:$16 sps:$4 sm:$0xff]  }
 0x3de   :  { %8604 = vpow2.f32 %v7414_v48  ;;  %v10367_v26 = vld [vmem:[#allocation11 + $0x68] ss:$16 sps:$4 sm:$0xff]   ;;  %v10373_v46 = vld [vmem:[#allocation11 + $0x84] ss:$16 sps:$4 sm:$0xff]   ;;  %v10375_v24 = vld [vmem:[#allocation11 + $0x8c] ss:$16 sps:$4 sm:$0xff]  }
 0x3df   :  { %8606 = vpow2.f32 %v7415_v22  ;;  %v10377_v28 = vld [vmem:[#allocation11 + $0x80] ss:$16 sps:$4 sm:$0xff]   ;;  %v10379_v37 = vld [vmem:[#allocation11 + $0x88] ss:$16 sps:$4 sm:$0xff]   ;;  %v10385_v15 = vld [vmem:[#allocation11 + $0xa4] ss:$16 sps:$4 sm:$0xff]  }
 0x3e0   :  { %8608 = vtanh.f32 %v3751_v60  ;;  %v10351_v60 = vld [vmem:[#allocation11 + $0x4c] ss:$16 sps:$4 sm:$0xff]   ;;  %v10397_v22 = vld [vmem:[#allocation11 + $0xc4] ss:$16 sps:$4 sm:$0xff]  }
 0x3e1   :  { %v10387_v48 = vld [vmem:[#allocation11 + $0xac] ss:$16 sps:$4 sm:$0xff]  }
 0x3e4   :  { %v8601_v53 = vpop.eup %8600 }
 0x3e5   :  { %v3456_v52 = vmul.f32 %v8601_v53, %v8599_v21  ;;  %v10389_v21 = vld [vmem:[#allocation11 + $0xa0] ss:$16 sps:$4 sm:$0xff]   ;;  %v10391_v53 = vld [vmem:[#allocation11 + $0xa8] ss:$16 sps:$4 sm:$0xff]  }
 0x3e7   :  { %v8603_v20 = vpop.eup %8602  ;;  %v10274_v29 = vsel %vm3463_vm14, %v3456_v52, %v10113_v50  ;;  %v3466_v31 = vsel %vm3463_vm14, %v3456_v52, 0.0  ;;  %v10399_v52 = vld [vmem:[#allocation11 + $0xcc] ss:$16 sps:$4 sm:$0xff]  }
 0x3e8   :  { %v8605_v33 = vpop.eup %8604  ;;  %v3756_v17 = vadd.f32 1.0, %v8603_v20  ;;  %v3467_v54 = vpack.c.bf16 %v3466_v31, %v3466_v31  ;;  %v3794_v16 = vpack.c.bf16 %v10274_v29, %v10274_v29  ;;  %v10401_v20 = vld [vmem:[#allocation11 + $0xc0] ss:$16 sps:$4 sm:$0xff]   ;;  %v10403_v31 = vld [vmem:[#allocation11 + $0xc8] ss:$16 sps:$4 sm:$0xff]  }
 0x3e9   :  { %v3762_v18 = vadd.f32 1.0, %v8605_v33  ;;  %v8607_v50 = vpop.eup %8606  ;;  %v10409_v33 = vld [vmem:[#allocation11 + $0xe4] ss:$16 sps:$4 sm:$0xff]  }
 0x3ea   :  { %8610 = vrcp.f32 %v3756_v17  ;;  %3468 = vst [vmem:[#allocation14 + $0x8] sm:$0xf] %v3467_v54  ;;  %4020 = vmatmul.mubr.bf16.vlgmr.msra.gmra.mrb[56].mxu0 %v3794_v16  ;;  %4061 = vmatmul.mubr.bf16.vlgmr.msra.gmra.mrb[56].mxu1 %v3794_v16  ;;  %v10411_v17 = vld [vmem:[#allocation11 + $0xec] ss:$16 sps:$4 sm:$0xff]   ;;  %v10413_v54 = vld [vmem:[#allocation11 + $0xe0] ss:$16 sps:$4 sm:$0xff]  }
 0x3eb   :  { %8612 = vrcp.f32 %v3762_v18  ;;  %4308 = vmatpush1.bf16.msra.mxu0 %v10116_v42  ;;  %4349 = vmatpush1.bf16.msra.mxu1 %v10118_v10  ;;  %v8609_v42 = vpop.eup %8608  ;;  %v11197_v10 = vld [vmem:[#allocation23_spill] sm:$0xff]  ;;  %v10415_v16 = vld [vmem:[#allocation11 + $0xe8] ss:$16 sps:$4 sm:$0xff]  }
 0x3ec   :  { %4309 = vmatprep.subr.bf16.mxu0 %v10122_v49  ;;  %4350 = vmatprep.subr.bf16.mxu1 %v10124_v25  ;;  %v11198_v25 = vld [vmem:[#allocation24_spill] sm:$0xff]  ;;  %v10421_v18 = vld [vmem:[#allocation13 + $0x4] ss:$16 sps:$4 sm:$0xff]  }
 0x3ed   :  { %4339 = vmatprep.mubr.bf16.mxu0 %v11112_v55  ;;  %4380 = vmatprep.mubr.bf16.mxu1 %v11112_v55 }
 0x3ef   :  { %4310 = vmatpush1.bf16.msra.mxu0 %v10128_v47  ;;  %4351 = vmatpush1.bf16.msra.mxu1 %v10130_v13  ;;  %v3769_v47 = vadd.f32 1.0, %v8607_v50  ;;  %v10423_v50 = vld [vmem:[#allocation13 + $0xc] ss:$16 sps:$4 sm:$0xff]  }
 0x3f0   :  { %4311 = vmatprep.subr.bf16.mxu0 %v10134_v35  ;;  %4352 = vmatprep.subr.bf16.mxu1 %v10136_v1  ;;  %v3782_v35 = vpop.permute.xlu1 %3781 }
 0x3f1   :  { %vm3783_vm15 = vcmp.eq.s32.totalorder %v3782_v35, 1  ;;  %8614 = vrcp.f32 %v3769_v47 }
 0x3f3   :  { %4312 = vmatpush1.bf16.msra.mxu0 %v10142_v30  ;;  %4353 = vmatpush1.bf16.msra.mxu1 %v11197_v10 }
 0x3f4   :  { %v8611_v49 = vpop.eup %8610  ;;  %4313 = vmatprep.subr.bf16.mxu0 %v11198_v25  ;;  %4354 = vmatprep.subr.bf16.mxu1 %v11199_v19  ;;  %v11209_v19 = vld [vmem:[#allocation35_spill] sm:$0xff] }
 0x3f5   :  { %v8613_v45 = vpop.eup %8612  ;;  %v3773_v56 = vmul.f32 %v8611_v49, %v8609_v42  ;;  %v11208_v49 = vld [vmem:[#allocation34_spill] sm:$0xff] }
 0x3f6   :  { %v3772_v13 = vmul.f32 %v8613_v45, %v10180_v14 }
 0x3f7   :  { %4314 = vmatpush1.bf16.msra.mxu0 %v10154_v32  ;;  %4355 = vmatpush1.bf16.msra.mxu1 %v10156_v7  ;;  %v11200_v32 = vld [vmem:[#allocation26_spill] sm:$0xff]  ;;  %v11201_v7 = vld [vmem:[#allocation27_spill] sm:$0xff] }
 0x3f8   :  { %v3774_v1 = vadd.f32 %v3773_v56, %v3772_v13  ;;  %4315 = vmatprep.subr.bf16.mxu0 %v10160_v41  ;;  %4356 = vmatprep.subr.bf16.mxu1 %v10162_v61  ;;  %v11203_v41 = vld [vmem:[#allocation29_spill] sm:$0xff]  ;;  %v11204_v61 = vld [vmem:[#allocation78_spill] sm:$0xff]  ;;  %v11210_v13 = vld [vmem:[#allocation36_spill] sm:$0xff] }
 0x3fa   :  { %8616 = vtanh.f32 %v3774_v1  ;;  %v10300_v30 = vsel %vm3783_vm15, %v3774_v1, %v10180_v14  ;;  %v11207_v14 = vld [vmem:[#allocation81_spill] sm:$0xff] }
 0x3fb   :  { %4316 = vmatpush1.bf16.msra.mxu0 %v10169_v44  ;;  %4357 = vmatpush1.bf16.msra.mxu1 %v10171_v5  ;;  %v8615_v51 = vpop.eup %8614  ;;  %v11211_v1 = vld [vmem:[#allocation37_spill] sm:$0xff] }
 0x3fc   :  { %4317 = vmatprep.subr.bf16.mxu0 %v11200_v32  ;;  %4358 = vmatprep.subr.bf16.mxu1 %v11201_v7 }
 0x3ff   :  { %4318 = vmatpush1.bf16.msra.mxu0 %v11202_v57  ;;  %4359 = vmatpush1.bf16.msra.mxu1 %v11203_v41 }
 0x400   :  { %4319 = vmatprep.subr.bf16.mxu0 %v11204_v61  ;;  %4360 = vmatprep.subr.bf16.mxu1 %v11205_v58 }
 0x403   :  { %4320 = vmatpush1.bf16.msra.mxu0 %v11206_v59  ;;  %4361 = vmatpush1.bf16.msra.mxu1 %v11207_v14 }
 0x404   :  { %v8617_v44 = vpop.eup %8616  ;;  %4321 = vmatprep.subr.bf16.mxu0 %v10202_v43  ;;  %4362 = vmatprep.subr.bf16.mxu1 %v10204_v23  ;;  %v10329_v43 = vld [vmem:[#allocation11] ss:$16 sps:$4 sm:$0xff]   ;;  %v10337_v23 = vld [vmem:[#allocation11 + $0x24] ss:$16 sps:$4 sm:$0xff]  }
 0x405   :  { %v3776_v5 = vmul.f32 %v8617_v44, %v8615_v51 }
 0x407   :  { %4322 = vmatpush1.bf16.msra.mxu0 %v10208_v36  ;;  %4363 = vmatpush1.bf16.msra.mxu1 %v10210_v40  ;;  %v10318_v39 = vsel %vm3783_vm15, %v3776_v5, %v10218_v63  ;;  %v3786_v12 = vsel %vm3783_vm15, %v3776_v5, 0.0  ;;  %v10325_v36 = vld [vmem:[#allocation11 + $0x4] ss:$16 sps:$4 sm:$0xff]   ;;  %v10327_v40 = vld [vmem:[#allocation11 + $0xc] ss:$16 sps:$4 sm:$0xff]  }
 0x408   :  { %v3787_v62 = vpack.c.bf16 %v3786_v12, %v3786_v12  ;;  %v4114_v34 = vpack.c.bf16 %v10318_v39, %v10318_v39  ;;  %v10331_v63 = vld [vmem:[#allocation11 + $0x8] ss:$16 sps:$4 sm:$0xff]   ;;  %4627 = vmatprep.subr.bf16.mxu0 %v10325_v36  ;;  %4668 = vmatprep.subr.bf16.mxu1 %v10327_v40 }
 0x40a   :  { %3788 = vst [vmem:[#allocation15 + $0x14] sm:$0xf] %v3787_v62  ;;  %4340 = vmatmul.mubr.bf16.vlgmr.msra.gmra.mrb[60].mxu0 %v4114_v34  ;;  %4381 = vmatmul.mubr.bf16.vlgmr.msra.gmra.mrb[60].mxu1 %v4114_v34 }
 0x40b   :  { %4659 = vmatprep.mubr.bf16.mxu0 %v11112_v55  ;;  %4700 = vmatprep.mubr.bf16.mxu1 %v11112_v55 }
 0x40c   :  { %4628 = vmatpush1.bf16.msra.mxu0 %v10329_v43  ;;  %4669 = vmatpush1.bf16.msra.mxu1 %v10331_v63 }
 0x40d   :  { %4629 = vmatprep.subr.bf16.mxu0 %v10337_v23  ;;  %4670 = vmatprep.subr.bf16.mxu1 %v10339_v3 }
 0x410   :  { %4630 = vmatpush1.bf16.msra.mxu0 %v10341_v2  ;;  %4671 = vmatpush1.bf16.msra.mxu1 %v10343_v4 }
 0x411   :  { %4631 = vmatprep.subr.bf16.mxu0 %v10349_v38  ;;  %4672 = vmatprep.subr.bf16.mxu1 %v10351_v60 }
 0x414   :  { %4632 = vmatpush1.bf16.msra.mxu0 %v10353_v6  ;;  %4673 = vmatpush1.bf16.msra.mxu1 %v10355_v0 }
 0x415   :  { %4633 = vmatprep.subr.bf16.mxu0 %v10361_v8  ;;  %4674 = vmatprep.subr.bf16.mxu1 %v10363_v9 }
 0x418   :  { %4634 = vmatpush1.bf16.msra.mxu0 %v10365_v11  ;;  %4675 = vmatpush1.bf16.msra.mxu1 %v10367_v26 }
 0x419   :  { %4635 = vmatprep.subr.bf16.mxu0 %v10373_v46  ;;  %4676 = vmatprep.subr.bf16.mxu1 %v10375_v24 }
 0x41c   :  { %4636 = vmatpush1.bf16.msra.mxu0 %v10377_v28  ;;  %4677 = vmatpush1.bf16.msra.mxu1 %v10379_v37 }
 0x41d   :  { %4637 = vmatprep.subr.bf16.mxu0 %v10385_v15  ;;  %4678 = vmatprep.subr.bf16.mxu1 %v10387_v48 }
 0x420   :  { %4638 = vmatpush1.bf16.msra.mxu0 %v10389_v21  ;;  %4679 = vmatpush1.bf16.msra.mxu1 %v10391_v53 }
 0x421   :  { %4639 = vmatprep.subr.bf16.mxu0 %v10397_v22  ;;  %4680 = vmatprep.subr.bf16.mxu1 %v10399_v52 }
 0x424   :  { %4640 = vmatpush1.bf16.msra.mxu0 %v10401_v20  ;;  %4681 = vmatpush1.bf16.msra.mxu1 %v10403_v31 }
 0x425   :  { %4641 = vmatprep.subr.bf16.mxu0 %v10409_v33  ;;  %4682 = vmatprep.subr.bf16.mxu1 %v10411_v17 }
 0x428   :  { %4642 = vmatpush1.bf16.msra.mxu0 %v10413_v54  ;;  %4683 = vmatpush1.bf16.msra.mxu1 %v10415_v16 }
 0x429   :  { %4947 = vmatprep.subr.bf16.mxu0 %v10421_v18  ;;  %4988 = vmatprep.subr.bf16.mxu1 %v10423_v50 }
 0x4bd   :  { %v4021_v42 = vpop.f32.mrb[56].mxu0  ;;  %v4062_v10 = vpop.f32.mrb[56].mxu1 }
 0x4be   :  { %v4069_v25 = vadd.f32 %v11208_v49, %v4021_v42  ;;  %v4071_v45 = vadd.f32 %v11209_v19, %v4062_v10  ;;  %v4023_v56 = vpop.f32.mrb[57].mxu0  ;;  %v4064_v47 = vpop.f32.mrb[57].mxu1 }
 0x4bf   :  { %v4070_v35 = vadd.f32 %v11210_v13, %v4023_v56  ;;  %v4072_v32 = vadd.f32 %v11211_v1, %v4064_v47  ;;  %v4025_v7 = vpop.f32.mrb[58].mxu0  ;;  %v4066_v57 = vpop.f32.mrb[58].mxu1  ;;  %v11212_v1 = vld [vmem:[#allocation70_spill] sm:$0xff] }
 0x4c0   :  { %v7449_v41 = vmul.f32 -1.442695, %v4069_v25  ;;  %v4026_v61 = vpop.f32.mrb[59].mxu0  ;;  %v4067_v58 = vpop.f32.mrb[59].mxu1 }
 0x4c1   :  { %v7450_v51 = vmul.f32 -1.442695, %v4070_v35  ;;  %v7451_v59 = vmul.f32 -1.442695, %v4072_v32  ;;  %v4102_v56 = vpop.permute.xlu0 %4101  ;;  %v11214_v61 = vld [vmem:[#allocation72_spill] sm:$0xff] }
 0x4c2   :  { %8618 = vpow2.f32 %v7449_v41  ;;  %vm4103_vm0 = vcmp.eq.s32.totalorder %v4102_v56, 1  ;;  %v10457_v56 = vld [vmem:[#allocation13 + $0x20] ss:$16 sps:$4 sm:$0xff]  }
 0x4c3   :  { %8620 = vpow2.f32 %v7450_v51  ;;  %v11215_v51 = vld [vmem:[#allocation73_spill] sm:$0xff] }
 0x4c4   :  { %8622 = vpow2.f32 %v7451_v59 }
 0x4c5   :  { %8624 = vtanh.f32 %v4071_v45  ;;  %v11213_v45 = vld [vmem:[#allocation71_spill] sm:$0xff] }
 0x4cc   :  { %v8619_v14 = vpop.eup %8618 }
 0x4cd   :  { %v8621_v44 = vpop.eup %8620  ;;  %v4076_v5 = vadd.f32 1.0, %v8619_v14 }
 0x4ce   :  { %v4082_v12 = vadd.f32 1.0, %v8621_v44  ;;  %v8623_v62 = vpop.eup %8622 }
 0x4cf   :  { %8626 = vrcp.f32 %v4076_v5  ;;  %v8625_v34 = vpop.eup %8624  ;;  %v4089_v25 = vadd.f32 1.0, %v8623_v62 }
 0x4d0   :  { %8628 = vrcp.f32 %v4082_v12 }
 0x4d1   :  { %8630 = vrcp.f32 %v4089_v25 }
 0x4d9   :  { %v8627_v42 = vpop.eup %8626 }
 0x4da   :  { %v8629_v10 = vpop.eup %8628  ;;  %v4093_v49 = vmul.f32 %v8627_v42, %v8625_v34 }
 0x4db   :  { %v4092_v19 = vmul.f32 %v8629_v10, %v10270_v27  ;;  %v8631_v10 = vpop.eup %8630 }
 0x4dd   :  { %v4094_v47 = vadd.f32 %v4093_v49, %v4092_v19  ;;  %v4341_v13 = vpop.f32.mrb[60].mxu0  ;;  %v4382_v35 = vpop.f32.mrb[60].mxu1 }
 0x4de   :  { %v4389_v32 = vadd.f32 %v11212_v1, %v4341_v13  ;;  %v4391_v7 = vadd.f32 %v11213_v45, %v4382_v35  ;;  %v4343_v57 = vpop.f32.mrb[61].mxu0  ;;  %v4384_v41 = vpop.f32.mrb[61].mxu1  ;;  %v10445_v45 = vld [vmem:[#allocation13] ss:$16 sps:$4 sm:$0xff]  }
 0x4df   :  { %8632 = vtanh.f32 %v4094_v47  ;;  %v4390_v58 = vadd.f32 %v11214_v61, %v4343_v57  ;;  %v4392_v59 = vadd.f32 %v11215_v51, %v4384_v41  ;;  %v4345_v14 = vpop.f32.mrb[62].mxu0  ;;  %v4386_v44 = vpop.f32.mrb[62].mxu1  ;;  %v10438_v5 = vsel %vm4103_vm0, %v4094_v47, %v10270_v27  ;;  %v10447_v27 = vld [vmem:[#allocation13 + $0x8] ss:$16 sps:$4 sm:$0xff]   ;;  %v10451_v61 = vld [vmem:[#allocation13 + $0x24] ss:$16 sps:$4 sm:$0xff]  }
 0x4e0   :  { %v7485_v12 = vmul.f32 -1.442695, %v4389_v32  ;;  %v4346_v62 = vpop.f32.mrb[63].mxu0  ;;  %v4387_v34 = vpop.f32.mrb[63].mxu1  ;;  %v10459_v51 = vld [vmem:[#allocation13 + $0x28] ss:$16 sps:$4 sm:$0xff]  }
 0x4e1   :  { %v7486_v42 = vmul.f32 -1.442695, %v4390_v58  ;;  %v7487_v25 = vmul.f32 -1.442695, %v4392_v59  ;;  %v10453_v58 = vld [vmem:[#allocation13 + $0x2c] ss:$16 sps:$4 sm:$0xff]  }
 0x4e2   :  { %8634 = vpow2.f32 %v7485_v12  ;;  %v10463_v59 = vld [vmem:[#allocation13 + $0x44] ss:$16 sps:$4 sm:$0xff]   ;;  %v10471_v14 = vld [vmem:[#allocation13 + $0x40] ss:$16 sps:$4 sm:$0xff]   ;;  %v10473_v44 = vld [vmem:[#allocation13 + $0x48] ss:$16 sps:$4 sm:$0xff]  }
 0x4e3   :  { %8636 = vpow2.f32 %v7486_v42  ;;  %11216 = vst [vmem:[#allocation21_spill] sm:$0xff] %v10473_v44  ;;  %v10477_v12 = vld [vmem:[#allocation13 + $0x64] ss:$16 sps:$4 sm:$0xff]   ;;  %v10479_v62 = vld [vmem:[#allocation13 + $0x6c] ss:$16 sps:$4 sm:$0xff]  }
 0x4e4   :  { %8638 = vpow2.f32 %v7487_v25  ;;  %11217 = vst [vmem:[#allocation22_spill] sm:$0xff] %v10477_v12  ;;  %11218 = vst [vmem:[#allocation30_spill] sm:$0xff] %v10479_v62 }
 0x4e5   :  { %8640 = vtanh.f32 %v4391_v7  ;;  %v10465_v7 = vld [vmem:[#allocation13 + $0x4c] ss:$16 sps:$4 sm:$0xff]  }
 0x4e9   :  { %v8633_v49 = vpop.eup %8632 }
 0x4ea   :  { %v4096_v19 = vmul.f32 %v8633_v49, %v8631_v10  ;;  %v10483_v10 = vld [vmem:[#allocation13 + $0x60] ss:$16 sps:$4 sm:$0xff]   ;;  %v10485_v49 = vld [vmem:[#allocation13 + $0x68] ss:$16 sps:$4 sm:$0xff]  }
 0x4ec   :  { %v8635_v13 = vpop.eup %8634  ;;  %v10442_v35 = vsel %vm4103_vm0, %v4096_v19, %v10274_v29  ;;  %v4106_v1 = vsel %vm4103_vm0, %v4096_v19, 0.0  ;;  %v10489_v19 = vld [vmem:[#allocation13 + $0x84] ss:$16 sps:$4 sm:$0xff]  }
 0x4ed   :  { %v8637_v47 = vpop.eup %8636  ;;  %v4396_v32 = vadd.f32 1.0, %v8635_v13  ;;  %v4107_v57 = vpack.c.bf16 %v4106_v1, %v4106_v1  ;;  %v4434_v41 = vpack.c.bf16 %v10442_v35, %v10442_v35  ;;  %v10491_v13 = vld [vmem:[#allocation13 + $0x8c] ss:$16 sps:$4 sm:$0xff]  }
 0x4ee   :  { %v4402_v29 = vadd.f32 1.0, %v8637_v47  ;;  %v8639_v34 = vpop.eup %8638 }
 0x4ef   :  { %8642 = vrcp.f32 %v4396_v32  ;;  %4108 = vst [vmem:[#allocation14 + $0xc] sm:$0xf] %v4107_v57  ;;  %4660 = vmatmul.mubr.bf16.vlgmr.msra.gmra.mrb[64].mxu0 %v4434_v41  ;;  %4701 = vmatmul.mubr.bf16.vlgmr.msra.gmra.mrb[64].mxu1 %v4434_v41  ;;  %v8641_v42 = vpop.eup %8640  ;;  %v4409_v32 = vadd.f32 1.0, %v8639_v34  ;;  %v10496_v41 = vld [vmem:[#allocation13 + $0x80] ss:$16 sps:$4 sm:$0xff]  }
 0x4f0   :  { %8644 = vrcp.f32 %v4402_v29  ;;  %4948 = vmatpush1.bf16.msra.mxu0 %v10445_v45  ;;  %4989 = vmatpush1.bf16.msra.mxu1 %v10447_v27  ;;  %11219 = vst [vmem:[#allocation31_spill] sm:$0xff] %v10496_v41  ;;  %v10498_v29 = vld [vmem:[#allocation13 + $0x88] ss:$16 sps:$4 sm:$0xff]  }
 0x4f1   :  { %4949 = vmatprep.subr.bf16.mxu0 %v10451_v61  ;;  %4990 = vmatprep.subr.bf16.mxu1 %v10453_v58  ;;  %11220 = vst [vmem:[#allocation32_spill] sm:$0xff] %v10498_v29  ;;  %8646 = vrcp.f32 %v4409_v32  ;;  %v10520_v32 = vld [vmem:[#allocation13 + $0xcc] ss:$16 sps:$4 sm:$0xff]  }
 0x4f2   :  { %4979 = vmatprep.mubr.bf16.mxu0 %v11112_v55  ;;  %5020 = vmatprep.mubr.bf16.mxu1 %v11112_v55  ;;  %11226 = vst [vmem:[#allocation23_spill] sm:$0xff] %v10520_v32 }
 0x4f4   :  { %4950 = vmatpush1.bf16.msra.mxu0 %v10457_v56  ;;  %4991 = vmatpush1.bf16.msra.mxu1 %v10459_v51 }
 0x4f5   :  { %4951 = vmatprep.subr.bf16.mxu0 %v10463_v59  ;;  %4992 = vmatprep.subr.bf16.mxu1 %v10465_v7 }
 0x4f8   :  { %4952 = vmatpush1.bf16.msra.mxu0 %v10471_v14  ;;  %4993 = vmatpush1.bf16.msra.mxu1 %v10473_v44 }
 0x4f9   :  { %v8643_v25 = vpop.eup %8642  ;;  %4953 = vmatprep.subr.bf16.mxu0 %v10477_v12  ;;  %4994 = vmatprep.subr.bf16.mxu1 %v10479_v62  ;;  %v4422_v12 = vpop.permute.xlu1 %4421  ;;  %v10502_v62 = vld [vmem:[#allocation13 + $0xa4] ss:$16 sps:$4 sm:$0xff]  }
 0x4fa   :  { %v8645_v1 = vpop.eup %8644  ;;  %v4413_v47 = vmul.f32 %v8643_v25, %v8641_v42  ;;  %11221 = vst [vmem:[#allocation33_spill] sm:$0xff] %v10502_v62  ;;  %v10504_v42 = vld [vmem:[#allocation13 + $0xac] ss:$16 sps:$4 sm:$0xff]   ;;  %vm4423_vm1 = vcmp.eq.s32.totalorder %v4422_v12, 1  ;;  %v10512_v25 = vld [vmem:[#allocation13 + $0xa0] ss:$16 sps:$4 sm:$0xff]  }
 0x4fb   :  { %v4412_v57 = vmul.f32 %v8645_v1, %v10300_v30  ;;  %11222 = vst [vmem:[#allocation74_spill] sm:$0xff] %v10504_v42  ;;  %11223 = vst [vmem:[#allocation75_spill] sm:$0xff] %v10512_v25  ;;  %v10514_v1 = vld [vmem:[#allocation13 + $0xa8] ss:$16 sps:$4 sm:$0xff]  }
 0x4fc   :  { %4954 = vmatpush1.bf16.msra.mxu0 %v10483_v10  ;;  %4995 = vmatpush1.bf16.msra.mxu1 %v10485_v49  ;;  %11224 = vst [vmem:[#allocation76_spill] sm:$0xff] %v10514_v1 }
 0x4fd   :  { %v4414_v44 = vadd.f32 %v4413_v47, %v4412_v57  ;;  %4955 = vmatprep.subr.bf16.mxu0 %v10489_v19  ;;  %4996 = vmatprep.subr.bf16.mxu1 %v10491_v13  ;;  %v10518_v47 = vld [vmem:[#allocation13 + $0xc4] ss:$16 sps:$4 sm:$0xff]  }
 0x4fe   :  { %11225 = vst [vmem:[#allocation77_spill] sm:$0xff] %v10518_v47  ;;  %v10530_v57 = vld [vmem:[#allocation13 + $0xe4] ss:$16 sps:$4 sm:$0xff]  }
 0x4ff   :  { %8648 = vtanh.f32 %v4414_v44  ;;  %v10508_v34 = vsel %vm4423_vm1, %v4414_v44, %v10300_v30  ;;  %v10524_v30 = vld [vmem:[#allocation13 + $0xc0] ss:$16 sps:$4 sm:$0xff]   ;;  %v10526_v44 = vld [vmem:[#allocation13 + $0xc8] ss:$16 sps:$4 sm:$0xff]  }
 0x500   :  { %4956 = vmatpush1.bf16.msra.mxu0 %v10496_v41  ;;  %4997 = vmatpush1.bf16.msra.mxu1 %v10498_v29  ;;  %11227 = vst [vmem:[#allocation24_spill] sm:$0xff] %v10524_v30  ;;  %11228 = vst [vmem:[#allocation25_spill] sm:$0xff] %v10526_v44 }
 0x501   :  { %4957 = vmatprep.subr.bf16.mxu0 %v10502_v62  ;;  %4998 = vmatprep.subr.bf16.mxu1 %v10504_v42  ;;  %v10532_v62 = vld [vmem:[#allocation13 + $0xec] ss:$16 sps:$4 sm:$0xff]   ;;  %v8647_v42 = vpop.eup %8646 }
 0x504   :  { %4958 = vmatpush1.bf16.msra.mxu0 %v10512_v25  ;;  %4999 = vmatpush1.bf16.msra.mxu1 %v10514_v1  ;;  %v10536_v25 = vld [vmem:[#allocation13 + $0xe0] ss:$16 sps:$4 sm:$0xff]   ;;  %v10538_v1 = vld [vmem:[#allocation13 + $0xe8] ss:$16 sps:$4 sm:$0xff]  }
 0x505   :  { %4959 = vmatprep.subr.bf16.mxu0 %v10518_v47  ;;  %5000 = vmatprep.subr.bf16.mxu1 %v10520_v32 }
 0x508   :  { %4960 = vmatpush1.bf16.msra.mxu0 %v10524_v30  ;;  %5001 = vmatpush1.bf16.msra.mxu1 %v10526_v44 }
 0x509   :  { %v8649_v29 = vpop.eup %8648  ;;  %4961 = vmatprep.subr.bf16.mxu0 %v10530_v57  ;;  %5002 = vmatprep.subr.bf16.mxu1 %v10532_v62 }
 0x50a   :  { %v4416_v47 = vmul.f32 %v8649_v29, %v8647_v42 }
 0x50c   :  { %4962 = vmatpush1.bf16.msra.mxu0 %v10536_v25  ;;  %5003 = vmatpush1.bf16.msra.mxu1 %v10538_v1  ;;  %v10546_v32 = vsel %vm4423_vm1, %v4416_v47, %v10318_v39  ;;  %v4426_v44 = vsel %vm4423_vm1, %v4416_v47, 0.0 }
 0x50d   :  { %v4427_v30 = vpack.c.bf16 %v4426_v44, %v4426_v44  ;;  %v4754_v41 = vpack.c.bf16 %v10546_v32, %v10546_v32  ;;  %5267 = vmatprep.subr.bf16.mxu0 %v10325_v36  ;;  %5308 = vmatprep.subr.bf16.mxu1 %v10327_v40  ;;  %v11229_v40 = vld [vmem:[#allocation38_spill] sm:$0xff] }
 0x50f   :  { %4428 = vst [vmem:[#allocation15 + $0x10] sm:$0xf] %v4427_v30  ;;  %4980 = vmatmul.mubr.bf16.vlgmr.msra.gmra.mrb[68].mxu0 %v4754_v41  ;;  %5021 = vmatmul.mubr.bf16.vlgmr.msra.gmra.mrb[68].mxu1 %v4754_v41  ;;  %v11234_v41 = vld [vmem:[#allocation67_spill] sm:$0xff]  ;;  %v11235_v30 = vld [vmem:[#allocation68_spill] sm:$0xff] }
 0x510   :  { %5268 = vmatpush1.bf16.msra.mxu0 %v10329_v43  ;;  %5309 = vmatpush1.bf16.msra.mxu1 %v10331_v63  ;;  %v11230_v63 = vld [vmem:[#allocation39_spill] sm:$0xff] }
 0x511   :  { %5269 = vmatprep.subr.bf16.mxu0 %v10337_v23  ;;  %5310 = vmatprep.subr.bf16.mxu1 %v10339_v3 }
 0x512   :  { %5299 = vmatprep.mubr.bf16.mxu0 %v11112_v55  ;;  %5340 = vmatprep.mubr.bf16.mxu1 %v11112_v55 }
 0x514   :  { %5270 = vmatpush1.bf16.msra.mxu0 %v10341_v2  ;;  %5311 = vmatpush1.bf16.msra.mxu1 %v10343_v4  ;;  %v11231_v4 = vld [vmem:[#allocation40_spill] sm:$0xff] }
 0x515   :  { %5271 = vmatprep.subr.bf16.mxu0 %v10349_v38  ;;  %5312 = vmatprep.subr.bf16.mxu1 %v10351_v60  ;;  %v11232_v60 = vld [vmem:[#allocation41_spill] sm:$0xff] }
 0x518   :  { %5272 = vmatpush1.bf16.msra.mxu0 %v10353_v6  ;;  %5313 = vmatpush1.bf16.msra.mxu1 %v10355_v0 }
 0x519   :  { %5273 = vmatprep.subr.bf16.mxu0 %v10361_v8  ;;  %5314 = vmatprep.subr.bf16.mxu1 %v10363_v9 }
 0x51c   :  { %5274 = vmatpush1.bf16.msra.mxu0 %v10365_v11  ;;  %5315 = vmatpush1.bf16.msra.mxu1 %v10367_v26 }
 0x51d   :  { %5275 = vmatprep.subr.bf16.mxu0 %v10373_v46  ;;  %5316 = vmatprep.subr.bf16.mxu1 %v10375_v24 }
 0x520   :  { %5276 = vmatpush1.bf16.msra.mxu0 %v10377_v28  ;;  %5317 = vmatpush1.bf16.msra.mxu1 %v10379_v37 }
 0x521   :  { %5277 = vmatprep.subr.bf16.mxu0 %v10385_v15  ;;  %5318 = vmatprep.subr.bf16.mxu1 %v10387_v48 }
 0x524   :  { %5278 = vmatpush1.bf16.msra.mxu0 %v10389_v21  ;;  %5319 = vmatpush1.bf16.msra.mxu1 %v10391_v53 }
 0x525   :  { %5279 = vmatprep.subr.bf16.mxu0 %v10397_v22  ;;  %5320 = vmatprep.subr.bf16.mxu1 %v10399_v52 }
 0x528   :  { %5280 = vmatpush1.bf16.msra.mxu0 %v10401_v20  ;;  %5321 = vmatpush1.bf16.msra.mxu1 %v10403_v31 }
 0x529   :  { %5281 = vmatprep.subr.bf16.mxu0 %v10409_v33  ;;  %5322 = vmatprep.subr.bf16.mxu1 %v10411_v17  ;;  %v4742_v17 = vpop.permute.xlu0 %4741 }
 0x52a   :  { %vm4743_vm2 = vcmp.eq.s32.totalorder %v4742_v17, 1 }
 0x52c   :  { %5282 = vmatpush1.bf16.msra.mxu0 %v10413_v54  ;;  %5323 = vmatpush1.bf16.msra.mxu1 %v10415_v16 }
 0x52d   :  { %5587 = vmatprep.subr.bf16.mxu0 %v10421_v18  ;;  %5628 = vmatprep.subr.bf16.mxu1 %v10423_v50  ;;  %v11233_v50 = vld [vmem:[#allocation66_spill] sm:$0xff] }
 0x5c2   :  { %v4661_v39 = vpop.f32.mrb[64].mxu0  ;;  %v4702_v36 = vpop.f32.mrb[64].mxu1 }
 0x5c3   :  { %v4709_v43 = vadd.f32 %v11229_v40, %v4661_v39  ;;  %v4711_v23 = vadd.f32 %v11230_v63, %v4702_v36  ;;  %v4663_v3 = vpop.f32.mrb[65].mxu0  ;;  %v4704_v2 = vpop.f32.mrb[65].mxu1  ;;  %v11236_v39 = vld [vmem:[#allocation69_spill] sm:$0xff] }
 0x5c4   :  { %v4710_v38 = vadd.f32 %v11231_v4, %v4663_v3  ;;  %v4712_v6 = vadd.f32 %v11232_v60, %v4704_v2  ;;  %v4665_v0 = vpop.f32.mrb[66].mxu0  ;;  %v4706_v8 = vpop.f32.mrb[66].mxu1 }
 0x5c5   :  { %v7521_v9 = vmul.f32 -1.442695, %v4709_v43  ;;  %v4666_v11 = vpop.f32.mrb[67].mxu0  ;;  %v4707_v26 = vpop.f32.mrb[67].mxu1 }
 0x5c6   :  { %v7522_v46 = vmul.f32 -1.442695, %v4710_v38  ;;  %v7523_v24 = vmul.f32 -1.442695, %v4712_v6 }
 0x5c7   :  { %8650 = vpow2.f32 %v7521_v9 }
 0x5c8   :  { %8652 = vpow2.f32 %v7522_v46 }
 0x5c9   :  { %8654 = vpow2.f32 %v7523_v24 }
 0x5ca   :  { %8656 = vtanh.f32 %v4711_v23 }
 0x5d1   :  { %v8651_v28 = vpop.eup %8650 }
 0x5d2   :  { %v8653_v37 = vpop.eup %8652  ;;  %v4716_v15 = vadd.f32 1.0, %v8651_v28 }
 0x5d3   :  { %v4722_v48 = vadd.f32 1.0, %v8653_v37  ;;  %v8655_v21 = vpop.eup %8654  ;;  %v11239_v37 = vld [vmem:[#allocation30_spill] sm:$0xff] }
 0x5d4   :  { %8658 = vrcp.f32 %v4716_v15  ;;  %v8657_v53 = vpop.eup %8656  ;;  %v4729_v31 = vadd.f32 1.0, %v8655_v21  ;;  %v11240_v21 = vld [vmem:[#allocation31_spill] sm:$0xff] }
 0x5d5   :  { %8660 = vrcp.f32 %v4722_v48 }
 0x5d6   :  { %8662 = vrcp.f32 %v4729_v31  ;;  %v11248_v31 = vld [vmem:[#allocation24_spill] sm:$0xff] }
 0x5de   :  { %v8659_v22 = vpop.eup %8658 }
 0x5df   :  { %v8661_v52 = vpop.eup %8660  ;;  %v4733_v20 = vmul.f32 %v8659_v22, %v8657_v53  ;;  %v11241_v53 = vld [vmem:[#allocation32_spill] sm:$0xff]  ;;  %v11244_v22 = vld [vmem:[#allocation75_spill] sm:$0xff] }
 0x5e0   :  { %v4732_v33 = vmul.f32 %v8661_v52, %v10438_v5  ;;  %v8663_v38 = vpop.eup %8662  ;;  %v11247_v52 = vld [vmem:[#allocation23_spill] sm:$0xff] }
 0x5e2   :  { %v4734_v54 = vadd.f32 %v4733_v20, %v4732_v33  ;;  %v4981_v16 = vpop.f32.mrb[68].mxu0  ;;  %v5022_v18 = vpop.f32.mrb[68].mxu1 }
 0x5e3   :  { %v5029_v12 = vadd.f32 %v11233_v50, %v4981_v16  ;;  %v5031_v29 = vadd.f32 %v11234_v41, %v5022_v18  ;;  %v4983_v42 = vpop.f32.mrb[69].mxu0  ;;  %v5024_v47 = vpop.f32.mrb[69].mxu1  ;;  %v10669_v41 = vld [vmem:[#allocation11 + $0x20] ss:$16 sps:$4 sm:$0xff]  }
 0x5e4   :  { %8664 = vtanh.f32 %v4734_v54  ;;  %v5030_v44 = vadd.f32 %v11235_v30, %v4983_v42  ;;  %v5032_v36 = vadd.f32 %v11236_v39, %v5024_v47  ;;  %v4985_v40 = vpop.f32.mrb[70].mxu0  ;;  %v5026_v43 = vpop.f32.mrb[70].mxu1  ;;  %v10598_v63 = vsel %vm4743_vm2, %v4734_v54, %v10438_v5  ;;  %v10677_v42 = vld [vmem:[#allocation11 + $0x44] ss:$16 sps:$4 sm:$0xff]   ;;  %v10679_v47 = vld [vmem:[#allocation11 + $0x4c] ss:$16 sps:$4 sm:$0xff]  }
 0x5e5   :  { %v7557_v23 = vmul.f32 -1.442695, %v5029_v12  ;;  %v4986_v3 = vpop.f32.mrb[71].mxu0  ;;  %v5027_v2 = vpop.f32.mrb[71].mxu1  ;;  %v10667_v12 = vld [vmem:[#allocation11 + $0x2c] ss:$16 sps:$4 sm:$0xff]  }
 0x5e6   :  { %v7558_v4 = vmul.f32 -1.442695, %v5030_v44  ;;  %v7559_v6 = vmul.f32 -1.442695, %v5032_v36  ;;  %v10681_v30 = vld [vmem:[#allocation11 + $0x40] ss:$16 sps:$4 sm:$0xff]  }
 0x5e7   :  { %8666 = vpow2.f32 %v7557_v23  ;;  %v10683_v44 = vld [vmem:[#allocation11 + $0x48] ss:$16 sps:$4 sm:$0xff]   ;;  %v10689_v39 = vld [vmem:[#allocation11 + $0x64] ss:$16 sps:$4 sm:$0xff]   ;;  %v10691_v36 = vld [vmem:[#allocation11 + $0x6c] ss:$16 sps:$4 sm:$0xff]  }
 0x5e8   :  { %8668 = vpow2.f32 %v7558_v4  ;;  %v10693_v40 = vld [vmem:[#allocation11 + $0x60] ss:$16 sps:$4 sm:$0xff]   ;;  %v10695_v43 = vld [vmem:[#allocation11 + $0x68] ss:$16 sps:$4 sm:$0xff]   ;;  %v10701_v23 = vld [vmem:[#allocation11 + $0x84] ss:$16 sps:$4 sm:$0xff]  }
 0x5e9   :  { %8670 = vpow2.f32 %v7559_v6  ;;  %v10703_v3 = vld [vmem:[#allocation11 + $0x8c] ss:$16 sps:$4 sm:$0xff]   ;;  %v10705_v2 = vld [vmem:[#allocation11 + $0x80] ss:$16 sps:$4 sm:$0xff]   ;;  %v10707_v4 = vld [vmem:[#allocation11 + $0x88] ss:$16 sps:$4 sm:$0xff]  }
 0x5ea   :  { %8672 = vtanh.f32 %v5031_v29  ;;  %v10671_v29 = vld [vmem:[#allocation11 + $0x28] ss:$16 sps:$4 sm:$0xff]   ;;  %v10717_v6 = vld [vmem:[#allocation11 + $0xa0] ss:$16 sps:$4 sm:$0xff]  }
 0x5ee   :  { %v8665_v60 = vpop.eup %8664 }
 0x5ef   :  { %v4736_v0 = vmul.f32 %v8665_v60, %v8663_v38  ;;  %v10713_v38 = vld [vmem:[#allocation11 + $0xa4] ss:$16 sps:$4 sm:$0xff]   ;;  %v10715_v60 = vld [vmem:[#allocation11 + $0xac] ss:$16 sps:$4 sm:$0xff]  }
 0x5f1   :  { %v8667_v8 = vpop.eup %8666  ;;  %v10602_v9 = vsel %vm4743_vm2, %v4736_v0, %v10442_v35  ;;  %v4746_v11 = vsel %vm4743_vm2, %v4736_v0, 0.0  ;;  %v10719_v0 = vld [vmem:[#allocation11 + $0xa8] ss:$16 sps:$4 sm:$0xff]  }
 0x5f2   :  { %v8669_v26 = vpop.eup %8668  ;;  %v5036_v5 = vadd.f32 1.0, %v8667_v8  ;;  %v4747_v46 = vpack.c.bf16 %v4746_v11, %v4746_v11  ;;  %v5074_v24 = vpack.c.bf16 %v10602_v9, %v10602_v9  ;;  %v10725_v8 = vld [vmem:[#allocation11 + $0xc4] ss:$16 sps:$4 sm:$0xff]   ;;  %v10727_v11 = vld [vmem:[#allocation11 + $0xcc] ss:$16 sps:$4 sm:$0xff]  }
 0x5f3   :  { %v5042_v28 = vadd.f32 1.0, %v8669_v26  ;;  %v8671_v35 = vpop.eup %8670  ;;  %v10729_v26 = vld [vmem:[#allocation11 + $0xc0] ss:$16 sps:$4 sm:$0xff]  }
 0x5f4   :  { %8674 = vrcp.f32 %v5036_v5  ;;  %4748 = vst [vmem:[#allocation14 + $0x10] sm:$0xf] %v4747_v46  ;;  %5300 = vmatmul.mubr.bf16.vlgmr.msra.gmra.mrb[72].mxu0 %v5074_v24  ;;  %5341 = vmatmul.mubr.bf16.vlgmr.msra.gmra.mrb[72].mxu1 %v5074_v24  ;;  %v10731_v5 = vld [vmem:[#allocation11 + $0xc8] ss:$16 sps:$4 sm:$0xff]   ;;  %v10737_v46 = vld [vmem:[#allocation11 + $0xe4] ss:$16 sps:$4 sm:$0xff]  }
 0x5f5   :  { %8676 = vrcp.f32 %v5042_v28  ;;  %5588 = vmatpush1.bf16.msra.mxu0 %v10445_v45  ;;  %5629 = vmatpush1.bf16.msra.mxu1 %v10447_v27  ;;  %v8673_v45 = vpop.eup %8672  ;;  %v11237_v27 = vld [vmem:[#allocation21_spill] sm:$0xff]  ;;  %v10739_v24 = vld [vmem:[#allocation11 + $0xec] ss:$16 sps:$4 sm:$0xff]  }
 0x5f6   :  { %5589 = vmatprep.subr.bf16.mxu0 %v10451_v61  ;;  %5630 = vmatprep.subr.bf16.mxu1 %v10453_v58  ;;  %v11238_v58 = vld [vmem:[#allocation22_spill] sm:$0xff]  ;;  %v10741_v28 = vld [vmem:[#allocation11 + $0xe0] ss:$16 sps:$4 sm:$0xff]  }
 0x5f7   :  { %5619 = vmatprep.mubr.bf16.mxu0 %v11112_v55  ;;  %5660 = vmatprep.mubr.bf16.mxu1 %v11112_v55 }
 0x5f9   :  { %5590 = vmatpush1.bf16.msra.mxu0 %v10457_v56  ;;  %5631 = vmatpush1.bf16.msra.mxu1 %v10459_v51  ;;  %v5049_v56 = vadd.f32 1.0, %v8671_v35  ;;  %v10743_v35 = vld [vmem:[#allocation11 + $0xe8] ss:$16 sps:$4 sm:$0xff]  }
 0x5fa   :  { %5591 = vmatprep.subr.bf16.mxu0 %v10463_v59  ;;  %5632 = vmatprep.subr.bf16.mxu1 %v10465_v7  ;;  %v5062_v59 = vpop.permute.xlu1 %5061 }
 0x5fb   :  { %vm5063_vm3 = vcmp.eq.s32.totalorder %v5062_v59, 1  ;;  %8678 = vrcp.f32 %v5049_v56 }
 0x5fd   :  { %5592 = vmatpush1.bf16.msra.mxu0 %v10471_v14  ;;  %5633 = vmatpush1.bf16.msra.mxu1 %v11237_v27  ;;  %v10751_v27 = vld [vmem:[#allocation13 + $0xc] ss:$16 sps:$4 sm:$0xff]  }
 0x5fe   :  { %v8675_v61 = vpop.eup %8674  ;;  %5593 = vmatprep.subr.bf16.mxu0 %v11238_v58  ;;  %5634 = vmatprep.subr.bf16.mxu1 %v11239_v37  ;;  %v11250_v37 = vld [vmem:[#allocation42_spill] sm:$0xff] }
 0x5ff   :  { %v8677_v15 = vpop.eup %8676  ;;  %v5053_v48 = vmul.f32 %v8675_v61, %v8673_v45  ;;  %v10749_v45 = vld [vmem:[#allocation13 + $0x4] ss:$16 sps:$4 sm:$0xff]  }
 0x600   :  { %v5052_v51 = vmul.f32 %v8677_v15, %v10508_v34 }
 0x601   :  { %5594 = vmatpush1.bf16.msra.mxu0 %v10483_v10  ;;  %5635 = vmatpush1.bf16.msra.mxu1 %v10485_v49  ;;  %v11242_v10 = vld [vmem:[#allocation33_spill] sm:$0xff]  ;;  %v11243_v49 = vld [vmem:[#allocation74_spill] sm:$0xff] }
 0x602   :  { %v5054_v7 = vadd.f32 %v5053_v48, %v5052_v51  ;;  %5595 = vmatprep.subr.bf16.mxu0 %v10489_v19  ;;  %5636 = vmatprep.subr.bf16.mxu1 %v10491_v13  ;;  %v11245_v19 = vld [vmem:[#allocation76_spill] sm:$0xff]  ;;  %v11246_v13 = vld [vmem:[#allocation77_spill] sm:$0xff]  ;;  %v11251_v48 = vld [vmem:[#allocation43_spill] sm:$0xff] }
 0x604   :  { %8680 = vtanh.f32 %v5054_v7  ;;  %v10628_v14 = vsel %vm5063_vm3, %v5054_v7, %v10508_v34  ;;  %v11249_v34 = vld [vmem:[#allocation25_spill] sm:$0xff]  ;;  %v11252_v7 = vld [vmem:[#allocation44_spill] sm:$0xff] }
 0x605   :  { %5596 = vmatpush1.bf16.msra.mxu0 %v11240_v21  ;;  %5637 = vmatpush1.bf16.msra.mxu1 %v11241_v53  ;;  %v8679_v20 = vpop.eup %8678  ;;  %v11253_v53 = vld [vmem:[#allocation45_spill] sm:$0xff] }
 0x606   :  { %5597 = vmatprep.subr.bf16.mxu0 %v11242_v10  ;;  %5638 = vmatprep.subr.bf16.mxu1 %v11243_v49 }
 0x609   :  { %5598 = vmatpush1.bf16.msra.mxu0 %v11244_v22  ;;  %5639 = vmatpush1.bf16.msra.mxu1 %v11245_v19 }
 0x60a   :  { %5599 = vmatprep.subr.bf16.mxu0 %v11246_v13  ;;  %5640 = vmatprep.subr.bf16.mxu1 %v11247_v52 }
 0x60d   :  { %5600 = vmatpush1.bf16.msra.mxu0 %v11248_v31  ;;  %5641 = vmatpush1.bf16.msra.mxu1 %v11249_v34 }
 0x60e   :  { %v8681_v33 = vpop.eup %8680  ;;  %5601 = vmatprep.subr.bf16.mxu0 %v10530_v57  ;;  %5642 = vmatprep.subr.bf16.mxu1 %v10532_v62  ;;  %v10653_v62 = vld [vmem:[#allocation11 + $0x4] ss:$16 sps:$4 sm:$0xff]  }
 0x60f   :  { %v5056_v17 = vmul.f32 %v8681_v33, %v8679_v20  ;;  %v10665_v57 = vld [vmem:[#allocation11 + $0x24] ss:$16 sps:$4 sm:$0xff]  }
 0x611   :  { %5602 = vmatpush1.bf16.msra.mxu0 %v10536_v25  ;;  %5643 = vmatpush1.bf16.msra.mxu1 %v10538_v1  ;;  %v10646_v54 = vsel %vm5063_vm3, %v5056_v17, %v10546_v32  ;;  %v5066_v16 = vsel %vm5063_vm3, %v5056_v17, 0.0  ;;  %v10655_v25 = vld [vmem:[#allocation11 + $0xc] ss:$16 sps:$4 sm:$0xff]   ;;  %v10657_v1 = vld [vmem:[#allocation11] ss:$16 sps:$4 sm:$0xff]  }
 0x612   :  { %v5067_v18 = vpack.c.bf16 %v5066_v16, %v5066_v16  ;;  %v5394_v50 = vpack.c.bf16 %v10646_v54, %v10646_v54  ;;  %v10659_v32 = vld [vmem:[#allocation11 + $0x8] ss:$16 sps:$4 sm:$0xff]   ;;  %5907 = vmatprep.subr.bf16.mxu0 %v10653_v62  ;;  %5948 = vmatprep.subr.bf16.mxu1 %v10655_v25 }
 0x614   :  { %5068 = vst [vmem:[#allocation15 + $0xc] sm:$0xf] %v5067_v18  ;;  %5620 = vmatmul.mubr.bf16.vlgmr.msra.gmra.mrb[76].mxu0 %v5394_v50  ;;  %5661 = vmatmul.mubr.bf16.vlgmr.msra.gmra.mrb[76].mxu1 %v5394_v50 }
 0x615   :  { %5939 = vmatprep.mubr.bf16.mxu0 %v11112_v55  ;;  %5980 = vmatprep.mubr.bf16.mxu1 %v11112_v55 }
 0x616   :  { %5908 = vmatpush1.bf16.msra.mxu0 %v10657_v1  ;;  %5949 = vmatpush1.bf16.msra.mxu1 %v10659_v32 }
 0x617   :  { %5909 = vmatprep.subr.bf16.mxu0 %v10665_v57  ;;  %5950 = vmatprep.subr.bf16.mxu1 %v10667_v12 }
 0x61a   :  { %5910 = vmatpush1.bf16.msra.mxu0 %v10669_v41  ;;  %5951 = vmatpush1.bf16.msra.mxu1 %v10671_v29 }
 0x61b   :  { %5911 = vmatprep.subr.bf16.mxu0 %v10677_v42  ;;  %5952 = vmatprep.subr.bf16.mxu1 %v10679_v47 }
 0x61e   :  { %5912 = vmatpush1.bf16.msra.mxu0 %v10681_v30  ;;  %5953 = vmatpush1.bf16.msra.mxu1 %v10683_v44 }
 0x61f   :  { %5913 = vmatprep.subr.bf16.mxu0 %v10689_v39  ;;  %5954 = vmatprep.subr.bf16.mxu1 %v10691_v36 }
 0x622   :  { %5914 = vmatpush1.bf16.msra.mxu0 %v10693_v40  ;;  %5955 = vmatpush1.bf16.msra.mxu1 %v10695_v43 }
 0x623   :  { %5915 = vmatprep.subr.bf16.mxu0 %v10701_v23  ;;  %5956 = vmatprep.subr.bf16.mxu1 %v10703_v3 }
 0x626   :  { %5916 = vmatpush1.bf16.msra.mxu0 %v10705_v2  ;;  %5957 = vmatpush1.bf16.msra.mxu1 %v10707_v4 }
 0x627   :  { %5917 = vmatprep.subr.bf16.mxu0 %v10713_v38  ;;  %5958 = vmatprep.subr.bf16.mxu1 %v10715_v60 }
 0x62a   :  { %5918 = vmatpush1.bf16.msra.mxu0 %v10717_v6  ;;  %5959 = vmatpush1.bf16.msra.mxu1 %v10719_v0 }
 0x62b   :  { %5919 = vmatprep.subr.bf16.mxu0 %v10725_v8  ;;  %5960 = vmatprep.subr.bf16.mxu1 %v10727_v11 }
 0x62e   :  { %5920 = vmatpush1.bf16.msra.mxu0 %v10729_v26  ;;  %5961 = vmatpush1.bf16.msra.mxu1 %v10731_v5 }
 0x62f   :  { %5921 = vmatprep.subr.bf16.mxu0 %v10737_v46  ;;  %5962 = vmatprep.subr.bf16.mxu1 %v10739_v24 }
 0x632   :  { %5922 = vmatpush1.bf16.msra.mxu0 %v10741_v28  ;;  %5963 = vmatpush1.bf16.msra.mxu1 %v10743_v35 }
 0x633   :  { %6227 = vmatprep.subr.bf16.mxu0 %v10749_v45  ;;  %6268 = vmatprep.subr.bf16.mxu1 %v10751_v27 }
 0x6c7   :  { %v5301_v61 = vpop.f32.mrb[72].mxu0  ;;  %v5342_v58 = vpop.f32.mrb[72].mxu1 }
 0x6c8   :  { %v5349_v15 = vadd.f32 %v11250_v37, %v5301_v61  ;;  %v5351_v56 = vadd.f32 %v11251_v48, %v5342_v58  ;;  %v5303_v51 = vpop.f32.mrb[73].mxu0  ;;  %v5344_v59 = vpop.f32.mrb[73].mxu1 }
 0x6c9   :  { %v5350_v21 = vadd.f32 %v11252_v7, %v5303_v51  ;;  %v5352_v10 = vadd.f32 %v11253_v53, %v5344_v59  ;;  %v5305_v49 = vpop.f32.mrb[74].mxu0  ;;  %v5346_v22 = vpop.f32.mrb[74].mxu1  ;;  %v11254_v53 = vld [vmem:[#allocation62_spill] sm:$0xff] }
 0x6ca   :  { %v7593_v19 = vmul.f32 -1.442695, %v5349_v15  ;;  %v5306_v13 = vpop.f32.mrb[75].mxu0  ;;  %v5347_v52 = vpop.f32.mrb[75].mxu1 }
 0x6cb   :  { %v7594_v20 = vmul.f32 -1.442695, %v5350_v21  ;;  %v7595_v31 = vmul.f32 -1.442695, %v5352_v10  ;;  %v5382_v51 = vpop.permute.xlu0 %5381  ;;  %v11256_v13 = vld [vmem:[#allocation64_spill] sm:$0xff] }
 0x6cc   :  { %8682 = vpow2.f32 %v7593_v19  ;;  %vm5383_vm4 = vcmp.eq.s32.totalorder %v5382_v51, 1  ;;  %v10785_v51 = vld [vmem:[#allocation13 + $0x20] ss:$16 sps:$4 sm:$0xff]  }
 0x6cd   :  { %8684 = vpow2.f32 %v7594_v20  ;;  %v11257_v20 = vld [vmem:[#allocation65_spill] sm:$0xff] }
 0x6ce   :  { %8686 = vpow2.f32 %v7595_v31 }
 0x6cf   :  { %8688 = vtanh.f32 %v5351_v56  ;;  %v11255_v56 = vld [vmem:[#allocation63_spill] sm:$0xff] }
 0x6d6   :  { %v8683_v34 = vpop.eup %8682 }
 0x6d7   :  { %v8685_v33 = vpop.eup %8684  ;;  %v5356_v17 = vadd.f32 1.0, %v8683_v34 }
 0x6d8   :  { %v5362_v16 = vadd.f32 1.0, %v8685_v33  ;;  %v8687_v18 = vpop.eup %8686 }
 0x6d9   :  { %8690 = vrcp.f32 %v5356_v17  ;;  %v8689_v50 = vpop.eup %8688  ;;  %v5369_v15 = vadd.f32 1.0, %v8687_v18 }
 0x6da   :  { %8692 = vrcp.f32 %v5362_v16 }
 0x6db   :  { %8694 = vrcp.f32 %v5369_v15 }
 0x6e3   :  { %v8691_v61 = vpop.eup %8690 }
 0x6e4   :  { %v8693_v58 = vpop.eup %8692  ;;  %v5373_v37 = vmul.f32 %v8691_v61, %v8689_v50 }
 0x6e5   :  { %v5372_v48 = vmul.f32 %v8693_v58, %v10598_v63  ;;  %v8695_v58 = vpop.eup %8694 }
 0x6e7   :  { %v5374_v59 = vadd.f32 %v5373_v37, %v5372_v48  ;;  %v5621_v7 = vpop.f32.mrb[76].mxu0  ;;  %v5662_v21 = vpop.f32.mrb[76].mxu1 }
 0x6e8   :  { %v5669_v10 = vadd.f32 %v11254_v53, %v5621_v7  ;;  %v5671_v49 = vadd.f32 %v11255_v56, %v5662_v21  ;;  %v5623_v22 = vpop.f32.mrb[77].mxu0  ;;  %v5664_v19 = vpop.f32.mrb[77].mxu1  ;;  %v10773_v56 = vld [vmem:[#allocation13] ss:$16 sps:$4 sm:$0xff]  }
 0x6e9   :  { %8696 = vtanh.f32 %v5374_v59  ;;  %v5670_v52 = vadd.f32 %v11256_v13, %v5623_v22  ;;  %v5672_v31 = vadd.f32 %v11257_v20, %v5664_v19  ;;  %v5625_v34 = vpop.f32.mrb[78].mxu0  ;;  %v5666_v33 = vpop.f32.mrb[78].mxu1  ;;  %v10766_v17 = vsel %vm5383_vm4, %v5374_v59, %v10598_v63  ;;  %v10775_v63 = vld [vmem:[#allocation13 + $0x8] ss:$16 sps:$4 sm:$0xff]   ;;  %v10779_v13 = vld [vmem:[#allocation13 + $0x24] ss:$16 sps:$4 sm:$0xff]  }
 0x6ea   :  { %v7629_v16 = vmul.f32 -1.442695, %v5669_v10  ;;  %v5626_v18 = vpop.f32.mrb[79].mxu0  ;;  %v5667_v50 = vpop.f32.mrb[79].mxu1  ;;  %v10787_v20 = vld [vmem:[#allocation13 + $0x28] ss:$16 sps:$4 sm:$0xff]  }
 0x6eb   :  { %v7630_v61 = vmul.f32 -1.442695, %v5670_v52  ;;  %v7631_v15 = vmul.f32 -1.442695, %v5672_v31  ;;  %v10781_v52 = vld [vmem:[#allocation13 + $0x2c] ss:$16 sps:$4 sm:$0xff]  }
 0x6ec   :  { %8698 = vpow2.f32 %v7629_v16  ;;  %v10791_v31 = vld [vmem:[#allocation13 + $0x44] ss:$16 sps:$4 sm:$0xff]   ;;  %v10799_v34 = vld [vmem:[#allocation13 + $0x40] ss:$16 sps:$4 sm:$0xff]   ;;  %v10801_v33 = vld [vmem:[#allocation13 + $0x48] ss:$16 sps:$4 sm:$0xff]  }
 0x6ed   :  { %8700 = vpow2.f32 %v7630_v61  ;;  %11258 = vst [vmem:[#allocation26_spill] sm:$0xff] %v10801_v33  ;;  %v10805_v16 = vld [vmem:[#allocation13 + $0x64] ss:$16 sps:$4 sm:$0xff]   ;;  %v10807_v18 = vld [vmem:[#allocation13 + $0x6c] ss:$16 sps:$4 sm:$0xff]  }
 0x6ee   :  { %8702 = vpow2.f32 %v7631_v15  ;;  %11259 = vst [vmem:[#allocation27_spill] sm:$0xff] %v10805_v16  ;;  %11260 = vst [vmem:[#allocation28_spill] sm:$0xff] %v10807_v18 }
 0x6ef   :  { %8704 = vtanh.f32 %v5671_v49  ;;  %v10793_v49 = vld [vmem:[#allocation13 + $0x4c] ss:$16 sps:$4 sm:$0xff]  }
 0x6f3   :  { %v8697_v37 = vpop.eup %8696 }
 0x6f4   :  { %v5376_v48 = vmul.f32 %v8697_v37, %v8695_v58  ;;  %v10811_v58 = vld [vmem:[#allocation13 + $0x60] ss:$16 sps:$4 sm:$0xff]   ;;  %v10813_v37 = vld [vmem:[#allocation13 + $0x68] ss:$16 sps:$4 sm:$0xff]  }
 0x6f6   :  { %v8699_v7 = vpop.eup %8698  ;;  %v10770_v21 = vsel %vm5383_vm4, %v5376_v48, %v10602_v9  ;;  %v5386_v53 = vsel %vm5383_vm4, %v5376_v48, 0.0  ;;  %v10817_v48 = vld [vmem:[#allocation13 + $0x84] ss:$16 sps:$4 sm:$0xff]  }
 0x6f7   :  { %v8701_v59 = vpop.eup %8700  ;;  %v5676_v10 = vadd.f32 1.0, %v8699_v7  ;;  %v5387_v22 = vpack.c.bf16 %v5386_v53, %v5386_v53  ;;  %v5714_v19 = vpack.c.bf16 %v10770_v21, %v10770_v21  ;;  %v10819_v7 = vld [vmem:[#allocation13 + $0x8c] ss:$16 sps:$4 sm:$0xff]  }
 0x6f8   :  { %v5682_v9 = vadd.f32 1.0, %v8701_v59  ;;  %v8703_v50 = vpop.eup %8702 }
 0x6f9   :  { %8706 = vrcp.f32 %v5676_v10  ;;  %5388 = vst [vmem:[#allocation14 + $0x14] sm:$0xf] %v5387_v22  ;;  %5940 = vmatmul.mubr.bf16.vlgmr.msra.gmra.mrb[80].mxu0 %v5714_v19  ;;  %5981 = vmatmul.mubr.bf16.vlgmr.msra.gmra.mrb[80].mxu1 %v5714_v19  ;;  %v8705_v61 = vpop.eup %8704  ;;  %v5689_v10 = vadd.f32 1.0, %v8703_v50  ;;  %v10824_v19 = vld [vmem:[#allocation13 + $0x80] ss:$16 sps:$4 sm:$0xff]  }
 0x6fa   :  { %8708 = vrcp.f32 %v5682_v9  ;;  %6228 = vmatpush1.bf16.msra.mxu0 %v10773_v56  ;;  %6269 = vmatpush1.bf16.msra.mxu1 %v10775_v63  ;;  %11261 = vst [vmem:[#allocation29_spill] sm:$0xff] %v10824_v19  ;;  %v10826_v9 = vld [vmem:[#allocation13 + $0x88] ss:$16 sps:$4 sm:$0xff]  }
 0x6fb   :  { %6229 = vmatprep.subr.bf16.mxu0 %v10779_v13  ;;  %6270 = vmatprep.subr.bf16.mxu1 %v10781_v52  ;;  %11262 = vst [vmem:[#allocation78_spill] sm:$0xff] %v10826_v9  ;;  %8710 = vrcp.f32 %v5689_v10  ;;  %v10848_v10 = vld [vmem:[#allocation13 + $0xcc] ss:$16 sps:$4 sm:$0xff]  }
 0x6fc   :  { %6259 = vmatprep.mubr.bf16.mxu0 %v11112_v55  ;;  %6300 = vmatprep.mubr.bf16.mxu1 %v11112_v55  ;;  %11268 = vst [vmem:[#allocation36_spill] sm:$0xff] %v10848_v10 }
 0x6fe   :  { %6230 = vmatpush1.bf16.msra.mxu0 %v10785_v51  ;;  %6271 = vmatpush1.bf16.msra.mxu1 %v10787_v20 }
 0x6ff   :  { %6231 = vmatprep.subr.bf16.mxu0 %v10791_v31  ;;  %6272 = vmatprep.subr.bf16.mxu1 %v10793_v49 }
 0x702   :  { %6232 = vmatpush1.bf16.msra.mxu0 %v10799_v34  ;;  %6273 = vmatpush1.bf16.msra.mxu1 %v10801_v33 }
 0x703   :  { %v8707_v15 = vpop.eup %8706  ;;  %6233 = vmatprep.subr.bf16.mxu0 %v10805_v16  ;;  %6274 = vmatprep.subr.bf16.mxu1 %v10807_v18  ;;  %v5702_v16 = vpop.permute.xlu1 %5701  ;;  %v10830_v18 = vld [vmem:[#allocation13 + $0xa4] ss:$16 sps:$4 sm:$0xff]  }
 0x704   :  { %v8709_v53 = vpop.eup %8708  ;;  %v5693_v59 = vmul.f32 %v8707_v15, %v8705_v61  ;;  %11263 = vst [vmem:[#allocation79_spill] sm:$0xff] %v10830_v18  ;;  %v10832_v61 = vld [vmem:[#allocation13 + $0xac] ss:$16 sps:$4 sm:$0xff]   ;;  %vm5703_vm5 = vcmp.eq.s32.totalorder %v5702_v16, 1  ;;  %v10840_v15 = vld [vmem:[#allocation13 + $0xa0] ss:$16 sps:$4 sm:$0xff]  }
 0x705   :  { %v5692_v22 = vmul.f32 %v8709_v53, %v10628_v14  ;;  %11264 = vst [vmem:[#allocation80_spill] sm:$0xff] %v10832_v61  ;;  %11265 = vst [vmem:[#allocation81_spill] sm:$0xff] %v10840_v15  ;;  %v10842_v53 = vld [vmem:[#allocation13 + $0xa8] ss:$16 sps:$4 sm:$0xff]  }
 0x706   :  { %6234 = vmatpush1.bf16.msra.mxu0 %v10811_v58  ;;  %6275 = vmatpush1.bf16.msra.mxu1 %v10813_v37  ;;  %11266 = vst [vmem:[#allocation34_spill] sm:$0xff] %v10842_v53 }
 0x707   :  { %v5694_v33 = vadd.f32 %v5693_v59, %v5692_v22  ;;  %6235 = vmatprep.subr.bf16.mxu0 %v10817_v48  ;;  %6276 = vmatprep.subr.bf16.mxu1 %v10819_v7  ;;  %v10846_v59 = vld [vmem:[#allocation13 + $0xc4] ss:$16 sps:$4 sm:$0xff]  }
 0x708   :  { %11267 = vst [vmem:[#allocation35_spill] sm:$0xff] %v10846_v59  ;;  %v10858_v22 = vld [vmem:[#allocation13 + $0xe4] ss:$16 sps:$4 sm:$0xff]  }
 0x709   :  { %8712 = vtanh.f32 %v5694_v33  ;;  %v10836_v50 = vsel %vm5703_vm5, %v5694_v33, %v10628_v14  ;;  %v10852_v14 = vld [vmem:[#allocation13 + $0xc0] ss:$16 sps:$4 sm:$0xff]   ;;  %v10854_v33 = vld [vmem:[#allocation13 + $0xc8] ss:$16 sps:$4 sm:$0xff]  }
 0x70a   :  { %6236 = vmatpush1.bf16.msra.mxu0 %v10824_v19  ;;  %6277 = vmatpush1.bf16.msra.mxu1 %v10826_v9  ;;  %11269 = vst [vmem:[#allocation37_spill] sm:$0xff] %v10852_v14  ;;  %11270 = vst [vmem:[#allocation70_spill] sm:$0xff] %v10854_v33 }
 0x70b   :  { %6237 = vmatprep.subr.bf16.mxu0 %v10830_v18  ;;  %6278 = vmatprep.subr.bf16.mxu1 %v10832_v61  ;;  %v10860_v18 = vld [vmem:[#allocation13 + $0xec] ss:$16 sps:$4 sm:$0xff]   ;;  %v8711_v61 = vpop.eup %8710 }
 0x70e   :  { %6238 = vmatpush1.bf16.msra.mxu0 %v10840_v15  ;;  %6279 = vmatpush1.bf16.msra.mxu1 %v10842_v53  ;;  %v10864_v15 = vld [vmem:[#allocation13 + $0xe0] ss:$16 sps:$4 sm:$0xff]   ;;  %v10866_v53 = vld [vmem:[#allocation13 + $0xe8] ss:$16 sps:$4 sm:$0xff]  }
 0x70f   :  { %6239 = vmatprep.subr.bf16.mxu0 %v10846_v59  ;;  %6280 = vmatprep.subr.bf16.mxu1 %v10848_v10 }
 0x712   :  { %6240 = vmatpush1.bf16.msra.mxu0 %v10852_v14  ;;  %6281 = vmatpush1.bf16.msra.mxu1 %v10854_v33 }
 0x713   :  { %v8713_v9 = vpop.eup %8712  ;;  %6241 = vmatprep.subr.bf16.mxu0 %v10858_v22  ;;  %6282 = vmatprep.subr.bf16.mxu1 %v10860_v18 }
 0x714   :  { %v5696_v59 = vmul.f32 %v8713_v9, %v8711_v61 }
 0x716   :  { %6242 = vmatpush1.bf16.msra.mxu0 %v10864_v15  ;;  %6283 = vmatpush1.bf16.msra.mxu1 %v10866_v53  ;;  %v10874_v10 = vsel %vm5703_vm5, %v5696_v59, %v10646_v54  ;;  %v5706_v33 = vsel %vm5703_vm5, %v5696_v59, 0.0 }
 0x717   :  { %v5707_v14 = vpack.c.bf16 %v5706_v33, %v5706_v33  ;;  %v6034_v19 = vpack.c.bf16 %v10874_v10, %v10874_v10  ;;  %6547 = vmatprep.subr.bf16.mxu0 %v10653_v62  ;;  %6588 = vmatprep.subr.bf16.mxu1 %v10655_v25  ;;  %v11271_v25 = vld [vmem:[#allocation46_spill] sm:$0xff] }
 0x719   :  { %5708 = vst [vmem:[#allocation15 + $0x8] sm:$0xf] %v5707_v14  ;;  %6260 = vmatmul.mubr.bf16.vlgmr.msra.gmra.mrb[84].mxu0 %v6034_v19  ;;  %6301 = vmatmul.mubr.bf16.vlgmr.msra.gmra.mrb[84].mxu1 %v6034_v19  ;;  %v11276_v19 = vld [vmem:[#allocation59_spill] sm:$0xff]  ;;  %v11277_v14 = vld [vmem:[#allocation60_spill] sm:$0xff] }
 0x71a   :  { %6548 = vmatpush1.bf16.msra.mxu0 %v10657_v1  ;;  %6589 = vmatpush1.bf16.msra.mxu1 %v10659_v32  ;;  %v11272_v32 = vld [vmem:[#allocation47_spill] sm:$0xff] }
 0x71b   :  { %6549 = vmatprep.subr.bf16.mxu0 %v10665_v57  ;;  %6590 = vmatprep.subr.bf16.mxu1 %v10667_v12 }
 0x71c   :  { %6579 = vmatprep.mubr.bf16.mxu0 %v11112_v55  ;;  %6620 = vmatprep.mubr.bf16.mxu1 %v11112_v55 }
 0x71e   :  { %6550 = vmatpush1.bf16.msra.mxu0 %v10669_v41  ;;  %6591 = vmatpush1.bf16.msra.mxu1 %v10671_v29  ;;  %v11273_v29 = vld [vmem:[#allocation48_spill] sm:$0xff] }
 0x71f   :  { %6551 = vmatprep.subr.bf16.mxu0 %v10677_v42  ;;  %6592 = vmatprep.subr.bf16.mxu1 %v10679_v47  ;;  %v11274_v47 = vld [vmem:[#allocation49_spill] sm:$0xff] }
 0x722   :  { %6552 = vmatpush1.bf16.msra.mxu0 %v10681_v30  ;;  %6593 = vmatpush1.bf16.msra.mxu1 %v10683_v44 }
 0x723   :  { %6553 = vmatprep.subr.bf16.mxu0 %v10689_v39  ;;  %6594 = vmatprep.subr.bf16.mxu1 %v10691_v36 }
 0x726   :  { %6554 = vmatpush1.bf16.msra.mxu0 %v10693_v40  ;;  %6595 = vmatpush1.bf16.msra.mxu1 %v10695_v43 }
 0x727   :  { %6555 = vmatprep.subr.bf16.mxu0 %v10701_v23  ;;  %6596 = vmatprep.subr.bf16.mxu1 %v10703_v3 }
 0x72a   :  { %6556 = vmatpush1.bf16.msra.mxu0 %v10705_v2  ;;  %6597 = vmatpush1.bf16.msra.mxu1 %v10707_v4 }
 0x72b   :  { %6557 = vmatprep.subr.bf16.mxu0 %v10713_v38  ;;  %6598 = vmatprep.subr.bf16.mxu1 %v10715_v60 }
 0x72e   :  { %6558 = vmatpush1.bf16.msra.mxu0 %v10717_v6  ;;  %6599 = vmatpush1.bf16.msra.mxu1 %v10719_v0 }
 0x72f   :  { %6559 = vmatprep.subr.bf16.mxu0 %v10725_v8  ;;  %6600 = vmatprep.subr.bf16.mxu1 %v10727_v11 }
 0x732   :  { %6560 = vmatpush1.bf16.msra.mxu0 %v10729_v26  ;;  %6601 = vmatpush1.bf16.msra.mxu1 %v10731_v5 }
 0x733   :  { %6561 = vmatprep.subr.bf16.mxu0 %v10737_v46  ;;  %6602 = vmatprep.subr.bf16.mxu1 %v10739_v24  ;;  %v6022_v24 = vpop.permute.xlu0 %6021 }
 0x734   :  { %vm6023_vm6 = vcmp.eq.s32.totalorder %v6022_v24, 1 }
 0x736   :  { %6562 = vmatpush1.bf16.msra.mxu0 %v10741_v28  ;;  %6603 = vmatpush1.bf16.msra.mxu1 %v10743_v35 }
 0x737   :  { %6866 = vmatprep.subr.bf16.mxu0 %v10749_v45  ;;  %6907 = vmatprep.subr.bf16.mxu1 %v10751_v27  ;;  %v11275_v27 = vld [vmem:[#allocation58_spill] sm:$0xff] }
 0x7cc   :  { %v5941_v54 = vpop.f32.mrb[80].mxu0  ;;  %v5982_v62 = vpop.f32.mrb[80].mxu1 }
 0x7cd   :  { %v5989_v1 = vadd.f32 %v11271_v25, %v5941_v54  ;;  %v5991_v57 = vadd.f32 %v11272_v32, %v5982_v62  ;;  %v5943_v12 = vpop.f32.mrb[81].mxu0  ;;  %v5984_v41 = vpop.f32.mrb[81].mxu1  ;;  %v11278_v54 = vld [vmem:[#allocation61_spill] sm:$0xff] }
 0x7ce   :  { %v5990_v42 = vadd.f32 %v11273_v29, %v5943_v12  ;;  %v5992_v30 = vadd.f32 %v11274_v47, %v5984_v41  ;;  %v5945_v44 = vpop.f32.mrb[82].mxu0  ;;  %v5986_v39 = vpop.f32.mrb[82].mxu1 }
 0x7cf   :  { %v7665_v36 = vmul.f32 -1.442695, %v5989_v1  ;;  %v5946_v40 = vpop.f32.mrb[83].mxu0  ;;  %v5987_v43 = vpop.f32.mrb[83].mxu1 }
 0x7d0   :  { %v7666_v23 = vmul.f32 -1.442695, %v5990_v42  ;;  %v7667_v3 = vmul.f32 -1.442695, %v5992_v30 }
 0x7d1   :  { %8714 = vpow2.f32 %v7665_v36 }
 0x7d2   :  { %8716 = vpow2.f32 %v7666_v23 }
 0x7d3   :  { %8718 = vpow2.f32 %v7667_v3 }
 0x7d4   :  { %8720 = vtanh.f32 %v5991_v57 }
 0x7db   :  { %v8715_v2 = vpop.eup %8714 }
 0x7dc   :  { %v8717_v4 = vpop.eup %8716  ;;  %v5996_v38 = vadd.f32 1.0, %v8715_v2 }
 0x7dd   :  { %v6002_v60 = vadd.f32 1.0, %v8717_v4  ;;  %v8719_v6 = vpop.eup %8718  ;;  %v11281_v4 = vld [vmem:[#allocation28_spill] sm:$0xff] }
 0x7de   :  { %8722 = vrcp.f32 %v5996_v38  ;;  %v8721_v0 = vpop.eup %8720  ;;  %v6009_v5 = vadd.f32 1.0, %v8719_v6  ;;  %v11283_v6 = vld [vmem:[#allocation78_spill] sm:$0xff] }
 0x7df   :  { %8724 = vrcp.f32 %v6002_v60  ;;  %v11282_v60 = vld [vmem:[#allocation29_spill] sm:$0xff] }
 0x7e0   :  { %8726 = vrcp.f32 %v6009_v5 }
 0x7e8   :  { %v8723_v8 = vpop.eup %8722 }
 0x7e9   :  { %v8725_v11 = vpop.eup %8724  ;;  %v6013_v26 = vmul.f32 %v8723_v8, %v8721_v0  ;;  %v11286_v0 = vld [vmem:[#allocation81_spill] sm:$0xff]  ;;  %v11289_v8 = vld [vmem:[#allocation36_spill] sm:$0xff] }
 0x7ea   :  { %v6012_v46 = vmul.f32 %v8725_v11, %v10766_v17  ;;  %v8727_v42 = vpop.eup %8726 }
 0x7ec   :  { %v6014_v28 = vadd.f32 %v6013_v26, %v6012_v46  ;;  %v6261_v35 = vpop.f32.mrb[84].mxu0  ;;  %v6302_v45 = vpop.f32.mrb[84].mxu1  ;;  %v11290_v26 = vld [vmem:[#allocation37_spill] sm:$0xff] }
 0x7ed   :  { %v6309_v16 = vadd.f32 %v11275_v27, %v6261_v35  ;;  %v6311_v9 = vadd.f32 %v11276_v19, %v6302_v45  ;;  %v6263_v61 = vpop.f32.mrb[85].mxu0  ;;  %v6304_v59 = vpop.f32.mrb[85].mxu1  ;;  %v11292_v27 = vld [vmem:[#allocation50_spill] sm:$0xff] }
 0x7ee   :  { %8728 = vtanh.f32 %v6014_v28  ;;  %v6310_v33 = vadd.f32 %v11277_v14, %v6263_v61  ;;  %v6312_v62 = vadd.f32 %v11278_v54, %v6304_v59  ;;  %v6265_v25 = vpop.f32.mrb[86].mxu0  ;;  %v6306_v1 = vpop.f32.mrb[86].mxu1  ;;  %v10926_v32 = vsel %vm6023_vm6, %v6014_v28, %v10766_v17  ;;  %v11294_v61 = vld [vmem:[#allocation52_spill] sm:$0xff]  ;;  %v11295_v59 = vld [vmem:[#allocation53_spill] sm:$0xff] }
 0x7ef   :  { %v7701_v57 = vmul.f32 -1.442695, %v6309_v16  ;;  %v6266_v12 = vpop.f32.mrb[87].mxu0  ;;  %v6307_v41 = vpop.f32.mrb[87].mxu1 }
 0x7f0   :  { %v7702_v29 = vmul.f32 -1.442695, %v6310_v33  ;;  %v7703_v30 = vmul.f32 -1.442695, %v6312_v62 }
 0x7f1   :  { %8730 = vpow2.f32 %v7701_v57 }
 0x7f2   :  { %8732 = vpow2.f32 %v7702_v29 }
 0x7f3   :  { %8734 = vpow2.f32 %v7703_v30 }
 0x7f4   :  { %8736 = vtanh.f32 %v6311_v9 }
 0x7f8   :  { %v8729_v47 = vpop.eup %8728 }
 0x7f9   :  { %v6016_v44 = vmul.f32 %v8729_v47, %v8727_v42 }
 0x7fb   :  { %v8731_v39 = vpop.eup %8730  ;;  %v10930_v36 = vsel %vm6023_vm6, %v6016_v44, %v10770_v21  ;;  %v6026_v40 = vsel %vm6023_vm6, %v6016_v44, 0.0 }
 0x7fc   :  { %v8733_v43 = vpop.eup %8732  ;;  %v6316_v17 = vadd.f32 1.0, %v8731_v39  ;;  %v6027_v23 = vpack.c.bf16 %v6026_v40, %v6026_v40  ;;  %v6354_v3 = vpack.c.bf16 %v10930_v36, %v10930_v36 }
 0x7fd   :  { %v6322_v2 = vadd.f32 1.0, %v8733_v43  ;;  %v8735_v21 = vpop.eup %8734 }
 0x7fe   :  { %8738 = vrcp.f32 %v6316_v17  ;;  %6028 = vst [vmem:[#allocation14 + $0x18] sm:$0xf] %v6027_v23  ;;  %6580 = vmatmul.mubr.bf16.vlgmr.msra.gmra.mrb[88].mxu0 %v6354_v3  ;;  %6621 = vmatmul.mubr.bf16.vlgmr.msra.gmra.mrb[88].mxu1 %v6354_v3 }
 0x7ff   :  { %8740 = vrcp.f32 %v6322_v2  ;;  %6867 = vmatpush1.bf16.msra.mxu0 %v10773_v56  ;;  %6908 = vmatpush1.bf16.msra.mxu1 %v10775_v63  ;;  %v8737_v56 = vpop.eup %8736  ;;  %v11279_v63 = vld [vmem:[#allocation26_spill] sm:$0xff] }
 0x800   :  { %6868 = vmatprep.subr.bf16.mxu0 %v10779_v13  ;;  %6909 = vmatprep.subr.bf16.mxu1 %v10781_v52  ;;  %v11280_v52 = vld [vmem:[#allocation27_spill] sm:$0xff] }
 0x801   :  { %6898 = vmatprep.mubr.bf16.mxu0 %v11112_v55  ;;  %6939 = vmatprep.mubr.bf16.mxu1 %v11112_v55 }
 0x803   :  { %6869 = vmatpush1.bf16.msra.mxu0 %v10785_v51  ;;  %6910 = vmatpush1.bf16.msra.mxu1 %v10787_v20  ;;  %v6329_v51 = vadd.f32 1.0, %v8735_v21 }
 0x804   :  { %6870 = vmatprep.subr.bf16.mxu0 %v10791_v31  ;;  %6911 = vmatprep.subr.bf16.mxu1 %v10793_v49  ;;  %v6342_v31 = vpop.permute.xlu1 %6341 }
 0x805   :  { %vm6343_vm7 = vcmp.eq.s32.totalorder %v6342_v31, 1  ;;  %8742 = vrcp.f32 %v6329_v51 }
 0x807   :  { %6871 = vmatpush1.bf16.msra.mxu0 %v10799_v34  ;;  %6912 = vmatpush1.bf16.msra.mxu1 %v11279_v63 }
 0x808   :  { %v8739_v13 = vpop.eup %8738  ;;  %6872 = vmatprep.subr.bf16.mxu0 %v11280_v52  ;;  %6913 = vmatprep.subr.bf16.mxu1 %v11281_v4 }
 0x809   :  { %v8741_v55 = vpop.eup %8740  ;;  %v6333_v38 = vmul.f32 %v8739_v13, %v8737_v56  ;;  %v11296_v56 = vld [vmem:[#allocation54_spill] sm:$0xff]  ;;  %v11297_v13 = vld [vmem:[#allocation55_spill] sm:$0xff] }
 0x80a   :  { %v6332_v20 = vmul.f32 %v8741_v55, %v10836_v50 }
 0x80b   :  { %6873 = vmatpush1.bf16.msra.mxu0 %v10811_v58  ;;  %6914 = vmatpush1.bf16.msra.mxu1 %v10813_v37  ;;  %v11284_v58 = vld [vmem:[#allocation79_spill] sm:$0xff]  ;;  %v11285_v37 = vld [vmem:[#allocation80_spill] sm:$0xff] }
 0x80c   :  { %v6334_v49 = vadd.f32 %v6333_v38, %v6332_v20  ;;  %6874 = vmatprep.subr.bf16.mxu0 %v10817_v48  ;;  %6915 = vmatprep.subr.bf16.mxu1 %v10819_v7  ;;  %v11287_v48 = vld [vmem:[#allocation34_spill] sm:$0xff]  ;;  %v11288_v7 = vld [vmem:[#allocation35_spill] sm:$0xff]  ;;  %v11298_v38 = vld [vmem:[#allocation56_spill] sm:$0xff] }
 0x80d   :  { %v11299_v20 = vld [vmem:[#allocation57_spill] sm:$0xff] }
 0x80e   :  { %8744 = vtanh.f32 %v6334_v49  ;;  %v10956_v34 = vsel %vm6343_vm7, %v6334_v49, %v10836_v50  ;;  %v11291_v50 = vld [vmem:[#allocation70_spill] sm:$0xff] }
 0x80f   :  { %6875 = vmatpush1.bf16.msra.mxu0 %v11282_v60  ;;  %6916 = vmatpush1.bf16.msra.mxu1 %v11283_v6  ;;  %v8743_v11 = vpop.eup %8742 }
 0x810   :  { %6876 = vmatprep.subr.bf16.mxu0 %v11284_v58  ;;  %6917 = vmatprep.subr.bf16.mxu1 %v11285_v37 }
 0x813   :  { %6877 = vmatpush1.bf16.msra.mxu0 %v11286_v0  ;;  %6918 = vmatpush1.bf16.msra.mxu1 %v11287_v48  ;;  %v6662_v48 = vpop.permute.xlu0 %6661 }
 0x814   :  { %6878 = vmatprep.subr.bf16.mxu0 %v11288_v7  ;;  %6919 = vmatprep.subr.bf16.mxu1 %v11289_v8  ;;  %vm6663_vm8 = vcmp.eq.s32.totalorder %v6662_v48, 1 }
 0x817   :  { %6879 = vmatpush1.bf16.msra.mxu0 %v11290_v26  ;;  %6920 = vmatpush1.bf16.msra.mxu1 %v11291_v50 }
 0x818   :  { %v8745_v5 = vpop.eup %8744  ;;  %6880 = vmatprep.subr.bf16.mxu0 %v10858_v22  ;;  %6921 = vmatprep.subr.bf16.mxu1 %v10860_v18 }
 0x819   :  { %v6336_v46 = vmul.f32 %v8745_v5, %v8743_v11 }
 0x81b   :  { %6881 = vmatpush1.bf16.msra.mxu0 %v10864_v15  ;;  %6922 = vmatpush1.bf16.msra.mxu1 %v10866_v53  ;;  %v10974_v24 = vsel %vm6343_vm7, %v6336_v46, %v10874_v10  ;;  %v6346_v28 = vsel %vm6343_vm7, %v6336_v46, 0.0  ;;  %v11293_v15 = vld [vmem:[#allocation51_spill] sm:$0xff] }
 0x81c   :  { %v6347_v35 = vpack.c.bf16 %v6346_v28, %v6346_v28  ;;  %v6673_v45 = vpack.c.bf16 %v10974_v24, %v10974_v24 }
 0x81e   :  { %6348 = vst [vmem:[#allocation15 + $0x4] sm:$0xf] %v6347_v35  ;;  %6899 = vmatmul.mubr.bf16.vlgmr.msra.gmra.mrb[92].mxu0 %v6673_v45  ;;  %6940 = vmatmul.mubr.bf16.vlgmr.msra.gmra.mrb[92].mxu1 %v6673_v45 }
 0x8d1   :  { %v6581_v22 = vpop.f32.mrb[88].mxu0  ;;  %v6622_v18 = vpop.f32.mrb[88].mxu1 }
 0x8d2   :  { %v6629_v16 = vadd.f32 %v11292_v27, %v6581_v22  ;;  %v6631_v19 = vadd.f32 %v11293_v15, %v6622_v18  ;;  %v6583_v53 = vpop.f32.mrb[89].mxu0  ;;  %v6624_v9 = vpop.f32.mrb[89].mxu1 }
 0x8d3   :  { %v6630_v10 = vadd.f32 %v11294_v61, %v6583_v53  ;;  %v6632_v14 = vadd.f32 %v11295_v59, %v6624_v9  ;;  %v6585_v33 = vpop.f32.mrb[90].mxu0  ;;  %v6626_v54 = vpop.f32.mrb[90].mxu1 }
 0x8d4   :  { %v7737_v62 = vmul.f32 -1.442695, %v6629_v16  ;;  %v6586_v25 = vpop.f32.mrb[91].mxu0  ;;  %v6627_v1 = vpop.f32.mrb[91].mxu1 }
 0x8d5   :  { %v7738_v57 = vmul.f32 -1.442695, %v6630_v10  ;;  %v7739_v12 = vmul.f32 -1.442695, %v6632_v14 }
 0x8d6   :  { %8746 = vpow2.f32 %v7737_v62 }
 0x8d7   :  { %8748 = vpow2.f32 %v7738_v57 }
 0x8d8   :  { %8750 = vpow2.f32 %v7739_v12 }
 0x8d9   :  { %8752 = vtanh.f32 %v6631_v19 }
 0x8e0   :  { %v8747_v41 = vpop.eup %8746 }
 0x8e1   :  { %v8749_v29 = vpop.eup %8748  ;;  %v6636_v42 = vadd.f32 1.0, %v8747_v41 }
 0x8e2   :  { %v6642_v47 = vadd.f32 1.0, %v8749_v29  ;;  %v8751_v30 = vpop.eup %8750 }
 0x8e3   :  { %8754 = vrcp.f32 %v6636_v42  ;;  %v8753_v44 = vpop.eup %8752  ;;  %v6649_v17 = vadd.f32 1.0, %v8751_v30 }
 0x8e4   :  { %8756 = vrcp.f32 %v6642_v47 }
 0x8e5   :  { %8758 = vrcp.f32 %v6649_v17 }
 0x8ed   :  { %v8755_v39 = vpop.eup %8754 }
 0x8ee   :  { %v8757_v40 = vpop.eup %8756  ;;  %v6653_v43 = vmul.f32 %v8755_v39, %v8753_v44 }
 0x8ef   :  { %v6652_v23 = vmul.f32 %v8757_v40, %v10926_v32  ;;  %v8759_v0 = vpop.eup %8758 }
 0x8f1   :  { %v6654_v3 = vadd.f32 %v6653_v43, %v6652_v23  ;;  %v6900_v2 = vpop.f32.mrb[92].mxu0  ;;  %v6941_v21 = vpop.f32.mrb[92].mxu1 }
 0x8f2   :  { %v6948_v63 = vadd.f32 %v11296_v56, %v6900_v2  ;;  %v6950_v52 = vadd.f32 %v11297_v13, %v6941_v21  ;;  %v6902_v4 = vpop.f32.mrb[93].mxu0  ;;  %v6943_v55 = vpop.f32.mrb[93].mxu1 }
 0x8f3   :  { %8760 = vtanh.f32 %v6654_v3  ;;  %v6949_v51 = vadd.f32 %v11298_v38, %v6902_v4  ;;  %v6951_v31 = vadd.f32 %v11299_v20, %v6943_v55  ;;  %v6904_v49 = vpop.f32.mrb[94].mxu0  ;;  %v6945_v60 = vpop.f32.mrb[94].mxu1 }
 0x8f4   :  { %v7773_v6 = vmul.f32 -1.442695, %v6948_v63  ;;  %v6905_v58 = vpop.f32.mrb[95].mxu0  ;;  %v6946_v32 = vpop.f32.mrb[95].mxu1 }
 0x8f5   :  { %v7774_v37 = vmul.f32 -1.442695, %v6949_v51  ;;  %v7775_v8 = vmul.f32 -1.442695, %v6951_v31 }
 0x8f6   :  { %8762 = vpow2.f32 %v7773_v6 }
 0x8f7   :  { %8764 = vpow2.f32 %v7774_v37 }
 0x8f8   :  { %8766 = vpow2.f32 %v7775_v8 }
 0x8f9   :  { %8768 = vtanh.f32 %v6950_v52 }
 0x8fd   :  { %v8761_v7 = vpop.eup %8760 }
 0x8fe   :  { %v6656_v11 = vmul.f32 %v8761_v7, %v8759_v0 }
 0x900   :  { %v8763_v26 = vpop.eup %8762  ;;  %v6664_v50 = vsel %vm6663_vm8, %v6656_v11, %v10930_v36  ;;  %v6666_v5 = vsel %vm6663_vm8, %v6656_v11, 0.0 }
 0x901   :  { %v8765_v46 = vpop.eup %8764  ;;  %v6667_v28 = vpack.c.bf16 %v6666_v5, %v6666_v5  ;;  %6995 = vst [vmem:[%s11042_s15] sm:$0xff] %v6664_v50  ;;  %v6955_v35 = vadd.f32 1.0, %v8763_v26 }
 0x902   :  { %v6961_v45 = vadd.f32 1.0, %v8765_v46 }
 0x903   :  { %6668 = vst [vmem:[#allocation14 + $0x1c] sm:$0xf] %v6667_v28  ;;  %8770 = vrcp.f32 %v6955_v35 }
 0x904   :  { %8772 = vrcp.f32 %v6961_v45 }
 0x905   :  { %8855 = shalt.err (!%p8852_p0)
}
 0x906   :  { %s8856_s29 = scalar_lea.hbm %s11040_s13, 512 }
 0x907   :  { %p8857_p1 = scmp.ne.s32.totalorder %s11040_s13, %s8856_s29  ;;  %p8860_p2 = scmp.lt.u32.totalorder %s8856_s29, %s11040_s13 }
 0x909   :  { %p8862_p3 = pnand %p8860_p2, %p8857_p1 }
 0x90b   :  { %8865 = shalt.err (!%p8862_p3)
}
 0x90c   :  { %s8904_s5 = smov 64   ;;  %s8905_s3 = smov 4   ;;  %v8767_v36 = vpop.eup %8766  ;;  %v6981_v61 = vpop.permute.xlu1 %6980 }
 0x90d   :  { %7008 = dma.vmem_to_hbm [thread:$0]  %s7003_s25, 512, %s11040_s13, [#allocation10], %s8904_s5, %s8904_s5, %s8905_s3   ;;  %v8769_v22 = vpop.eup %8768  ;;  %v6968_v15 = vadd.f32 1.0, %v8767_v36  ;;  %vm6982_vm9 = vcmp.eq.s32.totalorder %v6981_v61, 1 }
 0x90e   :  { %v8771_v18 = vpop.eup %8770  ;;  %s8906_s1 = smov [#allocation15]  }
 0x90f   :  { %v8773_v27 = vpop.eup %8772  ;;  %v6972_v16 = vmul.f32 %v8771_v18, %v8769_v22  ;;  %8774 = vrcp.f32 %v6968_v15  ;;  %s7018_s22 = sshll.u32 %s8906_s1, 4  ;;  %s7019_s22 = int_to_ptr.vmem [resolvable:$true] %s7018_s22 }
 0x910   :  { %v6971_v19 = vmul.f32 %v8773_v27, %v10956_v34  ;;  %s8866_s12 = scalar_lea.vmem %s7019_s22, 512  ;;  %p8871_p5 = scmp.lt.s32.totalorder %s7019_s22, %s7019_s22 }
 0x911   :  { %p8867_p4 = scmp.ne.s32.totalorder %s7019_s22, %s8866_s12  ;;  %p8872_p6 = scmp.lt.s32.totalorder %s8866_s12, %s8866_s12 }
 0x912   :  { %v6973_v53 = vadd.f32 %v6972_v16, %v6971_v19 }
 0x913   :  { %p8873_p7 = por %p8872_p6, %p8871_p5 }
 0x914   :  { %8776 = vtanh.f32 %v6973_v53 }
 0x915   :  { %p8874_p8 = pnand %p8873_p7, %p8867_p4 }
 0x919   :  { %v8775_v9 = vpop.eup %8774 }
 0x91e   :  { %v8777_v10 = vpop.eup %8776 }
 0x91f   :  { %v6975_v59 = vmul.f32 %v8777_v10, %v8775_v9 }
 0x921   :  { %v6983_v14 = vsel %vm6982_vm9, %v6975_v59, %v10974_v24  ;;  %v6985_v33 = vsel %vm6982_vm9, %v6975_v59, 0.0 }
 0x922   :  { %v6986_v54 = vpack.c.bf16 %v6985_v33, %v6985_v33  ;;  %6996 = vst [vmem:[%s11043_s16] sm:$0xff] %v6983_v14 }
 0x924   :  { %6987 = vst [vmem:[#allocation15] sm:$0xf] %v6986_v54 }
 0x925   :  { %8877 = shalt.err (!%p8874_p8)
}
 0x926   :  { %s8878_s20 = scalar_lea.hbm %s11041_s14, 512 }
 0x927   :  { %p8879_p9 = scmp.ne.s32.totalorder %s11041_s14, %s8878_s20  ;;  %p8882_p10 = scmp.lt.u32.totalorder %s8878_s20, %s11041_s14 }
 0x929   :  { %p8884_p11 = pnand %p8882_p10, %p8879_p9 }
 0x92b   :  { %8887 = shalt.err (!%p8884_p11)
}
 0x92c   :  { %7024 = dma.vmem_to_hbm [thread:$0]  %s7019_s22, 512, %s11041_s14, [#allocation16], %s8904_s5, %s8904_s5, %s8905_s3  }
 0x92d   :  { %8892 = dma.done.wait [#allocation10], 512  }
 0x92e   :  { %8893 = vsyncadd [#allocation10], 4294966784 }
 0x92f   :  { %8894 = dma.done.wait [#allocation16], 512  }
 0x930   :  { %8895 = vsyncadd [#allocation16], 4294966784 }
 0x931   :  { %7039 = vsyncpa [#allocation9], 1 }
 0x932   :  { %7040 = vsyncpa [#allocation12], 1 }
 0x933   :  { %7041 = vsyncpa [#allocation10], 1 }
 0x934   :  { %7042 = vsyncpa [#allocation16], 1 }

</bundles_post_ra>
